<compile_context>
chip_gen: v5e
topology: v5e:2x2
jax: 0.10.0
libtpu: 0.0.40
codegen_flags: <defaults>
</compile_context>

<pallas_src>
import functools

import jax
import jax.numpy as jnp
from jax.experimental import pallas as pl
from jax.experimental.pallas import tpu as pltpu

LANE_PAD = 256  # pad M (lane axis) to this multiple: dense stores + full MXU fill


def _round_up(n, m):
    return (n + m - 1) // m * m


# ----------------------------- Pallas kernel --------------------------------
def _gemm_bias_act_kernel(w_ref, p_ref, b_ref, o_ref, *, act):
    # w_ref: (O, K)  bf16   GEMM weight (deconv phases merged along O)
    # p_ref: (K, M)  bf16   patch matrix, M padded to a multiple of LANE_PAD
    # b_ref: (O, 1)  f32
    # o_ref: (O, M)  bf16 / f32   lane-dense output
    acc = jnp.dot(w_ref[...], p_ref[...], preferred_element_type=jnp.float32)
    acc = acc + b_ref[...]
    if act == "relu":
        acc = jnp.maximum(acc, 0.0)
    elif act == "sigmoid":
        acc = jax.nn.sigmoid(acc)
    o_ref[...] = acc.astype(o_ref.dtype)


def fused_gemm_bias_act(w_g, patches_t, bias, act, out_dtype):
    """act(w_g @ patches_t + bias) as ONE grid-less pallas_call (all VMEM-resident)."""
    O, K = w_g.shape
    Kp, M = patches_t.shape
    assert K == Kp
    vmem = lambda: pl.BlockSpec(memory_space=pltpu.MemorySpace.VMEM)
    return pl.pallas_call(
        functools.partial(_gemm_bias_act_kernel, act=act),
        out_shape=jax.ShapeDtypeStruct((O, M), out_dtype),
        in_specs=[vmem(), vmem(), vmem()],
        out_specs=vmem(),
    )(w_g, patches_t, bias)


# ------------------------- conv lowering (XLA side) ---------------------------
def _pad_lanes(patches_t, m):
    mp = _round_up(m, LANE_PAD)
    if mp != m:
        patches_t = jnp.pad(patches_t, ((0, 0), (0, mp - m)))
    return patches_t


def conv2d_fwd(x, w_g, bias, *, kh, kw, stride, act, out_dtype):
    """x: (C, N, H, W) bf16; w_g: (O, C*kh*kw) bf16 -> (O, N, Ho, Wo) out_dtype."""
    C, N, H, W = x.shape
    Ho = (H - kh) // stride + 1
    Wo = (W - kw) // stride + 1
    taps = []
    for i in range(kh):
        for j in range(kw):
            taps.append(x[:, :, i:i + stride * (Ho - 1) + 1:stride,
                          j:j + stride * (Wo - 1) + 1:stride])
    M = N * Ho * Wo
    patches_t = jnp.stack(taps, axis=1).reshape(C * kh * kw, M)   # K ordered (c,i,j)
    patches_t = _pad_lanes(patches_t, M)
    out = fused_gemm_bias_act(w_g, patches_t, bias, act, out_dtype)   # (O, Mp)
    return out[:, :M].reshape(-1, N, Ho, Wo)


def conv_transpose2d_fwd(x, w_g, bias, *, kh, kw, stride, out_hw, act, out_dtype):
    """Phase-decomposed ConvTranspose2d, exact PyTorch semantics incl. the
    output_padding implied by output_size=out_hw. The 4 phases run as ONE merged
    GEMM: w_g has shape (4*O, C*(kh//2)*(kw//2)), phase-major rows in order
    (0,0),(0,1),(1,0),(1,1)."""
    assert stride == 2 and kh % 2 == 0 and kw % 2 == 0
    C, N, H, W = x.shape
    Ho_t, Wo_t = out_hw
    oph = Ho_t - ((H - 1) * stride + kh)
    opw = Wo_t - ((W - 1) * stride + kw)
    assert 0 <= oph < stride and 0 <= opw < stride
    kh2, kw2 = kh // 2, kw // 2
    MH, MW = (Ho_t + 1) // 2, (Wo_t + 1) // 2        # max per-phase extent
    assert MH >= H and MW >= W
    # Pad once; all 4 output phases read the same padded input with different
    # sub-kernels -> they share one (K, M) patch matrix.
    xp = jnp.pad(x, ((0, 0), (0, 0), (kh2 - 1, MH - H), (kw2 - 1, MW - W)))
    taps = []
    for t in range(kh2):
        for u in range(kw2):
            taps.append(xp[:, :, t:t + MH, u:u + MW])
    M = N * MH * MW
    patches_t = jnp.stack(taps, axis=1).reshape(C * kh2 * kw2, M)
    patches_t = _pad_lanes(patches_t, M)

    out = fused_gemm_bias_act(w_g, patches_t, bias, act, out_dtype)   # (4*O, Mp)
    O = w_g.shape[0] // 4
    # Phase recombination: single transpose+reshape interleave (no strided scatters).
    out = out[:, :M].reshape(2, 2, O, N, MH, MW)                      # [ph, pw, o, n, a, b]
    out = jnp.transpose(out, (2, 3, 4, 0, 5, 1)).reshape(O, N, 2 * MH, 2 * MW)
    return out[:, :, :Ho_t, :Wo_t]


# ------------------------------- forward --------------------------------------
def autoencoder_forward(x_nchw, gp):
    x = jnp.transpose(x_nchw.astype(jnp.bfloat16), (1, 0, 2, 3))      # (C, N, H, W)
    e1 = conv2d_fwd(x, gp["enc1_w"], gp["enc1_b"], kh=16, kw=16, stride=2,
                    act="relu", out_dtype=jnp.bfloat16)
    e2 = conv2d_fwd(e1, gp["enc2_w"], gp["enc2_b"], kh=8, kw=8, stride=2,
                    act="relu", out_dtype=jnp.bfloat16)
    d1 = conv_transpose2d_fwd(e2, gp["dec1_w"], gp["dec1_b"], kh=8, kw=8, stride=2,
                              out_hw=(e1.shape[2], e1.shape[3]), act="relu",
                              out_dtype=jnp.bfloat16)
    d2 = conv_transpose2d_fwd(d1, gp["dec2_w"], gp["dec2_b"], kh=16, kw=16, stride=2,
                              out_hw=(x.shape[2], x.shape[3]), act="sigmoid",
                              out_dtype=jnp.float32)
    return jnp.transpose(d2, (1, 0, 2, 3))                            # back to NCHW


# ------------------------------- params ---------------------------------------
def init_params(key, in_ch, out_ch):
    ks = jax.random.split(key, 8)

    def u(k, shape, fan_in):
        bound = 1.0 / (fan_in ** 0.5)
        return jax.random.uniform(k, shape, jnp.float32, -bound, bound)

    return {
        "enc1_w": u(ks[0], (16, in_ch, 16, 16), in_ch * 16 * 16),
        "enc1_b": u(ks[1], (16,), in_ch * 16 * 16),
        "enc2_w": u(ks[2], (32, 16, 8, 8), 16 * 8 * 8),
        "enc2_b": u(ks[3], (32,), 16 * 8 * 8),
        "dec1_w": u(ks[4], (32, 16, 8, 8), 32 * 8 * 8),   # ConvTranspose2d: (C_in, C_out, kh, kw)
        "dec1_b": u(ks[5], (16,), 32 * 8 * 8),
        "dec2_w": u(ks[6], (16, out_ch, 16, 16), 16 * 16 * 16),
        "dec2_b": u(ks[7], (out_ch,), 16 * 16 * 16),
    }


def prepare_params(params):
    """Precompute GEMM-layout bf16 weights ONCE (not per forward)."""
    def enc(w, b):
        O = w.shape[0]
        return (w.reshape(O, -1).astype(jnp.bfloat16),                 # (O, C*kh*kw)
                b.reshape(-1, 1).astype(jnp.float32))

    def dec(w, b):
        # w: (C_in, C_out, kh, kw) -> 4 phase GEMMs merged along O: (4*O, C_in*kh2*kw2)
        O = w.shape[1]
        mats = []
        for ph in (0, 1):
            for pw in (0, 1):
                sub = w[:, :, ph::2, pw::2][:, :, ::-1, ::-1]          # (C_in,C_out,kh2,kw2)
                mats.append(jnp.transpose(sub, (1, 0, 2, 3)).reshape(O, -1))
        w_merged = jnp.concatenate(mats, axis=0).astype(jnp.bfloat16)  # (4*O, K)
        b_merged = jnp.tile(b.reshape(-1, 1), (4, 1)).astype(jnp.float32)  # (4*O, 1)
        return w_merged, b_merged

    e1w, e1b = enc(params["enc1_w"], params["enc1_b"])
    e2w, e2b = enc(params["enc2_w"], params["enc2_b"])
    d1w, d1b = dec(params["dec1_w"], params["dec1_b"])
    d2w, d2b = dec(params["dec2_w"], params["dec2_b"])
    return {"enc1_w": e1w, "enc1_b": e1b, "enc2_w": e2w, "enc2_b": e2b,
            "dec1_w": d1w, "dec1_b": d1b, "dec2_w": d2w, "dec2_b": d2b}


# -------------------------- pure-JAX reference ---------------------------------
def _ref_forward(x, p):
    dn = ("NCHW", "OIHW", "NCHW")

    def conv(x, w, b, stride):
        y = jax.lax.conv_general_dilated(x, w, (stride, stride), "VALID",
                                         dimension_numbers=dn)
        return y + b.reshape(1, -1, 1, 1)

    def deconv(x, w, b, stride, out_hw):
        _, _, kh, kw = w.shape
        oph = out_hw[0] - ((x.shape[2] - 1) * stride + kh)
        opw = out_hw[1] - ((x.shape[3] - 1) * stride + kw)
        w_conv = jnp.transpose(w[:, :, ::-1, ::-1], (1, 0, 2, 3))
        y = jax.lax.conv_general_dilated(
            x, w_conv, (1, 1),
            padding=[(kh - 1, kh - 1 + oph), (kw - 1, kw - 1 + opw)],
            lhs_dilation=(stride, stride), dimension_numbers=dn)
        return y + b.reshape(1, -1, 1, 1)

    e1 = jax.nn.relu(conv(x, p["enc1_w"], p["enc1_b"], 2))
    e2 = jax.nn.relu(conv(e1, p["enc2_w"], p["enc2_b"], 2))
    d1 = jax.nn.relu(deconv(e2, p["dec1_w"], p["dec1_b"], 2,
                            (e1.shape[2], e1.shape[3])))
    d2 = deconv(d1, p["dec2_w"], p["dec2_b"], 2, (x.shape[2], x.shape[3]))
    return jax.nn.sigmoid(d2)


if __name__ == "__main__":
    key = jax.random.PRNGKey(0)
    kx, kp = jax.random.split(key)
    in_ch, out_ch = 4, 4
    # spatial must fit the 16x16 then 8x8 stride-2 kernels -> use 40x40
    x = jax.random.normal(kx, (2, in_ch, 40, 40), jnp.float32)
    params = init_params(kp, in_ch, out_ch)
    gemm_params = prepare_params(params)          # one-time weight repack

    fwd = jax.jit(autoencoder_forward)
    y = fwd(x, gemm_params)
    jax.block_until_ready(y)
    assert y.shape == x.shape[:1] + (out_ch,) + x.shape[2:], y.shape

    y_ref = jax.jit(_ref_forward)(x, params)
    max_err = float(jnp.max(jnp.abs(y - y_ref)))
    if max_err > 5e-2:
        raise RuntimeError(f"mismatch vs reference, max abs err = {max_err}")

    print("KERNEL_OK")
</pallas_src>

<mosaic_0001>
module attributes {stable_mosaic.version = 11 : i64} {
  func.func @_gemm_bias_act_kernel(%arg0: memref<16x1024xbf16, #tpu.memory_space<vmem>>, %arg1: memref<1024x512xbf16, #tpu.memory_space<vmem>>, %arg2: memref<16x1xf32, #tpu.memory_space<vmem>>, %arg3: memref<16x512xbf16, #tpu.memory_space<vmem>>) attributes {dimension_semantics = [], scalar_prefetch = 0 : i64, scratch_operands = 0 : i64, tpu.core_type = #tpu.core_type<tc>} {
    %c0 = arith.constant 0 : index
    %c0_0 = arith.constant 0 : index
    %0 = vector.load %arg0[%c0, %c0_0] : memref<16x1024xbf16, #tpu.memory_space<vmem>>, vector<16x1024xbf16>
    %c0_1 = arith.constant 0 : index
    %c0_2 = arith.constant 0 : index
    %1 = vector.load %arg1[%c0_1, %c0_2] : memref<1024x512xbf16, #tpu.memory_space<vmem>>, vector<1024x512xbf16>
    %cst = arith.constant dense<0.000000e+00> : vector<16x512xf32>
    %2 = tpu.matmul %0, %1, %cst {dimension_numbers = #tpu.dot_dimension_numbers<[1], [0], [0], [1], [0, 0, 1, 1], [], []>} : vector<16x1024xbf16>, vector<1024x512xbf16>, vector<16x512xf32> -> vector<16x512xf32>
    %c0_3 = arith.constant 0 : index
    %c0_4 = arith.constant 0 : index
    %3 = vector.load %arg2[%c0_3, %c0_4] : memref<16x1xf32, #tpu.memory_space<vmem>>, vector<16x1xf32>
    %4 = vector.broadcast %3 : vector<16x1xf32> to vector<16x512xf32>
    %5 = arith.addf %2, %4 : vector<16x512xf32>
    %cst_5 = arith.constant 0.000000e+00 : f32
    %6 = vector.broadcast %cst_5 : f32 to vector<16x512xf32>
    %7 = arith.maximumf %5, %6 : vector<16x512xf32>
    %8 = arith.truncf %7 : vector<16x512xf32> to vector<16x512xbf16>
    %c0_6 = arith.constant 0 : index
    %c0_7 = arith.constant 0 : index
    %9 = vector.load %arg3[%c0_6, %c0_7] : memref<16x512xbf16, #tpu.memory_space<vmem>>, vector<16x512xbf16>
    tpu.vector_store %arg3[%c0_6, %c0_7], %8 {strides = array<i32>} : memref<16x512xbf16, #tpu.memory_space<vmem>>, vector<16x512xbf16>,
    return
  }
}

module attributes {stable_mosaic.version = 11 : i64} {
  func.func @_gemm_bias_act_kernel(%arg0: memref<32x1024xbf16, #tpu.memory_space<vmem>>, %arg1: memref<1024x256xbf16, #tpu.memory_space<vmem>>, %arg2: memref<32x1xf32, #tpu.memory_space<vmem>>, %arg3: memref<32x256xbf16, #tpu.memory_space<vmem>>) attributes {dimension_semantics = [], scalar_prefetch = 0 : i64, scratch_operands = 0 : i64, tpu.core_type = #tpu.core_type<tc>} {
    %c0 = arith.constant 0 : index
    %c0_0 = arith.constant 0 : index
    %0 = vector.load %arg0[%c0, %c0_0] : memref<32x1024xbf16, #tpu.memory_space<vmem>>, vector<32x1024xbf16>
    %c0_1 = arith.constant 0 : index
    %c0_2 = arith.constant 0 : index
    %1 = vector.load %arg1[%c0_1, %c0_2] : memref<1024x256xbf16, #tpu.memory_space<vmem>>, vector<1024x256xbf16>
    %cst = arith.constant dense<0.000000e+00> : vector<32x256xf32>
    %2 = tpu.matmul %0, %1, %cst {dimension_numbers = #tpu.dot_dimension_numbers<[1], [0], [0], [1], [0, 0, 1, 1], [], []>} : vector<32x1024xbf16>, vector<1024x256xbf16>, vector<32x256xf32> -> vector<32x256xf32>
    %c0_3 = arith.constant 0 : index
    %c0_4 = arith.constant 0 : index
    %3 = vector.load %arg2[%c0_3, %c0_4] : memref<32x1xf32, #tpu.memory_space<vmem>>, vector<32x1xf32>
    %4 = vector.broadcast %3 : vector<32x1xf32> to vector<32x256xf32>
    %5 = arith.addf %2, %4 : vector<32x256xf32>
    %cst_5 = arith.constant 0.000000e+00 : f32
    %6 = vector.broadcast %cst_5 : f32 to vector<32x256xf32>
    %7 = arith.maximumf %5, %6 : vector<32x256xf32>
    %8 = arith.truncf %7 : vector<32x256xf32> to vector<32x256xbf16>
    %c0_6 = arith.constant 0 : index
    %c0_7 = arith.constant 0 : index
    %9 = vector.load %arg3[%c0_6, %c0_7] : memref<32x256xbf16, #tpu.memory_space<vmem>>, vector<32x256xbf16>
    tpu.vector_store %arg3[%c0_6, %c0_7], %8 {strides = array<i32>} : memref<32x256xbf16, #tpu.memory_space<vmem>>, vector<32x256xbf16>,
    return
  }
}

module attributes {stable_mosaic.version = 11 : i64} {
  func.func @_gemm_bias_act_kernel(%arg0: memref<64x512xbf16, #tpu.memory_space<vmem>>, %arg1: memref<512x256xbf16, #tpu.memory_space<vmem>>, %arg2: memref<64x1xf32, #tpu.memory_space<vmem>>, %arg3: memref<64x256xbf16, #tpu.memory_space<vmem>>) attributes {dimension_semantics = [], scalar_prefetch = 0 : i64, scratch_operands = 0 : i64, tpu.core_type = #tpu.core_type<tc>} {
    %c0 = arith.constant 0 : index
    %c0_0 = arith.constant 0 : index
    %0 = vector.load %arg0[%c0, %c0_0] : memref<64x512xbf16, #tpu.memory_space<vmem>>, vector<64x512xbf16>
    %c0_1 = arith.constant 0 : index
    %c0_2 = arith.constant 0 : index
    %1 = vector.load %arg1[%c0_1, %c0_2] : memref<512x256xbf16, #tpu.memory_space<vmem>>, vector<512x256xbf16>
    %cst = arith.constant dense<0.000000e+00> : vector<64x256xf32>
    %2 = tpu.matmul %0, %1, %cst {dimension_numbers = #tpu.dot_dimension_numbers<[1], [0], [0], [1], [0, 0, 1, 1], [], []>} : vector<64x512xbf16>, vector<512x256xbf16>, vector<64x256xf32> -> vector<64x256xf32>
    %c0_3 = arith.constant 0 : index
    %c0_4 = arith.constant 0 : index
    %3 = vector.load %arg2[%c0_3, %c0_4] : memref<64x1xf32, #tpu.memory_space<vmem>>, vector<64x1xf32>
    %4 = vector.broadcast %3 : vector<64x1xf32> to vector<64x256xf32>
    %5 = arith.addf %2, %4 : vector<64x256xf32>
    %cst_5 = arith.constant 0.000000e+00 : f32
    %6 = vector.broadcast %cst_5 : f32 to vector<64x256xf32>
    %7 = arith.maximumf %5, %6 : vector<64x256xf32>
    %8 = arith.truncf %7 : vector<64x256xf32> to vector<64x256xbf16>
    %c0_6 = arith.constant 0 : index
    %c0_7 = arith.constant 0 : index
    %9 = vector.load %arg3[%c0_6, %c0_7] : memref<64x256xbf16, #tpu.memory_space<vmem>>, vector<64x256xbf16>
    tpu.vector_store %arg3[%c0_6, %c0_7], %8 {strides = array<i32>} : memref<64x256xbf16, #tpu.memory_space<vmem>>, vector<64x256xbf16>,
    return
  }
}

module attributes {stable_mosaic.version = 11 : i64} {
  func.func @_gemm_bias_act_kernel(%arg0: memref<16x1024xbf16, #tpu.memory_space<vmem>>, %arg1: memref<1024x1024xbf16, #tpu.memory_space<vmem>>, %arg2: memref<16x1xf32, #tpu.memory_space<vmem>>, %arg3: memref<16x1024xf32, #tpu.memory_space<vmem>>) attributes {dimension_semantics = [], scalar_prefetch = 0 : i64, scratch_operands = 0 : i64, tpu.core_type = #tpu.core_type<tc>} {
    %c0 = arith.constant 0 : index
    %c0_0 = arith.constant 0 : index
    %0 = vector.load %arg0[%c0, %c0_0] : memref<16x1024xbf16, #tpu.memory_space<vmem>>, vector<16x1024xbf16>
    %c0_1 = arith.constant 0 : index
    %c0_2 = arith.constant 0 : index
    %1 = vector.load %arg1[%c0_1, %c0_2] : memref<1024x1024xbf16, #tpu.memory_space<vmem>>, vector<1024x1024xbf16>
    %cst = arith.constant dense<0.000000e+00> : vector<16x1024xf32>
    %2 = tpu.matmul %0, %1, %cst {dimension_numbers = #tpu.dot_dimension_numbers<[1], [0], [0], [1], [0, 0, 1, 1], [], []>} : vector<16x1024xbf16>, vector<1024x1024xbf16>, vector<16x1024xf32> -> vector<16x1024xf32>
    %c0_3 = arith.constant 0 : index
    %c0_4 = arith.constant 0 : index
    %3 = vector.load %arg2[%c0_3, %c0_4] : memref<16x1xf32, #tpu.memory_space<vmem>>, vector<16x1xf32>
    %4 = vector.broadcast %3 : vector<16x1xf32> to vector<16x1024xf32>
    %5 = arith.addf %2, %4 : vector<16x1024xf32>
    %6 = arith.negf %5 : vector<16x1024xf32>
    %7 = math.exp %6 : vector<16x1024xf32>
    %cst_5 = arith.constant 1.000000e+00 : f32
    %8 = vector.broadcast %cst_5 : f32 to vector<16x1024xf32>
    %9 = arith.addf %8, %7 : vector<16x1024xf32>
    %10 = arith.divf %8, %9 : vector<16x1024xf32>
    %c0_6 = arith.constant 0 : index
    %c0_7 = arith.constant 0 : index
    %11 = vector.load %arg3[%c0_6, %c0_7] : memref<16x1024xf32, #tpu.memory_space<vmem>>, vector<16x1024xf32>
    tpu.vector_store %arg3[%c0_6, %c0_7], %10 {strides = array<i32>} : memref<16x1024xf32, #tpu.memory_space<vmem>>, vector<16x1024xf32>,
    return
  }
}

</mosaic_0001>

<bundles_post_ra>
// kernel: autoencoder_forward.4
= control target key start
LH: loop header
LB: loop body
LE: loop exit
PB: predicated region body
PF: predicated region fallthrough
CT: control target
= control target key end

     0   :  { %s5131_s1 = inlined_call_operand.vmem [shape: bf16[1024,512], index: 1, kind: input, shape index: {}]   ;;  %s5132_s0 = inlined_call_operand.vmem [shape: bf16[16,1024], index: 0, kind: input, shape index: {}]   ;;  %s5133_s2 = inlined_call_operand.vmem [shape: f32[16,1], index: 2, kind: input, shape index: {}]   ;;  %s5134_s3 = inlined_call_operand.vmem [shape: bf16[16,512], index: 3, kind: output, shape index: {}]  }
   0x1   :  { %v2224_v0 = vld [vmem:[%s5131_s1 + $0xe0] sm:$0xf]  ;;  %v3172_v1 = vld [vmem:[%s5131_s1 + $0xec] sm:$0xf0] }
   0x2   :  { %v2352_v2 = vld [vmem:[%s5131_s1 + $0x1e0] sm:$0xf]  ;;  %v2225_v3 = vor.u32 %v3172_v1, %v2224_v0  ;;  %v3204_v4 = vld [vmem:[%s5131_s1 + $0x1ec] sm:$0xf0] }
   0x3   :  { %v2480_v5 = vld [vmem:[%s5131_s1 + $0x2e0] sm:$0xf]  ;;  %v3236_v6 = vld [vmem:[%s5131_s1 + $0x2ec] sm:$0xf0]  ;;  %v2353_v7 = vor.u32 %v3204_v4, %v2352_v2 }
   0x4   :  { %v2481_v8 = vor.u32 %v3236_v6, %v2480_v5  ;;  %v2608_v9 = vld [vmem:[%s5131_s1 + $0x3e0] sm:$0xf]  ;;  %v3268_v10 = vld [vmem:[%s5131_s1 + $0x3ec] sm:$0xf0]  ;;  %1610 = vmatpush.bf16.msra.mxu0 %v2225_v3 }
   0x5   :  { %v2208_v11 = vld [vmem:[%s5131_s1 + $0xc0] sm:$0xf]  ;;  %v2609_v12 = vor.u32 %v3268_v10, %v2608_v9  ;;  %v3168_v13 = vld [vmem:[%s5131_s1 + $0xcc] sm:$0xf0]  ;;  %1624 = vmatpush.bf16.msra.mxu1 %v2353_v7 }
   0x6   :  { %v2336_v14 = vld [vmem:[%s5131_s1 + $0x1c0] sm:$0xf]  ;;  %v3200_v15 = vld [vmem:[%s5131_s1 + $0x1cc] sm:$0xf0]  ;;  %1638 = vmatpush.bf16.msra.mxu2 %v2481_v8  ;;  %v2209_v16 = vor.u32 %v3168_v13, %v2208_v11 }
   0x7   :  { %v2337_v17 = vor.u32 %v3200_v15, %v2336_v14  ;;  %v2464_v18 = vld [vmem:[%s5131_s1 + $0x2c0] sm:$0xf]  ;;  %v3232_v19 = vld [vmem:[%s5131_s1 + $0x2cc] sm:$0xf0]  ;;  %1652 = vmatpush.bf16.msra.mxu3 %v2609_v12 }
   0x8   :  { %v2592_v20 = vld [vmem:[%s5131_s1 + $0x3c0] sm:$0xf]  ;;  %v2465_v21 = vor.u32 %v3232_v19, %v2464_v18  ;;  %v3264_v22 = vld [vmem:[%s5131_s1 + $0x3cc] sm:$0xf0]  ;;  %1611 = vmatpush.bf16.msra.mxu0 %v2209_v16 }
   0x9   :  { %v2192_v23 = vld [vmem:[%s5131_s1 + $0xa0] sm:$0xf]  ;;  %v3164_v24 = vld [vmem:[%s5131_s1 + $0xac] sm:$0xf0]  ;;  %v2593_v25 = vor.u32 %v3264_v22, %v2592_v20  ;;  %1625 = vmatpush.bf16.msra.mxu1 %v2337_v17 }
   0xa   :  { %v2320_v26 = vld [vmem:[%s5131_s1 + $0x1a0] sm:$0xf]  ;;  %v3196_v27 = vld [vmem:[%s5131_s1 + $0x1ac] sm:$0xf0]  ;;  %v2193_v29 = vor.u32 %v3164_v24, %v2192_v23  ;;  %1639 = vmatpush.bf16.msra.mxu2 %v2465_v21 }
   0xb   :  { %v2448_v28 = vld [vmem:[%s5131_s1 + $0x2a0] sm:$0xf]  ;;  %v3228_v30 = vld [vmem:[%s5131_s1 + $0x2ac] sm:$0xf0]  ;;  %v2321_v33 = vor.u32 %v3196_v27, %v2320_v26  ;;  %1653 = vmatpush.bf16.msra.mxu3 %v2593_v25 }
   0xc   :  { %v2576_v31 = vld [vmem:[%s5131_s1 + $0x3a0] sm:$0xf]  ;;  %v3260_v32 = vld [vmem:[%s5131_s1 + $0x3ac] sm:$0xf0]  ;;  %v2449_v34 = vor.u32 %v3228_v30, %v2448_v28  ;;  %1612 = vmatpush.bf16.msra.mxu0 %v2193_v29 }
   0xd   :  { %v2176_v35 = vld [vmem:[%s5131_s1 + $0x80] sm:$0xf]  ;;  %v3160_v36 = vld [vmem:[%s5131_s1 + $0x8c] sm:$0xf0]  ;;  %v2577_v38 = vor.u32 %v3260_v32, %v2576_v31  ;;  %1626 = vmatpush.bf16.msra.mxu1 %v2321_v33 }
   0xe   :  { %v2304_v37 = vld [vmem:[%s5131_s1 + $0x180] sm:$0xf]  ;;  %v3192_v39 = vld [vmem:[%s5131_s1 + $0x18c] sm:$0xf0]  ;;  %v2177_v44 = vor.u32 %v3160_v36, %v2176_v35  ;;  %1640 = vmatpush.bf16.msra.mxu2 %v2449_v34 }
   0xf   :  { %v2432_v40 = vld [vmem:[%s5131_s1 + $0x280] sm:$0xf]  ;;  %v3224_v41 = vld [vmem:[%s5131_s1 + $0x28c] sm:$0xf0]  ;;  %v2305_v45 = vor.u32 %v3192_v39, %v2304_v37  ;;  %1654 = vmatpush.bf16.msra.mxu3 %v2577_v38 }
  0x10   :  { %v2560_v42 = vld [vmem:[%s5131_s1 + $0x380] sm:$0xf]  ;;  %v3256_v43 = vld [vmem:[%s5131_s1 + $0x38c] sm:$0xf0]  ;;  %v2433_v46 = vor.u32 %v3224_v41, %v2432_v40  ;;  %1613 = vmatpush.bf16.msra.mxu0 %v2177_v44 }
  0x11   :  { %v2160_v47 = vld [vmem:[%s5131_s1 + $0x60] sm:$0xf]  ;;  %v3156_v48 = vld [vmem:[%s5131_s1 + $0x6c] sm:$0xf0]  ;;  %v2561_v50 = vor.u32 %v3256_v43, %v2560_v42  ;;  %1627 = vmatpush.bf16.msra.mxu1 %v2305_v45 }
  0x12   :  { %v2288_v49 = vld [vmem:[%s5131_s1 + $0x160] sm:$0xf]  ;;  %v3188_v51 = vld [vmem:[%s5131_s1 + $0x16c] sm:$0xf0]  ;;  %v2161_v56 = vor.u32 %v3156_v48, %v2160_v47  ;;  %1641 = vmatpush.bf16.msra.mxu2 %v2433_v46 }
  0x13   :  { %v2416_v52 = vld [vmem:[%s5131_s1 + $0x260] sm:$0xf]  ;;  %v3220_v53 = vld [vmem:[%s5131_s1 + $0x26c] sm:$0xf0]  ;;  %v2289_v57 = vor.u32 %v3188_v51, %v2288_v49  ;;  %1655 = vmatpush.bf16.msra.mxu3 %v2561_v50 }
  0x14   :  { %v2544_v54 = vld [vmem:[%s5131_s1 + $0x360] sm:$0xf]  ;;  %v3252_v55 = vld [vmem:[%s5131_s1 + $0x36c] sm:$0xf0]  ;;  %v2417_v58 = vor.u32 %v3220_v53, %v2416_v52  ;;  %1614 = vmatpush.bf16.msra.mxu0 %v2161_v56 }
  0x15   :  { %v2144_v59 = vld [vmem:[%s5131_s1 + $0x40] sm:$0xf]  ;;  %v3152_v60 = vld [vmem:[%s5131_s1 + $0x4c] sm:$0xf0]  ;;  %v2545_v62 = vor.u32 %v3252_v55, %v2544_v54  ;;  %1628 = vmatpush.bf16.msra.mxu1 %v2289_v57  ;;  %v2088_v54 = vld [vmem:[%s5132_s0 + $0x8] sm:$0xf] }
  0x16   :  { %v2272_v61 = vld [vmem:[%s5131_s1 + $0x140] sm:$0xf]  ;;  %v3184_v63 = vld [vmem:[%s5131_s1 + $0x14c] sm:$0xf0]  ;;  %v2145_v4 = vor.u32 %v3152_v60, %v2144_v59  ;;  %1642 = vmatpush.bf16.msra.mxu2 %v2417_v58  ;;  %v3139_v59 = vld [vmem:[%s5132_s0 + $0x24] sm:$0xf0] }
  0x17   :  { %v2400_v0 = vld [vmem:[%s5131_s1 + $0x240] sm:$0xf]  ;;  %v3216_v1 = vld [vmem:[%s5131_s1 + $0x24c] sm:$0xf0]  ;;  %v2273_v5 = vor.u32 %v3184_v63, %v2272_v61  ;;  %1656 = vmatpush.bf16.msra.mxu3 %v2545_v62 }
  0x18   :  { %v2528_v2 = vld [vmem:[%s5131_s1 + $0x340] sm:$0xf]  ;;  %v3248_v3 = vld [vmem:[%s5131_s1 + $0x34c] sm:$0xf0]  ;;  %v2401_v6 = vor.u32 %v3216_v1, %v2400_v0  ;;  %1615 = vmatpush.bf16.msra.mxu0 %v2145_v4  ;;  %v3690_v1 = vor.u32 %v3139_v59, %v2088_v54 }
  0x19   :  { %v2128_v7 = vld [vmem:[%s5131_s1 + $0x20] sm:$0xf]  ;;  %v3148_v8 = vld [vmem:[%s5131_s1 + $0x2c] sm:$0xf0]  ;;  %v2529_v10 = vor.u32 %v3248_v3, %v2528_v2  ;;  %1629 = vmatpush.bf16.msra.mxu1 %v2273_v5 }
  0x1a   :  { %v2256_v9 = vld [vmem:[%s5131_s1 + $0x120] sm:$0xf]  ;;  %v3180_v11 = vld [vmem:[%s5131_s1 + $0x12c] sm:$0xf0]  ;;  %v2129_v16 = vor.u32 %v3148_v8, %v2128_v7  ;;  %1643 = vmatpush.bf16.msra.mxu2 %v2401_v6  ;;  %v3134_v6 = vld [vmem:[%s5132_s0 + $0x4] sm:$0xf] }
  0x1b   :  { %v2384_v12 = vld [vmem:[%s5131_s1 + $0x220] sm:$0xf]  ;;  %v3212_v13 = vld [vmem:[%s5131_s1 + $0x22c] sm:$0xf0]  ;;  %v2257_v19 = vor.u32 %v3180_v11, %v2256_v9  ;;  %1657 = vmatpush.bf16.msra.mxu3 %v2529_v10  ;;  %v2082_v7 = vld [vmem:[%s5132_s0 + $0x20] sm:$0xf0] }
  0x1c   :  { %v2512_v14 = vld [vmem:[%s5131_s1 + $0x320] sm:$0xf]  ;;  %v3244_v15 = vld [vmem:[%s5131_s1 + $0x32c] sm:$0xf0]  ;;  %v2385_v20 = vor.u32 %v3212_v13, %v2384_v12  ;;  %1616 = vmatpush.bf16.msra.mxu0 %v2129_v16  ;;  %v3135_v8 = vld [vmem:[%s5132_s0 + $0xc] sm:$0xf]  ;;  %v3712_v10 = vor.u32 %v3134_v6, %v2082_v7 }
  0x1d   :  { %v2112_v17 = vld [vmem:[%s5131_s1] sm:$0xf]  ;;  %v3144_v18 = vld [vmem:[%s5131_s1 + $0xc] sm:$0xf0]  ;;  %v2513_v24 = vor.u32 %v3244_v15, %v2512_v14  ;;  %1630 = vmatpush.bf16.msra.mxu1 %v2257_v19  ;;  %v2090_v11 = vld [vmem:[%s5132_s0 + $0x28] sm:$0xf0] }
  0x1e   :  { %v2240_v21 = vld [vmem:[%s5131_s1 + $0x100] sm:$0xf]  ;;  %v3176_v22 = vld [vmem:[%s5131_s1 + $0x10c] sm:$0xf0]  ;;  %v2113_v31 = vor.u32 %v3144_v18, %v2112_v17  ;;  %1644 = vmatpush.bf16.msra.mxu2 %v2385_v20  ;;  %v3726_v17 = vor.u32 %v3135_v8, %v2090_v11 }
  0x1f   :  { %v2368_v23 = vld [vmem:[%s5131_s1 + $0x200] sm:$0xf]  ;;  %v3208_v25 = vld [vmem:[%s5131_s1 + $0x20c] sm:$0xf0]  ;;  %v2241_v35 = vor.u32 %v3176_v22, %v2240_v21  ;;  %1658 = vmatpush.bf16.msra.mxu3 %v2513_v24 }
  0x20   :  { %v2496_v26 = vld [vmem:[%s5131_s1 + $0x300] sm:$0xf]  ;;  %v3240_v27 = vld [vmem:[%s5131_s1 + $0x30c] sm:$0xf0]  ;;  %v2369_v36 = vor.u32 %v3208_v25, %v2368_v23  ;;  %1617 = vmatpush.bf16.msra.mxu0 %v2113_v31 }
  0x21   :  { %v2736_v28 = vld [vmem:[%s5131_s1 + $0x4e0] sm:$0xf]  ;;  %v3300_v29 = vld [vmem:[%s5131_s1 + $0x4ec] sm:$0xf0]  ;;  %v2497_v39 = vor.u32 %v3240_v27, %v2496_v26  ;;  %1631 = vmatpush.bf16.msra.mxu1 %v2241_v35 }
  0x22   :  { %v2864_v30 = vld [vmem:[%s5131_s1 + $0x5e0] sm:$0xf]  ;;  %v3332_v32 = vld [vmem:[%s5131_s1 + $0x5ec] sm:$0xf0]  ;;  %v2737_v40 = vor.u32 %v3300_v29, %v2736_v28  ;;  %1645 = vmatpush.bf16.msra.mxu2 %v2369_v36 }
  0x23   :  { %v2992_v33 = vld [vmem:[%s5131_s1 + $0x6e0] sm:$0xf]  ;;  %v3364_v34 = vld [vmem:[%s5131_s1 + $0x6ec] sm:$0xf0]  ;;  %v2865_v43 = vor.u32 %v3332_v32, %v2864_v30  ;;  %1659 = vmatpush.bf16.msra.mxu3 %v2497_v39 }
  0x24   :  { %v3120_v37 = vld [vmem:[%s5131_s1 + $0x7e0] sm:$0xf]  ;;  %v3396_v38 = vld [vmem:[%s5131_s1 + $0x7ec] sm:$0xf0]  ;;  %v2993_v44 = vor.u32 %v3364_v34, %v2992_v33  ;;  %1666 = vmatpush.bf16.msrb.mxu0 %v2737_v40  ;;  %1632 = vmatmul.bf16.vlgmr.msra.gmra.mxu1 %v3712_v10 }
  0x25   :  { %v2720_v41 = vld [vmem:[%s5131_s1 + $0x4c0] sm:$0xf]  ;;  %v3296_v42 = vld [vmem:[%s5131_s1 + $0x4cc] sm:$0xf0]  ;;  %v3121_v48 = vor.u32 %v3396_v38, %v3120_v37  ;;  %1680 = vmatpush.bf16.msrb.mxu1 %v2865_v43  ;;  %1646 = vmatmul.bf16.vlgmr.msra.gmra.mxu2 %v3690_v1 }
  0x26   :  { %v2848_v45 = vld [vmem:[%s5131_s1 + $0x5c0] sm:$0xf]  ;;  %v3328_v46 = vld [vmem:[%s5131_s1 + $0x5cc] sm:$0xf0]  ;;  %v2721_v55 = vor.u32 %v3296_v42, %v2720_v41  ;;  %1694 = vmatpush.bf16.msrb.mxu2 %v2993_v44  ;;  %1660 = vmatmul.bf16.vlgmr.msra.gmra.mxu3 %v3726_v17 }
  0x27   :  { %v2976_v47 = vld [vmem:[%s5131_s1 + $0x6c0] sm:$0xf]  ;;  %v3360_v49 = vld [vmem:[%s5131_s1 + $0x6cc] sm:$0xf0]  ;;  %v2849_v60 = vor.u32 %v3328_v46, %v2848_v45  ;;  %1708 = vmatpush.bf16.msrb.mxu3 %v3121_v48 }
  0x28   :  { %v3104_v50 = vld [vmem:[%s5131_s1 + $0x7c0] sm:$0xf]  ;;  %v3392_v51 = vld [vmem:[%s5131_s1 + $0x7cc] sm:$0xf0]  ;;  %v2977_v61 = vor.u32 %v3360_v49, %v2976_v47  ;;  %1667 = vmatpush.bf16.msrb.mxu0 %v2721_v55 }
  0x29   :  { %v2080_v52 = vld [vmem:[%s5132_s0] sm:$0xf]  ;;  %v3292_v57 = vld [vmem:[%s5131_s1 + $0x4ac] sm:$0xf0]  ;;  %v3105_v2 = vor.u32 %v3392_v51, %v3104_v50  ;;  %1681 = vmatpush.bf16.msrb.mxu1 %v2849_v60 }
  0x2a   :  { %v3138_v53 = vld [vmem:[%s5132_s0 + $0x1c] sm:$0xf0]  ;;  %v3324_v63 = vld [vmem:[%s5131_s1 + $0x5ac] sm:$0xf0]  ;;  %1695 = vmatpush.bf16.msrb.mxu2 %v2977_v61  ;;  %v3400_v61 = vmov 0  }
  0x2b   :  { %v2704_v56 = vld [vmem:[%s5131_s1 + $0x4a0] sm:$0xf]  ;;  %v3676_v58 = vor.u32 %v3138_v53, %v2080_v52  ;;  %v3356_v3 = vld [vmem:[%s5131_s1 + $0x6ac] sm:$0xf0]  ;;  %1709 = vmatpush.bf16.msrb.mxu3 %v3105_v2  ;;  %3399 = vset.pattern.permute.xlu0 %v3400_v61  ;;  %v2450_v61 = vld [vmem:[%s5131_s1 + $0x2b0] sm:$0xf0] }
  0x2c   :  { %v2832_v62 = vld [vmem:[%s5131_s1 + $0x5a0] sm:$0xf]  ;;  %v3388_v5 = vld [vmem:[%s5131_s1 + $0x7ac] sm:$0xf0]  ;;  %v2705_v9 = vor.u32 %v3292_v57, %v2704_v56 }
  0x2d   :  { %v2960_v0 = vld [vmem:[%s5131_s1 + $0x6a0] sm:$0xf]  ;;  %1618 = vmatmul.bf16.vlgmr.msra.gmra.mxu0 %v3676_v58  ;;  %v2833_v12 = vor.u32 %v3324_v63, %v2832_v62  ;;  %v3288_v15 = vld [vmem:[%s5131_s1 + $0x48c] sm:$0xf0] }
  0x2e   :  { %v3088_v4 = vld [vmem:[%s5131_s1 + $0x7a0] sm:$0xf]  ;;  %v2961_v13 = vor.u32 %v3356_v3, %v2960_v0  ;;  %v3320_v19 = vld [vmem:[%s5131_s1 + $0x58c] sm:$0xf0]  ;;  %1668 = vmatpush.bf16.msrb.mxu0 %v2705_v9 }
  0x2f   :  { %v2688_v14 = vld [vmem:[%s5131_s1 + $0x480] sm:$0xf]  ;;  %v3089_v18 = vor.u32 %v3388_v5, %v3088_v4  ;;  %v3352_v21 = vld [vmem:[%s5131_s1 + $0x68c] sm:$0xf0]  ;;  %1682 = vmatpush.bf16.msrb.mxu1 %v2833_v12  ;;  %v3170_v12 = vld [vmem:[%s5131_s1 + $0xe4] sm:$0xf] }
  0x30   :  { %v2816_v16 = vld [vmem:[%s5131_s1 + $0x580] sm:$0xf]  ;;  %v3384_v23 = vld [vmem:[%s5131_s1 + $0x78c] sm:$0xf0]  ;;  %v2689_v24 = vor.u32 %v3288_v15, %v2688_v14  ;;  %1696 = vmatpush.bf16.msrb.mxu2 %v2961_v13  ;;  %v2226_v13 = vld [vmem:[%s5131_s1 + $0xf0] sm:$0xf0] }
  0x31   :  { %v2944_v20 = vld [vmem:[%s5131_s1 + $0x680] sm:$0xf]  ;;  %v2817_v25 = vor.u32 %v3320_v19, %v2816_v16  ;;  %v3284_v28 = vld [vmem:[%s5131_s1 + $0x46c] sm:$0xf0]  ;;  %1710 = vmatpush.bf16.msrb.mxu3 %v3089_v18  ;;  %v3202_v15 = vld [vmem:[%s5131_s1 + $0x1e4] sm:$0xf] }
  0x32   :  { %v3072_v22 = vld [vmem:[%s5131_s1 + $0x780] sm:$0xf]  ;;  %v2945_v26 = vor.u32 %v3352_v21, %v2944_v20  ;;  %v3316_v31 = vld [vmem:[%s5131_s1 + $0x56c] sm:$0xf0]  ;;  %1669 = vmatpush.bf16.msrb.mxu0 %v2689_v24  ;;  %v2354_v16 = vld [vmem:[%s5131_s1 + $0x1f0] sm:$0xf0] }
  0x33   :  { %v2672_v27 = vld [vmem:[%s5131_s1 + $0x460] sm:$0xf]  ;;  %v3073_v30 = vor.u32 %v3384_v23, %v3072_v22  ;;  %v3348_v33 = vld [vmem:[%s5131_s1 + $0x66c] sm:$0xf0]  ;;  %1683 = vmatpush.bf16.msrb.mxu1 %v2817_v25  ;;  %v3234_v18 = vld [vmem:[%s5131_s1 + $0x2e4] sm:$0xf] }
  0x34   :  { %v2800_v29 = vld [vmem:[%s5131_s1 + $0x560] sm:$0xf]  ;;  %v3380_v35 = vld [vmem:[%s5131_s1 + $0x76c] sm:$0xf0]  ;;  %v2673_v36 = vor.u32 %v3284_v28, %v2672_v27  ;;  %1697 = vmatpush.bf16.msrb.mxu2 %v2945_v26  ;;  %v2482_v19 = vld [vmem:[%s5131_s1 + $0x2f0] sm:$0xf0] }
  0x35   :  { %v2928_v32 = vld [vmem:[%s5131_s1 + $0x660] sm:$0xf]  ;;  %v2801_v37 = vor.u32 %v3316_v31, %v2800_v29  ;;  %v3280_v40 = vld [vmem:[%s5131_s1 + $0x44c] sm:$0xf0]  ;;  %1711 = vmatpush.bf16.msrb.mxu3 %v3073_v30  ;;  %v3266_v20 = vld [vmem:[%s5131_s1 + $0x3e4] sm:$0xf] }
  0x36   :  { %v3056_v34 = vld [vmem:[%s5131_s1 + $0x760] sm:$0xf]  ;;  %v2929_v38 = vor.u32 %v3348_v33, %v2928_v32  ;;  %v3312_v43 = vld [vmem:[%s5131_s1 + $0x54c] sm:$0xf0]  ;;  %1670 = vmatpush.bf16.msrb.mxu0 %v2673_v36  ;;  %v2610_v21 = vld [vmem:[%s5131_s1 + $0x3f0] sm:$0xf0]  ;;  %v2229_v32 = vor.u32 %v3170_v12, %v2226_v13  ;;  %v2357_v36 = vor.u32 %v3202_v15, %v2354_v16 }
  0x37   :  { %v2656_v39 = vld [vmem:[%s5131_s1 + $0x440] sm:$0xf]  ;;  %v3057_v42 = vor.u32 %v3380_v35, %v3056_v34  ;;  %v3344_v45 = vld [vmem:[%s5131_s1 + $0x64c] sm:$0xf0]  ;;  %1684 = vmatpush.bf16.msrb.mxu1 %v2801_v37  ;;  %v2104_v25 = vld [vmem:[%s5132_s0 + $0x18] sm:$0xf]  ;;  %v2485_v37 = vor.u32 %v3234_v18, %v2482_v19 }
  0x38   :  { %v2784_v41 = vld [vmem:[%s5131_s1 + $0x540] sm:$0xf]  ;;  %v3376_v47 = vld [vmem:[%s5131_s1 + $0x74c] sm:$0xf0]  ;;  %v2657_v48 = vor.u32 %v3280_v40, %v2656_v39  ;;  %1698 = vmatpush.bf16.msrb.mxu2 %v2929_v38  ;;  %v3141_v28 = vld [vmem:[%s5132_s0 + $0x34] sm:$0xf0] }
  0x39   :  { %v2912_v44 = vld [vmem:[%s5131_s1 + $0x640] sm:$0xf]  ;;  %v2785_v51 = vor.u32 %v3312_v43, %v2784_v41  ;;  %v3276_v53 = vld [vmem:[%s5131_s1 + $0x42c] sm:$0xf0]  ;;  %1712 = vmatpush.bf16.msrb.mxu3 %v3057_v42  ;;  %v3136_v29 = vld [vmem:[%s5132_s0 + $0x14] sm:$0xf]  ;;  %v2613_v41 = vor.u32 %v3266_v20, %v2610_v21 }
  0x3a   :  { %v3040_v46 = vld [vmem:[%s5131_s1 + $0x740] sm:$0xf]  ;;  %v2913_v52 = vor.u32 %v3344_v45, %v2912_v44  ;;  %v3308_v55 = vld [vmem:[%s5131_s1 + $0x52c] sm:$0xf0]  ;;  %1671 = vmatpush.bf16.msrb.mxu0 %v2657_v48  ;;  %v2098_v30 = vld [vmem:[%s5132_s0 + $0x30] sm:$0xf0] }
  0x3b   :  { %v2640_v49 = vld [vmem:[%s5131_s1 + $0x420] sm:$0xf]  ;;  %v3041_v56 = vor.u32 %v3376_v47, %v3040_v46  ;;  %v3340_v59 = vld [vmem:[%s5131_s1 + $0x62c] sm:$0xf0]  ;;  %1685 = vmatpush.bf16.msrb.mxu1 %v2785_v51  ;;  %v3137_v33 = vld [vmem:[%s5132_s0 + $0x1c] sm:$0xf]  ;;  %v3915_v46 = vor.u32 %v3141_v28, %v2104_v25  ;;  %v3917_v47 = vor.u32 %v3136_v29, %v2098_v30 }
  0x3c   :  { %v278_v50 = vld [vmem:[%s5133_s2] sm:$0xff]  ;;  %v3372_v62 = vld [vmem:[%s5131_s1 + $0x72c] sm:$0xf0]  ;;  %v2641_v2 = vor.u32 %v3276_v53, %v2640_v49  ;;  %1699 = vmatpush.bf16.msrb.mxu2 %v2913_v52  ;;  %v2106_v34 = vld [vmem:[%s5132_s0 + $0x38] sm:$0xf0] }
  0x3d   :  { %v2768_v54 = vld [vmem:[%s5131_s1 + $0x520] sm:$0xf]  ;;  %v3272_v0 = vld [vmem:[%s5131_s1 + $0x40c] sm:$0xf0]  ;;  %282 = vperm.xlu0 %3399, %v278_v50   ;;  %1713 = vmatpush.bf16.msrb.mxu3 %v3041_v56  ;;  %v279_v35 = vld [vmem:[%s5133_s2 + $0x8] sm:$0xff]  ;;  %v3925_v50 = vor.u32 %v3137_v33, %v2106_v34 }
  0x3e   :  { %v2896_v57 = vld [vmem:[%s5131_s1 + $0x620] sm:$0xf]  ;;  %v3304_v4 = vld [vmem:[%s5131_s1 + $0x50c] sm:$0xf0]  ;;  %v2769_v7 = vor.u32 %v3308_v55, %v2768_v54  ;;  %1672 = vmatpush.bf16.msrb.mxu0 %v2641_v2  ;;  %v3166_v38 = vld [vmem:[%s5131_s1 + $0xc4] sm:$0xf] }
  0x3f   :  { %v3024_v60 = vld [vmem:[%s5131_s1 + $0x720] sm:$0xf]  ;;  %v3336_v6 = vld [vmem:[%s5131_s1 + $0x60c] sm:$0xf0]  ;;  %v2897_v8 = vor.u32 %v3340_v59, %v2896_v57  ;;  %v2210_v39 = vld [vmem:[%s5131_s1 + $0xd0] sm:$0xf0] }
  0x40   :  { %v2624_v63 = vld [vmem:[%s5131_s1 + $0x400] sm:$0xf]  ;;  %v3368_v11 = vld [vmem:[%s5131_s1 + $0x70c] sm:$0xf0]  ;;  %v3025_v14 = vor.u32 %v3372_v62, %v3024_v60  ;;  %1686 = vmatpush.bf16.msrb.mxu1 %v2769_v7  ;;  %v3198_v40 = vld [vmem:[%s5131_s1 + $0x1c4] sm:$0xf]  ;;  %v2213_v51 = vor.u32 %v3166_v38, %v2210_v39 }
  0x41   :  { %v2752_v3 = vld [vmem:[%s5131_s1 + $0x500] sm:$0xf]  ;;  %v2625_v22 = vor.u32 %v3272_v0, %v2624_v63  ;;  %v2096_v23 = vld [vmem:[%s5132_s0 + $0x10] sm:$0xf]  ;;  %1700 = vmatpush.bf16.msrb.mxu2 %v2897_v8  ;;  %v2338_v43 = vld [vmem:[%s5131_s1 + $0x1d0] sm:$0xf0] }
  0x42   :  { %v2880_v5 = vld [vmem:[%s5131_s1 + $0x600] sm:$0xf]  ;;  %v3140_v24 = vld [vmem:[%s5132_s0 + $0x2c] sm:$0xf0]  ;;  %v2753_v26 = vor.u32 %v3304_v4, %v2752_v3  ;;  %1714 = vmatpush.bf16.msrb.mxu3 %v3025_v14  ;;  %v3230_v44 = vld [vmem:[%s5131_s1 + $0x2c4] sm:$0xf]  ;;  %v2341_v52 = vor.u32 %v3198_v40, %v2338_v43 }
  0x43   :  { %v3008_v9 = vld [vmem:[%s5131_s1 + $0x700] sm:$0xf]  ;;  %v2881_v27 = vor.u32 %v3336_v6, %v2880_v5  ;;  %1673 = vmatpush.bf16.msrb.mxu0 %v2625_v22  ;;  %v3904_v42 = vor.u32 %v3140_v24, %v2096_v23  ;;  %v2466_v45 = vld [vmem:[%s5131_s1 + $0x2d0] sm:$0xf0]  ;;  %v3262_v48 = vld [vmem:[%s5131_s1 + $0x3c4] sm:$0xf] }
  0x44   :  { %v3009_v31 = vor.u32 %v3368_v11, %v3008_v9  ;;  %1687 = vmatpush.bf16.msrb.mxu1 %v2753_v26  ;;  %v2594_v49 = vld [vmem:[%s5131_s1 + $0x3d0] sm:$0xf0]  ;;  %v2469_v53 = vor.u32 %v3230_v44, %v2466_v45  ;;  %v3162_v54 = vld [vmem:[%s5131_s1 + $0xa4] sm:$0xf] }
  0x45   :  { %287 = vperm.xlu0 %3399, %v279_v35   ;;  %1701 = vmatpush.bf16.msrb.mxu2 %v2881_v27  ;;  %v2194_v55 = vld [vmem:[%s5131_s1 + $0xb0] sm:$0xf0]  ;;  %v3194_v56 = vld [vmem:[%s5131_s1 + $0x1a4] sm:$0xf]  ;;  %v2597_v57 = vor.u32 %v3262_v48, %v2594_v49 }
  0x46   :  { %1715 = vmatpush.bf16.msrb.mxu3 %v3009_v31  ;;  %1674 = vmatmul.bf16.vlgmr.msrb.gmra.mxu0 %v3904_v42  ;;  %v2322_v59 = vld [vmem:[%s5131_s1 + $0x1b0] sm:$0xf0]  ;;  %v3226_v60 = vld [vmem:[%s5131_s1 + $0x2a4] sm:$0xf]  ;;  %v2197_v0 = vor.u32 %v3162_v54, %v2194_v55 }
  0x47   :  { %1722 = vmatpush.bf16.msra.mxu0 %v2229_v32  ;;  %1688 = vmatmul.bf16.vlgmr.msrb.gmra.mxu1 %v3917_v47  ;;  %v3258_v62 = vld [vmem:[%s5131_s1 + $0x3a4] sm:$0xf]  ;;  %v2578_v63 = vld [vmem:[%s5131_s1 + $0x3b0] sm:$0xf0]  ;;  %v2325_v2 = vor.u32 %v3194_v56, %v2322_v59  ;;  %v2453_v3 = vor.u32 %v3226_v60, %v2450_v61 }
  0x48   :  { %1736 = vmatpush.bf16.msra.mxu1 %v2357_v36  ;;  %1702 = vmatmul.bf16.vlgmr.msrb.gmra.mxu2 %v3915_v46  ;;  %v3158_v4 = vld [vmem:[%s5131_s1 + $0x84] sm:$0xf]  ;;  %v2178_v5 = vld [vmem:[%s5131_s1 + $0x90] sm:$0xf0]  ;;  %v2581_v7 = vor.u32 %v3258_v62, %v2578_v63 }
  0x49   :  { %1750 = vmatpush.bf16.msra.mxu2 %v2485_v37  ;;  %1716 = vmatmul.bf16.vlgmr.msrb.gmra.mxu3 %v3925_v50  ;;  %v3190_v6 = vld [vmem:[%s5131_s1 + $0x184] sm:$0xf]  ;;  %v2306_v8 = vld [vmem:[%s5131_s1 + $0x190] sm:$0xf0]  ;;  %v2181_v14 = vor.u32 %v3158_v4, %v2178_v5 }
  0x4a   :  { %1764 = vmatpush.bf16.msra.mxu3 %v2613_v41  ;;  %v3222_v9 = vld [vmem:[%s5131_s1 + $0x284] sm:$0xf]  ;;  %v2434_v11 = vld [vmem:[%s5131_s1 + $0x290] sm:$0xf0]  ;;  %v2309_v15 = vor.u32 %v3190_v6, %v2306_v8 }
  0x4b   :  { %1723 = vmatpush.bf16.msra.mxu0 %v2213_v51  ;;  %v3254_v12 = vld [vmem:[%s5131_s1 + $0x384] sm:$0xf]  ;;  %v2562_v13 = vld [vmem:[%s5131_s1 + $0x390] sm:$0xf0]  ;;  %v2437_v16 = vor.u32 %v3222_v9, %v2434_v11 }
  0x4c   :  { %1737 = vmatpush.bf16.msra.mxu1 %v2341_v52  ;;  %v3154_v18 = vld [vmem:[%s5131_s1 + $0x64] sm:$0xf]  ;;  %v2162_v19 = vld [vmem:[%s5131_s1 + $0x70] sm:$0xf0]  ;;  %v2565_v21 = vor.u32 %v3254_v12, %v2562_v13 }
  0x4d   :  { %1751 = vmatpush.bf16.msra.mxu2 %v2469_v53  ;;  %v3186_v20 = vld [vmem:[%s5131_s1 + $0x164] sm:$0xf]  ;;  %v2290_v22 = vld [vmem:[%s5131_s1 + $0x170] sm:$0xf0]  ;;  %v2165_v27 = vor.u32 %v3154_v18, %v2162_v19 }
  0x4e   :  { %1765 = vmatpush.bf16.msra.mxu3 %v2597_v57  ;;  %v3218_v23 = vld [vmem:[%s5131_s1 + $0x264] sm:$0xf]  ;;  %v2418_v24 = vld [vmem:[%s5131_s1 + $0x270] sm:$0xf0]  ;;  %v2293_v28 = vor.u32 %v3186_v20, %v2290_v22 }
  0x4f   :  { %1724 = vmatpush.bf16.msra.mxu0 %v2197_v0  ;;  %v3250_v25 = vld [vmem:[%s5131_s1 + $0x364] sm:$0xf]  ;;  %v2546_v26 = vld [vmem:[%s5131_s1 + $0x370] sm:$0xf0]  ;;  %v2421_v29 = vor.u32 %v3218_v23, %v2418_v24 }
  0x50   :  { %1738 = vmatpush.bf16.msra.mxu1 %v2325_v2  ;;  %v3150_v30 = vld [vmem:[%s5131_s1 + $0x44] sm:$0xf]  ;;  %v2146_v31 = vld [vmem:[%s5131_s1 + $0x50] sm:$0xf0]  ;;  %v2549_v33 = vor.u32 %v3250_v25, %v2546_v26 }
  0x51   :  { %1752 = vmatpush.bf16.msra.mxu2 %v2453_v3  ;;  %v3182_v32 = vld [vmem:[%s5131_s1 + $0x144] sm:$0xf]  ;;  %v2274_v34 = vld [vmem:[%s5131_s1 + $0x150] sm:$0xf0]  ;;  %v2149_v39 = vor.u32 %v3150_v30, %v2146_v31 }
  0x52   :  { %1766 = vmatpush.bf16.msra.mxu3 %v2581_v7  ;;  %v3214_v35 = vld [vmem:[%s5131_s1 + $0x244] sm:$0xf]  ;;  %v2402_v36 = vld [vmem:[%s5131_s1 + $0x250] sm:$0xf0]  ;;  %v2277_v40 = vor.u32 %v3182_v32, %v2274_v34 }
  0x53   :  { %1725 = vmatpush.bf16.msra.mxu0 %v2181_v14  ;;  %v3246_v37 = vld [vmem:[%s5131_s1 + $0x344] sm:$0xf]  ;;  %v2530_v38 = vld [vmem:[%s5131_s1 + $0x350] sm:$0xf0]  ;;  %v2405_v41 = vor.u32 %v3214_v35, %v2402_v36 }
  0x54   :  { %1739 = vmatpush.bf16.msra.mxu1 %v2309_v15  ;;  %v3146_v43 = vld [vmem:[%s5131_s1 + $0x24] sm:$0xf]  ;;  %v2130_v44 = vld [vmem:[%s5131_s1 + $0x30] sm:$0xf0]  ;;  %v2533_v48 = vor.u32 %v3246_v37, %v2530_v38 }
  0x55   :  { %1753 = vmatpush.bf16.msra.mxu2 %v2437_v16  ;;  %v3178_v45 = vld [vmem:[%s5131_s1 + $0x124] sm:$0xf]  ;;  %v2258_v49 = vld [vmem:[%s5131_s1 + $0x130] sm:$0xf0]  ;;  %v2133_v55 = vor.u32 %v3146_v43, %v2130_v44 }
  0x56   :  { %1767 = vmatpush.bf16.msra.mxu3 %v2565_v21  ;;  %v3210_v51 = vld [vmem:[%s5131_s1 + $0x224] sm:$0xf]  ;;  %v2386_v52 = vld [vmem:[%s5131_s1 + $0x230] sm:$0xf0]  ;;  %v2261_v59 = vor.u32 %v3178_v45, %v2258_v49 }
  0x57   :  { %1726 = vmatpush.bf16.msra.mxu0 %v2165_v27  ;;  %v3242_v53 = vld [vmem:[%s5131_s1 + $0x324] sm:$0xf]  ;;  %v2514_v54 = vld [vmem:[%s5131_s1 + $0x330] sm:$0xf0]  ;;  %v2389_v60 = vor.u32 %v3210_v51, %v2386_v52 }
  0x58   :  { %1740 = vmatpush.bf16.msra.mxu1 %v2293_v28  ;;  %v3142_v56 = vld [vmem:[%s5131_s1 + $0x4] sm:$0xf]  ;;  %v2114_v57 = vld [vmem:[%s5131_s1 + $0x10] sm:$0xf0]  ;;  %v2517_v0 = vor.u32 %v3242_v53, %v2514_v54 }
  0x59   :  { %1754 = vmatpush.bf16.msra.mxu2 %v2421_v29  ;;  %v3174_v61 = vld [vmem:[%s5131_s1 + $0x104] sm:$0xf]  ;;  %v2242_v62 = vld [vmem:[%s5131_s1 + $0x110] sm:$0xf0]  ;;  %v2117_v8 = vor.u32 %v3142_v56, %v2114_v57 }
  0x5a   :  { %1768 = vmatpush.bf16.msra.mxu3 %v2549_v33  ;;  %v3206_v63 = vld [vmem:[%s5131_s1 + $0x204] sm:$0xf]  ;;  %v2370_v2 = vld [vmem:[%s5131_s1 + $0x210] sm:$0xf0]  ;;  %v2245_v13 = vor.u32 %v3174_v61, %v2242_v62 }
  0x5b   :  { %1727 = vmatpush.bf16.msra.mxu0 %v2149_v39  ;;  %v3238_v3 = vld [vmem:[%s5131_s1 + $0x304] sm:$0xf]  ;;  %v2498_v4 = vld [vmem:[%s5131_s1 + $0x310] sm:$0xf0]  ;;  %v2373_v14 = vor.u32 %v3206_v63, %v2370_v2 }
  0x5c   :  { %1741 = vmatpush.bf16.msra.mxu1 %v2277_v40  ;;  %v3298_v5 = vld [vmem:[%s5131_s1 + $0x4e4] sm:$0xf]  ;;  %v2738_v6 = vld [vmem:[%s5131_s1 + $0x4f0] sm:$0xf0]  ;;  %v2501_v18 = vor.u32 %v3238_v3, %v2498_v4 }
  0x5d   :  { %1755 = vmatpush.bf16.msra.mxu2 %v2405_v41  ;;  %v3330_v7 = vld [vmem:[%s5131_s1 + $0x5e4] sm:$0xf]  ;;  %v2866_v9 = vld [vmem:[%s5131_s1 + $0x5f0] sm:$0xf0]  ;;  %v2741_v19 = vor.u32 %v3298_v5, %v2738_v6 }
  0x5e   :  { %1769 = vmatpush.bf16.msra.mxu3 %v2533_v48  ;;  %v3362_v11 = vld [vmem:[%s5131_s1 + $0x6e4] sm:$0xf]  ;;  %v2994_v12 = vld [vmem:[%s5131_s1 + $0x6f0] sm:$0xf0]  ;;  %v2869_v20 = vor.u32 %v3330_v7, %v2866_v9 }
  0x5f   :  { %1728 = vmatpush.bf16.msra.mxu0 %v2133_v55  ;;  %v3394_v15 = vld [vmem:[%s5131_s1 + $0x7e4] sm:$0xf]  ;;  %v3122_v16 = vld [vmem:[%s5131_s1 + $0x7f0] sm:$0xf0]  ;;  %v2997_v21 = vor.u32 %v3362_v11, %v2994_v12 }
  0x60   :  { %1742 = vmatpush.bf16.msra.mxu1 %v2261_v59  ;;  %v3294_v22 = vld [vmem:[%s5131_s1 + $0x4c4] sm:$0xf]  ;;  %v2722_v23 = vld [vmem:[%s5131_s1 + $0x4d0] sm:$0xf0]  ;;  %v3125_v25 = vor.u32 %v3394_v15, %v3122_v16 }
  0x61   :  { %1756 = vmatpush.bf16.msra.mxu2 %v2389_v60  ;;  %v3326_v24 = vld [vmem:[%s5131_s1 + $0x5c4] sm:$0xf]  ;;  %v2850_v26 = vld [vmem:[%s5131_s1 + $0x5d0] sm:$0xf0]  ;;  %v2725_v31 = vor.u32 %v3294_v22, %v2722_v23 }
  0x62   :  { %1770 = vmatpush.bf16.msra.mxu3 %v2517_v0  ;;  %v3358_v27 = vld [vmem:[%s5131_s1 + $0x6c4] sm:$0xf]  ;;  %v2978_v28 = vld [vmem:[%s5131_s1 + $0x6d0] sm:$0xf0]  ;;  %v2853_v32 = vor.u32 %v3326_v24, %v2850_v26 }
  0x63   :  { %1729 = vmatpush.bf16.msra.mxu0 %v2117_v8  ;;  %v3390_v29 = vld [vmem:[%s5131_s1 + $0x7c4] sm:$0xf]  ;;  %v3106_v30 = vld [vmem:[%s5131_s1 + $0x7d0] sm:$0xf0]  ;;  %v2981_v33 = vor.u32 %v3358_v27, %v2978_v28 }
  0x64   :  { %1743 = vmatpush.bf16.msra.mxu1 %v2245_v13  ;;  %v3290_v34 = vld [vmem:[%s5131_s1 + $0x4a4] sm:$0xf]  ;;  %v2706_v35 = vld [vmem:[%s5131_s1 + $0x4b0] sm:$0xf0]  ;;  %v3109_v37 = vor.u32 %v3390_v29, %v3106_v30 }
  0x65   :  { %1757 = vmatpush.bf16.msra.mxu2 %v2373_v14  ;;  %v3322_v36 = vld [vmem:[%s5131_s1 + $0x5a4] sm:$0xf]  ;;  %v2834_v38 = vld [vmem:[%s5131_s1 + $0x5b0] sm:$0xf0]  ;;  %v2709_v44 = vor.u32 %v3290_v34, %v2706_v35 }
  0x66   :  { %1771 = vmatpush.bf16.msra.mxu3 %v2501_v18  ;;  %v3354_v39 = vld [vmem:[%s5131_s1 + $0x6a4] sm:$0xf]  ;;  %v2962_v40 = vld [vmem:[%s5131_s1 + $0x6b0] sm:$0xf0]  ;;  %1730 = vmatmul.bf16.vlgmr.msra.gmra.mxu0 %v3676_v58  ;;  %v2837_v45 = vor.u32 %v3322_v36, %v2834_v38 }
  0x67   :  { %1778 = vmatpush.bf16.msrb.mxu0 %v2741_v19  ;;  %v3386_v41 = vld [vmem:[%s5131_s1 + $0x7a4] sm:$0xf]  ;;  %v3090_v43 = vld [vmem:[%s5131_s1 + $0x7b0] sm:$0xf0]  ;;  %1744 = vmatmul.bf16.vlgmr.msra.gmra.mxu1 %v3712_v10  ;;  %v2965_v48 = vor.u32 %v3354_v39, %v2962_v40 }
  0x68   :  { %1792 = vmatpush.bf16.msrb.mxu1 %v2869_v20  ;;  %1758 = vmatmul.bf16.vlgmr.msra.gmra.mxu2 %v3690_v1  ;;  %v3286_v49 = vld [vmem:[%s5131_s1 + $0x484] sm:$0xf]  ;;  %v2690_v51 = vld [vmem:[%s5131_s1 + $0x490] sm:$0xf0]  ;;  %v3093_v53 = vor.u32 %v3386_v41, %v3090_v43 }
  0x69   :  { %1806 = vmatpush.bf16.msrb.mxu2 %v2997_v21  ;;  %1772 = vmatmul.bf16.vlgmr.msra.gmra.mxu3 %v3726_v17  ;;  %v3318_v52 = vld [vmem:[%s5131_s1 + $0x584] sm:$0xf]  ;;  %v2818_v54 = vld [vmem:[%s5131_s1 + $0x590] sm:$0xf0]  ;;  %v2693_v60 = vor.u32 %v3286_v49, %v2690_v51  ;;  %v2232_v51 = vld [vmem:[%s5131_s1 + $0xe8] sm:$0xf] }
  0x6a   :  { %1820 = vmatpush.bf16.msrb.mxu3 %v3125_v25  ;;  %v3350_v55 = vld [vmem:[%s5131_s1 + $0x684] sm:$0xf]  ;;  %v2946_v56 = vld [vmem:[%s5131_s1 + $0x690] sm:$0xf0]  ;;  %v2821_v61 = vor.u32 %v3318_v52, %v2818_v54  ;;  %v3173_v52 = vld [vmem:[%s5131_s1 + $0xf4] sm:$0xf0] }
  0x6b   :  { %1779 = vmatpush.bf16.msrb.mxu0 %v2725_v31  ;;  %v3382_v57 = vld [vmem:[%s5131_s1 + $0x784] sm:$0xf]  ;;  %v3074_v59 = vld [vmem:[%s5131_s1 + $0x790] sm:$0xf0]  ;;  %v2949_v62 = vor.u32 %v3350_v55, %v2946_v56  ;;  %v3205_v55 = vld [vmem:[%s5131_s1 + $0x1f4] sm:$0xf0] }
  0x6c   :  { %1793 = vmatpush.bf16.msrb.mxu1 %v2853_v32  ;;  %v3282_v63 = vld [vmem:[%s5131_s1 + $0x464] sm:$0xf]  ;;  %v2674_v0 = vld [vmem:[%s5131_s1 + $0x470] sm:$0xf0]  ;;  %v3077_v3 = vor.u32 %v3382_v57, %v3074_v59  ;;  %v2488_v56 = vld [vmem:[%s5131_s1 + $0x2e8] sm:$0xf] }
  0x6d   :  { %1807 = vmatpush.bf16.msrb.mxu2 %v2981_v33  ;;  %v3314_v2 = vld [vmem:[%s5131_s1 + $0x564] sm:$0xf]  ;;  %v2802_v4 = vld [vmem:[%s5131_s1 + $0x570] sm:$0xf0]  ;;  %v2677_v9 = vor.u32 %v3282_v63, %v2674_v0  ;;  %v3237_v57 = vld [vmem:[%s5131_s1 + $0x2f4] sm:$0xf0]  ;;  %v2233_v0 = vor.u32 %v3173_v52, %v2232_v51 }
  0x6e   :  { %1821 = vmatpush.bf16.msrb.mxu3 %v3109_v37  ;;  %v3346_v5 = vld [vmem:[%s5131_s1 + $0x664] sm:$0xf]  ;;  %v2930_v6 = vld [vmem:[%s5131_s1 + $0x670] sm:$0xf0]  ;;  %v2805_v11 = vor.u32 %v3314_v2, %v2802_v4  ;;  %v2216_v4 = vld [vmem:[%s5131_s1 + $0xc8] sm:$0xf] }
  0x6f   :  { %1780 = vmatpush.bf16.msrb.mxu0 %v2709_v44  ;;  %v3378_v7 = vld [vmem:[%s5131_s1 + $0x764] sm:$0xf]  ;;  %v3058_v8 = vld [vmem:[%s5131_s1 + $0x770] sm:$0xf0]  ;;  %v2933_v12 = vor.u32 %v3346_v5, %v2930_v6  ;;  %v3169_v5 = vld [vmem:[%s5131_s1 + $0xd4] sm:$0xf0] }
  0x70   :  { %1794 = vmatpush.bf16.msrb.mxu1 %v2837_v45  ;;  %v3278_v13 = vld [vmem:[%s5131_s1 + $0x444] sm:$0xf]  ;;  %v2658_v14 = vld [vmem:[%s5131_s1 + $0x450] sm:$0xf0]  ;;  %v3061_v16 = vor.u32 %v3378_v7, %v3058_v8  ;;  %v2344_v6 = vld [vmem:[%s5131_s1 + $0x1c8] sm:$0xf] }
  0x71   :  { %1808 = vmatpush.bf16.msrb.mxu2 %v2965_v48  ;;  %v3310_v15 = vld [vmem:[%s5131_s1 + $0x544] sm:$0xf]  ;;  %v2786_v18 = vld [vmem:[%s5131_s1 + $0x550] sm:$0xf0]  ;;  %v2661_v23 = vor.u32 %v3278_v13, %v2658_v14  ;;  %v3201_v8 = vld [vmem:[%s5131_s1 + $0x1d4] sm:$0xf0]  ;;  %v2217_v14 = vor.u32 %v3169_v5, %v2216_v4 }
  0x72   :  { %1822 = vmatpush.bf16.msrb.mxu3 %v3093_v53  ;;  %v3342_v19 = vld [vmem:[%s5131_s1 + $0x644] sm:$0xf]  ;;  %v2914_v20 = vld [vmem:[%s5131_s1 + $0x650] sm:$0xf0]  ;;  %v2789_v24 = vor.u32 %v3310_v15, %v2786_v18  ;;  %v2360_v53 = vld [vmem:[%s5131_s1 + $0x1e8] sm:$0xf]  ;;  %v2345_v15 = vor.u32 %v3201_v8, %v2344_v6 }
  0x73   :  { %1781 = vmatpush.bf16.msrb.mxu0 %v2693_v60  ;;  %v3374_v21 = vld [vmem:[%s5131_s1 + $0x744] sm:$0xf]  ;;  %v3042_v22 = vld [vmem:[%s5131_s1 + $0x750] sm:$0xf0]  ;;  %v2917_v25 = vor.u32 %v3342_v19, %v2914_v20  ;;  %v2361_v2 = vor.u32 %v3205_v55, %v2360_v53  ;;  %v3265_v13 = vld [vmem:[%s5131_s1 + $0x3d4] sm:$0xf0] }
  0x74   :  { %1795 = vmatpush.bf16.msrb.mxu1 %v2821_v61  ;;  %v3274_v26 = vld [vmem:[%s5131_s1 + $0x424] sm:$0xf]  ;;  %v2642_v27 = vld [vmem:[%s5131_s1 + $0x430] sm:$0xf0]  ;;  %v3045_v29 = vor.u32 %v3374_v21, %v3042_v22  ;;  %v2616_v61 = vld [vmem:[%s5131_s1 + $0x3e8] sm:$0xf] }
  0x75   :  { %1809 = vmatpush.bf16.msrb.mxu2 %v2949_v62  ;;  %v3306_v28 = vld [vmem:[%s5131_s1 + $0x524] sm:$0xf]  ;;  %v2770_v30 = vld [vmem:[%s5131_s1 + $0x530] sm:$0xf0]  ;;  %v2645_v35 = vor.u32 %v3274_v26, %v2642_v27  ;;  %v3269_v62 = vld [vmem:[%s5131_s1 + $0x3f4] sm:$0xf0] }
  0x76   :  { %1823 = vmatpush.bf16.msrb.mxu3 %v3077_v3  ;;  %v3338_v31 = vld [vmem:[%s5131_s1 + $0x624] sm:$0xf]  ;;  %v2898_v32 = vld [vmem:[%s5131_s1 + $0x630] sm:$0xf0]  ;;  %v2773_v38 = vor.u32 %v3306_v28, %v2770_v30  ;;  %v2489_v3 = vor.u32 %v3237_v57, %v2488_v56  ;;  %v2617_v7 = vor.u32 %v3269_v62, %v2616_v61  ;;  %v2200_v18 = vld [vmem:[%s5131_s1 + $0xa8] sm:$0xf] }
  0x77   :  { %1782 = vmatpush.bf16.msrb.mxu0 %v2677_v9  ;;  %v3370_v33 = vld [vmem:[%s5131_s1 + $0x724] sm:$0xf]  ;;  %v3026_v34 = vld [vmem:[%s5131_s1 + $0x730] sm:$0xf0]  ;;  %v2901_v39 = vor.u32 %v3338_v31, %v2898_v32  ;;  %v2472_v9 = vld [vmem:[%s5131_s1 + $0x2c8] sm:$0xf] }
  0x78   :  { %1796 = vmatpush.bf16.msrb.mxu1 %v2805_v11  ;;  %v3270_v36 = vld [vmem:[%s5131_s1 + $0x404] sm:$0xf]  ;;  %v2626_v37 = vld [vmem:[%s5131_s1 + $0x410] sm:$0xf0]  ;;  %v3029_v44 = vor.u32 %v3370_v33, %v3026_v34  ;;  %v3233_v11 = vld [vmem:[%s5131_s1 + $0x2d4] sm:$0xf0] }
  0x79   :  { %1810 = vmatpush.bf16.msrb.mxu2 %v2933_v12  ;;  %v3302_v40 = vld [vmem:[%s5131_s1 + $0x504] sm:$0xf]  ;;  %v2754_v41 = vld [vmem:[%s5131_s1 + $0x510] sm:$0xf0]  ;;  %v2629_v54 = vor.u32 %v3270_v36, %v2626_v37  ;;  %v2600_v12 = vld [vmem:[%s5131_s1 + $0x3c8] sm:$0xf] }
  0x7a   :  { %1824 = vmatpush.bf16.msrb.mxu3 %v3061_v16  ;;  %v3334_v43 = vld [vmem:[%s5131_s1 + $0x604] sm:$0xf]  ;;  %v2882_v45 = vld [vmem:[%s5131_s1 + $0x610] sm:$0xf0]  ;;  %v2757_v59 = vor.u32 %v3302_v40, %v2754_v41  ;;  %v2473_v16 = vor.u32 %v3233_v11, %v2472_v9  ;;  %v3165_v19 = vld [vmem:[%s5131_s1 + $0xb4] sm:$0xf0]  ;;  %v2601_v21 = vor.u32 %v3265_v13, %v2600_v12 }
  0x7b   :  { %1783 = vmatpush.bf16.msrb.mxu0 %v2661_v23  ;;  %v3366_v48 = vld [vmem:[%s5131_s1 + $0x704] sm:$0xf]  ;;  %v3010_v49 = vld [vmem:[%s5131_s1 + $0x710] sm:$0xf0]  ;;  %v2885_v60 = vor.u32 %v3334_v43, %v2882_v45  ;;  %v2328_v20 = vld [vmem:[%s5131_s1 + $0x1a8] sm:$0xf]  ;;  %v2201_v27 = vor.u32 %v3165_v19, %v2200_v18 }
  0x7c   :  { %1797 = vmatpush.bf16.msrb.mxu1 %v2789_v24  ;;  %v3013_v63 = vor.u32 %v3366_v48, %v3010_v49  ;;  %v3197_v22 = vld [vmem:[%s5131_s1 + $0x1b4] sm:$0xf0]  ;;  %v2456_v23 = vld [vmem:[%s5131_s1 + $0x2a8] sm:$0xf] }
  0x7d   :  { %1811 = vmatpush.bf16.msrb.mxu2 %v2917_v25  ;;  %v3229_v24 = vld [vmem:[%s5131_s1 + $0x2b4] sm:$0xf0]  ;;  %v2584_v25 = vld [vmem:[%s5131_s1 + $0x3a8] sm:$0xf]  ;;  %v2329_v28 = vor.u32 %v3197_v22, %v2328_v20 }
  0x7e   :  { %1825 = vmatpush.bf16.msrb.mxu3 %v3045_v29  ;;  %v3261_v26 = vld [vmem:[%s5131_s1 + $0x3b4] sm:$0xf0]  ;;  %v2457_v29 = vor.u32 %v3229_v24, %v2456_v23  ;;  %v2184_v30 = vld [vmem:[%s5131_s1 + $0x88] sm:$0xf] }
  0x7f   :  { %1784 = vmatpush.bf16.msrb.mxu0 %v2645_v35  ;;  %v3161_v31 = vld [vmem:[%s5131_s1 + $0x94] sm:$0xf0]  ;;  %v2312_v32 = vld [vmem:[%s5131_s1 + $0x188] sm:$0xf]  ;;  %v2585_v33 = vor.u32 %v3261_v26, %v2584_v25 }
  0x80   :  { %1798 = vmatpush.bf16.msrb.mxu1 %v2773_v38  ;;  %v3193_v34 = vld [vmem:[%s5131_s1 + $0x194] sm:$0xf0]  ;;  %v2440_v35 = vld [vmem:[%s5131_s1 + $0x288] sm:$0xf] }
  0x81   :  { %1812 = vmatpush.bf16.msrb.mxu2 %v2901_v39  ;;  %v3225_v36 = vld [vmem:[%s5131_s1 + $0x294] sm:$0xf0]  ;;  %v2568_v37 = vld [vmem:[%s5131_s1 + $0x388] sm:$0xf]  ;;  %v2185_v39 = vor.u32 %v3161_v31, %v2184_v30  ;;  %v2313_v40 = vor.u32 %v3193_v34, %v2312_v32 }
  0x82   :  { %1826 = vmatpush.bf16.msrb.mxu3 %v3029_v44  ;;  %v3257_v38 = vld [vmem:[%s5131_s1 + $0x394] sm:$0xf0]  ;;  %v2441_v41 = vor.u32 %v3225_v36, %v2440_v35  ;;  %v2168_v43 = vld [vmem:[%s5131_s1 + $0x68] sm:$0xf] }
  0x83   :  { %1785 = vmatpush.bf16.msrb.mxu0 %v2629_v54  ;;  %v3157_v44 = vld [vmem:[%s5131_s1 + $0x74] sm:$0xf0]  ;;  %v2296_v45 = vld [vmem:[%s5131_s1 + $0x168] sm:$0xf]  ;;  %v2569_v48 = vor.u32 %v3257_v38, %v2568_v37 }
  0x84   :  { %1799 = vmatpush.bf16.msrb.mxu1 %v2757_v59  ;;  %v3189_v49 = vld [vmem:[%s5131_s1 + $0x174] sm:$0xf0]  ;;  %v2424_v51 = vld [vmem:[%s5131_s1 + $0x268] sm:$0xf]  ;;  %v2169_v55 = vor.u32 %v3157_v44, %v2168_v43 }
  0x85   :  { %1813 = vmatpush.bf16.msrb.mxu2 %v2885_v60  ;;  %v3221_v52 = vld [vmem:[%s5131_s1 + $0x274] sm:$0xf0]  ;;  %v2552_v53 = vld [vmem:[%s5131_s1 + $0x368] sm:$0xf]  ;;  %v2297_v56 = vor.u32 %v3189_v49, %v2296_v45 }
  0x86   :  { %1827 = vmatpush.bf16.msrb.mxu3 %v3013_v63  ;;  %1786 = vmatmul.bf16.vlgmr.msrb.gmra.mxu0 %v3904_v42  ;;  %v3253_v54 = vld [vmem:[%s5131_s1 + $0x374] sm:$0xf0]  ;;  %v2425_v57 = vor.u32 %v3221_v52, %v2424_v51  ;;  %v2152_v59 = vld [vmem:[%s5131_s1 + $0x48] sm:$0xf] }
  0x87   :  { %1834 = vmatpush.bf16.msra.mxu0 %v2233_v0  ;;  %1800 = vmatmul.bf16.vlgmr.msrb.gmra.mxu1 %v3917_v47  ;;  %v3153_v60 = vld [vmem:[%s5131_s1 + $0x54] sm:$0xf0]  ;;  %v2280_v61 = vld [vmem:[%s5131_s1 + $0x148] sm:$0xf]  ;;  %v2553_v62 = vor.u32 %v3253_v54, %v2552_v53 }
  0x88   :  { %1848 = vmatpush.bf16.msra.mxu1 %v2361_v2  ;;  %1814 = vmatmul.bf16.vlgmr.msrb.gmra.mxu2 %v3915_v46  ;;  %v3185_v63 = vld [vmem:[%s5131_s1 + $0x154] sm:$0xf0]  ;;  %v2408_v0 = vld [vmem:[%s5131_s1 + $0x248] sm:$0xf]  ;;  %v2153_v5 = vor.u32 %v3153_v60, %v2152_v59 }
  0x89   :  { %1862 = vmatpush.bf16.msra.mxu2 %v2489_v3  ;;  %1828 = vmatmul.bf16.vlgmr.msrb.gmra.mxu3 %v3925_v50  ;;  %v3217_v2 = vld [vmem:[%s5131_s1 + $0x254] sm:$0xf0]  ;;  %v2536_v3 = vld [vmem:[%s5131_s1 + $0x348] sm:$0xf]  ;;  %v2281_v6 = vor.u32 %v3185_v63, %v2280_v61 }
  0x8a   :  { %1876 = vmatpush.bf16.msra.mxu3 %v2617_v7  ;;  %v3249_v4 = vld [vmem:[%s5131_s1 + $0x354] sm:$0xf0]  ;;  %v2409_v7 = vor.u32 %v3217_v2, %v2408_v0  ;;  %v2136_v8 = vld [vmem:[%s5131_s1 + $0x28] sm:$0xf] }
  0x8b   :  { %1835 = vmatpush.bf16.msra.mxu0 %v2217_v14  ;;  %v3149_v9 = vld [vmem:[%s5131_s1 + $0x34] sm:$0xf0]  ;;  %v2264_v11 = vld [vmem:[%s5131_s1 + $0x128] sm:$0xf]  ;;  %v2537_v12 = vor.u32 %v3249_v4, %v2536_v3 }
  0x8c   :  { %1849 = vmatpush.bf16.msra.mxu1 %v2345_v15  ;;  %v3181_v13 = vld [vmem:[%s5131_s1 + $0x134] sm:$0xf0]  ;;  %v2392_v14 = vld [vmem:[%s5131_s1 + $0x228] sm:$0xf]  ;;  %v2137_v19 = vor.u32 %v3149_v9, %v2136_v8 }
  0x8d   :  { %1863 = vmatpush.bf16.msra.mxu2 %v2473_v16  ;;  %v3213_v15 = vld [vmem:[%s5131_s1 + $0x234] sm:$0xf0]  ;;  %v2520_v16 = vld [vmem:[%s5131_s1 + $0x328] sm:$0xf]  ;;  %v2265_v22 = vor.u32 %v3181_v13, %v2264_v11 }
  0x8e   :  { %1877 = vmatpush.bf16.msra.mxu3 %v2601_v21  ;;  %v3245_v18 = vld [vmem:[%s5131_s1 + $0x334] sm:$0xf0]  ;;  %v2120_v20 = vld [vmem:[%s5131_s1 + $0x8] sm:$0xf]  ;;  %v2393_v23 = vor.u32 %v3213_v15, %v2392_v14 }
  0x8f   :  { %1836 = vmatpush.bf16.msra.mxu0 %v2201_v27  ;;  %v3145_v21 = vld [vmem:[%s5131_s1 + $0x14] sm:$0xf0]  ;;  %v2248_v24 = vld [vmem:[%s5131_s1 + $0x108] sm:$0xf]  ;;  %v2521_v27 = vor.u32 %v3245_v18, %v2520_v16 }
  0x90   :  { %1850 = vmatpush.bf16.msra.mxu1 %v2329_v28  ;;  %v3177_v25 = vld [vmem:[%s5131_s1 + $0x114] sm:$0xf0]  ;;  %v2376_v26 = vld [vmem:[%s5131_s1 + $0x208] sm:$0xf]  ;;  %v2121_v34 = vor.u32 %v3145_v21, %v2120_v20 }
  0x91   :  { %1864 = vmatpush.bf16.msra.mxu2 %v2457_v29  ;;  %v3209_v28 = vld [vmem:[%s5131_s1 + $0x214] sm:$0xf0]  ;;  %v2504_v29 = vld [vmem:[%s5131_s1 + $0x308] sm:$0xf]  ;;  %v2249_v38 = vor.u32 %v3177_v25, %v2248_v24 }
  0x92   :  { %1878 = vmatpush.bf16.msra.mxu3 %v2585_v33  ;;  %v3241_v30 = vld [vmem:[%s5131_s1 + $0x314] sm:$0xf0]  ;;  %v2744_v31 = vld [vmem:[%s5131_s1 + $0x4e8] sm:$0xf] }
  0x93   :  { %1837 = vmatpush.bf16.msra.mxu0 %v2185_v39  ;;  %v3301_v32 = vld [vmem:[%s5131_s1 + $0x4f4] sm:$0xf0]  ;;  %v2872_v33 = vld [vmem:[%s5131_s1 + $0x5e8] sm:$0xf]  ;;  %v2377_v39 = vor.u32 %v3209_v28, %v2376_v26  ;;  %v2505_v43 = vor.u32 %v3241_v30, %v2504_v29 }
  0x94   :  { %1851 = vmatpush.bf16.msra.mxu1 %v2313_v40  ;;  %v3333_v35 = vld [vmem:[%s5131_s1 + $0x5f4] sm:$0xf0]  ;;  %v3000_v36 = vld [vmem:[%s5131_s1 + $0x6e8] sm:$0xf]  ;;  %v2745_v44 = vor.u32 %v3301_v32, %v2744_v31 }
  0x95   :  { %1865 = vmatpush.bf16.msra.mxu2 %v2441_v41  ;;  %v3365_v37 = vld [vmem:[%s5131_s1 + $0x6f4] sm:$0xf0]  ;;  %v3128_v40 = vld [vmem:[%s5131_s1 + $0x7e8] sm:$0xf]  ;;  %v2873_v45 = vor.u32 %v3333_v35, %v2872_v33 }
  0x96   :  { %1879 = vmatpush.bf16.msra.mxu3 %v2569_v48  ;;  %v3397_v41 = vld [vmem:[%s5131_s1 + $0x7f4] sm:$0xf0]  ;;  %v3001_v48 = vor.u32 %v3365_v37, %v3000_v36  ;;  %v2728_v49 = vld [vmem:[%s5131_s1 + $0x4c8] sm:$0xf] }
  0x97   :  { %1838 = vmatpush.bf16.msra.mxu0 %v2169_v55  ;;  %v3297_v51 = vld [vmem:[%s5131_s1 + $0x4d4] sm:$0xf0]  ;;  %v2856_v52 = vld [vmem:[%s5131_s1 + $0x5c8] sm:$0xf]  ;;  %v3129_v53 = vor.u32 %v3397_v41, %v3128_v40 }
  0x98   :  { %1852 = vmatpush.bf16.msra.mxu1 %v2297_v56  ;;  %v3329_v54 = vld [vmem:[%s5131_s1 + $0x5d4] sm:$0xf0]  ;;  %v2984_v55 = vld [vmem:[%s5131_s1 + $0x6c8] sm:$0xf]  ;;  %v2729_v60 = vor.u32 %v3297_v51, %v2728_v49 }
  0x99   :  { %1866 = vmatpush.bf16.msra.mxu2 %v2425_v57  ;;  %v3361_v56 = vld [vmem:[%s5131_s1 + $0x6d4] sm:$0xf0]  ;;  %v3112_v57 = vld [vmem:[%s5131_s1 + $0x7c8] sm:$0xf]  ;;  %v2857_v61 = vor.u32 %v3329_v54, %v2856_v52 }
  0x9a   :  { %1880 = vmatpush.bf16.msra.mxu3 %v2553_v62  ;;  %v3393_v59 = vld [vmem:[%s5131_s1 + $0x7d4] sm:$0xf0]  ;;  %v2985_v62 = vor.u32 %v3361_v56, %v2984_v55  ;;  %v2712_v63 = vld [vmem:[%s5131_s1 + $0x4a8] sm:$0xf] }
  0x9b   :  { %1839 = vmatpush.bf16.msra.mxu0 %v2153_v5  ;;  %v3293_v0 = vld [vmem:[%s5131_s1 + $0x4b4] sm:$0xf0]  ;;  %v2840_v2 = vld [vmem:[%s5131_s1 + $0x5a8] sm:$0xf]  ;;  %v3113_v3 = vor.u32 %v3393_v59, %v3112_v57 }
  0x9c   :  { %1853 = vmatpush.bf16.msra.mxu1 %v2281_v6  ;;  %v3325_v4 = vld [vmem:[%s5131_s1 + $0x5b4] sm:$0xf0]  ;;  %v2968_v5 = vld [vmem:[%s5131_s1 + $0x6a8] sm:$0xf]  ;;  %v2713_v9 = vor.u32 %v3293_v0, %v2712_v63 }
  0x9d   :  { %1867 = vmatpush.bf16.msra.mxu2 %v2409_v7  ;;  %v3357_v6 = vld [vmem:[%s5131_s1 + $0x6b4] sm:$0xf0]  ;;  %v3096_v7 = vld [vmem:[%s5131_s1 + $0x7a8] sm:$0xf]  ;;  %v2841_v11 = vor.u32 %v3325_v4, %v2840_v2 }
  0x9e   :  { %1881 = vmatpush.bf16.msra.mxu3 %v2537_v12  ;;  %v3389_v8 = vld [vmem:[%s5131_s1 + $0x7b4] sm:$0xf0]  ;;  %v2969_v12 = vor.u32 %v3357_v6, %v2968_v5  ;;  %v2696_v13 = vld [vmem:[%s5131_s1 + $0x488] sm:$0xf] }
  0x9f   :  { %1840 = vmatpush.bf16.msra.mxu0 %v2137_v19  ;;  %v3289_v14 = vld [vmem:[%s5131_s1 + $0x494] sm:$0xf0]  ;;  %v2824_v15 = vld [vmem:[%s5131_s1 + $0x588] sm:$0xf]  ;;  %v3097_v16 = vor.u32 %v3389_v8, %v3096_v7 }
  0xa0   :  { %1854 = vmatpush.bf16.msra.mxu1 %v2265_v22  ;;  %v3321_v18 = vld [vmem:[%s5131_s1 + $0x594] sm:$0xf0]  ;;  %v2952_v19 = vld [vmem:[%s5131_s1 + $0x688] sm:$0xf] }
  0xa1   :  { %1868 = vmatpush.bf16.msra.mxu2 %v2393_v23  ;;  %v3353_v20 = vld [vmem:[%s5131_s1 + $0x694] sm:$0xf0]  ;;  %v3080_v21 = vld [vmem:[%s5131_s1 + $0x788] sm:$0xf]  ;;  %v2697_v23 = vor.u32 %v3289_v14, %v2696_v13  ;;  %v2825_v24 = vor.u32 %v3321_v18, %v2824_v15  ;;  %v3171_v14 = vld [vmem:[%s5131_s1 + $0xec] sm:$0xf] }
  0xa2   :  { %1882 = vmatpush.bf16.msra.mxu3 %v2521_v27  ;;  %v3385_v22 = vld [vmem:[%s5131_s1 + $0x794] sm:$0xf0]  ;;  %v2953_v25 = vor.u32 %v3353_v20, %v2952_v19  ;;  %v2680_v26 = vld [vmem:[%s5131_s1 + $0x468] sm:$0xf]  ;;  %v2234_v15 = vld [vmem:[%s5131_s1 + $0xf8] sm:$0xf0] }
  0xa3   :  { %1841 = vmatpush.bf16.msra.mxu0 %v2121_v34  ;;  %v3285_v27 = vld [vmem:[%s5131_s1 + $0x474] sm:$0xf0]  ;;  %v2808_v28 = vld [vmem:[%s5131_s1 + $0x568] sm:$0xf]  ;;  %v3081_v29 = vor.u32 %v3385_v22, %v3080_v21  ;;  %v2362_v19 = vld [vmem:[%s5131_s1 + $0x1f8] sm:$0xf0] }
  0xa4   :  { %1855 = vmatpush.bf16.msra.mxu1 %v2249_v38  ;;  %v3317_v30 = vld [vmem:[%s5131_s1 + $0x574] sm:$0xf0]  ;;  %v2936_v31 = vld [vmem:[%s5131_s1 + $0x668] sm:$0xf]  ;;  %v2681_v35 = vor.u32 %v3285_v27, %v2680_v26  ;;  %v3235_v20 = vld [vmem:[%s5131_s1 + $0x2ec] sm:$0xf]  ;;  %v2237_v27 = vor.u32 %v3171_v14, %v2234_v15 }
  0xa5   :  { %1869 = vmatpush.bf16.msra.mxu2 %v2377_v39  ;;  %v3349_v32 = vld [vmem:[%s5131_s1 + $0x674] sm:$0xf0]  ;;  %v3064_v33 = vld [vmem:[%s5131_s1 + $0x768] sm:$0xf]  ;;  %v2809_v36 = vor.u32 %v3317_v30, %v2808_v28  ;;  %v2490_v21 = vld [vmem:[%s5131_s1 + $0x2f8] sm:$0xf0] }
  0xa6   :  { %1883 = vmatpush.bf16.msra.mxu3 %v2505_v43  ;;  %1842 = vmatmul.bf16.vlgmr.msra.gmra.mxu0 %v3676_v58  ;;  %v3381_v34 = vld [vmem:[%s5131_s1 + $0x774] sm:$0xf0]  ;;  %v2937_v37 = vor.u32 %v3349_v32, %v2936_v31  ;;  %v2664_v38 = vld [vmem:[%s5131_s1 + $0x448] sm:$0xf]  ;;  %v3167_v30 = vld [vmem:[%s5131_s1 + $0xcc] sm:$0xf] }
  0xa7   :  { %1890 = vmatpush.bf16.msrb.mxu0 %v2745_v44  ;;  %1856 = vmatmul.bf16.vlgmr.msra.gmra.mxu1 %v3712_v10  ;;  %v3281_v39 = vld [vmem:[%s5131_s1 + $0x454] sm:$0xf0]  ;;  %v2792_v40 = vld [vmem:[%s5131_s1 + $0x548] sm:$0xf]  ;;  %v3065_v41 = vor.u32 %v3381_v34, %v3064_v33  ;;  %v2218_v31 = vld [vmem:[%s5131_s1 + $0xd8] sm:$0xf0] }
  0xa8   :  { %1904 = vmatpush.bf16.msrb.mxu1 %v2873_v45  ;;  %1870 = vmatmul.bf16.vlgmr.msra.gmra.mxu2 %v3690_v1  ;;  %v3313_v43 = vld [vmem:[%s5131_s1 + $0x554] sm:$0xf0]  ;;  %v2920_v44 = vld [vmem:[%s5131_s1 + $0x648] sm:$0xf]  ;;  %v2665_v51 = vor.u32 %v3281_v39, %v2664_v38  ;;  %v3199_v32 = vld [vmem:[%s5131_s1 + $0x1cc] sm:$0xf]  ;;  %v2221_v39 = vor.u32 %v3167_v30, %v2218_v31 }
  0xa9   :  { %1918 = vmatpush.bf16.msrb.mxu2 %v3001_v48  ;;  %1884 = vmatmul.bf16.vlgmr.msra.gmra.mxu3 %v3726_v17  ;;  %v3345_v45 = vld [vmem:[%s5131_s1 + $0x654] sm:$0xf0]  ;;  %v3048_v48 = vld [vmem:[%s5131_s1 + $0x748] sm:$0xf]  ;;  %v2793_v52 = vor.u32 %v3313_v43, %v2792_v40  ;;  %v2346_v34 = vld [vmem:[%s5131_s1 + $0x1d8] sm:$0xf0] }
  0xaa   :  { %1932 = vmatpush.bf16.msrb.mxu3 %v3129_v53  ;;  %v3377_v49 = vld [vmem:[%s5131_s1 + $0x754] sm:$0xf0]  ;;  %v2921_v53 = vor.u32 %v3345_v45, %v2920_v44  ;;  %v2648_v54 = vld [vmem:[%s5131_s1 + $0x428] sm:$0xf]  ;;  %v2602_v38 = vld [vmem:[%s5131_s1 + $0x3d8] sm:$0xf0]  ;;  %v2349_v40 = vor.u32 %v3199_v32, %v2346_v34 }
  0xab   :  { %1891 = vmatpush.bf16.msrb.mxu0 %v2729_v60  ;;  %v3277_v55 = vld [vmem:[%s5131_s1 + $0x434] sm:$0xf0]  ;;  %v2776_v56 = vld [vmem:[%s5131_s1 + $0x528] sm:$0xf]  ;;  %v3049_v57 = vor.u32 %v3377_v49, %v3048_v48  ;;  %v3163_v43 = vld [vmem:[%s5131_s1 + $0xac] sm:$0xf] }
  0xac   :  { %1905 = vmatpush.bf16.msrb.mxu1 %v2857_v61  ;;  %v3309_v59 = vld [vmem:[%s5131_s1 + $0x534] sm:$0xf0]  ;;  %v2904_v60 = vld [vmem:[%s5131_s1 + $0x628] sm:$0xf]  ;;  %v2649_v0 = vor.u32 %v3277_v55, %v2648_v54  ;;  %v2202_v44 = vld [vmem:[%s5131_s1 + $0xb8] sm:$0xf0] }
  0xad   :  { %1919 = vmatpush.bf16.msrb.mxu2 %v2985_v62  ;;  %v3341_v61 = vld [vmem:[%s5131_s1 + $0x634] sm:$0xf0]  ;;  %v3032_v62 = vld [vmem:[%s5131_s1 + $0x728] sm:$0xf]  ;;  %v2777_v4 = vor.u32 %v3309_v59, %v2776_v56  ;;  %v3195_v45 = vld [vmem:[%s5131_s1 + $0x1ac] sm:$0xf]  ;;  %v2205_v55 = vor.u32 %v3163_v43, %v2202_v44 }
  0xae   :  { %1933 = vmatpush.bf16.msrb.mxu3 %v3113_v3  ;;  %v3373_v63 = vld [vmem:[%s5131_s1 + $0x734] sm:$0xf0]  ;;  %v2632_v2 = vld [vmem:[%s5131_s1 + $0x408] sm:$0xf]  ;;  %v2905_v5 = vor.u32 %v3341_v61, %v2904_v60  ;;  %v2330_v49 = vld [vmem:[%s5131_s1 + $0x1b8] sm:$0xf0] }
  0xaf   :  { %1892 = vmatpush.bf16.msrb.mxu0 %v2713_v9  ;;  %v3273_v3 = vld [vmem:[%s5131_s1 + $0x414] sm:$0xf0]  ;;  %v2760_v6 = vld [vmem:[%s5131_s1 + $0x508] sm:$0xf]  ;;  %v3033_v9 = vor.u32 %v3373_v63, %v3032_v62  ;;  %v2586_v54 = vld [vmem:[%s5131_s1 + $0x3b8] sm:$0xf0]  ;;  %v2333_v56 = vor.u32 %v3195_v45, %v2330_v49 }
  0xb0   :  { %1906 = vmatpush.bf16.msrb.mxu1 %v2841_v11  ;;  %v3305_v7 = vld [vmem:[%s5131_s1 + $0x514] sm:$0xf0]  ;;  %v2888_v8 = vld [vmem:[%s5131_s1 + $0x608] sm:$0xf]  ;;  %v2633_v18 = vor.u32 %v3273_v3, %v2632_v2  ;;  %v3159_v59 = vld [vmem:[%s5131_s1 + $0x8c] sm:$0xf] }
  0xb1   :  { %1920 = vmatpush.bf16.msrb.mxu2 %v2969_v12  ;;  %v3337_v11 = vld [vmem:[%s5131_s1 + $0x614] sm:$0xf0]  ;;  %v3016_v12 = vld [vmem:[%s5131_s1 + $0x708] sm:$0xf]  ;;  %v2761_v22 = vor.u32 %v3305_v7, %v2760_v6  ;;  %v2186_v60 = vld [vmem:[%s5131_s1 + $0x98] sm:$0xf0]  ;;  %v4763_v6 = vpop.f32.mrf.mxu0 }
  0xb2   :  { %1934 = vmatpush.bf16.msrb.mxu3 %v3097_v16  ;;  %v3369_v13 = vld [vmem:[%s5131_s1 + $0x714] sm:$0xf0]  ;;  %v3203_v16 = vld [vmem:[%s5131_s1 + $0x1ec] sm:$0xf]  ;;  %v2314_v63 = vld [vmem:[%s5131_s1 + $0x198] sm:$0xf0] }
  0xb3   :  { %1893 = vmatpush.bf16.msrb.mxu0 %v2697_v23  ;;  %v2889_v23 = vor.u32 %v3337_v11, %v2888_v8  ;;  %v3017_v26 = vor.u32 %v3369_v13, %v3016_v12  ;;  %v2365_v28 = vor.u32 %v3203_v16, %v2362_v19  ;;  %v3191_v61 = vld [vmem:[%s5131_s1 + $0x18c] sm:$0xf]  ;;  %v2442_v2 = vld [vmem:[%s5131_s1 + $0x298] sm:$0xf0]  ;;  %v4774_v13 = vpop.f32.mrf.mxu1 }
  0xb4   :  { %1907 = vmatpush.bf16.msrb.mxu1 %v2825_v24  ;;  %v3267_v24 = vld [vmem:[%s5131_s1 + $0x3ec] sm:$0xf]  ;;  %v2317_v7 = vor.u32 %v3191_v61, %v2314_v63  ;;  %v2170_v11 = vld [vmem:[%s5131_s1 + $0x78] sm:$0xf0] }
  0xb5   :  { %1921 = vmatpush.bf16.msrb.mxu2 %v2953_v25  ;;  %v2618_v25 = vld [vmem:[%s5131_s1 + $0x3f8] sm:$0xf0]  ;;  %v3255_v3 = vld [vmem:[%s5131_s1 + $0x38c] sm:$0xf] }
  0xb6   :  { %1935 = vmatpush.bf16.msrb.mxu3 %v3081_v29  ;;  %v2493_v29 = vor.u32 %v3235_v20, %v2490_v21  ;;  %v2621_v33 = vor.u32 %v3267_v24, %v2618_v25  ;;  %v3187_v12 = vld [vmem:[%s5131_s1 + $0x16c] sm:$0xf]  ;;  %v2298_v15 = vld [vmem:[%s5131_s1 + $0x178] sm:$0xf0] }
  0xb7   :  { %1894 = vmatpush.bf16.msrb.mxu0 %v2681_v35  ;;  %v3231_v35 = vld [vmem:[%s5131_s1 + $0x2cc] sm:$0xf]  ;;  %v2554_v20 = vld [vmem:[%s5131_s1 + $0x378] sm:$0xf0] }
  0xb8   :  { %1908 = vmatpush.bf16.msrb.mxu1 %v2809_v36  ;;  %v2474_v36 = vld [vmem:[%s5131_s1 + $0x2d8] sm:$0xf0]  ;;  %v3219_v16 = vld [vmem:[%s5131_s1 + $0x26c] sm:$0xf] }
  0xb9   :  { %1922 = vmatpush.bf16.msrb.mxu2 %v2937_v37  ;;  %v3263_v37 = vld [vmem:[%s5131_s1 + $0x3cc] sm:$0xf]  ;;  %v2154_v25 = vld [vmem:[%s5131_s1 + $0x58] sm:$0xf0] }
  0xba   :  { %1936 = vmatpush.bf16.msrb.mxu3 %v3065_v41  ;;  %v2477_v41 = vor.u32 %v3231_v35, %v2474_v36  ;;  %v2605_v48 = vor.u32 %v3263_v37, %v2602_v38  ;;  %v3251_v19 = vld [vmem:[%s5131_s1 + $0x36c] sm:$0xf]  ;;  %v2410_v30 = vld [vmem:[%s5131_s1 + $0x258] sm:$0xf0]  ;;  %v4817_v35 = vpop.f32.mrf.mxu3 }
  0xbb   :  { %1895 = vmatpush.bf16.msrb.mxu0 %v2665_v51  ;;  %v3227_v51 = vld [vmem:[%s5131_s1 + $0x2ac] sm:$0xf]  ;;  %v2538_v32 = vld [vmem:[%s5131_s1 + $0x358] sm:$0xf0] }
  0xbc   :  { %1909 = vmatpush.bf16.msrb.mxu1 %v2793_v52  ;;  %v2458_v52 = vld [vmem:[%s5131_s1 + $0x2b8] sm:$0xf0]  ;;  %v3151_v24 = vld [vmem:[%s5131_s1 + $0x4c] sm:$0xf] }
  0xbd   :  { %1923 = vmatpush.bf16.msrb.mxu2 %v2921_v53  ;;  %v3259_v53 = vld [vmem:[%s5131_s1 + $0x3ac] sm:$0xf]  ;;  %v2157_v34 = vor.u32 %v3151_v24, %v2154_v25  ;;  %v2266_v43 = vld [vmem:[%s5131_s1 + $0x138] sm:$0xf0] }
  0xbe   :  { %1937 = vmatpush.bf16.msrb.mxu3 %v3049_v57  ;;  %v2461_v57 = vor.u32 %v3227_v51, %v2458_v52  ;;  %v2589_v62 = vor.u32 %v3259_v53, %v2586_v54  ;;  %v3247_v31 = vld [vmem:[%s5131_s1 + $0x34c] sm:$0xf]  ;;  %v2394_v45 = vld [vmem:[%s5131_s1 + $0x238] sm:$0xf0]  ;;  %v4845_v52 = vpop.f32.mrf.mxu1 }
  0xbf   :  { %1896 = vmatpush.bf16.msrb.mxu0 %v2649_v0  ;;  %v3223_v0 = vld [vmem:[%s5131_s1 + $0x28c] sm:$0xf]  ;;  %v2522_v51 = vld [vmem:[%s5131_s1 + $0x338] sm:$0xf0] }
  0xc0   :  { %1910 = vmatpush.bf16.msrb.mxu1 %v2777_v4  ;;  %v2570_v4 = vld [vmem:[%s5131_s1 + $0x398] sm:$0xf0]  ;;  %v2445_v8 = vor.u32 %v3223_v0, %v2442_v2  ;;  %v3147_v38 = vld [vmem:[%s5131_s1 + $0x2c] sm:$0xf] }
  0xc1   :  { %1924 = vmatpush.bf16.msrb.mxu2 %v2905_v5  ;;  %v2189_v5 = vor.u32 %v3159_v59, %v2186_v60  ;;  %v2573_v14 = vor.u32 %v3255_v3, %v2570_v4  ;;  %v3211_v44 = vld [vmem:[%s5131_s1 + $0x22c] sm:$0xf]  ;;  %v2250_v60 = vld [vmem:[%s5131_s1 + $0x118] sm:$0xf0] }
  0xc2   :  { %1938 = vmatpush.bf16.msrb.mxu3 %v3033_v9  ;;  %v3155_v9 = vld [vmem:[%s5131_s1 + $0x6c] sm:$0xf]  ;;  %v2378_v63 = vld [vmem:[%s5131_s1 + $0x218] sm:$0xf0] }
  0xc3   :  { %1897 = vmatpush.bf16.msrb.mxu0 %v2633_v18  ;;  %v2426_v18 = vld [vmem:[%s5131_s1 + $0x278] sm:$0xf0]  ;;  %v2173_v21 = vor.u32 %v3155_v9, %v2170_v11  ;;  %v3243_v49 = vld [vmem:[%s5131_s1 + $0x32c] sm:$0xf] }
  0xc4   :  { %1911 = vmatpush.bf16.msrb.mxu1 %v2761_v22  ;;  %v2301_v22 = vor.u32 %v3187_v12, %v2298_v15  ;;  %v3143_v54 = vld [vmem:[%s5131_s1 + $0xc] sm:$0xf]  ;;  %v2506_v2 = vld [vmem:[%s5131_s1 + $0x318] sm:$0xf0] }
  0xc5   :  { %1925 = vmatpush.bf16.msrb.mxu2 %v2889_v23  ;;  %v2429_v23 = vor.u32 %v3219_v16, %v2426_v18  ;;  %v3175_v59 = vld [vmem:[%s5131_s1 + $0x10c] sm:$0xf]  ;;  %v2746_v4 = vld [vmem:[%s5131_s1 + $0x4f8] sm:$0xf0] }
  0xc6   :  { %1939 = vmatpush.bf16.msrb.mxu3 %v3017_v26  ;;  %1898 = vmatmul.bf16.vlgmr.msrb.gmra.mxu0 %v3904_v42  ;;  %v3183_v26 = vld [vmem:[%s5131_s1 + $0x14c] sm:$0xf]  ;;  %v3002_v11 = vld [vmem:[%s5131_s1 + $0x6f8] sm:$0xf0]  ;;  %v2253_v12 = vor.u32 %v3175_v59, %v2250_v60 }
  0xc7   :  { %1946 = vmatpush.bf16.msra.mxu0 %v2237_v27  ;;  %1912 = vmatmul.bf16.vlgmr.msrb.gmra.mxu1 %v3917_v47  ;;  %v2557_v27 = vor.u32 %v3251_v19, %v2554_v20  ;;  %v3207_v61 = vld [vmem:[%s5131_s1 + $0x20c] sm:$0xf]  ;;  %v3130_v16 = vld [vmem:[%s5131_s1 + $0x7f8] sm:$0xf0] }
  0xc8   :  { %1960 = vmatpush.bf16.msra.mxu1 %v2365_v28  ;;  %1926 = vmatmul.bf16.vlgmr.msrb.gmra.mxu2 %v3915_v46  ;;  %v2282_v28 = vld [vmem:[%s5131_s1 + $0x158] sm:$0xf0]  ;;  %v3239_v0 = vld [vmem:[%s5131_s1 + $0x30c] sm:$0xf] }
  0xc9   :  { %1974 = vmatpush.bf16.msra.mxu2 %v2493_v29  ;;  %1940 = vmatmul.bf16.vlgmr.msrb.gmra.mxu3 %v3925_v50  ;;  %v3215_v29 = vld [vmem:[%s5131_s1 + $0x24c] sm:$0xf]  ;;  %v2285_v36 = vor.u32 %v3183_v26, %v2282_v28  ;;  %v2509_v19 = vor.u32 %v3239_v0, %v2506_v2  ;;  %v2730_v25 = vld [vmem:[%s5131_s1 + $0x4d8] sm:$0xf0] }
  0xca   :  { %1988 = vmatpush.bf16.msra.mxu3 %v2621_v33  ;;  %v4815_v33 = vpop.f32.mrf.mxu2  ;;  %v2413_v37 = vor.u32 %v3215_v29, %v2410_v30  ;;  %v3299_v3 = vld [vmem:[%s5131_s1 + $0x4ec] sm:$0xf]  ;;  %v2858_v28 = vld [vmem:[%s5131_s1 + $0x5d8] sm:$0xf0] }
  0xcb   :  { %1947 = vmatpush.bf16.msra.mxu0 %v2221_v39  ;;  %v2138_v39 = vld [vmem:[%s5131_s1 + $0x38] sm:$0xf0]  ;;  %v3363_v9 = vld [vmem:[%s5131_s1 + $0x6ec] sm:$0xf]  ;;  %v2749_v20 = vor.u32 %v3299_v3, %v2746_v4 }
  0xcc   :  { %1961 = vmatpush.bf16.msra.mxu1 %v2349_v40  ;;  %v3179_v40 = vld [vmem:[%s5131_s1 + $0x12c] sm:$0xf]  ;;  %v2141_v53 = vor.u32 %v3147_v38, %v2138_v39  ;;  %v2986_v30 = vld [vmem:[%s5131_s1 + $0x6d8] sm:$0xf0] }
  0xcd   :  { %1975 = vmatpush.bf16.msra.mxu2 %v2477_v41  ;;  %v2541_v41 = vor.u32 %v3247_v31, %v2538_v32  ;;  %v3395_v15 = vld [vmem:[%s5131_s1 + $0x7ec] sm:$0xf]  ;;  %v2698_v59 = vld [vmem:[%s5131_s1 + $0x498] sm:$0xf0] }
  0xce   :  { %1989 = vmatpush.bf16.msra.mxu3 %v2605_v48  ;;  %v4837_v48 = vpop.f32.mrf.mxu0  ;;  %v3295_v24 = vld [vmem:[%s5131_s1 + $0x4cc] sm:$0xf]  ;;  %v2826_v60 = vld [vmem:[%s5131_s1 + $0x598] sm:$0xf0] }
  0xcf   :  { %1948 = vmatpush.bf16.msra.mxu0 %v2205_v55  ;;  %v2122_v55 = vld [vmem:[%s5131_s1 + $0x18] sm:$0xf0]  ;;  %v3327_v26 = vld [vmem:[%s5131_s1 + $0x5cc] sm:$0xf] }
  0xd0   :  { %1962 = vmatpush.bf16.msra.mxu1 %v2333_v56  ;;  %v2269_v56 = vor.u32 %v3179_v40, %v2266_v43  ;;  %v3359_v29 = vld [vmem:[%s5131_s1 + $0x6cc] sm:$0xf]  ;;  %v2861_v38 = vor.u32 %v3327_v26, %v2858_v28  ;;  %v3082_v2 = vld [vmem:[%s5131_s1 + $0x798] sm:$0xf0] }
  0xd1   :  { %1976 = vmatpush.bf16.msra.mxu2 %v2461_v57  ;;  %v2397_v57 = vor.u32 %v3211_v44, %v2394_v45  ;;  %v3391_v32 = vld [vmem:[%s5131_s1 + $0x7cc] sm:$0xf]  ;;  %v2989_v39 = vor.u32 %v3359_v29, %v2986_v30  ;;  %v2842_v45 = vld [vmem:[%s5131_s1 + $0x5b8] sm:$0xf0]  ;;  %v5020_v29 = vpop.permute.xlu0 %282 }
  0xd2   :  { %1990 = vmatpush.bf16.msra.mxu3 %v2589_v62  ;;  %v2525_v62 = vor.u32 %v3243_v49, %v2522_v51  ;;  %v4895_v18 = vpop.f32.mrf.mxu2  ;;  %v3291_v40 = vld [vmem:[%s5131_s1 + $0x4ac] sm:$0xf]  ;;  %v2970_v51 = vld [vmem:[%s5131_s1 + $0x6b8] sm:$0xf0] }
  0xd3   :  { %1949 = vmatpush.bf16.msra.mxu0 %v2189_v5  ;;  %v3331_v5 = vld [vmem:[%s5131_s1 + $0x5ec] sm:$0xf] }
  0xd4   :  { %1963 = vmatpush.bf16.msra.mxu1 %v2317_v7  ;;  %v2125_v7 = vor.u32 %v3143_v54, %v2122_v55  ;;  %v3323_v43 = vld [vmem:[%s5131_s1 + $0x5ac] sm:$0xf] }
  0xd5   :  { %1977 = vmatpush.bf16.msra.mxu2 %v2445_v8  ;;  %v2874_v8 = vld [vmem:[%s5131_s1 + $0x5f8] sm:$0xf0]  ;;  %v3355_v49 = vld [vmem:[%s5131_s1 + $0x6ac] sm:$0xf]  ;;  %v2845_v55 = vor.u32 %v3323_v43, %v2842_v45  ;;  %v1620_v43 = vadd.f32 %v4763_v6, %v5020_v29 }
  0xd6   :  { %1991 = vmatpush.bf16.msra.mxu3 %v2573_v14  ;;  %v2381_v14 = vor.u32 %v3207_v61, %v2378_v63  ;;  %v4917_v31 = vpop.f32.mrf.mxu0  ;;  %v3351_v61 = vld [vmem:[%s5131_s1 + $0x68c] sm:$0xf] }
  0xd7   :  { %1950 = vmatpush.bf16.msra.mxu0 %v2173_v21  ;;  %v4897_v21 = vpop.f32.mrf.mxu3  ;;  %v3383_v0 = vld [vmem:[%s5131_s1 + $0x78c] sm:$0xf] }
  0xd8   :  { %1964 = vmatpush.bf16.msra.mxu1 %v2301_v22  ;;  %v2877_v22 = vor.u32 %v3331_v5, %v2874_v8  ;;  %v3283_v8 = vld [vmem:[%s5131_s1 + $0x46c] sm:$0xf] }
  0xd9   :  { %1978 = vmatpush.bf16.msra.mxu2 %v2429_v23  ;;  %v3005_v23 = vor.u32 %v3363_v9, %v3002_v11  ;;  %v2682_v9 = vld [vmem:[%s5131_s1 + $0x478] sm:$0xf0]  ;;  %v3315_v11 = vld [vmem:[%s5131_s1 + $0x56c] sm:$0xf] }
  0xda   :  { %1992 = vmatpush.bf16.msra.mxu3 %v2557_v27  ;;  %v3133_v27 = vor.u32 %v3395_v15, %v3130_v16  ;;  %v2810_v15 = vld [vmem:[%s5131_s1 + $0x578] sm:$0xf0]  ;;  %v3347_v16 = vld [vmem:[%s5131_s1 + $0x66c] sm:$0xf] }
  0xdb   :  { %1951 = vmatpush.bf16.msra.mxu0 %v2157_v34  ;;  %v3114_v34 = vld [vmem:[%s5131_s1 + $0x7d8] sm:$0xf0]  ;;  %v3279_v26 = vld [vmem:[%s5131_s1 + $0x44c] sm:$0xf] }
  0xdc   :  { %1965 = vmatpush.bf16.msra.mxu1 %v2285_v36  ;;  %v4925_v36 = vpop.f32.mrf.mxu1  ;;  %v3117_v44 = vor.u32 %v3391_v32, %v3114_v34  ;;  %v3311_v28 = vld [vmem:[%s5131_s1 + $0x54c] sm:$0xf]  ;;  %v2794_v32 = vld [vmem:[%s5131_s1 + $0x558] sm:$0xf0] }
  0xdd   :  { %1979 = vmatpush.bf16.msra.mxu2 %v2413_v37  ;;  %v2733_v37 = vor.u32 %v3295_v24, %v2730_v25  ;;  %v2813_v24 = vor.u32 %v3315_v11, %v2810_v15  ;;  %v3343_v34 = vld [vmem:[%s5131_s1 + $0x64c] sm:$0xf]  ;;  %v2797_v45 = vor.u32 %v3311_v28, %v2794_v32  ;;  %v2890_v11 = vld [vmem:[%s5131_s1 + $0x618] sm:$0xf0] }
  0xde   :  { %1993 = vmatpush.bf16.msra.mxu3 %v2541_v41  ;;  %v2714_v41 = vld [vmem:[%s5131_s1 + $0x4b8] sm:$0xf0]  ;;  %v4983_v4 = vpop.f32.mrf.mxu0 }
  0xdf   :  { %1952 = vmatpush.bf16.msra.mxu0 %v2141_v53  ;;  %v3387_v53 = vld [vmem:[%s5131_s1 + $0x7ac] sm:$0xf]  ;;  %v2717_v54 = vor.u32 %v3291_v40, %v2714_v41  ;;  %v4975_v63 = vpop.f32.mrf.mxu3  ;;  %v3018_v15 = vld [vmem:[%s5131_s1 + $0x718] sm:$0xf0] }
  0xe0   :  { %1966 = vmatpush.bf16.msra.mxu1 %v2269_v56  ;;  %v2973_v56 = vor.u32 %v3355_v49, %v2970_v51 }
  0xe1   :  { %1980 = vmatpush.bf16.msra.mxu2 %v2397_v57  ;;  %v3287_v57 = vld [vmem:[%s5131_s1 + $0x48c] sm:$0xf] }
  0xe2   :  { %1994 = vmatpush.bf16.msra.mxu3 %v2525_v62  ;;  %v2954_v62 = vld [vmem:[%s5131_s1 + $0x698] sm:$0xf0]  ;;  %v2701_v3 = vor.u32 %v3287_v57, %v2698_v59 }
  0xe3   :  { %1953 = vmatpush.bf16.msra.mxu0 %v2125_v7  ;;  %v2957_v7 = vor.u32 %v3351_v61, %v2954_v62  ;;  %v2906_v57 = vld [vmem:[%s5131_s1 + $0x638] sm:$0xf0]  ;;  %v1634_v61 = vadd.f32 %v4774_v13, %v1620_v43 }
  0xe4   :  { %1967 = vmatpush.bf16.msra.mxu1 %v2253_v12  ;;  %v4994_v12 = vpop.f32.mrf.mxu1 }
  0xe5   :  { %1981 = vmatpush.bf16.msra.mxu2 %v2381_v14  ;;  %v3085_v14 = vor.u32 %v3383_v0, %v3082_v2  ;;  %v3271_v2 = vld [vmem:[%s5131_s1 + $0x40c] sm:$0xf] }
  0xe6   :  { %1995 = vmatpush.bf16.msra.mxu3 %v2509_v19  ;;  %1954 = vmatmul.bf16.vlgmr.msra.gmra.mxu0 %v3676_v58  ;;  %v3319_v58 = vld [vmem:[%s5131_s1 + $0x58c] sm:$0xf]  ;;  %v2938_v19 = vld [vmem:[%s5131_s1 + $0x678] sm:$0xf0]  ;;  %v1731_v51 = vpop.f32.mrf.mxu0 }
  0xe7   :  { %2002 = vmatpush.bf16.msrb.mxu0 %v2749_v20  ;;  %1968 = vmatmul.bf16.vlgmr.msra.gmra.mxu1 %v3712_v10  ;;  %v2829_v5 = vor.u32 %v3319_v58, %v2826_v60  ;;  %v3379_v20 = vld [vmem:[%s5131_s1 + $0x76c] sm:$0xf]  ;;  %v2941_v25 = vor.u32 %v3347_v16, %v2938_v19  ;;  %v5093_v16 = vpop.permute.xlu0 %287 }
  0xe8   :  { %2016 = vmatpush.bf16.msrb.mxu1 %v2877_v22  ;;  %1982 = vmatmul.bf16.vlgmr.msra.gmra.mxu2 %v3690_v1  ;;  %v3098_v1 = vld [vmem:[%s5131_s1 + $0x7b8] sm:$0xf0]  ;;  %v3371_v58 = vld [vmem:[%s5131_s1 + $0x72c] sm:$0xf]  ;;  %v1622_v28 = vadd.f32 %v4837_v48, %v5093_v16 }
  0xe9   :  { %2030 = vmatpush.bf16.msrb.mxu2 %v3005_v23  ;;  %1996 = vmatmul.bf16.vlgmr.msra.gmra.mxu3 %v3726_v17  ;;  %v4964_v17 = vpop.f32.mrf.mxu2  ;;  %v3101_v10 = vor.u32 %v3387_v53, %v3098_v1  ;;  %v3066_v22 = vld [vmem:[%s5131_s1 + $0x778] sm:$0xf0]  ;;  %v2685_v23 = vor.u32 %v3283_v8, %v2682_v9  ;;  %v3275_v53 = vld [vmem:[%s5131_s1 + $0x42c] sm:$0xf] }
  0xea   :  { %2044 = vmatpush.bf16.msrb.mxu3 %v3133_v27  ;;  %v2666_v27 = vld [vmem:[%s5131_s1 + $0x458] sm:$0xf0]  ;;  %v3069_v30 = vor.u32 %v3379_v20, %v3066_v22  ;;  %v3335_v9 = vld [vmem:[%s5131_s1 + $0x60c] sm:$0xf]  ;;  %v1648_v22 = vadd.f32 %v4815_v33, %v1634_v61 }
  0xeb   :  { %2003 = vmatpush.bf16.msrb.mxu0 %v2733_v37  ;;  %v2922_v37 = vld [vmem:[%s5131_s1 + $0x658] sm:$0xf0]  ;;  %v2669_v41 = vor.u32 %v3279_v26, %v2666_v27 }
  0xec   :  { %2017 = vmatpush.bf16.msrb.mxu1 %v2861_v38  ;;  %v3375_v38 = vld [vmem:[%s5131_s1 + $0x74c] sm:$0xf]  ;;  %v2925_v49 = vor.u32 %v3343_v34, %v2922_v37  ;;  %v2650_v1 = vld [vmem:[%s5131_s1 + $0x438] sm:$0xf0]  ;;  %v1745_v59 = vpop.f32.mrf.mxu1  ;;  %v1662_v34 = vadd.f32 %v4817_v35, %v1648_v22  ;;  %v1636_v37 = vadd.f32 %v4845_v52, %v1622_v28 }
  0xed   :  { %2031 = vmatpush.bf16.msrb.mxu2 %v2989_v39  ;;  %v3050_v39 = vld [vmem:[%s5131_s1 + $0x758] sm:$0xf0]  ;;  %v2653_v60 = vor.u32 %v3275_v53, %v2650_v1 }
  0xee   :  { %2045 = vmatpush.bf16.msrb.mxu3 %v3117_v44  ;;  %v5041_v44 = vpop.f32.mrf.mxu3  ;;  %v3053_v6 = vor.u32 %v3375_v38, %v3050_v39  ;;  %v2762_v8 = vld [vmem:[%s5131_s1 + $0x518] sm:$0xf0]  ;;  %v1676_v48 = vadd.f32 %v4917_v31, %v1662_v34 }
  0xef   :  { %2004 = vmatpush.bf16.msrb.mxu0 %v2717_v54  ;;  %v3307_v54 = vld [vmem:[%s5131_s1 + $0x52c] sm:$0xf] }
  0xf0   :  { %2018 = vmatpush.bf16.msrb.mxu1 %v2845_v55  ;;  %v2778_v55 = vld [vmem:[%s5131_s1 + $0x538] sm:$0xf0]  ;;  %v1690_v52 = vadd.f32 %v4925_v36, %v1676_v48 }
  0xf1   :  { %2032 = vmatpush.bf16.msrb.mxu2 %v2973_v56  ;;  %v5037_v40 = vpop.f32.mrf.mxu2  ;;  %v3339_v56 = vld [vmem:[%s5131_s1 + $0x62c] sm:$0xf]  ;;  %v2781_v62 = vor.u32 %v3307_v54, %v2778_v55 }
  0xf2   :  { %2046 = vmatpush.bf16.msrb.mxu3 %v3101_v10  ;;  %v3034_v10 = vld [vmem:[%s5131_s1 + $0x738] sm:$0xf0]  ;;  %v2909_v0 = vor.u32 %v3339_v56, %v2906_v57 }
  0xf3   :  { %2005 = vmatpush.bf16.msrb.mxu0 %v2701_v3  ;;  %v2634_v3 = vld [vmem:[%s5131_s1 + $0x418] sm:$0xf0]  ;;  %v3037_v13 = vor.u32 %v3371_v58, %v3034_v10 }
  0xf4   :  { %2019 = vmatpush.bf16.msrb.mxu1 %v2829_v5  ;;  %v3303_v5 = vld [vmem:[%s5131_s1 + $0x50c] sm:$0xf]  ;;  %v2637_v19 = vor.u32 %v3271_v2, %v2634_v3  ;;  %v1747_v32 = vpop.f32.mrf.mxu1 }
  0xf5   :  { %2033 = vmatpush.bf16.msrb.mxu2 %v2957_v7  ;;  %v1732_v7 = vadd.f32 %v1731_v51, %v5020_v29 }
  0xf6   :  { %2047 = vmatpush.bf16.msrb.mxu3 %v3085_v14  ;;  %v3367_v14 = vld [vmem:[%s5131_s1 + $0x70c] sm:$0xf] }
  0xf7   :  { %2006 = vmatpush.bf16.msrb.mxu0 %v2685_v23  ;;  %v2765_v23 = vor.u32 %v3303_v5, %v2762_v8  ;;  %v1746_v26 = vadd.f32 %v1745_v59, %v1732_v7  ;;  %v3021_v27 = vor.u32 %v3367_v14, %v3018_v15 }
  0xf8   :  { %2020 = vmatpush.bf16.msrb.mxu1 %v2813_v24  ;;  %v2893_v24 = vor.u32 %v3335_v9, %v2890_v11 }
  0xf9   :  { %2034 = vmatpush.bf16.msrb.mxu2 %v2941_v25  ;;  %v1759_v20 = vpop.f32.mrf.mxu2  ;;  %v1773_v25 = vpop.f32.mrf.mxu3 }
  0xfa   :  { %2048 = vmatpush.bf16.msrb.mxu3 %v3069_v30  ;;  %v1733_v30 = vpop.f32.mrf.mxu0  ;;  %v1760_v33 = vadd.f32 %v1759_v20, %v1746_v26 }
  0xfb   :  { %2007 = vmatpush.bf16.msrb.mxu0 %v2669_v41  ;;  %v1734_v38 = vadd.f32 %v1733_v30, %v5093_v16  ;;  %v1650_v41 = vadd.f32 %v4895_v18, %v1636_v37 }
  0xfc   :  { %2021 = vmatpush.bf16.msrb.mxu1 %v2797_v45  ;;  %v1774_v39 = vadd.f32 %v1773_v25, %v1760_v33 }
  0xfd   :  { %2035 = vmatpush.bf16.msrb.mxu2 %v2925_v49  ;;  %v1748_v43 = vadd.f32 %v1747_v32, %v1734_v38  ;;  %v1664_v53 = vadd.f32 %v4897_v21, %v1650_v41 }
  0xfe   :  { %2049 = vmatpush.bf16.msrb.mxu3 %v3053_v6 }
  0xff   :  { %2008 = vmatpush.bf16.msrb.mxu0 %v2653_v60  ;;  %v1678_v31 = vadd.f32 %v4983_v4, %v1664_v53 }
 0x100   :  { %2022 = vmatpush.bf16.msrb.mxu1 %v2781_v62 }
 0x101   :  { %2036 = vmatpush.bf16.msrb.mxu2 %v2909_v0  ;;  %v1761_v35 = vpop.f32.mrf.mxu2  ;;  %v1775_v45 = vpop.f32.mrf.mxu3  ;;  %v1692_v36 = vadd.f32 %v4994_v12, %v1678_v31 }
 0x102   :  { %2050 = vmatpush.bf16.msrb.mxu3 %v3037_v13 }
 0x103   :  { %2009 = vmatpush.bf16.msrb.mxu0 %v2637_v19  ;;  %v1787_v49 = vpop.f32.mrf.mxu0  ;;  %v1706_v21 = vadd.f32 %v5037_v40, %v1692_v36 }
 0x104   :  { %2023 = vmatpush.bf16.msrb.mxu1 %v2765_v23  ;;  %v1801_v51 = vpop.f32.mrf.mxu1 }
 0x105   :  { %2037 = vmatpush.bf16.msrb.mxu2 %v2893_v24  ;;  %v1720_v4 = vadd.f32 %v5041_v44, %v1706_v21 }
 0x106   :  { %2051 = vmatpush.bf16.msrb.mxu3 %v3021_v27  ;;  %2010 = vmatmul.bf16.vlgmr.msrb.gmra.mxu0 %v3904_v42  ;;  %v1788_v42 = vadd.f32 %v1787_v49, %v1774_v39 }
 0x107   :  { %2024 = vmatmul.bf16.vlgmr.msrb.gmra.mxu1 %v3917_v47  ;;  %v1762_v47 = vadd.f32 %v1761_v35, %v1748_v43  ;;  %v2062_v12 = vmax.f32 %v1720_v4, 0.0 }
 0x108   :  { %2038 = vmatmul.bf16.vlgmr.msrb.gmra.mxu2 %v3915_v46  ;;  %v1704_v46 = vadd.f32 %v4964_v17, %v1690_v52  ;;  %v1802_v1 = vadd.f32 %v1801_v51, %v1788_v42 }
 0x109   :  { %2052 = vmatmul.bf16.vlgmr.msrb.gmra.mxu3 %v3925_v50  ;;  %v1776_v50 = vadd.f32 %v1775_v45, %v1762_v47 }
 0x10a   :  { %v1718_v6 = vadd.f32 %v4975_v63, %v1704_v46 }
 0x10b   :  { %v1815_v54 = vpop.f32.mrf.mxu2  ;;  %v1789_v55 = vpop.f32.mrf.mxu0 }
 0x10c   :  { %v1816_v18 = vadd.f32 %v1815_v54, %v1802_v1  ;;  %v1829_v56 = vpop.f32.mrf.mxu3  ;;  %v1790_v57 = vadd.f32 %v1789_v55, %v1776_v50  ;;  %v1803_v58 = vpop.f32.mrf.mxu1  ;;  %v2058_v10 = vmax.f32 %v1718_v6, 0.0 }
 0x10e   :  { %v1830_v59 = vadd.f32 %v1829_v56, %v1816_v18  ;;  %v1804_v61 = vadd.f32 %v1803_v58, %v1790_v57 }
 0x110   :  { %v2059_v60 = vmax.f32 %v1830_v59, 0.0 }
 0x112   :  { %v2066_v17 = vpack.c.bf16 %v2059_v60, %v2058_v10 }
 0x113   :  { %v1817_v62 = vpop.f32.mrf.mxu2 }
 0x114   :  { %2070 = vst [vmem:[%s5134_s3] sm:$0xff] %v2066_v17  ;;  %v1818_v63 = vadd.f32 %v1817_v62, %v1804_v61  ;;  %v1831_v0 = vpop.f32.mrf.mxu3 }
 0x116   :  { %v1832_v2 = vadd.f32 %v1831_v0, %v1818_v63 }
 0x118   :  { %v2063_v3 = vmax.f32 %v1832_v2, 0.0 }
 0x11a   :  { %v2068_v5 = vpack.c.bf16 %v2063_v3, %v2062_v12 }
 0x11c   :  { %2072 = vst [vmem:[%s5134_s3 + $0x10] sm:$0xff] %v2068_v5 }
 0x123   :  { %v1843_v40 = vpop.f32.mrf.mxu0 }
 0x124   :  { %v1857_v7 = vpop.f32.mrf.mxu1  ;;  %v1844_v25 = vadd.f32 %v1843_v40, %v5020_v29 }
 0x126   :  { %v1858_v30 = vadd.f32 %v1857_v7, %v1844_v25 }
 0x12b   :  { %v1871_v13 = vpop.f32.mrf.mxu2  ;;  %v1845_v9 = vpop.f32.mrf.mxu0 }
 0x12c   :  { %v1885_v8 = vpop.f32.mrf.mxu3  ;;  %v1859_v44 = vpop.f32.mrf.mxu1  ;;  %v1872_v34 = vadd.f32 %v1871_v13, %v1858_v30  ;;  %v1846_v38 = vadd.f32 %v1845_v9, %v5093_v16 }
 0x12e   :  { %v1886_v39 = vadd.f32 %v1885_v8, %v1872_v34  ;;  %v1860_v43 = vadd.f32 %v1859_v44, %v1846_v38 }
 0x133   :  { %v1873_v11 = vpop.f32.mrf.mxu2 }
 0x134   :  { %v1887_v14 = vpop.f32.mrf.mxu3  ;;  %v1874_v51 = vadd.f32 %v1873_v11, %v1860_v43 }
 0x136   :  { %v1888_v50 = vadd.f32 %v1887_v14, %v1874_v51 }
 0x143   :  { %v1899_v15 = vpop.f32.mrf.mxu0 }
 0x144   :  { %v1913_v19 = vpop.f32.mrf.mxu1  ;;  %v1900_v52 = vadd.f32 %v1899_v15, %v1886_v39 }
 0x146   :  { %v1914_v47 = vadd.f32 %v1913_v19, %v1900_v52 }
 0x14b   :  { %v1927_v20 = vpop.f32.mrf.mxu2  ;;  %v1901_v23 = vpop.f32.mrf.mxu0 }
 0x14c   :  { %v1941_v22 = vpop.f32.mrf.mxu3  ;;  %v1915_v24 = vpop.f32.mrf.mxu1  ;;  %v1928_v18 = vadd.f32 %v1927_v20, %v1914_v47  ;;  %v1902_v56 = vadd.f32 %v1901_v23, %v1888_v50 }
 0x14e   :  { %v1942_v59 = vadd.f32 %v1941_v22, %v1928_v18  ;;  %v1916_v60 = vadd.f32 %v1915_v24, %v1902_v56 }
 0x150   :  { %v2060_v62 = vmax.f32 %v1942_v59, 0.0 }
 0x153   :  { %v1929_v26 = vpop.f32.mrf.mxu2 }
 0x154   :  { %v1943_v27 = vpop.f32.mrf.mxu3  ;;  %v1930_v4 = vadd.f32 %v1929_v26, %v1916_v60 }
 0x156   :  { %v1944_v5 = vadd.f32 %v1943_v27, %v1930_v4 }
 0x158   :  { %v2064_v8 = vmax.f32 %v1944_v5, 0.0 }
 0x163   :  { %v1955_v28 = vpop.f32.mrf.mxu0 }
 0x164   :  { %v1969_v32 = vpop.f32.mrf.mxu1  ;;  %v1956_v33 = vadd.f32 %v1955_v28, %v5020_v29 }
 0x166   :  { %v1970_v35 = vadd.f32 %v1969_v32, %v1956_v33 }
 0x16b   :  { %v1983_v37 = vpop.f32.mrf.mxu2  ;;  %v1957_v41 = vpop.f32.mrf.mxu0 }
 0x16c   :  { %v1997_v48 = vpop.f32.mrf.mxu3  ;;  %v1971_v45 = vpop.f32.mrf.mxu1  ;;  %v1984_v49 = vadd.f32 %v1983_v37, %v1970_v35  ;;  %v1958_v42 = vadd.f32 %v1957_v41, %v5093_v16 }
 0x16e   :  { %v1998_v46 = vadd.f32 %v1997_v48, %v1984_v49  ;;  %v1972_v1 = vadd.f32 %v1971_v45, %v1958_v42 }
 0x173   :  { %v1985_v53 = vpop.f32.mrf.mxu2 }
 0x174   :  { %v1999_v31 = vpop.f32.mrf.mxu3  ;;  %v1986_v55 = vadd.f32 %v1985_v53, %v1972_v1 }
 0x176   :  { %v2000_v58 = vadd.f32 %v1999_v31, %v1986_v55 }
 0x183   :  { %v2011_v29 = vpop.f32.mrf.mxu0 }
 0x184   :  { %v2012_v54 = vadd.f32 %v2011_v29, %v1998_v46  ;;  %v2025_v6 = vpop.f32.mrf.mxu1 }
 0x186   :  { %v2026_v36 = vadd.f32 %v2025_v6, %v2012_v54 }
 0x18b   :  { %v2039_v57 = vpop.f32.mrf.mxu2  ;;  %v2013_v16 = vpop.f32.mrf.mxu0 }
 0x18c   :  { %v2040_v10 = vadd.f32 %v2039_v57, %v2026_v36  ;;  %v2053_v21 = vpop.f32.mrf.mxu3  ;;  %v2014_v61 = vadd.f32 %v2013_v16, %v2000_v58  ;;  %v2027_v0 = vpop.f32.mrf.mxu1 }
 0x18e   :  { %v2054_v17 = vadd.f32 %v2053_v21, %v2040_v10  ;;  %v2028_v12 = vadd.f32 %v2027_v0, %v2014_v61 }
 0x190   :  { %v2061_v63 = vmax.f32 %v2054_v17, 0.0 }
 0x192   :  { %v2067_v2 = vpack.c.bf16 %v2061_v63, %v2060_v62 }
 0x193   :  { %v2041_v3 = vpop.f32.mrf.mxu2 }
 0x194   :  { %2071 = vst [vmem:[%s5134_s3 + $0x8] sm:$0xff] %v2067_v2  ;;  %v2042_v40 = vadd.f32 %v2041_v3, %v2028_v12  ;;  %v2055_v7 = vpop.f32.mrf.mxu3 }
 0x196   :  { %v2056_v13 = vadd.f32 %v2055_v7, %v2042_v40 }
 0x198   :  { %v2065_v9 = vmax.f32 %v2056_v13, 0.0 }
 0x19a   :  { %v2069_v44 = vpack.c.bf16 %v2065_v9, %v2064_v8 }
 0x19c   :  { %2073 = vst [vmem:[%s5134_s3 + $0x18] sm:$0xff] %v2069_v44 }

// kernel: autoencoder_forward.5
= control target key start
LH: loop header
LB: loop body
LE: loop exit
PB: predicated region body
PF: predicated region fallthrough
CT: control target
= control target key end

     0   :  { %s2950_s1 = inlined_call_operand.vmem [shape: bf16[1024,256], index: 1, kind: input, shape index: {}]   ;;  %s2951_s0 = inlined_call_operand.vmem [shape: bf16[32,1024], index: 0, kind: input, shape index: {}]   ;;  %s2952_s2 = inlined_call_operand.vmem [shape: f32[32,1], index: 2, kind: input, shape index: {}]   ;;  %s2953_s3 = inlined_call_operand.vmem [shape: bf16[32,256], index: 3, kind: output, shape index: {}]  }
   0x1   :  { %v1348_v0 = vld [vmem:[%s2950_s1 + $0x70] sm:$0xf]  ;;  %v1833_v1 = vld [vmem:[%s2950_s1 + $0x74] sm:$0xf0]  ;;  %v1340_v11 = vld [vmem:[%s2950_s1 + $0x60] sm:$0xf] }
   0x2   :  { %v1412_v2 = vld [vmem:[%s2950_s1 + $0xf0] sm:$0xf]  ;;  %v1349_v3 = vor.u32 %v1833_v1, %v1348_v0  ;;  %v1849_v4 = vld [vmem:[%s2950_s1 + $0xf4] sm:$0xf0]  ;;  %v1831_v13 = vld [vmem:[%s2950_s1 + $0x64] sm:$0xf0] }
   0x3   :  { %v1476_v5 = vld [vmem:[%s2950_s1 + $0x170] sm:$0xf]  ;;  %v1865_v6 = vld [vmem:[%s2950_s1 + $0x174] sm:$0xf0]  ;;  %v1413_v7 = vor.u32 %v1849_v4, %v1412_v2  ;;  %v1404_v14 = vld [vmem:[%s2950_s1 + $0xe0] sm:$0xf]  ;;  %v1341_v16 = vor.u32 %v1831_v13, %v1340_v11 }
   0x4   :  { %v1477_v8 = vor.u32 %v1865_v6, %v1476_v5  ;;  %v1540_v9 = vld [vmem:[%s2950_s1 + $0x1f0] sm:$0xf]  ;;  %v1881_v10 = vld [vmem:[%s2950_s1 + $0x1f4] sm:$0xf0]  ;;  %902 = vmatpush.bf16.msra.mxu0 %v1349_v3  ;;  %v1847_v15 = vld [vmem:[%s2950_s1 + $0xe4] sm:$0xf0] }
   0x5   :  { %v1541_v12 = vor.u32 %v1881_v10, %v1540_v9  ;;  %921 = vmatpush.bf16.msra.mxu1 %v1413_v7  ;;  %v1405_v17 = vor.u32 %v1847_v15, %v1404_v14  ;;  %v1468_v18 = vld [vmem:[%s2950_s1 + $0x160] sm:$0xf]  ;;  %v1863_v19 = vld [vmem:[%s2950_s1 + $0x164] sm:$0xf0]  ;;  %v1332_v23 = vld [vmem:[%s2950_s1 + $0x50] sm:$0xf] }
   0x6   :  { %940 = vmatpush.bf16.msra.mxu2 %v1477_v8  ;;  %v1532_v20 = vld [vmem:[%s2950_s1 + $0x1e0] sm:$0xf]  ;;  %v1469_v21 = vor.u32 %v1863_v19, %v1468_v18  ;;  %v1879_v22 = vld [vmem:[%s2950_s1 + $0x1e4] sm:$0xf0]  ;;  %v1829_v24 = vld [vmem:[%s2950_s1 + $0x54] sm:$0xf0] }
   0x7   :  { %959 = vmatpush.bf16.msra.mxu3 %v1541_v12  ;;  %v1533_v25 = vor.u32 %v1879_v22, %v1532_v20  ;;  %v1396_v26 = vld [vmem:[%s2950_s1 + $0xd0] sm:$0xf]  ;;  %v1845_v27 = vld [vmem:[%s2950_s1 + $0xd4] sm:$0xf0]  ;;  %v1333_v29 = vor.u32 %v1829_v24, %v1332_v23  ;;  %v1324_v35 = vld [vmem:[%s2950_s1 + $0x40] sm:$0xf] }
   0x8   :  { %v1460_v28 = vld [vmem:[%s2950_s1 + $0x150] sm:$0xf]  ;;  %903 = vmatpush.bf16.msra.mxu0 %v1341_v16  ;;  %v1861_v30 = vld [vmem:[%s2950_s1 + $0x154] sm:$0xf0]  ;;  %v1397_v33 = vor.u32 %v1845_v27, %v1396_v26  ;;  %v1827_v36 = vld [vmem:[%s2950_s1 + $0x44] sm:$0xf0] }
   0x9   :  { %v1524_v31 = vld [vmem:[%s2950_s1 + $0x1d0] sm:$0xf]  ;;  %v1877_v32 = vld [vmem:[%s2950_s1 + $0x1d4] sm:$0xf0]  ;;  %922 = vmatpush.bf16.msra.mxu1 %v1405_v17  ;;  %v1461_v34 = vor.u32 %v1861_v30, %v1460_v28  ;;  %v1388_v37 = vld [vmem:[%s2950_s1 + $0xc0] sm:$0xf]  ;;  %v1325_v44 = vor.u32 %v1827_v36, %v1324_v35 }
   0xa   :  { %941 = vmatpush.bf16.msra.mxu2 %v1469_v21  ;;  %v1525_v38 = vor.u32 %v1877_v32, %v1524_v31  ;;  %v1843_v39 = vld [vmem:[%s2950_s1 + $0xc4] sm:$0xf0]  ;;  %v1452_v40 = vld [vmem:[%s2950_s1 + $0x140] sm:$0xf]  ;;  %v1316_v47 = vld [vmem:[%s2950_s1 + $0x30] sm:$0xf] }
   0xb   :  { %960 = vmatpush.bf16.msra.mxu3 %v1533_v25  ;;  %v1859_v41 = vld [vmem:[%s2950_s1 + $0x144] sm:$0xf0]  ;;  %v1516_v42 = vld [vmem:[%s2950_s1 + $0x1c0] sm:$0xf]  ;;  %v1389_v45 = vor.u32 %v1843_v39, %v1388_v37  ;;  %v1825_v48 = vld [vmem:[%s2950_s1 + $0x34] sm:$0xf0] }
   0xc   :  { %v1875_v43 = vld [vmem:[%s2950_s1 + $0x1c4] sm:$0xf0]  ;;  %904 = vmatpush.bf16.msra.mxu0 %v1333_v29  ;;  %v1453_v46 = vor.u32 %v1859_v41, %v1452_v40  ;;  %v1380_v49 = vld [vmem:[%s2950_s1 + $0xb0] sm:$0xf]  ;;  %v1841_v51 = vld [vmem:[%s2950_s1 + $0xb4] sm:$0xf0]  ;;  %v1317_v56 = vor.u32 %v1825_v48, %v1316_v47 }
   0xd   :  { %923 = vmatpush.bf16.msra.mxu1 %v1397_v33  ;;  %v1517_v50 = vor.u32 %v1875_v43, %v1516_v42  ;;  %v1444_v52 = vld [vmem:[%s2950_s1 + $0x130] sm:$0xf]  ;;  %v1857_v53 = vld [vmem:[%s2950_s1 + $0x134] sm:$0xf0]  ;;  %v1381_v57 = vor.u32 %v1841_v51, %v1380_v49  ;;  %v1308_v59 = vld [vmem:[%s2950_s1 + $0x20] sm:$0xf] }
   0xe   :  { %942 = vmatpush.bf16.msra.mxu2 %v1461_v34  ;;  %v1508_v54 = vld [vmem:[%s2950_s1 + $0x1b0] sm:$0xf]  ;;  %v1873_v55 = vld [vmem:[%s2950_s1 + $0x1b4] sm:$0xf0]  ;;  %v1445_v58 = vor.u32 %v1857_v53, %v1444_v52  ;;  %v1823_v60 = vld [vmem:[%s2950_s1 + $0x24] sm:$0xf0] }
   0xf   :  { %961 = vmatpush.bf16.msra.mxu3 %v1525_v38  ;;  %v1372_v61 = vld [vmem:[%s2950_s1 + $0xa0] sm:$0xf]  ;;  %v1509_v62 = vor.u32 %v1873_v55, %v1508_v54  ;;  %v1839_v63 = vld [vmem:[%s2950_s1 + $0xa4] sm:$0xf0]  ;;  %v1309_v4 = vor.u32 %v1823_v60, %v1308_v59  ;;  %v1300_v7 = vld [vmem:[%s2950_s1 + $0x10] sm:$0xf] }
  0x10   :  { %905 = vmatpush.bf16.msra.mxu0 %v1325_v44  ;;  %v1436_v0 = vld [vmem:[%s2950_s1 + $0x120] sm:$0xf]  ;;  %v1855_v1 = vld [vmem:[%s2950_s1 + $0x124] sm:$0xf0]  ;;  %v1373_v5 = vor.u32 %v1839_v63, %v1372_v61  ;;  %v1821_v8 = vld [vmem:[%s2950_s1 + $0x14] sm:$0xf0] }
  0x11   :  { %924 = vmatpush.bf16.msra.mxu1 %v1389_v45  ;;  %v1500_v2 = vld [vmem:[%s2950_s1 + $0x1a0] sm:$0xf]  ;;  %v1871_v3 = vld [vmem:[%s2950_s1 + $0x1a4] sm:$0xf0]  ;;  %v1437_v6 = vor.u32 %v1855_v1, %v1436_v0  ;;  %v1364_v9 = vld [vmem:[%s2950_s1 + $0x90] sm:$0xf]  ;;  %v1301_v17 = vor.u32 %v1821_v8, %v1300_v7 }
  0x12   :  { %943 = vmatpush.bf16.msra.mxu2 %v1453_v46  ;;  %v1501_v10 = vor.u32 %v1871_v3, %v1500_v2  ;;  %v1837_v11 = vld [vmem:[%s2950_s1 + $0x94] sm:$0xf0]  ;;  %v1428_v12 = vld [vmem:[%s2950_s1 + $0x110] sm:$0xf]  ;;  %v1292_v16 = vld [vmem:[%s2950_s1] sm:$0xf] }
  0x13   :  { %962 = vmatpush.bf16.msra.mxu3 %v1517_v50  ;;  %v1853_v13 = vld [vmem:[%s2950_s1 + $0x114] sm:$0xf0]  ;;  %v1492_v14 = vld [vmem:[%s2950_s1 + $0x190] sm:$0xf]  ;;  %v1819_v18 = vld [vmem:[%s2950_s1 + $0x4] sm:$0xf0]  ;;  %v1365_v21 = vor.u32 %v1837_v11, %v1364_v9 }
  0x14   :  { %906 = vmatpush.bf16.msra.mxu0 %v1317_v56  ;;  %v1869_v15 = vld [vmem:[%s2950_s1 + $0x194] sm:$0xf0]  ;;  %v1356_v19 = vld [vmem:[%s2950_s1 + $0x80] sm:$0xf]  ;;  %v1835_v20 = vld [vmem:[%s2950_s1 + $0x84] sm:$0xf0]  ;;  %v1429_v22 = vor.u32 %v1853_v13, %v1428_v12  ;;  %v1293_v34 = vor.u32 %v1819_v18, %v1292_v16 }
  0x15   :  { %925 = vmatpush.bf16.msra.mxu1 %v1381_v57  ;;  %v1420_v23 = vld [vmem:[%s2950_s1 + $0x100] sm:$0xf]  ;;  %v1851_v24 = vld [vmem:[%s2950_s1 + $0x104] sm:$0xf0]  ;;  %v1493_v26 = vor.u32 %v1869_v15, %v1492_v14  ;;  %v1802_v30 = vld [vmem:[%s2951_s0 + $0x4] sm:$0xf]  ;;  %v1357_v38 = vor.u32 %v1835_v20, %v1356_v19 }
  0x16   :  { %944 = vmatpush.bf16.msra.mxu2 %v1445_v58  ;;  %v1484_v25 = vld [vmem:[%s2950_s1 + $0x180] sm:$0xf]  ;;  %v1867_v27 = vld [vmem:[%s2950_s1 + $0x184] sm:$0xf0]  ;;  %v1230_v31 = vld [vmem:[%s2951_s0 + $0x20] sm:$0xf0]  ;;  %v1421_v39 = vor.u32 %v1851_v24, %v1420_v23 }
  0x17   :  { %963 = vmatpush.bf16.msra.mxu3 %v1509_v62  ;;  %v1228_v28 = vld [vmem:[%s2951_s0] sm:$0xf]  ;;  %v1732_v32 = vld [vmem:[%s2950_s1 + $0x370] sm:$0xf]  ;;  %v1929_v33 = vld [vmem:[%s2950_s1 + $0x374] sm:$0xf0]  ;;  %v1485_v43 = vor.u32 %v1867_v27, %v1484_v25  ;;  %v2218_v53 = vor.u32 %v1802_v30, %v1230_v31 }
  0x18   :  { %907 = vmatpush.bf16.msra.mxu0 %v1309_v4  ;;  %v1806_v29 = vld [vmem:[%s2951_s0 + $0x1c] sm:$0xf0]  ;;  %v1236_v35 = vld [vmem:[%s2951_s0 + $0x8] sm:$0xf]  ;;  %v1668_v36 = vld [vmem:[%s2950_s1 + $0x2f0] sm:$0xf]  ;;  %v1733_v44 = vor.u32 %v1929_v33, %v1732_v32 }
  0x19   :  { %926 = vmatpush.bf16.msra.mxu1 %v1373_v5  ;;  %v1913_v37 = vld [vmem:[%s2950_s1 + $0x2f4] sm:$0xf0]  ;;  %v1807_v40 = vld [vmem:[%s2951_s0 + $0x24] sm:$0xf0]  ;;  %v1803_v41 = vld [vmem:[%s2951_s0 + $0xc] sm:$0xf]  ;;  %v2207_v48 = vor.u32 %v1806_v29, %v1228_v28 }
  0x1a   :  { %945 = vmatpush.bf16.msra.mxu2 %v1437_v6  ;;  %v1238_v42 = vld [vmem:[%s2951_s0 + $0x28] sm:$0xf0]  ;;  %v1604_v45 = vld [vmem:[%s2950_s1 + $0x270] sm:$0xf]  ;;  %v1897_v46 = vld [vmem:[%s2950_s1 + $0x274] sm:$0xf0]  ;;  %v1669_v49 = vor.u32 %v1913_v37, %v1668_v36  ;;  %v2220_v54 = vor.u32 %v1807_v40, %v1236_v35 }
  0x1b   :  { %964 = vmatpush.bf16.msra.mxu3 %v1501_v10  ;;  %v1796_v47 = vld [vmem:[%s2950_s1 + $0x3f0] sm:$0xf]  ;;  %v1945_v50 = vld [vmem:[%s2950_s1 + $0x3f4] sm:$0xf0]  ;;  %v1724_v51 = vld [vmem:[%s2950_s1 + $0x360] sm:$0xf]  ;;  %v2228_v57 = vor.u32 %v1803_v41, %v1238_v42  ;;  %v1605_v58 = vor.u32 %v1897_v46, %v1604_v45 }
  0x1c   :  { %908 = vmatpush.bf16.msra.mxu0 %v1301_v17  ;;  %v1927_v52 = vld [vmem:[%s2950_s1 + $0x364] sm:$0xf0]  ;;  %v1660_v55 = vld [vmem:[%s2950_s1 + $0x2e0] sm:$0xf]  ;;  %v1797_v59 = vor.u32 %v1945_v50, %v1796_v47  ;;  %v1716_v2 = vld [vmem:[%s2950_s1 + $0x350] sm:$0xf] }
  0x1d   :  { %927 = vmatpush.bf16.msra.mxu1 %v1365_v21  ;;  %v1911_v56 = vld [vmem:[%s2950_s1 + $0x2e4] sm:$0xf0]  ;;  %v1725_v60 = vor.u32 %v1927_v52, %v1724_v51  ;;  %v1596_v61 = vld [vmem:[%s2950_s1 + $0x260] sm:$0xf]  ;;  %v1925_v3 = vld [vmem:[%s2950_s1 + $0x354] sm:$0xf0] }
  0x1e   :  { %946 = vmatpush.bf16.msra.mxu2 %v1429_v22  ;;  %v1895_v62 = vld [vmem:[%s2950_s1 + $0x264] sm:$0xf0]  ;;  %v1788_v63 = vld [vmem:[%s2950_s1 + $0x3e0] sm:$0xf]  ;;  %v1661_v0 = vor.u32 %v1911_v56, %v1660_v55  ;;  %v1652_v4 = vld [vmem:[%s2950_s1 + $0x2d0] sm:$0xf]  ;;  %v1717_v9 = vor.u32 %v1925_v3, %v1716_v2 }
  0x1f   :  { %965 = vmatpush.bf16.msra.mxu3 %v1493_v26  ;;  %v1943_v1 = vld [vmem:[%s2950_s1 + $0x3e4] sm:$0xf0]  ;;  %v1909_v5 = vld [vmem:[%s2950_s1 + $0x2d4] sm:$0xf0]  ;;  %v1597_v6 = vor.u32 %v1895_v62, %v1596_v61  ;;  %v158_v7 = vld [vmem:[%s2952_s2] sm:$0xff]  ;;  %v1949_v15 = vmov 0  }
  0x20   :  { %909 = vmatpush.bf16.msra.mxu0 %v1293_v34  ;;  %v1789_v8 = vor.u32 %v1943_v1, %v1788_v63  ;;  %v1588_v10 = vld [vmem:[%s2950_s1 + $0x250] sm:$0xf]  ;;  %v1893_v11 = vld [vmem:[%s2950_s1 + $0x254] sm:$0xf0]  ;;  %v1653_v13 = vor.u32 %v1909_v5, %v1652_v4  ;;  %1947 = vset.pattern.permute.xlu0 %v1949_v15  ;;  %v1708_v16 = vld [vmem:[%s2950_s1 + $0x340] sm:$0xf] }
  0x21   :  { %928 = vmatpush.bf16.msra.mxu1 %v1357_v38  ;;  %v1780_v12 = vld [vmem:[%s2950_s1 + $0x3d0] sm:$0xf]  ;;  %v1941_v14 = vld [vmem:[%s2950_s1 + $0x3d4] sm:$0xf0]  ;;  %v1923_v17 = vld [vmem:[%s2950_s1 + $0x344] sm:$0xf0]  ;;  %164 = vperm.xlu0 %1947, %v158_v7   ;;  %v1589_v20 = vor.u32 %v1893_v11, %v1588_v10 }
  0x22   :  { %947 = vmatpush.bf16.msra.mxu2 %v1421_v39  ;;  %v1644_v18 = vld [vmem:[%s2950_s1 + $0x2c0] sm:$0xf]  ;;  %v1907_v19 = vld [vmem:[%s2950_s1 + $0x2c4] sm:$0xf0]  ;;  %1948 = vset.pattern.permute.xlu1 %v1949_v15  ;;  %v1781_v24 = vor.u32 %v1941_v14, %v1780_v12  ;;  %v1709_v25 = vor.u32 %v1923_v17, %v1708_v16  ;;  %v1810_v30 = vld [vmem:[%s2951_s0 + $0x44] sm:$0xf] }
  0x23   :  { %966 = vmatpush.bf16.msra.mxu3 %v1485_v43  ;;  %910 = vmatmul.bf16.vlgmr.msra.gmra.mxu0 %v2207_v48  ;;  %v1580_v21 = vld [vmem:[%s2950_s1 + $0x240] sm:$0xf]  ;;  %v1891_v22 = vld [vmem:[%s2950_s1 + $0x244] sm:$0xf0]  ;;  %v1645_v29 = vor.u32 %v1907_v19, %v1644_v18  ;;  %v1262_v31 = vld [vmem:[%s2951_s0 + $0x60] sm:$0xf0] }
  0x24   :  { %929 = vmatmul.bf16.vlgmr.msra.gmra.mxu1 %v2218_v53  ;;  %978 = vmatpush.bf16.msrb.mxu0 %v1605_v58  ;;  %v1772_v23 = vld [vmem:[%s2950_s1 + $0x3c0] sm:$0xf]  ;;  %v1939_v26 = vld [vmem:[%s2950_s1 + $0x3c4] sm:$0xf0]  ;;  %v1700_v34 = vld [vmem:[%s2950_s1 + $0x330] sm:$0xf]  ;;  %v1581_v39 = vor.u32 %v1891_v22, %v1580_v21  ;;  %v2359_v56 = vor.u32 %v1810_v30, %v1262_v31 }
  0x25   :  { %997 = vmatpush.bf16.msrb.mxu1 %v1669_v49  ;;  %948 = vmatmul.bf16.vlgmr.msra.gmra.mxu2 %v2220_v54  ;;  %v1260_v27 = vld [vmem:[%s2951_s0 + $0x40] sm:$0xf]  ;;  %v1268_v32 = vld [vmem:[%s2951_s0 + $0x48] sm:$0xf]  ;;  %v1921_v35 = vld [vmem:[%s2950_s1 + $0x334] sm:$0xf0]  ;;  %v1773_v43 = vor.u32 %v1939_v26, %v1772_v23 }
  0x26   :  { %1016 = vmatpush.bf16.msrb.mxu2 %v1733_v44  ;;  %967 = vmatmul.bf16.vlgmr.msra.gmra.mxu3 %v2228_v57  ;;  %v1814_v28 = vld [vmem:[%s2951_s0 + $0x5c] sm:$0xf0]  ;;  %v1815_v33 = vld [vmem:[%s2951_s0 + $0x64] sm:$0xf0]  ;;  %v1811_v36 = vld [vmem:[%s2951_s0 + $0x4c] sm:$0xf]  ;;  %v1701_v44 = vor.u32 %v1921_v35, %v1700_v34 }
  0x27   :  { %1035 = vmatpush.bf16.msrb.mxu3 %v1797_v59  ;;  %v1636_v37 = vld [vmem:[%s2950_s1 + $0x2b0] sm:$0xf]  ;;  %v1905_v38 = vld [vmem:[%s2950_s1 + $0x2b4] sm:$0xf0]  ;;  %v1270_v40 = vld [vmem:[%s2951_s0 + $0x68] sm:$0xf0]  ;;  %v2348_v49 = vor.u32 %v1814_v28, %v1260_v27  ;;  %v2361_v58 = vor.u32 %v1815_v33, %v1268_v32 }
  0x28   :  { %979 = vmatpush.bf16.msrb.mxu0 %v1597_v6  ;;  %v1572_v41 = vld [vmem:[%s2950_s1 + $0x230] sm:$0xf]  ;;  %v159_v42 = vld [vmem:[%s2952_s2 + $0x8] sm:$0xff]  ;;  %v1889_v45 = vld [vmem:[%s2950_s1 + $0x234] sm:$0xf0]  ;;  %v1637_v50 = vor.u32 %v1905_v38, %v1636_v37  ;;  %v2369_v61 = vor.u32 %v1811_v36, %v1270_v40 }
  0x29   :  { %998 = vmatpush.bf16.msrb.mxu1 %v1661_v0  ;;  %v1764_v46 = vld [vmem:[%s2950_s1 + $0x3b0] sm:$0xf]  ;;  %v1937_v47 = vld [vmem:[%s2950_s1 + $0x3b4] sm:$0xf0]  ;;  %v1692_v51 = vld [vmem:[%s2950_s1 + $0x320] sm:$0xf]  ;;  %169 = vperm.xlu0 %1947, %v159_v42   ;;  %v1573_v62 = vor.u32 %v1889_v45, %v1572_v41 }
  0x2a   :  { %1017 = vmatpush.bf16.msrb.mxu2 %v1725_v60  ;;  %v1919_v52 = vld [vmem:[%s2950_s1 + $0x324] sm:$0xf0]  ;;  %v160_v55 = vld [vmem:[%s2952_s2 + $0x10] sm:$0xff]  ;;  %v1628_v59 = vld [vmem:[%s2950_s1 + $0x2a0] sm:$0xf]  ;;  %v1765_v63 = vor.u32 %v1937_v47, %v1764_v46 }
  0x2b   :  { %1036 = vmatpush.bf16.msrb.mxu3 %v1789_v8  ;;  %v1903_v60 = vld [vmem:[%s2950_s1 + $0x2a4] sm:$0xf0]  ;;  %174 = vperm.xlu1 %1948, %v160_v55   ;;  %v1693_v0 = vor.u32 %v1919_v52, %v1692_v51  ;;  %v1564_v1 = vld [vmem:[%s2950_s1 + $0x220] sm:$0xf]  ;;  %v1684_v6 = vld [vmem:[%s2950_s1 + $0x310] sm:$0xf] }
  0x2c   :  { %980 = vmatpush.bf16.msrb.mxu0 %v1589_v20  ;;  %v1887_v2 = vld [vmem:[%s2950_s1 + $0x224] sm:$0xf0]  ;;  %v1756_v3 = vld [vmem:[%s2950_s1 + $0x3a0] sm:$0xf]  ;;  %v1629_v4 = vor.u32 %v1903_v60, %v1628_v59  ;;  %v1917_v7 = vld [vmem:[%s2950_s1 + $0x314] sm:$0xf0] }
  0x2d   :  { %999 = vmatpush.bf16.msrb.mxu1 %v1653_v13  ;;  %v1935_v5 = vld [vmem:[%s2950_s1 + $0x3a4] sm:$0xf0]  ;;  %v1620_v8 = vld [vmem:[%s2950_s1 + $0x290] sm:$0xf]  ;;  %v1565_v10 = vor.u32 %v1887_v2, %v1564_v1  ;;  %v1885_v12 = vld [vmem:[%s2950_s1 + $0x214] sm:$0xf0]  ;;  %v1685_v14 = vor.u32 %v1917_v7, %v1684_v6 }
  0x2e   :  { %1018 = vmatpush.bf16.msrb.mxu2 %v1717_v9  ;;  %v1901_v9 = vld [vmem:[%s2950_s1 + $0x294] sm:$0xf0]  ;;  %v1556_v11 = vld [vmem:[%s2950_s1 + $0x210] sm:$0xf]  ;;  %v1757_v13 = vor.u32 %v1935_v5, %v1756_v3  ;;  %v1676_v17 = vld [vmem:[%s2950_s1 + $0x300] sm:$0xf] }
  0x2f   :  { %1037 = vmatpush.bf16.msrb.mxu3 %v1781_v24  ;;  %v1748_v15 = vld [vmem:[%s2950_s1 + $0x390] sm:$0xf]  ;;  %v1933_v16 = vld [vmem:[%s2950_s1 + $0x394] sm:$0xf0]  ;;  %v1621_v18 = vor.u32 %v1901_v9, %v1620_v8  ;;  %v1915_v19 = vld [vmem:[%s2950_s1 + $0x304] sm:$0xf0] }
  0x30   :  { %981 = vmatpush.bf16.msrb.mxu0 %v1581_v39  ;;  %v1612_v20 = vld [vmem:[%s2950_s1 + $0x280] sm:$0xf]  ;;  %v161_v21 = vld [vmem:[%s2952_s2 + $0x18] sm:$0xff]  ;;  %v1899_v22 = vld [vmem:[%s2950_s1 + $0x284] sm:$0xf0]  ;;  %v1677_v30 = vor.u32 %v1915_v19, %v1676_v17 }
  0x31   :  { %1000 = vmatpush.bf16.msrb.mxu1 %v1645_v29  ;;  %v1864_v23 = vld [vmem:[%s2950_s1 + $0x174] sm:$0xf]  ;;  %v1478_v24 = vld [vmem:[%s2950_s1 + $0x178] sm:$0xf0]  ;;  %v1548_v26 = vld [vmem:[%s2950_s1 + $0x200] sm:$0xf]  ;;  %v1749_v29 = vor.u32 %v1933_v16, %v1748_v15  ;;  %v1613_v34 = vor.u32 %v1899_v22, %v1612_v20 }
  0x32   :  { %1019 = vmatpush.bf16.msrb.mxu2 %v1709_v25  ;;  %v1557_v25 = vor.u32 %v1885_v12, %v1556_v11  ;;  %v1848_v27 = vld [vmem:[%s2950_s1 + $0xf4] sm:$0xf]  ;;  %v1414_v28 = vld [vmem:[%s2950_s1 + $0xf8] sm:$0xf0]  ;;  %v1883_v31 = vld [vmem:[%s2950_s1 + $0x204] sm:$0xf0]  ;;  %v1481_v39 = vor.u32 %v1864_v23, %v1478_v24 }
  0x33   :  { %1038 = vmatpush.bf16.msrb.mxu3 %v1773_v43  ;;  %915 = vmatmul.bf16.gmra.mxu0 %v2348_v49  ;;  %v1740_v32 = vld [vmem:[%s2950_s1 + $0x380] sm:$0xf]  ;;  %v1931_v33 = vld [vmem:[%s2950_s1 + $0x384] sm:$0xf0]  ;;  %v1244_v35 = vld [vmem:[%s2951_s0 + $0x10] sm:$0xf]  ;;  %v1417_v43 = vor.u32 %v1848_v27, %v1414_v28  ;;  %v1549_v47 = vor.u32 %v1883_v31, %v1548_v26 }
  0x34   :  { %934 = vmatmul.bf16.gmra.mxu1 %v2359_v56  ;;  %982 = vmatpush.bf16.msrb.mxu0 %v1573_v62  ;;  %v1808_v36 = vld [vmem:[%s2951_s0 + $0x2c] sm:$0xf0]  ;;  %v1804_v37 = vld [vmem:[%s2951_s0 + $0x14] sm:$0xf]  ;;  %v1350_v41 = vld [vmem:[%s2950_s1 + $0x78] sm:$0xf0]  ;;  %v1741_v55 = vor.u32 %v1931_v33, %v1740_v32 }
  0x35   :  { %1001 = vmatpush.bf16.msrb.mxu1 %v1637_v50  ;;  %953 = vmatmul.bf16.gmra.mxu2 %v2361_v58  ;;  %v1246_v38 = vld [vmem:[%s2951_s0 + $0x30] sm:$0xf0]  ;;  %v1862_v45 = vld [vmem:[%s2950_s1 + $0x164] sm:$0xf]  ;;  %v1470_v46 = vld [vmem:[%s2950_s1 + $0x168] sm:$0xf0]  ;;  %v2507_v5 = vor.u32 %v1808_v36, %v1244_v35 }
  0x36   :  { %1020 = vmatpush.bf16.msrb.mxu2 %v1701_v44  ;;  %972 = vmatmul.bf16.gmra.mxu3 %v2369_v61  ;;  %v1832_v40 = vld [vmem:[%s2950_s1 + $0x74] sm:$0xf]  ;;  %v1542_v44 = vld [vmem:[%s2950_s1 + $0x1f8] sm:$0xf0]  ;;  %v1252_v50 = vld [vmem:[%s2951_s0 + $0x18] sm:$0xf]  ;;  %v1473_v1 = vor.u32 %v1862_v45, %v1470_v46  ;;  %v2509_v6 = vor.u32 %v1804_v37, %v1246_v38 }
  0x37   :  { %1039 = vmatpush.bf16.msrb.mxu3 %v1765_v63  ;;  %179 = vperm.xlu1 %1948, %v161_v21   ;;  %v1880_v42 = vld [vmem:[%s2950_s1 + $0x1f4] sm:$0xf]  ;;  %v1809_v51 = vld [vmem:[%s2951_s0 + $0x34] sm:$0xf0]  ;;  %v1805_v52 = vld [vmem:[%s2951_s0 + $0x1c] sm:$0xf]  ;;  %v1353_v60 = vor.u32 %v1832_v40, %v1350_v41 }
  0x38   :  { %983 = vmatpush.bf16.msrb.mxu0 %v1565_v10  ;;  %v1254_v59 = vld [vmem:[%s2951_s0 + $0x38] sm:$0xf0]  ;;  %v1830_v62 = vld [vmem:[%s2950_s1 + $0x64] sm:$0xf]  ;;  %v1342_v63 = vld [vmem:[%s2950_s1 + $0x68] sm:$0xf0]  ;;  %v2520_v10 = vor.u32 %v1809_v51, %v1252_v50 }
  0x39   :  { %1002 = vmatpush.bf16.msrb.mxu1 %v1629_v4  ;;  %v1846_v2 = vld [vmem:[%s2950_s1 + $0xe4] sm:$0xf]  ;;  %v1406_v3 = vld [vmem:[%s2950_s1 + $0xe8] sm:$0xf0]  ;;  %v1860_v8 = vld [vmem:[%s2950_s1 + $0x154] sm:$0xf]  ;;  %v2522_v11 = vor.u32 %v1805_v52, %v1254_v59  ;;  %v1345_v12 = vor.u32 %v1830_v62, %v1342_v63 }
  0x3a   :  { %1021 = vmatpush.bf16.msrb.mxu2 %v1693_v0  ;;  %v1545_v0 = vor.u32 %v1880_v42, %v1542_v44  ;;  %v1878_v4 = vld [vmem:[%s2950_s1 + $0x1e4] sm:$0xf]  ;;  %v1534_v7 = vld [vmem:[%s2950_s1 + $0x1e8] sm:$0xf0]  ;;  %v1462_v9 = vld [vmem:[%s2950_s1 + $0x158] sm:$0xf0] }
  0x3b   :  { %1040 = vmatpush.bf16.msrb.mxu3 %v1757_v13  ;;  %v1409_v13 = vor.u32 %v1846_v2, %v1406_v3  ;;  %v1334_v15 = vld [vmem:[%s2950_s1 + $0x58] sm:$0xf0]  ;;  %v1537_v16 = vor.u32 %v1878_v4, %v1534_v7  ;;  %v1465_v17 = vor.u32 %v1860_v8, %v1462_v9  ;;  %v1876_v20 = vld [vmem:[%s2950_s1 + $0x1d4] sm:$0xf]  ;;  %v1858_v22 = vld [vmem:[%s2950_s1 + $0x144] sm:$0xf] }
  0x3c   :  { %984 = vmatpush.bf16.msrb.mxu0 %v1557_v25  ;;  %v1398_v19 = vld [vmem:[%s2950_s1 + $0xd8] sm:$0xf0]  ;;  %v1454_v23 = vld [vmem:[%s2950_s1 + $0x148] sm:$0xf0]  ;;  %v1826_v26 = vld [vmem:[%s2950_s1 + $0x44] sm:$0xf] }
  0x3d   :  { %1003 = vmatpush.bf16.msrb.mxu1 %v1621_v18  ;;  %v1844_v18 = vld [vmem:[%s2950_s1 + $0xd4] sm:$0xf]  ;;  %v1526_v21 = vld [vmem:[%s2950_s1 + $0x1d8] sm:$0xf0]  ;;  %v1326_v27 = vld [vmem:[%s2950_s1 + $0x48] sm:$0xf0] }
  0x3e   :  { %1022 = vmatpush.bf16.msrb.mxu2 %v1685_v14  ;;  %v1828_v14 = vld [vmem:[%s2950_s1 + $0x54] sm:$0xf]  ;;  %v1401_v25 = vor.u32 %v1844_v18, %v1398_v19  ;;  %v1529_v28 = vor.u32 %v1876_v20, %v1526_v21  ;;  %v1390_v31 = vld [vmem:[%s2950_s1 + $0xc8] sm:$0xf0]  ;;  %v1874_v32 = vld [vmem:[%s2950_s1 + $0x1c4] sm:$0xf]  ;;  %v1329_v36 = vor.u32 %v1826_v26, %v1326_v27 }
  0x3f   :  { %1041 = vmatpush.bf16.msrb.mxu3 %v1749_v29  ;;  %v1337_v24 = vor.u32 %v1828_v14, %v1334_v15  ;;  %v1457_v29 = vor.u32 %v1858_v22, %v1454_v23  ;;  %v1518_v33 = vld [vmem:[%s2950_s1 + $0x1c8] sm:$0xf0]  ;;  %v1446_v35 = vld [vmem:[%s2950_s1 + $0x138] sm:$0xf0]  ;;  %v1824_v38 = vld [vmem:[%s2950_s1 + $0x34] sm:$0xf] }
  0x40   :  { %985 = vmatpush.bf16.msrb.mxu0 %v1549_v47  ;;  %v1521_v40 = vor.u32 %v1874_v32, %v1518_v33  ;;  %v1276_v41 = vld [vmem:[%s2951_s0 + $0x50] sm:$0xf]  ;;  %v1278_v44 = vld [vmem:[%s2951_s0 + $0x70] sm:$0xf0]  ;;  %v1382_v47 = vld [vmem:[%s2950_s1 + $0xb8] sm:$0xf0] }
  0x41   :  { %1004 = vmatpush.bf16.msrb.mxu1 %v1613_v34  ;;  %v1856_v34 = vld [vmem:[%s2950_s1 + $0x134] sm:$0xf]  ;;  %v1816_v42 = vld [vmem:[%s2951_s0 + $0x6c] sm:$0xf0]  ;;  %v1510_v51 = vld [vmem:[%s2950_s1 + $0x1b8] sm:$0xf0] }
  0x42   :  { %1023 = vmatpush.bf16.msrb.mxu2 %v1677_v30  ;;  %v1842_v30 = vld [vmem:[%s2950_s1 + $0xc4] sm:$0xf]  ;;  %v1449_v45 = vor.u32 %v1856_v34, %v1446_v35  ;;  %v1840_v46 = vld [vmem:[%s2950_s1 + $0xb4] sm:$0xf]  ;;  %v1284_v59 = vld [vmem:[%s2951_s0 + $0x58] sm:$0xf] }
  0x43   :  { %1042 = vmatpush.bf16.msrb.mxu3 %v1741_v55  ;;  %986 = vmatmul.bf16.vlgmr.msrb.gmra.mxu0 %v2507_v5  ;;  %v1393_v37 = vor.u32 %v1842_v30, %v1390_v31  ;;  %v1872_v50 = vld [vmem:[%s2950_s1 + $0x1b4] sm:$0xf]  ;;  %v1854_v52 = vld [vmem:[%s2950_s1 + $0x124] sm:$0xf]  ;;  %v1438_v55 = vld [vmem:[%s2950_s1 + $0x128] sm:$0xf0] }
  0x44   :  { %1054 = vmatpush.bf16.msra.mxu0 %v1353_v60  ;;  %1005 = vmatmul.bf16.vlgmr.msrb.gmra.mxu1 %v2509_v6  ;;  %v1817_v60 = vld [vmem:[%s2951_s0 + $0x74] sm:$0xf0]  ;;  %v1813_v62 = vld [vmem:[%s2951_s0 + $0x5c] sm:$0xf]  ;;  %v1822_v2 = vld [vmem:[%s2950_s1 + $0x24] sm:$0xf]  ;;  %v1513_v4 = vor.u32 %v1872_v50, %v1510_v51  ;;  %v1441_v7 = vor.u32 %v1854_v52, %v1438_v55 }
  0x45   :  { %1073 = vmatpush.bf16.msra.mxu1 %v1417_v43  ;;  %1024 = vmatmul.bf16.vlgmr.msrb.gmra.mxu2 %v2520_v10  ;;  %v1812_v43 = vld [vmem:[%s2951_s0 + $0x54] sm:$0xf]  ;;  %v1286_v63 = vld [vmem:[%s2951_s0 + $0x78] sm:$0xf0]  ;;  %v1310_v3 = vld [vmem:[%s2950_s1 + $0x28] sm:$0xf0]  ;;  %v2652_v18 = vor.u32 %v1817_v60, %v1284_v59 }
  0x46   :  { %1092 = vmatpush.bf16.msra.mxu2 %v1481_v39  ;;  %1043 = vmatmul.bf16.vlgmr.msrb.gmra.mxu3 %v2522_v11  ;;  %v1318_v39 = vld [vmem:[%s2950_s1 + $0x38] sm:$0xf0]  ;;  %v1838_v8 = vld [vmem:[%s2950_s1 + $0xa4] sm:$0xf]  ;;  %v1374_v9 = vld [vmem:[%s2950_s1 + $0xa8] sm:$0xf0]  ;;  %v2641_v14 = vor.u32 %v1812_v43, %v1278_v44  ;;  %v2654_v19 = vor.u32 %v1813_v62, %v1286_v63  ;;  %v1313_v20 = vor.u32 %v1822_v2, %v1310_v3 }
  0x47   :  { %1111 = vmatpush.bf16.msra.mxu3 %v1545_v0  ;;  %v1321_v0 = vor.u32 %v1824_v38, %v1318_v39  ;;  %v1502_v15 = vld [vmem:[%s2950_s1 + $0x1a8] sm:$0xf0]  ;;  %v1377_v21 = vor.u32 %v1838_v8, %v1374_v9  ;;  %v1820_v22 = vld [vmem:[%s2950_s1 + $0x14] sm:$0xf]  ;;  %v1302_v23 = vld [vmem:[%s2950_s1 + $0x18] sm:$0xf0] }
  0x48   :  { %1055 = vmatpush.bf16.msra.mxu0 %v1345_v12  ;;  %v1870_v12 = vld [vmem:[%s2950_s1 + $0x1a4] sm:$0xf]  ;;  %v1836_v26 = vld [vmem:[%s2950_s1 + $0x94] sm:$0xf]  ;;  %v1366_v27 = vld [vmem:[%s2950_s1 + $0x98] sm:$0xf0]  ;;  %v1305_v34 = vor.u32 %v1820_v22, %v1302_v23 }
  0x49   :  { %1074 = vmatpush.bf16.msra.mxu1 %v1409_v13  ;;  %v2639_v13 = vor.u32 %v1816_v42, %v1276_v41  ;;  %v1850_v30 = vld [vmem:[%s2950_s1 + $0x104] sm:$0xf]  ;;  %v1422_v31 = vld [vmem:[%s2950_s1 + $0x108] sm:$0xf0]  ;;  %v1928_v32 = vld [vmem:[%s2950_s1 + $0x374] sm:$0xf]  ;;  %v1369_v35 = vor.u32 %v1836_v26, %v1366_v27 }
  0x4a   :  { %1093 = vmatpush.bf16.msra.mxu2 %v1473_v1  ;;  %v1385_v1 = vor.u32 %v1840_v46, %v1382_v47  ;;  %v1734_v33 = vld [vmem:[%s2950_s1 + $0x378] sm:$0xf0]  ;;  %v1834_v38 = vld [vmem:[%s2950_s1 + $0x84] sm:$0xf]  ;;  %v1358_v41 = vld [vmem:[%s2950_s1 + $0x88] sm:$0xf0] }
  0x4b   :  { %1112 = vmatpush.bf16.msra.mxu3 %v1537_v16  ;;  %v1852_v16 = vld [vmem:[%s2950_s1 + $0x114] sm:$0xf]  ;;  %v1866_v42 = vld [vmem:[%s2950_s1 + $0x184] sm:$0xf]  ;;  %v1486_v43 = vld [vmem:[%s2950_s1 + $0x188] sm:$0xf0]  ;;  %v1737_v44 = vor.u32 %v1928_v32, %v1734_v33  ;;  %v1361_v59 = vor.u32 %v1834_v38, %v1358_v41 }
  0x4c   :  { %1056 = vmatpush.bf16.msra.mxu0 %v1337_v24  ;;  %v1505_v24 = vor.u32 %v1870_v12, %v1502_v15  ;;  %v1606_v46 = vld [vmem:[%s2950_s1 + $0x278] sm:$0xf0]  ;;  %v1912_v47 = vld [vmem:[%s2950_s1 + $0x2f4] sm:$0xf]  ;;  %v1926_v60 = vld [vmem:[%s2950_s1 + $0x364] sm:$0xf]  ;;  %v1489_v63 = vor.u32 %v1866_v42, %v1486_v43 }
  0x4d   :  { %1075 = vmatpush.bf16.msra.mxu1 %v1401_v25  ;;  %v1670_v50 = vld [vmem:[%s2950_s1 + $0x2f8] sm:$0xf0]  ;;  %v1944_v51 = vld [vmem:[%s2950_s1 + $0x3f4] sm:$0xf]  ;;  %v1726_v62 = vld [vmem:[%s2950_s1 + $0x368] sm:$0xf0] }
  0x4e   :  { %1094 = vmatpush.bf16.msra.mxu2 %v1465_v17  ;;  %v1430_v17 = vld [vmem:[%s2950_s1 + $0x118] sm:$0xf0]  ;;  %v1894_v3 = vld [vmem:[%s2950_s1 + $0x264] sm:$0xf]  ;;  %v1662_v9 = vld [vmem:[%s2950_s1 + $0x2e8] sm:$0xf0] }
  0x4f   :  { %1113 = vmatpush.bf16.msra.mxu3 %v1529_v28  ;;  %v1433_v25 = vor.u32 %v1852_v16, %v1430_v17  ;;  %v1868_v28 = vld [vmem:[%s2950_s1 + $0x194] sm:$0xf]  ;;  %v1798_v52 = vld [vmem:[%s2950_s1 + $0x3f8] sm:$0xf0]  ;;  %v1910_v8 = vld [vmem:[%s2950_s1 + $0x2e4] sm:$0xf] }
  0x50   :  { %1057 = vmatpush.bf16.msra.mxu0 %v1329_v36  ;;  %v1818_v36 = vld [vmem:[%s2950_s1 + $0x4] sm:$0xf]  ;;  %v1801_v2 = vor.u32 %v1944_v51, %v1798_v52  ;;  %v1790_v16 = vld [vmem:[%s2950_s1 + $0x3e8] sm:$0xf0]  ;;  %v1924_v17 = vld [vmem:[%s2950_s1 + $0x354] sm:$0xf]  ;;  %v1665_v23 = vor.u32 %v1910_v8, %v1662_v9 }
  0x51   :  { %1076 = vmatpush.bf16.msra.mxu1 %v1393_v37  ;;  %v1294_v37 = vld [vmem:[%s2950_s1 + $0x8] sm:$0xf0]  ;;  %v1942_v15 = vld [vmem:[%s2950_s1 + $0x3e4] sm:$0xf]  ;;  %v1590_v22 = vld [vmem:[%s2950_s1 + $0x258] sm:$0xf0] }
  0x52   :  { %1095 = vmatpush.bf16.msra.mxu2 %v1457_v29  ;;  %v1494_v29 = vld [vmem:[%s2950_s1 + $0x198] sm:$0xf0]  ;;  %v1297_v55 = vor.u32 %v1818_v36, %v1294_v37  ;;  %v1710_v32 = vld [vmem:[%s2950_s1 + $0x348] sm:$0xf0]  ;;  %v1890_v33 = vld [vmem:[%s2950_s1 + $0x244] sm:$0xf] }
  0x53   :  { %1114 = vmatpush.bf16.msra.mxu3 %v1521_v40  ;;  %991 = vmatmul.bf16.gmra.mxu0 %v2639_v13  ;;  %v1497_v39 = vor.u32 %v1868_v28, %v1494_v29  ;;  %v1425_v40 = vor.u32 %v1850_v30, %v1422_v31  ;;  %v1654_v26 = vld [vmem:[%s2950_s1 + $0x2d8] sm:$0xf0]  ;;  %v1940_v29 = vld [vmem:[%s2950_s1 + $0x3d4] sm:$0xf]  ;;  %v1922_v31 = vld [vmem:[%s2950_s1 + $0x344] sm:$0xf] }
  0x54   :  { %1058 = vmatpush.bf16.msra.mxu0 %v1321_v0  ;;  %1010 = vmatmul.bf16.gmra.mxu1 %v2641_v14  ;;  %v1782_v30 = vld [vmem:[%s2950_s1 + $0x3d8] sm:$0xf0]  ;;  %v1646_v36 = vld [vmem:[%s2950_s1 + $0x2c8] sm:$0xf0]  ;;  %v1713_v37 = vor.u32 %v1922_v31, %v1710_v32  ;;  %v1888_v41 = vld [vmem:[%s2950_s1 + $0x234] sm:$0xf] }
  0x55   :  { %1077 = vmatpush.bf16.msra.mxu1 %v1385_v1  ;;  %1029 = vmatmul.bf16.gmra.mxu2 %v2652_v18  ;;  %v1673_v1 = vor.u32 %v1912_v47, %v1670_v50  ;;  %v1574_v42 = vld [vmem:[%s2950_s1 + $0x238] sm:$0xf0]  ;;  %v1936_v51 = vld [vmem:[%s2950_s1 + $0x3b4] sm:$0xf]  ;;  %v1758_v8 = vld [vmem:[%s2950_s1 + $0x3a8] sm:$0xf0] }
  0x56   :  { %1096 = vmatpush.bf16.msra.mxu2 %v1449_v45  ;;  %1048 = vmatmul.bf16.gmra.mxu3 %v2654_v19  ;;  %v1896_v45 = vld [vmem:[%s2950_s1 + $0x274] sm:$0xf]  ;;  %v1577_v50 = vor.u32 %v1888_v41, %v1574_v42  ;;  %v1766_v52 = vld [vmem:[%s2950_s1 + $0x3b8] sm:$0xf0]  ;;  %v1898_v31 = vld [vmem:[%s2950_s1 + $0x284] sm:$0xf] }
  0x57   :  { %1115 = vmatpush.bf16.msra.mxu3 %v1513_v4  ;;  %v1609_v0 = vor.u32 %v1896_v45, %v1606_v46  ;;  %v1598_v4 = vld [vmem:[%s2950_s1 + $0x268] sm:$0xf0]  ;;  %v1904_v45 = vld [vmem:[%s2950_s1 + $0x2b4] sm:$0xf]  ;;  %v1638_v46 = vld [vmem:[%s2950_s1 + $0x2b8] sm:$0xf0] }
  0x58   :  { %1059 = vmatpush.bf16.msra.mxu0 %v1313_v20  ;;  %v1601_v12 = vor.u32 %v1894_v3, %v1598_v4  ;;  %v1718_v20 = vld [vmem:[%s2950_s1 + $0x358] sm:$0xf0]  ;;  %v1916_v9 = vld [vmem:[%s2950_s1 + $0x314] sm:$0xf] }
  0x59   :  { %1078 = vmatpush.bf16.msra.mxu1 %v1377_v21  ;;  %v1892_v21 = vld [vmem:[%s2950_s1 + $0x254] sm:$0xf]  ;;  %v1721_v27 = vor.u32 %v1924_v17, %v1718_v20 }
  0x5a   :  { %1097 = vmatpush.bf16.msra.mxu2 %v1441_v7  ;;  %v1729_v7 = vor.u32 %v1926_v60, %v1726_v62  ;;  %v1593_v28 = vor.u32 %v1892_v21, %v1590_v22  ;;  %v1886_v60 = vld [vmem:[%s2950_s1 + $0x224] sm:$0xf]  ;;  %v1566_v62 = vld [vmem:[%s2950_s1 + $0x228] sm:$0xf0]  ;;  %v1900_v21 = vld [vmem:[%s2950_s1 + $0x294] sm:$0xf] }
  0x5b   :  { %1116 = vmatpush.bf16.msra.mxu3 %v1505_v24  ;;  %v1793_v24 = vor.u32 %v1942_v15, %v1790_v16  ;;  %v1569_v4 = vor.u32 %v1886_v60, %v1566_v62  ;;  %v1884_v15 = vld [vmem:[%s2950_s1 + $0x214] sm:$0xf]  ;;  %v1558_v16 = vld [vmem:[%s2950_s1 + $0x218] sm:$0xf0] }
  0x5c   :  { %1060 = vmatpush.bf16.msra.mxu0 %v1305_v34  ;;  %v1582_v34 = vld [vmem:[%s2950_s1 + $0x248] sm:$0xf0]  ;;  %v1622_v22 = vld [vmem:[%s2950_s1 + $0x298] sm:$0xf0] }
  0x5d   :  { %1079 = vmatpush.bf16.msra.mxu1 %v1369_v35  ;;  %v1906_v35 = vld [vmem:[%s2950_s1 + $0x2c4] sm:$0xf]  ;;  %v1585_v38 = vor.u32 %v1890_v33, %v1582_v34  ;;  %v1614_v34 = vld [vmem:[%s2950_s1 + $0x288] sm:$0xf0] }
  0x5e   :  { %1098 = vmatpush.bf16.msra.mxu2 %v1433_v25  ;;  %v1908_v25 = vld [vmem:[%s2950_s1 + $0x2d4] sm:$0xf]  ;;  %v1649_v43 = vor.u32 %v1906_v35, %v1646_v36 }
  0x5f   :  { %1117 = vmatpush.bf16.msra.mxu3 %v1497_v39  ;;  %v1920_v39 = vld [vmem:[%s2950_s1 + $0x334] sm:$0xf] }
  0x60   :  { %1061 = vmatpush.bf16.msra.mxu0 %v1297_v55  ;;  %v1918_v55 = vld [vmem:[%s2950_s1 + $0x324] sm:$0xf] }
  0x61   :  { %1080 = vmatpush.bf16.msra.mxu1 %v1361_v59  ;;  %v1694_v59 = vld [vmem:[%s2950_s1 + $0x328] sm:$0xf0] }
  0x62   :  { %1099 = vmatpush.bf16.msra.mxu2 %v1425_v40  ;;  %v1702_v40 = vld [vmem:[%s2950_s1 + $0x338] sm:$0xf0]  ;;  %v1697_v3 = vor.u32 %v1918_v55, %v1694_v59 }
  0x63   :  { %1118 = vmatpush.bf16.msra.mxu3 %v1489_v63  ;;  %1062 = vmatmul.bf16.vlgmr.msra.gmra.mxu0 %v2207_v48  ;;  %v1657_v48 = vor.u32 %v1908_v25, %v1654_v26  ;;  %v1705_v47 = vor.u32 %v1920_v39, %v1702_v40  ;;  %v1641_v63 = vor.u32 %v1904_v45, %v1638_v46  ;;  %v1932_v25 = vld [vmem:[%s2950_s1 + $0x394] sm:$0xf]  ;;  %v1750_v26 = vld [vmem:[%s2950_s1 + $0x398] sm:$0xf0] }
  0x64   :  { %1130 = vmatpush.bf16.msrb.mxu0 %v1609_v0  ;;  %1081 = vmatmul.bf16.vlgmr.msra.gmra.mxu1 %v2218_v53  ;;  %v1785_v53 = vor.u32 %v1940_v29, %v1782_v30  ;;  %v1769_v0 = vor.u32 %v1936_v51, %v1766_v52  ;;  %v1882_v29 = vld [vmem:[%s2950_s1 + $0x204] sm:$0xf]  ;;  %v1550_v30 = vld [vmem:[%s2950_s1 + $0x208] sm:$0xf0] }
  0x65   :  { %1149 = vmatpush.bf16.msrb.mxu1 %v1673_v1  ;;  %1100 = vmatmul.bf16.vlgmr.msra.gmra.mxu2 %v2220_v54  ;;  %v1938_v54 = vld [vmem:[%s2950_s1 + $0x3c4] sm:$0xf]  ;;  %v1553_v33 = vor.u32 %v1882_v29, %v1550_v30 }
  0x66   :  { %1168 = vmatpush.bf16.msrb.mxu2 %v1737_v44  ;;  %1119 = vmatmul.bf16.vlgmr.msra.gmra.mxu3 %v2228_v57  ;;  %v1774_v57 = vld [vmem:[%s2950_s1 + $0x3c8] sm:$0xf0]  ;;  %v1902_v1 = vld [vmem:[%s2950_s1 + $0x2a4] sm:$0xf] }
  0x67   :  { %1187 = vmatpush.bf16.msrb.mxu3 %v1801_v2  ;;  %v1777_v44 = vor.u32 %v1938_v54, %v1774_v57  ;;  %v1630_v2 = vld [vmem:[%s2950_s1 + $0x2a8] sm:$0xf0] }
  0x68   :  { %1131 = vmatpush.bf16.msrb.mxu0 %v1601_v12  ;;  %v1686_v12 = vld [vmem:[%s2950_s1 + $0x318] sm:$0xf0]  ;;  %v1633_v17 = vor.u32 %v1902_v1, %v1630_v2 }
  0x69   :  { %1150 = vmatpush.bf16.msrb.mxu1 %v1665_v23  ;;  %v1689_v23 = vor.u32 %v1916_v9, %v1686_v12 }
  0x6a   :  { %1169 = vmatpush.bf16.msrb.mxu2 %v1729_v7  ;;  %v1934_v7 = vld [vmem:[%s2950_s1 + $0x3a4] sm:$0xf] }
  0x6b   :  { %1188 = vmatpush.bf16.msrb.mxu3 %v1793_v24  ;;  %v1761_v20 = vor.u32 %v1934_v7, %v1758_v8  ;;  %v1561_v24 = vor.u32 %v1884_v15, %v1558_v16 }
  0x6c   :  { %1132 = vmatpush.bf16.msrb.mxu0 %v1593_v28  ;;  %v1678_v28 = vld [vmem:[%s2950_s1 + $0x308] sm:$0xf0] }
  0x6d   :  { %1151 = vmatpush.bf16.msrb.mxu1 %v1657_v48  ;;  %v1617_v48 = vor.u32 %v1898_v31, %v1614_v34 }
  0x6e   :  { %1170 = vmatpush.bf16.msrb.mxu2 %v1721_v27  ;;  %v1914_v27 = vld [vmem:[%s2950_s1 + $0x304] sm:$0xf] }
  0x6f   :  { %1189 = vmatpush.bf16.msrb.mxu3 %v1785_v53  ;;  %v1681_v32 = vor.u32 %v1914_v27, %v1678_v28 }
  0x70   :  { %1133 = vmatpush.bf16.msrb.mxu0 %v1585_v38 }
  0x71   :  { %1152 = vmatpush.bf16.msrb.mxu1 %v1649_v43 }
  0x72   :  { %1171 = vmatpush.bf16.msrb.mxu2 %v1713_v37 }
  0x73   :  { %1190 = vmatpush.bf16.msrb.mxu3 %v1777_v44  ;;  %1067 = vmatmul.bf16.gmra.mxu0 %v2348_v49  ;;  %v1625_v49 = vor.u32 %v1900_v21, %v1622_v22 }
  0x74   :  { %1134 = vmatpush.bf16.msrb.mxu0 %v1577_v50  ;;  %1086 = vmatmul.bf16.gmra.mxu1 %v2359_v56  ;;  %v1753_v56 = vor.u32 %v1932_v25, %v1750_v26 }
  0x75   :  { %1153 = vmatpush.bf16.msrb.mxu1 %v1641_v63  ;;  %1105 = vmatmul.bf16.gmra.mxu2 %v2361_v58  ;;  %v1930_v58 = vld [vmem:[%s2950_s1 + $0x384] sm:$0xf] }
  0x76   :  { %1172 = vmatpush.bf16.msrb.mxu2 %v1705_v47  ;;  %1124 = vmatmul.bf16.gmra.mxu3 %v2369_v61  ;;  %v1742_v61 = vld [vmem:[%s2950_s1 + $0x388] sm:$0xf0] }
  0x77   :  { %1191 = vmatpush.bf16.msrb.mxu3 %v1769_v0  ;;  %v1745_v53 = vor.u32 %v1930_v58, %v1742_v61 }
  0x78   :  { %1135 = vmatpush.bf16.msrb.mxu0 %v1569_v4 }
  0x79   :  { %1154 = vmatpush.bf16.msrb.mxu1 %v1633_v17 }
  0x7a   :  { %1173 = vmatpush.bf16.msrb.mxu2 %v1697_v3 }
  0x7b   :  { %1192 = vmatpush.bf16.msrb.mxu3 %v1761_v20 }
  0x7c   :  { %1136 = vmatpush.bf16.msrb.mxu0 %v1561_v24 }
  0x7d   :  { %1155 = vmatpush.bf16.msrb.mxu1 %v1625_v49 }
  0x7e   :  { %1174 = vmatpush.bf16.msrb.mxu2 %v1689_v23 }
  0x7f   :  { %1193 = vmatpush.bf16.msrb.mxu3 %v1753_v56 }
  0x80   :  { %1137 = vmatpush.bf16.msrb.mxu0 %v1553_v33 }
  0x81   :  { %1156 = vmatpush.bf16.msrb.mxu1 %v1617_v48 }
  0x82   :  { %1175 = vmatpush.bf16.msrb.mxu2 %v1681_v32 }
  0x83   :  { %1194 = vmatpush.bf16.msrb.mxu3 %v1745_v53  ;;  %1138 = vmatmul.bf16.vlgmr.msrb.gmra.mxu0 %v2507_v5 }
  0x84   :  { %1157 = vmatmul.bf16.vlgmr.msrb.gmra.mxu1 %v2509_v6 }
  0x85   :  { %1176 = vmatmul.bf16.vlgmr.msrb.gmra.mxu2 %v2520_v10 }
  0x86   :  { %1195 = vmatmul.bf16.vlgmr.msrb.gmra.mxu3 %v2522_v11 }
  0x93   :  { %1143 = vmatmul.bf16.gmra.mxu0 %v2639_v13  ;;  %v2910_v35 = vpop.permute.xlu0 %164 }
  0x94   :  { %1162 = vmatmul.bf16.gmra.mxu1 %v2641_v14 }
  0x95   :  { %1181 = vmatmul.bf16.gmra.mxu2 %v2652_v18 }
  0x96   :  { %1200 = vmatmul.bf16.gmra.mxu3 %v2654_v19 }
  0x9b   :  { %v2913_v6 = vpop.permute.xlu0 %169 }
  0x9d   :  { %v2916_v40 = vpop.permute.xlu1 %174 }
  0xa0   :  { %v911_v36 = vpop.f32.mrf.mxu0 }
  0xa1   :  { %v912_v37 = vadd.f32 %v911_v36, %v2910_v35  ;;  %v930_v5 = vpop.f32.mrf.mxu1 }
  0xa3   :  { %v931_v38 = vadd.f32 %v930_v5, %v912_v37 }
  0xa8   :  { %v949_v10 = vpop.f32.mrf.mxu2  ;;  %v913_v57 = vpop.f32.mrf.mxu0 }
  0xa9   :  { %v950_v54 = vadd.f32 %v949_v10, %v931_v38  ;;  %v968_v11 = vpop.f32.mrf.mxu3  ;;  %v914_v13 = vadd.f32 %v913_v57, %v2913_v6  ;;  %v932_v14 = vpop.f32.mrf.mxu1 }
  0xaa   :  { %v2919_v50 = vpop.permute.xlu1 %179 }
  0xab   :  { %v969_v39 = vadd.f32 %v968_v11, %v950_v54  ;;  %v933_v18 = vadd.f32 %v932_v14, %v914_v13 }
  0xb0   :  { %v951_v19 = vpop.f32.mrf.mxu2  ;;  %v916_v43 = vpop.f32.mrf.mxu0 }
  0xb1   :  { %v952_v41 = vadd.f32 %v951_v19, %v933_v18  ;;  %v970_v42 = vpop.f32.mrf.mxu3  ;;  %v917_v44 = vadd.f32 %v916_v43, %v2916_v40  ;;  %v935_v45 = vpop.f32.mrf.mxu1 }
  0xb3   :  { %v971_v46 = vadd.f32 %v970_v42, %v952_v41  ;;  %v936_v47 = vadd.f32 %v935_v45, %v917_v44 }
  0xb8   :  { %v954_v51 = vpop.f32.mrf.mxu2  ;;  %v918_v59 = vpop.f32.mrf.mxu0 }
  0xb9   :  { %v955_v52 = vadd.f32 %v954_v51, %v936_v47  ;;  %v973_v55 = vpop.f32.mrf.mxu3  ;;  %v919_v60 = vadd.f32 %v918_v59, %v2919_v50  ;;  %v937_v62 = vpop.f32.mrf.mxu1 }
  0xbb   :  { %v974_v63 = vadd.f32 %v973_v55, %v955_v52  ;;  %v938_v0 = vadd.f32 %v937_v62, %v919_v60 }
  0xc0   :  { %v956_v1 = vpop.f32.mrf.mxu2  ;;  %v987_v4 = vpop.f32.mrf.mxu0 }
  0xc1   :  { %v957_v2 = vadd.f32 %v956_v1, %v938_v0  ;;  %v975_v3 = vpop.f32.mrf.mxu3  ;;  %v1006_v7 = vpop.f32.mrf.mxu1  ;;  %v988_v9 = vadd.f32 %v987_v4, %v969_v39 }
  0xc3   :  { %v976_v8 = vadd.f32 %v975_v3, %v957_v2  ;;  %v1007_v12 = vadd.f32 %v1006_v7, %v988_v9 }
  0xc8   :  { %v1025_v15 = vpop.f32.mrf.mxu2  ;;  %v989_v20 = vpop.f32.mrf.mxu0 }
  0xc9   :  { %v1044_v16 = vpop.f32.mrf.mxu3  ;;  %v1026_v17 = vadd.f32 %v1025_v15, %v1007_v12  ;;  %v1008_v21 = vpop.f32.mrf.mxu1  ;;  %v990_v22 = vadd.f32 %v989_v20, %v971_v46 }
  0xcb   :  { %v2922_v23 = vadd.f32 %v1044_v16, %v1026_v17  ;;  %v1009_v24 = vadd.f32 %v1008_v21, %v990_v22 }
  0xcd   :  { %v1206_v20 = vmax.f32 %v2922_v23, 0.0 }
  0xd0   :  { %v1027_v25 = vpop.f32.mrf.mxu2  ;;  %v992_v28 = vpop.f32.mrf.mxu0 }
  0xd1   :  { %v1046_v26 = vpop.f32.mrf.mxu3  ;;  %v1028_v27 = vadd.f32 %v1027_v25, %v1009_v24  ;;  %v1011_v29 = vpop.f32.mrf.mxu1  ;;  %v993_v30 = vadd.f32 %v992_v28, %v974_v63 }
  0xd3   :  { %v2924_v49 = vadd.f32 %v1046_v26, %v1028_v27  ;;  %v1012_v56 = vadd.f32 %v1011_v29, %v993_v30 }
  0xd5   :  { %v1208_v23 = vmax.f32 %v2924_v49, 0.0 }
  0xd8   :  { %v1030_v31 = vpop.f32.mrf.mxu2  ;;  %v994_v34 = vpop.f32.mrf.mxu0 }
  0xd9   :  { %v1049_v32 = vpop.f32.mrf.mxu3  ;;  %v1031_v33 = vadd.f32 %v1030_v31, %v1012_v56  ;;  %v1013_v58 = vpop.f32.mrf.mxu1  ;;  %v995_v61 = vadd.f32 %v994_v34, %v976_v8 }
  0xdb   :  { %v2926_v48 = vadd.f32 %v1049_v32, %v1031_v33  ;;  %v1014_v53 = vadd.f32 %v1013_v58, %v995_v61 }
  0xe0   :  { %v1032_v36 = vpop.f32.mrf.mxu2  ;;  %v1063_v38 = vpop.f32.mrf.mxu0 }
  0xe1   :  { %v1051_v37 = vpop.f32.mrf.mxu3  ;;  %v1033_v5 = vadd.f32 %v1032_v36, %v1014_v53  ;;  %v1082_v10 = vpop.f32.mrf.mxu1  ;;  %v1064_v42 = vadd.f32 %v1063_v38, %v2910_v35 }
  0xe3   :  { %v2928_v54 = vadd.f32 %v1051_v37, %v1033_v5  ;;  %v1083_v45 = vadd.f32 %v1082_v10, %v1064_v42 }
  0xe8   :  { %v1101_v11 = vpop.f32.mrf.mxu2  ;;  %v1065_v13 = vpop.f32.mrf.mxu0 }
  0xe9   :  { %v1120_v57 = vpop.f32.mrf.mxu3  ;;  %v1084_v14 = vpop.f32.mrf.mxu1  ;;  %v1102_v51 = vadd.f32 %v1101_v11, %v1083_v45  ;;  %v1066_v52 = vadd.f32 %v1065_v13, %v2913_v6 }
  0xeb   :  { %v1121_v60 = vadd.f32 %v1120_v57, %v1102_v51  ;;  %v1085_v0 = vadd.f32 %v1084_v14, %v1066_v52  ;;  %v1210_v57 = vmax.f32 %v2926_v48, 0.0 }
  0xf0   :  { %v1103_v39 = vpop.f32.mrf.mxu2  ;;  %v1068_v19 = vpop.f32.mrf.mxu0 }
  0xf1   :  { %v1122_v18 = vpop.f32.mrf.mxu3  ;;  %v1087_v41 = vpop.f32.mrf.mxu1  ;;  %v1104_v2 = vadd.f32 %v1103_v39, %v1085_v0  ;;  %v1069_v3 = vadd.f32 %v1068_v19, %v2916_v40 }
  0xf3   :  { %v1123_v8 = vadd.f32 %v1122_v18, %v1104_v2  ;;  %v1088_v9 = vadd.f32 %v1087_v41, %v1069_v3 }
  0xf8   :  { %v1106_v43 = vpop.f32.mrf.mxu2  ;;  %v1070_v46 = vpop.f32.mrf.mxu0 }
  0xf9   :  { %v1125_v44 = vpop.f32.mrf.mxu3  ;;  %v1089_v47 = vpop.f32.mrf.mxu1  ;;  %v1107_v21 = vadd.f32 %v1106_v43, %v1088_v9  ;;  %v1071_v24 = vadd.f32 %v1070_v46, %v2919_v50  ;;  %v1212_v43 = vmax.f32 %v2928_v54, 0.0 }
  0xfb   :  { %v1126_v28 = vadd.f32 %v1125_v44, %v1107_v21  ;;  %v1090_v56 = vadd.f32 %v1089_v47, %v1071_v24 }
 0x100   :  { %v1108_v55 = vpop.f32.mrf.mxu2  ;;  %v1139_v62 = vpop.f32.mrf.mxu0 }
 0x101   :  { %v1127_v59 = vpop.f32.mrf.mxu3  ;;  %v1158_v63 = vpop.f32.mrf.mxu1  ;;  %v1140_v1 = vadd.f32 %v1139_v62, %v1121_v60  ;;  %v1109_v34 = vadd.f32 %v1108_v55, %v1090_v56 }
 0x103   :  { %v1159_v4 = vadd.f32 %v1158_v63, %v1140_v1  ;;  %v1128_v37 = vadd.f32 %v1127_v59, %v1109_v34 }
 0x108   :  { %v1177_v35 = vpop.f32.mrf.mxu2  ;;  %v1141_v15 = vpop.f32.mrf.mxu0 }
 0x109   :  { %v1196_v7 = vpop.f32.mrf.mxu3  ;;  %v1178_v12 = vadd.f32 %v1177_v35, %v1159_v4  ;;  %v1160_v16 = vpop.f32.mrf.mxu1  ;;  %v1142_v6 = vadd.f32 %v1141_v15, %v1123_v8 }
 0x10b   :  { %v1197_v17 = vadd.f32 %v1196_v7, %v1178_v12  ;;  %v1161_v26 = vadd.f32 %v1160_v16, %v1142_v6 }
 0x10d   :  { %v1207_v22 = vmax.f32 %v1197_v17, 0.0 }
 0x10f   :  { %v1214_v25 = vpack.c.bf16 %v1207_v22, %v1206_v20 }
 0x110   :  { %v1179_v27 = vpop.f32.mrf.mxu2  ;;  %v1144_v30 = vpop.f32.mrf.mxu0 }
 0x111   :  { %v1198_v40 = vpop.f32.mrf.mxu3  ;;  %1218 = vst [vmem:[%s2953_s3] sm:$0xff] %v1214_v25  ;;  %v1180_v29 = vadd.f32 %v1179_v27, %v1161_v26  ;;  %v1145_v32 = vadd.f32 %v1144_v30, %v1126_v28  ;;  %v1163_v33 = vpop.f32.mrf.mxu1 }
 0x113   :  { %v1199_v31 = vadd.f32 %v1198_v40, %v1180_v29  ;;  %v1164_v61 = vadd.f32 %v1163_v33, %v1145_v32 }
 0x115   :  { %v1209_v58 = vmax.f32 %v1199_v31, 0.0 }
 0x117   :  { %v1215_v50 = vpack.c.bf16 %v1209_v58, %v1208_v23 }
 0x118   :  { %v1182_v53 = vpop.f32.mrf.mxu2  ;;  %v1146_v38 = vpop.f32.mrf.mxu0 }
 0x119   :  { %v1201_v36 = vpop.f32.mrf.mxu3  ;;  %1219 = vst [vmem:[%s2953_s3 + $0x8] sm:$0xff] %v1215_v50  ;;  %v1183_v5 = vadd.f32 %v1182_v53, %v1164_v61  ;;  %v1147_v11 = vadd.f32 %v1146_v38, %v1128_v37  ;;  %v1165_v14 = vpop.f32.mrf.mxu1 }
 0x11b   :  { %v1202_v10 = vadd.f32 %v1201_v36, %v1183_v5  ;;  %v1166_v39 = vadd.f32 %v1165_v14, %v1147_v11 }
 0x11d   :  { %v1211_v13 = vmax.f32 %v1202_v10, 0.0 }
 0x11f   :  { %v1216_v49 = vpack.c.bf16 %v1211_v13, %v1210_v57 }
 0x120   :  { %v1184_v18 = vpop.f32.mrf.mxu2 }
 0x121   :  { %1220 = vst [vmem:[%s2953_s3 + $0x10] sm:$0xff] %v1216_v49  ;;  %v1185_v19 = vadd.f32 %v1184_v18, %v1166_v39  ;;  %v1203_v41 = vpop.f32.mrf.mxu3 }
 0x123   :  { %v1204_v42 = vadd.f32 %v1203_v41, %v1185_v19 }
 0x125   :  { %v1213_v44 = vmax.f32 %v1204_v42, 0.0 }
 0x127   :  { %v1217_v45 = vpack.c.bf16 %v1213_v44, %v1212_v43 }
 0x129   :  { %1221 = vst [vmem:[%s2953_s3 + $0x18] sm:$0xff] %v1217_v45 }

// kernel: autoencoder_forward.6
= control target key start
LH: loop header
LB: loop body
LE: loop exit
PB: predicated region body
PF: predicated region fallthrough
CT: control target
= control target key end

     0   :  { %s1851_s1 = inlined_call_operand.vmem [shape: bf16[512,256], index: 1, kind: input, shape index: {}]   ;;  %s1852_s0 = inlined_call_operand.vmem [shape: bf16[64,512], index: 0, kind: input, shape index: {}]   ;;  %s1853_s2 = inlined_call_operand.vmem [shape: f32[64,1], index: 2, kind: input, shape index: {}]   ;;  %s1854_s3 = inlined_call_operand.vmem [shape: bf16[64,256], index: 3, kind: output, shape index: {}]  }
   0x1   :  { %v932_v0 = vld [vmem:[%s1851_s1 + $0x70] sm:$0xf]  ;;  %v1161_v1 = vld [vmem:[%s1851_s1 + $0x74] sm:$0xf0]  ;;  %v924_v11 = vld [vmem:[%s1851_s1 + $0x60] sm:$0xf] }
   0x2   :  { %v996_v2 = vld [vmem:[%s1851_s1 + $0xf0] sm:$0xf]  ;;  %v933_v3 = vor.u32 %v1161_v1, %v932_v0  ;;  %v1177_v4 = vld [vmem:[%s1851_s1 + $0xf4] sm:$0xf0]  ;;  %v1159_v13 = vld [vmem:[%s1851_s1 + $0x64] sm:$0xf0] }
   0x3   :  { %v1060_v5 = vld [vmem:[%s1851_s1 + $0x170] sm:$0xf]  ;;  %v1193_v6 = vld [vmem:[%s1851_s1 + $0x174] sm:$0xf0]  ;;  %v997_v7 = vor.u32 %v1177_v4, %v996_v2  ;;  %v988_v14 = vld [vmem:[%s1851_s1 + $0xe0] sm:$0xf]  ;;  %v925_v16 = vor.u32 %v1159_v13, %v924_v11 }
   0x4   :  { %v1061_v8 = vor.u32 %v1193_v6, %v1060_v5  ;;  %v1124_v9 = vld [vmem:[%s1851_s1 + $0x1f0] sm:$0xf]  ;;  %v1209_v10 = vld [vmem:[%s1851_s1 + $0x1f4] sm:$0xf0]  ;;  %542 = vmatpush.bf16.msra.mxu0 %v933_v3  ;;  %v1175_v15 = vld [vmem:[%s1851_s1 + $0xe4] sm:$0xf0] }
   0x5   :  { %v1125_v12 = vor.u32 %v1209_v10, %v1124_v9  ;;  %571 = vmatpush.bf16.msra.mxu1 %v997_v7  ;;  %v989_v17 = vor.u32 %v1175_v15, %v988_v14  ;;  %v1052_v18 = vld [vmem:[%s1851_s1 + $0x160] sm:$0xf]  ;;  %v1191_v19 = vld [vmem:[%s1851_s1 + $0x164] sm:$0xf0]  ;;  %v916_v23 = vld [vmem:[%s1851_s1 + $0x50] sm:$0xf] }
   0x6   :  { %600 = vmatpush.bf16.msra.mxu2 %v1061_v8  ;;  %v1116_v20 = vld [vmem:[%s1851_s1 + $0x1e0] sm:$0xf]  ;;  %v1053_v21 = vor.u32 %v1191_v19, %v1052_v18  ;;  %v1207_v22 = vld [vmem:[%s1851_s1 + $0x1e4] sm:$0xf0]  ;;  %v1157_v24 = vld [vmem:[%s1851_s1 + $0x54] sm:$0xf0] }
   0x7   :  { %629 = vmatpush.bf16.msra.mxu3 %v1125_v12  ;;  %v1117_v25 = vor.u32 %v1207_v22, %v1116_v20  ;;  %v980_v26 = vld [vmem:[%s1851_s1 + $0xd0] sm:$0xf]  ;;  %v1173_v27 = vld [vmem:[%s1851_s1 + $0xd4] sm:$0xf0]  ;;  %v917_v29 = vor.u32 %v1157_v24, %v916_v23  ;;  %v908_v35 = vld [vmem:[%s1851_s1 + $0x40] sm:$0xf] }
   0x8   :  { %v1044_v28 = vld [vmem:[%s1851_s1 + $0x150] sm:$0xf]  ;;  %543 = vmatpush.bf16.msra.mxu0 %v925_v16  ;;  %v1189_v30 = vld [vmem:[%s1851_s1 + $0x154] sm:$0xf0]  ;;  %v981_v33 = vor.u32 %v1173_v27, %v980_v26  ;;  %v1155_v36 = vld [vmem:[%s1851_s1 + $0x44] sm:$0xf0] }
   0x9   :  { %v1108_v31 = vld [vmem:[%s1851_s1 + $0x1d0] sm:$0xf]  ;;  %v1205_v32 = vld [vmem:[%s1851_s1 + $0x1d4] sm:$0xf0]  ;;  %572 = vmatpush.bf16.msra.mxu1 %v989_v17  ;;  %v1045_v34 = vor.u32 %v1189_v30, %v1044_v28  ;;  %v972_v37 = vld [vmem:[%s1851_s1 + $0xc0] sm:$0xf]  ;;  %v909_v44 = vor.u32 %v1155_v36, %v908_v35 }
   0xa   :  { %601 = vmatpush.bf16.msra.mxu2 %v1053_v21  ;;  %v1109_v38 = vor.u32 %v1205_v32, %v1108_v31  ;;  %v1171_v39 = vld [vmem:[%s1851_s1 + $0xc4] sm:$0xf0]  ;;  %v1036_v40 = vld [vmem:[%s1851_s1 + $0x140] sm:$0xf]  ;;  %v900_v47 = vld [vmem:[%s1851_s1 + $0x30] sm:$0xf] }
   0xb   :  { %630 = vmatpush.bf16.msra.mxu3 %v1117_v25  ;;  %v1187_v41 = vld [vmem:[%s1851_s1 + $0x144] sm:$0xf0]  ;;  %v1100_v42 = vld [vmem:[%s1851_s1 + $0x1c0] sm:$0xf]  ;;  %v973_v45 = vor.u32 %v1171_v39, %v972_v37  ;;  %v1153_v48 = vld [vmem:[%s1851_s1 + $0x34] sm:$0xf0] }
   0xc   :  { %v1203_v43 = vld [vmem:[%s1851_s1 + $0x1c4] sm:$0xf0]  ;;  %544 = vmatpush.bf16.msra.mxu0 %v917_v29  ;;  %v1037_v46 = vor.u32 %v1187_v41, %v1036_v40  ;;  %v964_v49 = vld [vmem:[%s1851_s1 + $0xb0] sm:$0xf]  ;;  %v1169_v51 = vld [vmem:[%s1851_s1 + $0xb4] sm:$0xf0]  ;;  %v901_v56 = vor.u32 %v1153_v48, %v900_v47 }
   0xd   :  { %573 = vmatpush.bf16.msra.mxu1 %v981_v33  ;;  %v1101_v50 = vor.u32 %v1203_v43, %v1100_v42  ;;  %v1028_v52 = vld [vmem:[%s1851_s1 + $0x130] sm:$0xf]  ;;  %v1185_v53 = vld [vmem:[%s1851_s1 + $0x134] sm:$0xf0]  ;;  %v965_v57 = vor.u32 %v1169_v51, %v964_v49  ;;  %v892_v59 = vld [vmem:[%s1851_s1 + $0x20] sm:$0xf] }
   0xe   :  { %602 = vmatpush.bf16.msra.mxu2 %v1045_v34  ;;  %v1092_v54 = vld [vmem:[%s1851_s1 + $0x1b0] sm:$0xf]  ;;  %v1201_v55 = vld [vmem:[%s1851_s1 + $0x1b4] sm:$0xf0]  ;;  %v1029_v58 = vor.u32 %v1185_v53, %v1028_v52  ;;  %v1151_v60 = vld [vmem:[%s1851_s1 + $0x24] sm:$0xf0] }
   0xf   :  { %631 = vmatpush.bf16.msra.mxu3 %v1109_v38  ;;  %v956_v61 = vld [vmem:[%s1851_s1 + $0xa0] sm:$0xf]  ;;  %v1093_v62 = vor.u32 %v1201_v55, %v1092_v54  ;;  %v1167_v63 = vld [vmem:[%s1851_s1 + $0xa4] sm:$0xf0]  ;;  %v893_v4 = vor.u32 %v1151_v60, %v892_v59  ;;  %v884_v7 = vld [vmem:[%s1851_s1 + $0x10] sm:$0xf] }
  0x10   :  { %545 = vmatpush.bf16.msra.mxu0 %v909_v44  ;;  %v1020_v0 = vld [vmem:[%s1851_s1 + $0x120] sm:$0xf]  ;;  %v1183_v1 = vld [vmem:[%s1851_s1 + $0x124] sm:$0xf0]  ;;  %v957_v5 = vor.u32 %v1167_v63, %v956_v61  ;;  %v1149_v8 = vld [vmem:[%s1851_s1 + $0x14] sm:$0xf0] }
  0x11   :  { %574 = vmatpush.bf16.msra.mxu1 %v973_v45  ;;  %v1084_v2 = vld [vmem:[%s1851_s1 + $0x1a0] sm:$0xf]  ;;  %v1199_v3 = vld [vmem:[%s1851_s1 + $0x1a4] sm:$0xf0]  ;;  %v1021_v6 = vor.u32 %v1183_v1, %v1020_v0  ;;  %v948_v9 = vld [vmem:[%s1851_s1 + $0x90] sm:$0xf]  ;;  %v885_v17 = vor.u32 %v1149_v8, %v884_v7 }
  0x12   :  { %603 = vmatpush.bf16.msra.mxu2 %v1037_v46  ;;  %v1085_v10 = vor.u32 %v1199_v3, %v1084_v2  ;;  %v1165_v11 = vld [vmem:[%s1851_s1 + $0x94] sm:$0xf0]  ;;  %v1012_v12 = vld [vmem:[%s1851_s1 + $0x110] sm:$0xf]  ;;  %v876_v16 = vld [vmem:[%s1851_s1] sm:$0xf] }
  0x13   :  { %632 = vmatpush.bf16.msra.mxu3 %v1101_v50  ;;  %v1181_v13 = vld [vmem:[%s1851_s1 + $0x114] sm:$0xf0]  ;;  %v1076_v14 = vld [vmem:[%s1851_s1 + $0x190] sm:$0xf]  ;;  %v1147_v18 = vld [vmem:[%s1851_s1 + $0x4] sm:$0xf0]  ;;  %v949_v21 = vor.u32 %v1165_v11, %v948_v9 }
  0x14   :  { %546 = vmatpush.bf16.msra.mxu0 %v901_v56  ;;  %v1197_v15 = vld [vmem:[%s1851_s1 + $0x194] sm:$0xf0]  ;;  %v940_v19 = vld [vmem:[%s1851_s1 + $0x80] sm:$0xf]  ;;  %v1163_v20 = vld [vmem:[%s1851_s1 + $0x84] sm:$0xf0]  ;;  %v1013_v22 = vor.u32 %v1181_v13, %v1012_v12  ;;  %v877_v35 = vor.u32 %v1147_v18, %v876_v16 }
  0x15   :  { %575 = vmatpush.bf16.msra.mxu1 %v965_v57  ;;  %v1004_v23 = vld [vmem:[%s1851_s1 + $0x100] sm:$0xf]  ;;  %v1179_v24 = vld [vmem:[%s1851_s1 + $0x104] sm:$0xf0]  ;;  %v1077_v26 = vor.u32 %v1197_v15, %v1076_v14  ;;  %v1132_v29 = vld [vmem:[%s1852_s0 + $0xc] sm:$0xf0]  ;;  %v941_v39 = vor.u32 %v1163_v20, %v940_v19 }
  0x16   :  { %604 = vmatpush.bf16.msra.mxu2 %v1029_v58  ;;  %v1068_v25 = vld [vmem:[%s1851_s1 + $0x180] sm:$0xf]  ;;  %v1195_v27 = vld [vmem:[%s1851_s1 + $0x184] sm:$0xf0]  ;;  %v1130_v30 = vld [vmem:[%s1852_s0 + $0x4] sm:$0xf]  ;;  %v1005_v40 = vor.u32 %v1179_v24, %v1004_v23 }
  0x17   :  { %633 = vmatpush.bf16.msra.mxu3 %v1093_v62  ;;  %v812_v28 = vld [vmem:[%s1852_s0] sm:$0xf]  ;;  %v814_v31 = vld [vmem:[%s1852_s0 + $0x10] sm:$0xf0]  ;;  %v820_v32 = vld [vmem:[%s1852_s0 + $0x8] sm:$0xf]  ;;  %v1069_v44 = vor.u32 %v1195_v27, %v1068_v25 }
  0x18   :  { %547 = vmatpush.bf16.msra.mxu0 %v893_v4  ;;  %v1192_v33 = vld [vmem:[%s1851_s1 + $0x174] sm:$0xf]  ;;  %v1062_v34 = vld [vmem:[%s1851_s1 + $0x178] sm:$0xf0]  ;;  %v94_v38 = vld [vmem:[%s1853_s2] sm:$0xff]  ;;  %v1214_v49 = vmov 0   ;;  %v1475_v50 = vor.u32 %v1132_v29, %v812_v28  ;;  %v1486_v55 = vor.u32 %v1130_v30, %v814_v31 }
  0x19   :  { %576 = vmatpush.bf16.msra.mxu1 %v957_v5  ;;  %v1208_v36 = vld [vmem:[%s1851_s1 + $0x1f4] sm:$0xf]  ;;  %v1126_v37 = vld [vmem:[%s1851_s1 + $0x1f8] sm:$0xf0]  ;;  %v1133_v41 = vld [vmem:[%s1852_s0 + $0x14] sm:$0xf0]  ;;  %v1065_v45 = vor.u32 %v1192_v33, %v1062_v34  ;;  %1211 = vset.pattern.permute.xlu0 %v1214_v49 }
  0x1a   :  { %605 = vmatpush.bf16.msra.mxu2 %v1021_v6  ;;  %v1131_v42 = vld [vmem:[%s1852_s0 + $0xc] sm:$0xf]  ;;  %v822_v43 = vld [vmem:[%s1852_s0 + $0x18] sm:$0xf0]  ;;  %v1160_v46 = vld [vmem:[%s1851_s1 + $0x74] sm:$0xf]  ;;  %v1129_v51 = vor.u32 %v1208_v36, %v1126_v37  ;;  %104 = vperm.xlu0 %1211, %v94_v38   ;;  %v1488_v56 = vor.u32 %v1133_v41, %v820_v32 }
  0x1b   :  { %634 = vmatpush.bf16.msra.mxu3 %v1085_v10  ;;  %v934_v47 = vld [vmem:[%s1851_s1 + $0x78] sm:$0xf0]  ;;  %v1176_v48 = vld [vmem:[%s1851_s1 + $0xf4] sm:$0xf]  ;;  %v1190_v53 = vld [vmem:[%s1851_s1 + $0x164] sm:$0xf]  ;;  %1212 = vset.pattern.permute.xlu1 %v1214_v49  ;;  %v1496_v59 = vor.u32 %v1131_v42, %v822_v43 }
  0x1c   :  { %548 = vmatpush.bf16.msra.mxu0 %v885_v17  ;;  %v998_v52 = vld [vmem:[%s1851_s1 + $0xf8] sm:$0xf0]  ;;  %v1054_v54 = vld [vmem:[%s1851_s1 + $0x168] sm:$0xf0]  ;;  %v1206_v57 = vld [vmem:[%s1851_s1 + $0x1e4] sm:$0xf]  ;;  %1213 = vset.pattern.permute.xlu2 %v1214_v49  ;;  %v937_v60 = vor.u32 %v1160_v46, %v934_v47 }
  0x1d   :  { %577 = vmatpush.bf16.msra.mxu1 %v949_v21  ;;  %v1118_v58 = vld [vmem:[%s1851_s1 + $0x1e8] sm:$0xf0]  ;;  %v1001_v61 = vor.u32 %v1176_v48, %v998_v52  ;;  %v1057_v62 = vor.u32 %v1190_v53, %v1054_v54  ;;  %v1158_v63 = vld [vmem:[%s1851_s1 + $0x64] sm:$0xf]  ;;  %v1188_v4 = vld [vmem:[%s1851_s1 + $0x154] sm:$0xf] }
  0x1e   :  { %606 = vmatpush.bf16.msra.mxu2 %v1013_v22  ;;  %v926_v0 = vld [vmem:[%s1851_s1 + $0x68] sm:$0xf0]  ;;  %v1174_v1 = vld [vmem:[%s1851_s1 + $0xe4] sm:$0xf]  ;;  %v1121_v2 = vor.u32 %v1206_v57, %v1118_v58  ;;  %v1046_v5 = vld [vmem:[%s1851_s1 + $0x158] sm:$0xf0] }
  0x1f   :  { %635 = vmatpush.bf16.msra.mxu3 %v1077_v26  ;;  %v990_v3 = vld [vmem:[%s1851_s1 + $0xe8] sm:$0xf0]  ;;  %v1204_v6 = vld [vmem:[%s1851_s1 + $0x1d4] sm:$0xf]  ;;  %v1110_v7 = vld [vmem:[%s1851_s1 + $0x1d8] sm:$0xf0]  ;;  %v929_v9 = vor.u32 %v1158_v63, %v926_v0  ;;  %v1049_v12 = vor.u32 %v1188_v4, %v1046_v5 }
  0x20   :  { %549 = vmatpush.bf16.msra.mxu0 %v877_v35  ;;  %v95_v8 = vld [vmem:[%s1853_s2 + $0x8] sm:$0xff]  ;;  %v1156_v10 = vld [vmem:[%s1851_s1 + $0x54] sm:$0xf]  ;;  %v993_v11 = vor.u32 %v1174_v1, %v990_v3  ;;  %v918_v13 = vld [vmem:[%s1851_s1 + $0x58] sm:$0xf0]  ;;  %v1113_v16 = vor.u32 %v1204_v6, %v1110_v7 }
  0x21   :  { %578 = vmatpush.bf16.msra.mxu1 %v941_v39  ;;  %v1172_v14 = vld [vmem:[%s1851_s1 + $0xd4] sm:$0xf]  ;;  %v982_v17 = vld [vmem:[%s1851_s1 + $0xd8] sm:$0xf0]  ;;  %v1186_v18 = vld [vmem:[%s1851_s1 + $0x144] sm:$0xf]  ;;  %v921_v22 = vor.u32 %v1156_v10, %v918_v13 }
  0x22   :  { %607 = vmatpush.bf16.msra.mxu2 %v1005_v40  ;;  %v96_v15 = vld [vmem:[%s1853_s2 + $0x10] sm:$0xff]  ;;  %109 = vperm.xlu0 %1211, %v95_v8   ;;  %v1038_v19 = vld [vmem:[%s1851_s1 + $0x148] sm:$0xf0]  ;;  %v1202_v20 = vld [vmem:[%s1851_s1 + $0x1c4] sm:$0xf]  ;;  %v985_v25 = vor.u32 %v1172_v14, %v982_v17 }
  0x23   :  { %636 = vmatpush.bf16.msra.mxu3 %v1069_v44  ;;  %550 = vmatmul.bf16.vlgmr.msra.gmra.mxu0 %v1475_v50  ;;  %v1102_v21 = vld [vmem:[%s1851_s1 + $0x1c8] sm:$0xf0]  ;;  %v828_v23 = vld [vmem:[%s1852_s0 + $0x20] sm:$0xf]  ;;  %v1136_v24 = vld [vmem:[%s1852_s0 + $0x2c] sm:$0xf0]  ;;  %v1041_v26 = vor.u32 %v1186_v18, %v1038_v19 }
  0x24   :  { %579 = vmatmul.bf16.vlgmr.msra.gmra.mxu1 %v1486_v55  ;;  %658 = vmatpush.bf16.msrb.mxu0 %v937_v60  ;;  %v1154_v27 = vld [vmem:[%s1851_s1 + $0x44] sm:$0xf]  ;;  %v910_v28 = vld [vmem:[%s1851_s1 + $0x48] sm:$0xf0]  ;;  %v830_v31 = vld [vmem:[%s1852_s0 + $0x30] sm:$0xf0]  ;;  %v1105_v33 = vor.u32 %v1202_v20, %v1102_v21  ;;  %v1616_v49 = vor.u32 %v1136_v24, %v828_v23 }
  0x25   :  { %608 = vmatmul.bf16.vlgmr.msra.gmra.mxu2 %v1488_v56  ;;  %687 = vmatpush.bf16.msrb.mxu1 %v1001_v61  ;;  %v1170_v29 = vld [vmem:[%s1851_s1 + $0xc4] sm:$0xf]  ;;  %v836_v32 = vld [vmem:[%s1852_s0 + $0x28] sm:$0xf]  ;;  %v974_v34 = vld [vmem:[%s1851_s1 + $0xc8] sm:$0xf0]  ;;  %v913_v42 = vor.u32 %v1154_v27, %v910_v28 }
  0x26   :  { %716 = vmatpush.bf16.msrb.mxu2 %v1065_v45  ;;  %637 = vmatmul.bf16.vlgmr.msra.gmra.mxu3 %v1496_v59  ;;  %v1134_v30 = vld [vmem:[%s1852_s0 + $0x24] sm:$0xf]  ;;  %v1184_v35 = vld [vmem:[%s1851_s1 + $0x134] sm:$0xf]  ;;  %v1030_v36 = vld [vmem:[%s1851_s1 + $0x138] sm:$0xf0]  ;;  %v977_v44 = vor.u32 %v1170_v29, %v974_v34 }
  0x27   :  { %745 = vmatpush.bf16.msrb.mxu3 %v1129_v51  ;;  %114 = vperm.xlu1 %1212, %v96_v15   ;;  %v1137_v37 = vld [vmem:[%s1852_s0 + $0x34] sm:$0xf0]  ;;  %v1200_v38 = vld [vmem:[%s1851_s1 + $0x1b4] sm:$0xf]  ;;  %v1094_v39 = vld [vmem:[%s1851_s1 + $0x1b8] sm:$0xf0]  ;;  %v1033_v45 = vor.u32 %v1184_v35, %v1030_v36  ;;  %v1627_v57 = vor.u32 %v1134_v30, %v830_v31 }
  0x28   :  { %659 = vmatpush.bf16.msrb.mxu0 %v929_v9  ;;  %v1135_v40 = vld [vmem:[%s1852_s0 + $0x2c] sm:$0xf]  ;;  %v838_v41 = vld [vmem:[%s1852_s0 + $0x38] sm:$0xf0]  ;;  %v1152_v46 = vld [vmem:[%s1851_s1 + $0x34] sm:$0xf]  ;;  %v1097_v51 = vor.u32 %v1200_v38, %v1094_v39  ;;  %v1629_v58 = vor.u32 %v1137_v37, %v836_v32 }
  0x29   :  { %688 = vmatpush.bf16.msrb.mxu1 %v993_v11  ;;  %v97_v43 = vld [vmem:[%s1853_s2 + $0x18] sm:$0xff]  ;;  %v1168_v48 = vld [vmem:[%s1851_s1 + $0xb4] sm:$0xf]  ;;  %v1182_v53 = vld [vmem:[%s1851_s1 + $0x124] sm:$0xf] }
  0x2a   :  { %717 = vmatpush.bf16.msrb.mxu2 %v1057_v62  ;;  %v902_v47 = vld [vmem:[%s1851_s1 + $0x38] sm:$0xf0]  ;;  %v1022_v54 = vld [vmem:[%s1851_s1 + $0x128] sm:$0xf0]  ;;  %v1198_v60 = vld [vmem:[%s1851_s1 + $0x1a4] sm:$0xf]  ;;  %v1637_v62 = vor.u32 %v1135_v40, %v838_v41 }
  0x2b   :  { %746 = vmatpush.bf16.msrb.mxu3 %v1121_v2  ;;  %v966_v52 = vld [vmem:[%s1851_s1 + $0xb8] sm:$0xf0]  ;;  %v1086_v61 = vld [vmem:[%s1851_s1 + $0x1a8] sm:$0xf0]  ;;  %v905_v63 = vor.u32 %v1152_v46, %v902_v47  ;;  %v1025_v1 = vor.u32 %v1182_v53, %v1022_v54  ;;  %v1150_v2 = vld [vmem:[%s1851_s1 + $0x24] sm:$0xf] }
  0x2c   :  { %660 = vmatpush.bf16.msrb.mxu0 %v921_v22  ;;  %v969_v0 = vor.u32 %v1168_v48, %v966_v52  ;;  %v894_v3 = vld [vmem:[%s1851_s1 + $0x28] sm:$0xf0]  ;;  %v1089_v4 = vor.u32 %v1198_v60, %v1086_v61  ;;  %v1166_v5 = vld [vmem:[%s1851_s1 + $0xa4] sm:$0xf]  ;;  %v1180_v8 = vld [vmem:[%s1851_s1 + $0x114] sm:$0xf] }
  0x2d   :  { %689 = vmatpush.bf16.msrb.mxu1 %v985_v25  ;;  %v958_v6 = vld [vmem:[%s1851_s1 + $0xa8] sm:$0xf0]  ;;  %v897_v7 = vor.u32 %v1150_v2, %v894_v3  ;;  %v1014_v9 = vld [vmem:[%s1851_s1 + $0x118] sm:$0xf0]  ;;  %v1148_v10 = vld [vmem:[%s1851_s1 + $0x14] sm:$0xf] }
  0x2e   :  { %718 = vmatpush.bf16.msrb.mxu2 %v1049_v12  ;;  %v961_v11 = vor.u32 %v1166_v5, %v958_v6  ;;  %v1017_v12 = vor.u32 %v1180_v8, %v1014_v9  ;;  %v886_v13 = vld [vmem:[%s1851_s1 + $0x18] sm:$0xf0]  ;;  %v1196_v14 = vld [vmem:[%s1851_s1 + $0x194] sm:$0xf]  ;;  %v1178_v19 = vld [vmem:[%s1851_s1 + $0x104] sm:$0xf] }
  0x2f   :  { %747 = vmatpush.bf16.msrb.mxu3 %v1113_v16  ;;  %119 = vperm.xlu1 %1212, %v97_v43   ;;  %v1078_v15 = vld [vmem:[%s1851_s1 + $0x198] sm:$0xf0]  ;;  %v1164_v17 = vld [vmem:[%s1851_s1 + $0x94] sm:$0xf]  ;;  %v1006_v20 = vld [vmem:[%s1851_s1 + $0x108] sm:$0xf0]  ;;  %v889_v21 = vor.u32 %v1148_v10, %v886_v13 }
  0x30   :  { %661 = vmatpush.bf16.msrb.mxu0 %v913_v42  ;;  %v1081_v16 = vor.u32 %v1196_v14, %v1078_v15  ;;  %v950_v18 = vld [vmem:[%s1851_s1 + $0x98] sm:$0xf0]  ;;  %v1194_v22 = vld [vmem:[%s1851_s1 + $0x184] sm:$0xf]  ;;  %v1070_v23 = vld [vmem:[%s1851_s1 + $0x188] sm:$0xf0]  ;;  %v1009_v25 = vor.u32 %v1178_v19, %v1006_v20 }
  0x31   :  { %690 = vmatpush.bf16.msrb.mxu1 %v977_v44  ;;  %v953_v24 = vor.u32 %v1164_v17, %v950_v18  ;;  %v878_v27 = vld [vmem:[%s1851_s1 + $0x8] sm:$0xf0]  ;;  %v100_v28 = vld [vmem:[%s1853_s2 + $0x30] sm:$0xff]  ;;  %v1073_v29 = vor.u32 %v1194_v22, %v1070_v23  ;;  %v1162_v30 = vld [vmem:[%s1851_s1 + $0x84] sm:$0xf] }
  0x32   :  { %719 = vmatpush.bf16.msrb.mxu2 %v1041_v26  ;;  %v1146_v26 = vld [vmem:[%s1851_s1 + $0x4] sm:$0xf]  ;;  %v942_v31 = vld [vmem:[%s1851_s1 + $0x88] sm:$0xf0]  ;;  %134 = vperm.xlu0 %1211, %v100_v28   ;;  %v844_v32 = vld [vmem:[%s1852_s0 + $0x40] sm:$0xf] }
  0x33   :  { %748 = vmatpush.bf16.msrb.mxu3 %v1105_v33  ;;  %555 = vmatmul.bf16.gmra.mxu0 %v1616_v49  ;;  %v1140_v33 = vld [vmem:[%s1852_s0 + $0x4c] sm:$0xf0]  ;;  %v1138_v34 = vld [vmem:[%s1852_s0 + $0x44] sm:$0xf]  ;;  %v846_v35 = vld [vmem:[%s1852_s0 + $0x50] sm:$0xf0]  ;;  %v881_v38 = vor.u32 %v1146_v26, %v878_v27  ;;  %v945_v41 = vor.u32 %v1162_v30, %v942_v31 }
  0x34   :  { %584 = vmatmul.bf16.gmra.mxu1 %v1627_v57  ;;  %662 = vmatpush.bf16.msrb.mxu0 %v905_v63  ;;  %v852_v36 = vld [vmem:[%s1852_s0 + $0x48] sm:$0xf]  ;;  %v1141_v37 = vld [vmem:[%s1852_s0 + $0x54] sm:$0xf0]  ;;  %v1139_v39 = vld [vmem:[%s1852_s0 + $0x4c] sm:$0xf]  ;;  %v845_v42 = vor.u32 %v1140_v33, %v844_v32  ;;  %v849_v43 = vor.u32 %v1138_v34, %v846_v35 }
  0x35   :  { %613 = vmatmul.bf16.gmra.mxu2 %v1629_v58  ;;  %691 = vmatpush.bf16.msrb.mxu1 %v969_v0  ;;  %v854_v40 = vld [vmem:[%s1852_s0 + $0x58] sm:$0xf0]  ;;  %v853_v44 = vor.u32 %v1141_v37, %v852_v36  ;;  %v98_v46 = vld [vmem:[%s1853_s2 + $0x20] sm:$0xff]  ;;  %v99_v48 = vld [vmem:[%s1853_s2 + $0x28] sm:$0xff] }
  0x36   :  { %720 = vmatpush.bf16.msrb.mxu2 %v1033_v45  ;;  %642 = vmatmul.bf16.gmra.mxu3 %v1637_v62  ;;  %v857_v45 = vor.u32 %v1139_v39, %v854_v40  ;;  %v101_v47 = vld [vmem:[%s1853_s2 + $0x38] sm:$0xff]  ;;  %v1144_v52 = vld [vmem:[%s1852_s0 + $0x6c] sm:$0xf0]  ;;  %v1142_v53 = vld [vmem:[%s1852_s0 + $0x64] sm:$0xf] }
  0x37   :  { %749 = vmatpush.bf16.msrb.mxu3 %v1097_v51  ;;  %124 = vperm.xlu2 %1213, %v98_v46   ;;  %v860_v51 = vld [vmem:[%s1852_s0 + $0x60] sm:$0xf]  ;;  %v862_v54 = vld [vmem:[%s1852_s0 + $0x70] sm:$0xf0]  ;;  %v868_v60 = vld [vmem:[%s1852_s0 + $0x68] sm:$0xf] }
  0x38   :  { %663 = vmatpush.bf16.msrb.mxu0 %v897_v7  ;;  %139 = vperm.xlu1 %1212, %v101_v47   ;;  %v1145_v61 = vld [vmem:[%s1852_s0 + $0x74] sm:$0xf0]  ;;  %v1143_v63 = vld [vmem:[%s1852_s0 + $0x6c] sm:$0xf]  ;;  %v870_v0 = vld [vmem:[%s1852_s0 + $0x78] sm:$0xf0]  ;;  %v865_v2 = vor.u32 %v1142_v53, %v862_v54 }
  0x39   :  { %692 = vmatpush.bf16.msrb.mxu1 %v961_v11  ;;  %v869_v3 = vor.u32 %v1145_v61, %v868_v60 }
  0x3a   :  { %721 = vmatpush.bf16.msrb.mxu2 %v1025_v1  ;;  %v861_v1 = vor.u32 %v1144_v52, %v860_v51 }
  0x3b   :  { %750 = vmatpush.bf16.msrb.mxu3 %v1089_v4  ;;  %v873_v4 = vor.u32 %v1143_v63, %v870_v0 }
  0x3c   :  { %664 = vmatpush.bf16.msrb.mxu0 %v889_v21 }
  0x3d   :  { %693 = vmatpush.bf16.msrb.mxu1 %v953_v24 }
  0x3e   :  { %722 = vmatpush.bf16.msrb.mxu2 %v1017_v12 }
  0x3f   :  { %751 = vmatpush.bf16.msrb.mxu3 %v1081_v16  ;;  %129 = vperm.xlu2 %1213, %v99_v48  }
  0x40   :  { %665 = vmatpush.bf16.msrb.mxu0 %v881_v38 }
  0x41   :  { %694 = vmatpush.bf16.msrb.mxu1 %v945_v41 }
  0x42   :  { %723 = vmatpush.bf16.msrb.mxu2 %v1009_v25 }
  0x43   :  { %752 = vmatpush.bf16.msrb.mxu3 %v1073_v29  ;;  %560 = vmatmul.bf16.gmra.mxu0 %v845_v42 }
  0x44   :  { %589 = vmatmul.bf16.gmra.mxu1 %v849_v43 }
  0x45   :  { %618 = vmatmul.bf16.gmra.mxu2 %v853_v44 }
  0x46   :  { %647 = vmatmul.bf16.gmra.mxu3 %v857_v45 }
  0x53   :  { %565 = vmatmul.bf16.gmra.mxu0 %v861_v1 }
  0x54   :  { %594 = vmatmul.bf16.gmra.mxu1 %v865_v2 }
  0x55   :  { %623 = vmatmul.bf16.gmra.mxu2 %v869_v3 }
  0x56   :  { %652 = vmatmul.bf16.gmra.mxu3 %v873_v4 }
  0x63   :  { %666 = vmatmul.bf16.vlgmr.msrb.gmra.mxu0 %v1475_v50 }
  0x64   :  { %695 = vmatmul.bf16.vlgmr.msrb.gmra.mxu1 %v1486_v55 }
  0x65   :  { %724 = vmatmul.bf16.vlgmr.msrb.gmra.mxu2 %v1488_v56 }
  0x66   :  { %753 = vmatmul.bf16.vlgmr.msrb.gmra.mxu3 %v1496_v59 }
  0x73   :  { %671 = vmatmul.bf16.gmra.mxu0 %v1616_v49 }
  0x74   :  { %700 = vmatmul.bf16.gmra.mxu1 %v1627_v57 }
  0x75   :  { %729 = vmatmul.bf16.gmra.mxu2 %v1629_v58 }
  0x76   :  { %758 = vmatmul.bf16.gmra.mxu3 %v1637_v62 }
  0x83   :  { %676 = vmatmul.bf16.gmra.mxu0 %v845_v42 }
  0x84   :  { %705 = vmatmul.bf16.gmra.mxu1 %v849_v43 }
  0x85   :  { %734 = vmatmul.bf16.gmra.mxu2 %v853_v44 }
  0x86   :  { %763 = vmatmul.bf16.gmra.mxu3 %v857_v45 }
  0x8c   :  { %v1771_v50 = vpop.permute.xlu0 %104 }
  0x91   :  { %v1789_v29 = vpop.permute.xlu2 %124 }
  0x93   :  { %681 = vmatmul.bf16.gmra.mxu0 %v861_v1 }
  0x94   :  { %710 = vmatmul.bf16.gmra.mxu1 %v865_v2  ;;  %v1774_v57 = vpop.permute.xlu0 %109 }
  0x95   :  { %739 = vmatmul.bf16.gmra.mxu2 %v869_v3 }
  0x96   :  { %768 = vmatmul.bf16.gmra.mxu3 %v873_v4 }
  0x99   :  { %v1779_v11 = vpop.permute.xlu1 %114  ;;  %v1794_v38 = vpop.permute.xlu2 %129 }
  0xa0   :  { %v551_v55 = vpop.f32.mrf.mxu0 }
  0xa1   :  { %v552_v56 = vadd.f32 %v551_v55, %v1771_v50  ;;  %v580_v59 = vpop.f32.mrf.mxu1  ;;  %v1784_v20 = vpop.permute.xlu1 %119 }
  0xa3   :  { %v581_v49 = vadd.f32 %v580_v59, %v552_v56 }
  0xa4   :  { %v1799_v47 = vpop.permute.xlu0 %134 }
  0xa8   :  { %v609_v58 = vpop.f32.mrf.mxu2  ;;  %v553_v6 = vpop.f32.mrf.mxu0 }
  0xa9   :  { %v610_v5 = vadd.f32 %v609_v58, %v581_v49  ;;  %v638_v62 = vpop.f32.mrf.mxu3  ;;  %v554_v7 = vadd.f32 %v553_v6, %v1774_v57  ;;  %v582_v8 = vpop.f32.mrf.mxu1 }
  0xaa   :  { %v1804_v0 = vpop.permute.xlu1 %139 }
  0xab   :  { %v1777_v9 = vadd.f32 %v638_v62, %v610_v5  ;;  %v583_v10 = vadd.f32 %v582_v8, %v554_v7 }
  0xb0   :  { %v611_v12 = vpop.f32.mrf.mxu2  ;;  %v556_v15 = vpop.f32.mrf.mxu0 }
  0xb1   :  { %v612_v13 = vadd.f32 %v611_v12, %v583_v10  ;;  %v640_v14 = vpop.f32.mrf.mxu3  ;;  %v557_v16 = vadd.f32 %v556_v15, %v1779_v11  ;;  %v585_v17 = vpop.f32.mrf.mxu1 }
  0xb3   :  { %v1782_v18 = vadd.f32 %v640_v14, %v612_v13  ;;  %v586_v19 = vadd.f32 %v585_v17, %v557_v16 }
  0xb8   :  { %v614_v21 = vpop.f32.mrf.mxu2  ;;  %v558_v24 = vpop.f32.mrf.mxu0 }
  0xb9   :  { %v615_v22 = vadd.f32 %v614_v21, %v586_v19  ;;  %v643_v23 = vpop.f32.mrf.mxu3  ;;  %v559_v25 = vadd.f32 %v558_v24, %v1784_v20  ;;  %v587_v26 = vpop.f32.mrf.mxu1 }
  0xbb   :  { %v1787_v27 = vadd.f32 %v643_v23, %v615_v22  ;;  %v588_v28 = vadd.f32 %v587_v26, %v559_v25  ;;  %v774_v22 = vmax.f32 %v1777_v9, 0.0 }
  0xc0   :  { %v616_v30 = vpop.f32.mrf.mxu2  ;;  %v561_v33 = vpop.f32.mrf.mxu0 }
  0xc1   :  { %v617_v31 = vadd.f32 %v616_v30, %v588_v28  ;;  %v645_v32 = vpop.f32.mrf.mxu3  ;;  %v562_v34 = vadd.f32 %v561_v33, %v1789_v29  ;;  %v590_v35 = vpop.f32.mrf.mxu1 }
  0xc3   :  { %v1792_v36 = vadd.f32 %v645_v32, %v617_v31  ;;  %v591_v37 = vadd.f32 %v590_v35, %v562_v34  ;;  %v776_v34 = vmax.f32 %v1782_v18, 0.0 }
  0xc8   :  { %v619_v39 = vpop.f32.mrf.mxu2  ;;  %v563_v42 = vpop.f32.mrf.mxu0 }
  0xc9   :  { %v620_v40 = vadd.f32 %v619_v39, %v591_v37  ;;  %v648_v41 = vpop.f32.mrf.mxu3  ;;  %v564_v43 = vadd.f32 %v563_v42, %v1794_v38  ;;  %v592_v44 = vpop.f32.mrf.mxu1 }
  0xcb   :  { %v1797_v45 = vadd.f32 %v648_v41, %v620_v40  ;;  %v593_v46 = vadd.f32 %v592_v44, %v564_v43 }
  0xd0   :  { %v621_v48 = vpop.f32.mrf.mxu2  ;;  %v566_v53 = vpop.f32.mrf.mxu0 }
  0xd1   :  { %v622_v51 = vadd.f32 %v621_v48, %v593_v46  ;;  %v650_v52 = vpop.f32.mrf.mxu3  ;;  %v595_v54 = vpop.f32.mrf.mxu1  ;;  %v567_v60 = vadd.f32 %v566_v53, %v1799_v47 }
  0xd3   :  { %v1802_v61 = vadd.f32 %v650_v52, %v622_v51  ;;  %v596_v63 = vadd.f32 %v595_v54, %v567_v60 }
  0xd8   :  { %v624_v1 = vpop.f32.mrf.mxu2  ;;  %v568_v4 = vpop.f32.mrf.mxu0 }
  0xd9   :  { %v625_v2 = vadd.f32 %v624_v1, %v596_v63  ;;  %v653_v3 = vpop.f32.mrf.mxu3  ;;  %v569_v55 = vadd.f32 %v568_v4, %v1804_v0  ;;  %v597_v56 = vpop.f32.mrf.mxu1 }
  0xdb   :  { %v1807_v59 = vadd.f32 %v653_v3, %v625_v2  ;;  %v598_v49 = vadd.f32 %v597_v56, %v569_v55  ;;  %v780_v2 = vmax.f32 %v1792_v36, 0.0 }
  0xe0   :  { %v626_v58 = vpop.f32.mrf.mxu2  ;;  %v667_v6 = vpop.f32.mrf.mxu0 }
  0xe1   :  { %v627_v5 = vadd.f32 %v626_v58, %v598_v49  ;;  %v655_v62 = vpop.f32.mrf.mxu3  ;;  %v668_v7 = vadd.f32 %v667_v6, %v1771_v50  ;;  %v696_v8 = vpop.f32.mrf.mxu1 }
  0xe3   :  { %v1810_v10 = vadd.f32 %v655_v62, %v627_v5  ;;  %v697_v12 = vadd.f32 %v696_v8, %v668_v7 }
  0xe8   :  { %v725_v13 = vpop.f32.mrf.mxu2  ;;  %v669_v16 = vpop.f32.mrf.mxu0 }
  0xe9   :  { %v726_v14 = vadd.f32 %v725_v13, %v697_v12  ;;  %v754_v15 = vpop.f32.mrf.mxu3  ;;  %v698_v17 = vpop.f32.mrf.mxu1  ;;  %v670_v21 = vadd.f32 %v669_v16, %v1774_v57 }
  0xeb   :  { %v755_v19 = vadd.f32 %v754_v15, %v726_v14  ;;  %v699_v25 = vadd.f32 %v698_v17, %v670_v21 }
  0xed   :  { %v775_v23 = vmax.f32 %v755_v19, 0.0  ;;  %v784_v19 = vmax.f32 %v1802_v61, 0.0 }
  0xef   :  { %v790_v24 = vpack.c.bf16 %v775_v23, %v774_v22 }
  0xf0   :  { %v727_v26 = vpop.f32.mrf.mxu2  ;;  %v672_v30 = vpop.f32.mrf.mxu0 }
  0xf1   :  { %798 = vst [vmem:[%s1854_s3] sm:$0xff] %v790_v24  ;;  %v728_v50 = vadd.f32 %v727_v26, %v699_v25  ;;  %v756_v28 = vpop.f32.mrf.mxu3  ;;  %v673_v31 = vadd.f32 %v672_v30, %v1779_v11  ;;  %v701_v32 = vpop.f32.mrf.mxu1  ;;  %v778_v11 = vmax.f32 %v1787_v27, 0.0 }
  0xf3   :  { %v757_v33 = vadd.f32 %v756_v28, %v728_v50  ;;  %v702_v35 = vadd.f32 %v701_v32, %v673_v31  ;;  %v786_v28 = vmax.f32 %v1807_v59, 0.0 }
  0xf5   :  { %v777_v57 = vmax.f32 %v757_v33, 0.0 }
  0xf7   :  { %v791_v9 = vpack.c.bf16 %v777_v57, %v776_v34 }
  0xf8   :  { %v730_v37 = vpop.f32.mrf.mxu2  ;;  %v674_v41 = vpop.f32.mrf.mxu0 }
  0xf9   :  { %799 = vst [vmem:[%s1854_s3 + $0x8] sm:$0xff] %v791_v9  ;;  %v731_v39 = vadd.f32 %v730_v37, %v702_v35  ;;  %v759_v40 = vpop.f32.mrf.mxu3  ;;  %v703_v42 = vpop.f32.mrf.mxu1  ;;  %v675_v44 = vadd.f32 %v674_v41, %v1784_v20  ;;  %v788_v35 = vmax.f32 %v1810_v10, 0.0 }
  0xfb   :  { %v760_v43 = vadd.f32 %v759_v40, %v731_v39  ;;  %v704_v18 = vadd.f32 %v703_v42, %v675_v44 }
  0xfd   :  { %v779_v46 = vmax.f32 %v760_v43, 0.0 }
  0xff   :  { %v792_v48 = vpack.c.bf16 %v779_v46, %v778_v11 }
 0x100   :  { %v732_v51 = vpop.f32.mrf.mxu2  ;;  %v677_v54 = vpop.f32.mrf.mxu0 }
 0x101   :  { %800 = vst [vmem:[%s1854_s3 + $0x10] sm:$0xff] %v792_v48  ;;  %v733_v52 = vadd.f32 %v732_v51, %v704_v18  ;;  %v761_v53 = vpop.f32.mrf.mxu3  ;;  %v678_v60 = vadd.f32 %v677_v54, %v1789_v29  ;;  %v706_v63 = vpop.f32.mrf.mxu1  ;;  %v782_v29 = vmax.f32 %v1797_v45, 0.0 }
 0x103   :  { %v762_v1 = vadd.f32 %v761_v53, %v733_v52  ;;  %v707_v3 = vadd.f32 %v706_v63, %v678_v60 }
 0x105   :  { %v781_v20 = vmax.f32 %v762_v1, 0.0 }
 0x107   :  { %v793_v27 = vpack.c.bf16 %v781_v20, %v780_v2 }
 0x108   :  { %v735_v4 = vpop.f32.mrf.mxu2  ;;  %v679_v49 = vpop.f32.mrf.mxu0 }
 0x109   :  { %801 = vst [vmem:[%s1854_s3 + $0x18] sm:$0xff] %v793_v27  ;;  %v736_v55 = vadd.f32 %v735_v4, %v707_v3  ;;  %v764_v56 = vpop.f32.mrf.mxu3  ;;  %v708_v58 = vpop.f32.mrf.mxu1  ;;  %v680_v62 = vadd.f32 %v679_v49, %v1794_v38 }
 0x10b   :  { %v765_v5 = vadd.f32 %v764_v56, %v736_v55  ;;  %v709_v36 = vadd.f32 %v708_v58, %v680_v62 }
 0x10d   :  { %v783_v6 = vmax.f32 %v765_v5, 0.0 }
 0x10f   :  { %v794_v7 = vpack.c.bf16 %v783_v6, %v782_v29 }
 0x110   :  { %v737_v8 = vpop.f32.mrf.mxu2  ;;  %v682_v14 = vpop.f32.mrf.mxu0 }
 0x111   :  { %802 = vst [vmem:[%s1854_s3 + $0x20] sm:$0xff] %v794_v7  ;;  %v738_v12 = vadd.f32 %v737_v8, %v709_v36  ;;  %v766_v13 = vpop.f32.mrf.mxu3  ;;  %v683_v16 = vadd.f32 %v682_v14, %v1799_v47  ;;  %v711_v17 = vpop.f32.mrf.mxu1 }
 0x113   :  { %v767_v15 = vadd.f32 %v766_v13, %v738_v12  ;;  %v712_v45 = vadd.f32 %v711_v17, %v683_v16 }
 0x115   :  { %v785_v38 = vmax.f32 %v767_v15, 0.0 }
 0x117   :  { %v795_v21 = vpack.c.bf16 %v785_v38, %v784_v19 }
 0x118   :  { %v740_v22 = vpop.f32.mrf.mxu2  ;;  %v684_v25 = vpop.f32.mrf.mxu0 }
 0x119   :  { %803 = vst [vmem:[%s1854_s3 + $0x28] sm:$0xff] %v795_v21  ;;  %v741_v23 = vadd.f32 %v740_v22, %v712_v45  ;;  %v769_v24 = vpop.f32.mrf.mxu3  ;;  %v685_v50 = vadd.f32 %v684_v25, %v1804_v0  ;;  %v713_v30 = vpop.f32.mrf.mxu1 }
 0x11b   :  { %v770_v26 = vadd.f32 %v769_v24, %v741_v23  ;;  %v714_v61 = vadd.f32 %v713_v30, %v685_v50 }
 0x11d   :  { %v787_v47 = vmax.f32 %v770_v26, 0.0 }
 0x11f   :  { %v796_v31 = vpack.c.bf16 %v787_v47, %v786_v28 }
 0x120   :  { %v742_v32 = vpop.f32.mrf.mxu2 }
 0x121   :  { %804 = vst [vmem:[%s1854_s3 + $0x30] sm:$0xff] %v796_v31  ;;  %v743_v33 = vadd.f32 %v742_v32, %v714_v61  ;;  %v771_v34 = vpop.f32.mrf.mxu3 }
 0x123   :  { %v772_v57 = vadd.f32 %v771_v34, %v743_v33 }
 0x125   :  { %v789_v9 = vmax.f32 %v772_v57, 0.0 }
 0x127   :  { %v797_v37 = vpack.c.bf16 %v789_v9, %v788_v35 }
 0x129   :  { %805 = vst [vmem:[%s1854_s3 + $0x38] sm:$0xff] %v797_v37 }

// kernel: autoencoder_forward.7
= control target key start
LH: loop header
LB: loop body
LE: loop exit
PB: predicated region body
PF: predicated region fallthrough
CT: control target
= control target key end

     0   :  { %s10465_s1 = inlined_call_operand.vmem [shape: bf16[1024,1024], index: 1, kind: input, shape index: {}]   ;;  %s10466_s0 = inlined_call_operand.vmem [shape: bf16[16,1024], index: 0, kind: input, shape index: {}]   ;;  %s10467_s2 = inlined_call_operand.vmem [shape: f32[16,1], index: 2, kind: input, shape index: {}]   ;;  %s10468_s3 = inlined_call_operand.vmem [shape: f32[16,1024], index: 3, kind: output, shape index: {}]  }
   0x1   :  { %v4624_v0 = vld [vmem:[%s10465_s1 + $0x1c0] sm:$0xf] }
   0x2   :  { %v6530_v1 = vld [vmem:[%s10465_s1 + $0x1dc] sm:$0xf0] }
   0x3   :  { %v4880_v2 = vld [vmem:[%s10465_s1 + $0x3c0] sm:$0xf]  ;;  %v4625_v3 = vor.u32 %v6530_v1, %v4624_v0 }
   0x4   :  { %v6594_v4 = vld [vmem:[%s10465_s1 + $0x3dc] sm:$0xf0] }
   0x5   :  { %v5136_v5 = vld [vmem:[%s10465_s1 + $0x5c0] sm:$0xf]  ;;  %v4881_v7 = vor.u32 %v6594_v4, %v4880_v2  ;;  %3146 = vmatpush.bf16.msra.mxu0 %v4625_v3 }
   0x6   :  { %v6658_v6 = vld [vmem:[%s10465_s1 + $0x5dc] sm:$0xf0] }
   0x7   :  { %v5137_v8 = vor.u32 %v6658_v6, %v5136_v5  ;;  %v5392_v9 = vld [vmem:[%s10465_s1 + $0x7c0] sm:$0xf]  ;;  %3160 = vmatpush.bf16.msra.mxu1 %v4881_v7 }
   0x8   :  { %v6722_v10 = vld [vmem:[%s10465_s1 + $0x7dc] sm:$0xf0] }
   0x9   :  { %v4592_v11 = vld [vmem:[%s10465_s1 + $0x180] sm:$0xf]  ;;  %v5393_v12 = vor.u32 %v6722_v10, %v5392_v9  ;;  %3174 = vmatpush.bf16.msra.mxu2 %v5137_v8 }
   0xa   :  { %v6522_v13 = vld [vmem:[%s10465_s1 + $0x19c] sm:$0xf0] }
   0xb   :  { %v4848_v14 = vld [vmem:[%s10465_s1 + $0x380] sm:$0xf]  ;;  %v4593_v16 = vor.u32 %v6522_v13, %v4592_v11  ;;  %3188 = vmatpush.bf16.msra.mxu3 %v5393_v12 }
   0xc   :  { %v6586_v15 = vld [vmem:[%s10465_s1 + $0x39c] sm:$0xf0] }
   0xd   :  { %v4849_v17 = vor.u32 %v6586_v15, %v4848_v14  ;;  %v5104_v18 = vld [vmem:[%s10465_s1 + $0x580] sm:$0xf]  ;;  %3147 = vmatpush.bf16.msra.mxu0 %v4593_v16 }
   0xe   :  { %v6650_v19 = vld [vmem:[%s10465_s1 + $0x59c] sm:$0xf0] }
   0xf   :  { %v5360_v20 = vld [vmem:[%s10465_s1 + $0x780] sm:$0xf]  ;;  %v5105_v21 = vor.u32 %v6650_v19, %v5104_v18  ;;  %3161 = vmatpush.bf16.msra.mxu1 %v4849_v17 }
  0x10   :  { %v6714_v22 = vld [vmem:[%s10465_s1 + $0x79c] sm:$0xf0] }
  0x11   :  { %v4560_v23 = vld [vmem:[%s10465_s1 + $0x140] sm:$0xf]  ;;  %v5361_v25 = vor.u32 %v6714_v22, %v5360_v20  ;;  %3175 = vmatpush.bf16.msra.mxu2 %v5105_v21 }
  0x12   :  { %v6514_v24 = vld [vmem:[%s10465_s1 + $0x15c] sm:$0xf0] }
  0x13   :  { %v4816_v26 = vld [vmem:[%s10465_s1 + $0x340] sm:$0xf]  ;;  %v4561_v29 = vor.u32 %v6514_v24, %v4560_v23  ;;  %3189 = vmatpush.bf16.msra.mxu3 %v5361_v25 }
  0x14   :  { %v6578_v27 = vld [vmem:[%s10465_s1 + $0x35c] sm:$0xf0] }
  0x15   :  { %v5072_v28 = vld [vmem:[%s10465_s1 + $0x540] sm:$0xf]  ;;  %v4817_v33 = vor.u32 %v6578_v27, %v4816_v26  ;;  %3148 = vmatpush.bf16.msra.mxu0 %v4561_v29 }
  0x16   :  { %v6642_v30 = vld [vmem:[%s10465_s1 + $0x55c] sm:$0xf0] }
  0x17   :  { %v5328_v31 = vld [vmem:[%s10465_s1 + $0x740] sm:$0xf]  ;;  %v5073_v34 = vor.u32 %v6642_v30, %v5072_v28  ;;  %3162 = vmatpush.bf16.msra.mxu1 %v4817_v33 }
  0x18   :  { %v6706_v32 = vld [vmem:[%s10465_s1 + $0x75c] sm:$0xf0] }
  0x19   :  { %v4528_v35 = vld [vmem:[%s10465_s1 + $0x100] sm:$0xf]  ;;  %v5329_v38 = vor.u32 %v6706_v32, %v5328_v31  ;;  %3176 = vmatpush.bf16.msra.mxu2 %v5073_v34 }
  0x1a   :  { %v6506_v36 = vld [vmem:[%s10465_s1 + $0x11c] sm:$0xf0] }
  0x1b   :  { %v4784_v37 = vld [vmem:[%s10465_s1 + $0x300] sm:$0xf]  ;;  %v4529_v44 = vor.u32 %v6506_v36, %v4528_v35  ;;  %3190 = vmatpush.bf16.msra.mxu3 %v5329_v38 }
  0x1c   :  { %v6570_v39 = vld [vmem:[%s10465_s1 + $0x31c] sm:$0xf0] }
  0x1d   :  { %v5040_v40 = vld [vmem:[%s10465_s1 + $0x500] sm:$0xf]  ;;  %v4785_v45 = vor.u32 %v6570_v39, %v4784_v37  ;;  %3149 = vmatpush.bf16.msra.mxu0 %v4529_v44 }
  0x1e   :  { %v6634_v41 = vld [vmem:[%s10465_s1 + $0x51c] sm:$0xf0] }
  0x1f   :  { %v5296_v42 = vld [vmem:[%s10465_s1 + $0x700] sm:$0xf]  ;;  %v5041_v46 = vor.u32 %v6634_v41, %v5040_v40  ;;  %3163 = vmatpush.bf16.msra.mxu1 %v4785_v45 }
  0x20   :  { %v6698_v43 = vld [vmem:[%s10465_s1 + $0x71c] sm:$0xf0] }
  0x21   :  { %v4496_v47 = vld [vmem:[%s10465_s1 + $0xc0] sm:$0xf]  ;;  %v5297_v50 = vor.u32 %v6698_v43, %v5296_v42  ;;  %3177 = vmatpush.bf16.msra.mxu2 %v5041_v46 }
  0x22   :  { %v6498_v48 = vld [vmem:[%s10465_s1 + $0xdc] sm:$0xf0] }
  0x23   :  { %v4752_v49 = vld [vmem:[%s10465_s1 + $0x2c0] sm:$0xf]  ;;  %v4497_v56 = vor.u32 %v6498_v48, %v4496_v47  ;;  %3191 = vmatpush.bf16.msra.mxu3 %v5297_v50 }
  0x24   :  { %v6562_v51 = vld [vmem:[%s10465_s1 + $0x2dc] sm:$0xf0] }
  0x25   :  { %v5008_v52 = vld [vmem:[%s10465_s1 + $0x4c0] sm:$0xf]  ;;  %v4753_v57 = vor.u32 %v6562_v51, %v4752_v49  ;;  %3150 = vmatpush.bf16.msra.mxu0 %v4497_v56 }
  0x26   :  { %v6626_v53 = vld [vmem:[%s10465_s1 + $0x4dc] sm:$0xf0] }
  0x27   :  { %v5264_v54 = vld [vmem:[%s10465_s1 + $0x6c0] sm:$0xf]  ;;  %v5009_v58 = vor.u32 %v6626_v53, %v5008_v52  ;;  %3164 = vmatpush.bf16.msra.mxu1 %v4753_v57 }
  0x28   :  { %v6690_v55 = vld [vmem:[%s10465_s1 + $0x6dc] sm:$0xf0] }
  0x29   :  { %v4464_v59 = vld [vmem:[%s10465_s1 + $0x80] sm:$0xf]  ;;  %v5265_v62 = vor.u32 %v6690_v55, %v5264_v54  ;;  %3178 = vmatpush.bf16.msra.mxu2 %v5009_v58  ;;  %v4376_v54 = vld [vmem:[%s10466_s0 + $0x8] sm:$0xf] }
  0x2a   :  { %v6490_v60 = vld [vmem:[%s10465_s1 + $0x9c] sm:$0xf0] }
  0x2b   :  { %v4720_v61 = vld [vmem:[%s10465_s1 + $0x280] sm:$0xf]  ;;  %v4465_v4 = vor.u32 %v6490_v60, %v4464_v59  ;;  %3192 = vmatpush.bf16.msra.mxu3 %v5265_v62  ;;  %v6467_v59 = vld [vmem:[%s10466_s0 + $0x24] sm:$0xf0] }
  0x2c   :  { %v6554_v63 = vld [vmem:[%s10465_s1 + $0x29c] sm:$0xf0] }
  0x2d   :  { %v4976_v0 = vld [vmem:[%s10465_s1 + $0x480] sm:$0xf]  ;;  %v4721_v5 = vor.u32 %v6554_v63, %v4720_v61  ;;  %3151 = vmatpush.bf16.msra.mxu0 %v4465_v4 }
  0x2e   :  { %v6618_v1 = vld [vmem:[%s10465_s1 + $0x49c] sm:$0xf0] }
  0x2f   :  { %v5232_v2 = vld [vmem:[%s10465_s1 + $0x680] sm:$0xf]  ;;  %v4977_v6 = vor.u32 %v6618_v1, %v4976_v0  ;;  %3165 = vmatpush.bf16.msra.mxu1 %v4721_v5  ;;  %v7338_v1 = vor.u32 %v6467_v59, %v4376_v54 }
  0x30   :  { %v6682_v3 = vld [vmem:[%s10465_s1 + $0x69c] sm:$0xf0] }
  0x31   :  { %v4432_v7 = vld [vmem:[%s10465_s1 + $0x40] sm:$0xf]  ;;  %v5233_v10 = vor.u32 %v6682_v3, %v5232_v2  ;;  %3179 = vmatpush.bf16.msra.mxu2 %v4977_v6  ;;  %v6462_v6 = vld [vmem:[%s10466_s0 + $0x4] sm:$0xf] }
  0x32   :  { %v6482_v8 = vld [vmem:[%s10465_s1 + $0x5c] sm:$0xf0] }
  0x33   :  { %v4688_v9 = vld [vmem:[%s10465_s1 + $0x240] sm:$0xf]  ;;  %v4433_v16 = vor.u32 %v6482_v8, %v4432_v7  ;;  %3193 = vmatpush.bf16.msra.mxu3 %v5233_v10  ;;  %v4370_v7 = vld [vmem:[%s10466_s0 + $0x20] sm:$0xf0]  ;;  %v6463_v8 = vld [vmem:[%s10466_s0 + $0xc] sm:$0xf] }
  0x34   :  { %v6546_v11 = vld [vmem:[%s10465_s1 + $0x25c] sm:$0xf0]  ;;  %v7360_v10 = vor.u32 %v6462_v6, %v4370_v7 }
  0x35   :  { %v4944_v12 = vld [vmem:[%s10465_s1 + $0x440] sm:$0xf]  ;;  %v4689_v19 = vor.u32 %v6546_v11, %v4688_v9  ;;  %3152 = vmatpush.bf16.msra.mxu0 %v4433_v16  ;;  %v4378_v11 = vld [vmem:[%s10466_s0 + $0x28] sm:$0xf0] }
  0x36   :  { %v6610_v13 = vld [vmem:[%s10465_s1 + $0x45c] sm:$0xf0] }
  0x37   :  { %v5200_v14 = vld [vmem:[%s10465_s1 + $0x640] sm:$0xf]  ;;  %v4945_v20 = vor.u32 %v6610_v13, %v4944_v12  ;;  %3166 = vmatpush.bf16.msra.mxu1 %v4689_v19 }
  0x38   :  { %v6674_v15 = vld [vmem:[%s10465_s1 + $0x65c] sm:$0xf0] }
  0x39   :  { %v4400_v17 = vld [vmem:[%s10465_s1] sm:$0xf]  ;;  %v5201_v24 = vor.u32 %v6674_v15, %v5200_v14  ;;  %3180 = vmatpush.bf16.msra.mxu2 %v4945_v20 }
  0x3a   :  { %v6474_v18 = vld [vmem:[%s10465_s1 + $0x1c] sm:$0xf0] }
  0x3b   :  { %v4656_v21 = vld [vmem:[%s10465_s1 + $0x200] sm:$0xf]  ;;  %v4401_v31 = vor.u32 %v6474_v18, %v4400_v17  ;;  %3194 = vmatpush.bf16.msra.mxu3 %v5201_v24  ;;  %v7374_v17 = vor.u32 %v6463_v8, %v4378_v11 }
  0x3c   :  { %v6538_v22 = vld [vmem:[%s10465_s1 + $0x21c] sm:$0xf0] }
  0x3d   :  { %v4912_v23 = vld [vmem:[%s10465_s1 + $0x400] sm:$0xf]  ;;  %v4657_v35 = vor.u32 %v6538_v22, %v4656_v21  ;;  %3153 = vmatpush.bf16.msra.mxu0 %v4401_v31 }
  0x3e   :  { %v6602_v25 = vld [vmem:[%s10465_s1 + $0x41c] sm:$0xf0] }
  0x3f   :  { %v5168_v26 = vld [vmem:[%s10465_s1 + $0x600] sm:$0xf]  ;;  %v4913_v36 = vor.u32 %v6602_v25, %v4912_v23  ;;  %3167 = vmatpush.bf16.msra.mxu1 %v4657_v35 }
  0x40   :  { %v6666_v27 = vld [vmem:[%s10465_s1 + $0x61c] sm:$0xf0] }
  0x41   :  { %v5648_v28 = vld [vmem:[%s10465_s1 + $0x9c0] sm:$0xf]  ;;  %v5169_v39 = vor.u32 %v6666_v27, %v5168_v26  ;;  %3181 = vmatpush.bf16.msra.mxu2 %v4913_v36 }
  0x42   :  { %v6786_v29 = vld [vmem:[%s10465_s1 + $0x9dc] sm:$0xf0]  ;;  %3168 = vmatmul.bf16.vlgmr.msra.gmra.mxu1 %v7360_v10 }
  0x43   :  { %v5904_v30 = vld [vmem:[%s10465_s1 + $0xbc0] sm:$0xf]  ;;  %v5649_v40 = vor.u32 %v6786_v29, %v5648_v28  ;;  %3195 = vmatpush.bf16.msra.mxu3 %v5169_v39 }
  0x44   :  { %v6850_v32 = vld [vmem:[%s10465_s1 + $0xbdc] sm:$0xf0]  ;;  %3182 = vmatmul.bf16.vlgmr.msra.gmra.mxu2 %v7338_v1 }
  0x45   :  { %v6160_v33 = vld [vmem:[%s10465_s1 + $0xdc0] sm:$0xf]  ;;  %v5905_v43 = vor.u32 %v6850_v32, %v5904_v30  ;;  %3202 = vmatpush.bf16.msrb.mxu0 %v5649_v40 }
  0x46   :  { %v6914_v34 = vld [vmem:[%s10465_s1 + $0xddc] sm:$0xf0]  ;;  %3196 = vmatmul.bf16.vlgmr.msra.gmra.mxu3 %v7374_v17 }
  0x47   :  { %v6416_v37 = vld [vmem:[%s10465_s1 + $0xfc0] sm:$0xf]  ;;  %v6161_v44 = vor.u32 %v6914_v34, %v6160_v33  ;;  %3216 = vmatpush.bf16.msrb.mxu1 %v5905_v43 }
  0x48   :  { %v6978_v38 = vld [vmem:[%s10465_s1 + $0xfdc] sm:$0xf0] }
  0x49   :  { %v5616_v41 = vld [vmem:[%s10465_s1 + $0x980] sm:$0xf]  ;;  %v6417_v48 = vor.u32 %v6978_v38, %v6416_v37  ;;  %3230 = vmatpush.bf16.msrb.mxu2 %v6161_v44 }
  0x4a   :  { %v6778_v42 = vld [vmem:[%s10465_s1 + $0x99c] sm:$0xf0] }
  0x4b   :  { %v5872_v45 = vld [vmem:[%s10465_s1 + $0xb80] sm:$0xf]  ;;  %v5617_v55 = vor.u32 %v6778_v42, %v5616_v41  ;;  %3244 = vmatpush.bf16.msrb.mxu3 %v6417_v48 }
  0x4c   :  { %v6842_v46 = vld [vmem:[%s10465_s1 + $0xb9c] sm:$0xf0] }
  0x4d   :  { %v6128_v47 = vld [vmem:[%s10465_s1 + $0xd80] sm:$0xf]  ;;  %v5873_v60 = vor.u32 %v6842_v46, %v5872_v45  ;;  %3203 = vmatpush.bf16.msrb.mxu0 %v5617_v55 }
  0x4e   :  { %v6906_v49 = vld [vmem:[%s10465_s1 + $0xd9c] sm:$0xf0] }
  0x4f   :  { %v6384_v50 = vld [vmem:[%s10465_s1 + $0xf80] sm:$0xf]  ;;  %v6129_v61 = vor.u32 %v6906_v49, %v6128_v47  ;;  %3217 = vmatpush.bf16.msrb.mxu1 %v5873_v60 }
  0x50   :  { %v6970_v51 = vld [vmem:[%s10465_s1 + $0xf9c] sm:$0xf0] }
  0x51   :  { %v4368_v52 = vld [vmem:[%s10466_s0] sm:$0xf]  ;;  %v6385_v2 = vor.u32 %v6970_v51, %v6384_v50  ;;  %3231 = vmatpush.bf16.msrb.mxu2 %v6129_v61  ;;  %v7048_v61 = vmov 0  }
  0x52   :  { %v6466_v53 = vld [vmem:[%s10466_s0 + $0x1c] sm:$0xf0]  ;;  %6983 = vset.pattern.permute.xlu0 %v7048_v61  ;;  %v5074_v61 = vld [vmem:[%s10465_s1 + $0x560] sm:$0xf0] }
  0x53   :  { %v5584_v56 = vld [vmem:[%s10465_s1 + $0x940] sm:$0xf]  ;;  %v7324_v58 = vor.u32 %v6466_v53, %v4368_v52  ;;  %3245 = vmatpush.bf16.msrb.mxu3 %v6385_v2 }
  0x54   :  { %v6770_v57 = vld [vmem:[%s10465_s1 + $0x95c] sm:$0xf0] }
  0x55   :  { %v5840_v62 = vld [vmem:[%s10465_s1 + $0xb40] sm:$0xf]  ;;  %3154 = vmatmul.bf16.vlgmr.msra.gmra.mxu0 %v7324_v58  ;;  %v5585_v9 = vor.u32 %v6770_v57, %v5584_v56 }
  0x56   :  { %v6834_v63 = vld [vmem:[%s10465_s1 + $0xb5c] sm:$0xf0] }
  0x57   :  { %v6096_v0 = vld [vmem:[%s10465_s1 + $0xd40] sm:$0xf]  ;;  %v5841_v12 = vor.u32 %v6834_v63, %v5840_v62  ;;  %3204 = vmatpush.bf16.msrb.mxu0 %v5585_v9 }
  0x58   :  { %v6898_v3 = vld [vmem:[%s10465_s1 + $0xd5c] sm:$0xf0] }
  0x59   :  { %v6352_v4 = vld [vmem:[%s10465_s1 + $0xf40] sm:$0xf]  ;;  %v6097_v13 = vor.u32 %v6898_v3, %v6096_v0  ;;  %3218 = vmatpush.bf16.msrb.mxu1 %v5841_v12  ;;  %v6526_v12 = vld [vmem:[%s10465_s1 + $0x1c4] sm:$0xf] }
  0x5a   :  { %v6962_v5 = vld [vmem:[%s10465_s1 + $0xf5c] sm:$0xf0] }
  0x5b   :  { %v5552_v14 = vld [vmem:[%s10465_s1 + $0x900] sm:$0xf]  ;;  %v6353_v18 = vor.u32 %v6962_v5, %v6352_v4  ;;  %3232 = vmatpush.bf16.msrb.mxu2 %v6097_v13  ;;  %v4626_v13 = vld [vmem:[%s10465_s1 + $0x1e0] sm:$0xf0] }
  0x5c   :  { %v6762_v15 = vld [vmem:[%s10465_s1 + $0x91c] sm:$0xf0] }
  0x5d   :  { %v5808_v16 = vld [vmem:[%s10465_s1 + $0xb00] sm:$0xf]  ;;  %v5553_v24 = vor.u32 %v6762_v15, %v5552_v14  ;;  %3246 = vmatpush.bf16.msrb.mxu3 %v6353_v18  ;;  %v6590_v15 = vld [vmem:[%s10465_s1 + $0x3c4] sm:$0xf] }
  0x5e   :  { %v6826_v19 = vld [vmem:[%s10465_s1 + $0xb1c] sm:$0xf0]  ;;  %v6654_v18 = vld [vmem:[%s10465_s1 + $0x5c4] sm:$0xf] }
  0x5f   :  { %v6064_v20 = vld [vmem:[%s10465_s1 + $0xd00] sm:$0xf]  ;;  %v5809_v25 = vor.u32 %v6826_v19, %v5808_v16  ;;  %3205 = vmatpush.bf16.msrb.mxu0 %v5553_v24  ;;  %v4882_v16 = vld [vmem:[%s10465_s1 + $0x3e0] sm:$0xf0]  ;;  %v6468_v24 = vld [vmem:[%s10466_s0 + $0x2c] sm:$0xf0] }
  0x60   :  { %v6890_v21 = vld [vmem:[%s10465_s1 + $0xd1c] sm:$0xf0]  ;;  %v5138_v19 = vld [vmem:[%s10465_s1 + $0x5e0] sm:$0xf0] }
  0x61   :  { %v6320_v22 = vld [vmem:[%s10465_s1 + $0xf00] sm:$0xf]  ;;  %v6065_v26 = vor.u32 %v6890_v21, %v6064_v20  ;;  %3219 = vmatpush.bf16.msrb.mxu1 %v5809_v25  ;;  %v6718_v20 = vld [vmem:[%s10465_s1 + $0x7c4] sm:$0xf]  ;;  %v4392_v25 = vld [vmem:[%s10466_s0 + $0x18] sm:$0xf] }
  0x62   :  { %v6954_v23 = vld [vmem:[%s10465_s1 + $0xf1c] sm:$0xf0]  ;;  %v5394_v21 = vld [vmem:[%s10465_s1 + $0x7e0] sm:$0xf0] }
  0x63   :  { %v5520_v27 = vld [vmem:[%s10465_s1 + $0x8c0] sm:$0xf]  ;;  %v6321_v30 = vor.u32 %v6954_v23, %v6320_v22  ;;  %3233 = vmatpush.bf16.msrb.mxu2 %v6065_v26  ;;  %v4384_v23 = vld [vmem:[%s10466_s0 + $0x10] sm:$0xf] }
  0x64   :  { %v6754_v28 = vld [vmem:[%s10465_s1 + $0x8dc] sm:$0xf0] }
  0x65   :  { %v5776_v29 = vld [vmem:[%s10465_s1 + $0xac0] sm:$0xf]  ;;  %v5521_v36 = vor.u32 %v6754_v28, %v5520_v27  ;;  %3247 = vmatpush.bf16.msrb.mxu3 %v6321_v30  ;;  %v6469_v28 = vld [vmem:[%s10466_s0 + $0x34] sm:$0xf0]  ;;  %v4386_v30 = vld [vmem:[%s10466_s0 + $0x30] sm:$0xf0] }
  0x66   :  { %v6818_v31 = vld [vmem:[%s10465_s1 + $0xadc] sm:$0xf0] }
  0x67   :  { %v6032_v32 = vld [vmem:[%s10465_s1 + $0xcc0] sm:$0xf]  ;;  %v5777_v37 = vor.u32 %v6818_v31, %v5776_v29  ;;  %3206 = vmatpush.bf16.msrb.mxu0 %v5521_v36  ;;  %v6464_v29 = vld [vmem:[%s10466_s0 + $0x14] sm:$0xf]  ;;  %v4885_v36 = vor.u32 %v6590_v15, %v4882_v16 }
  0x68   :  { %v6882_v33 = vld [vmem:[%s10465_s1 + $0xcdc] sm:$0xf0] }
  0x69   :  { %v6288_v34 = vld [vmem:[%s10465_s1 + $0xec0] sm:$0xf]  ;;  %v6033_v38 = vor.u32 %v6882_v33, %v6032_v32  ;;  %3220 = vmatpush.bf16.msrb.mxu1 %v5777_v37  ;;  %v4629_v32 = vor.u32 %v6526_v12, %v4626_v13  ;;  %v6465_v33 = vld [vmem:[%s10466_s0 + $0x1c] sm:$0xf]  ;;  %v5141_v37 = vor.u32 %v6654_v18, %v5138_v19  ;;  %v6694_v12 = vld [vmem:[%s10465_s1 + $0x704] sm:$0xf] }
  0x6a   :  { %v6946_v35 = vld [vmem:[%s10465_s1 + $0xedc] sm:$0xf0]  ;;  %v5298_v13 = vld [vmem:[%s10465_s1 + $0x720] sm:$0xf0] }
  0x6b   :  { %v5488_v39 = vld [vmem:[%s10465_s1 + $0x880] sm:$0xf]  ;;  %v6289_v42 = vor.u32 %v6946_v35, %v6288_v34  ;;  %3234 = vmatpush.bf16.msrb.mxu2 %v6033_v38  ;;  %v4394_v34 = vld [vmem:[%s10466_s0 + $0x38] sm:$0xf0]  ;;  %v535_v35 = vld [vmem:[%s10467_s2 + $0x8] sm:$0xff] }
  0x6c   :  { %v6746_v40 = vld [vmem:[%s10465_s1 + $0x89c] sm:$0xf0]  ;;  %v6518_v38 = vld [vmem:[%s10465_s1 + $0x184] sm:$0xf] }
  0x6d   :  { %v5744_v41 = vld [vmem:[%s10465_s1 + $0xa80] sm:$0xf]  ;;  %v5489_v48 = vor.u32 %v6746_v40, %v5488_v39  ;;  %3248 = vmatpush.bf16.msrb.mxu3 %v6289_v42  ;;  %v4594_v39 = vld [vmem:[%s10465_s1 + $0x1a0] sm:$0xf0]  ;;  %v7552_v42 = vor.u32 %v6468_v24, %v4384_v23 }
  0x6e   :  { %v6810_v43 = vld [vmem:[%s10465_s1 + $0xa9c] sm:$0xf0]  ;;  %v6582_v40 = vld [vmem:[%s10465_s1 + $0x384] sm:$0xf] }
  0x6f   :  { %v6000_v44 = vld [vmem:[%s10465_s1 + $0xc80] sm:$0xf]  ;;  %v5745_v51 = vor.u32 %v6810_v43, %v5744_v41  ;;  %3207 = vmatpush.bf16.msrb.mxu0 %v5489_v48  ;;  %v5397_v41 = vor.u32 %v6718_v20, %v5394_v21  ;;  %v4850_v43 = vld [vmem:[%s10465_s1 + $0x3a0] sm:$0xf0]  ;;  %v5301_v21 = vor.u32 %v6694_v12, %v5298_v13 }
  0x70   :  { %v6874_v45 = vld [vmem:[%s10465_s1 + $0xc9c] sm:$0xf0]  ;;  %v6710_v48 = vld [vmem:[%s10465_s1 + $0x784] sm:$0xf] }
  0x71   :  { %v6256_v46 = vld [vmem:[%s10465_s1 + $0xe80] sm:$0xf]  ;;  %v6001_v52 = vor.u32 %v6874_v45, %v6000_v44  ;;  %3221 = vmatpush.bf16.msrb.mxu1 %v5745_v51  ;;  %v6646_v44 = vld [vmem:[%s10465_s1 + $0x584] sm:$0xf]  ;;  %v4597_v51 = vor.u32 %v6518_v38, %v4594_v39 }
  0x72   :  { %v6938_v47 = vld [vmem:[%s10465_s1 + $0xe9c] sm:$0xf0]  ;;  %v5106_v45 = vld [vmem:[%s10465_s1 + $0x5a0] sm:$0xf0] }
  0x73   :  { %v5456_v49 = vld [vmem:[%s10465_s1 + $0x840] sm:$0xf]  ;;  %v6257_v56 = vor.u32 %v6938_v47, %v6256_v46  ;;  %3235 = vmatpush.bf16.msrb.mxu2 %v6001_v52  ;;  %v7563_v46 = vor.u32 %v6469_v28, %v4392_v25  ;;  %v7565_v47 = vor.u32 %v6464_v29, %v4386_v30  ;;  %v4853_v52 = vor.u32 %v6582_v40, %v4850_v43  ;;  %v6494_v18 = vld [vmem:[%s10465_s1 + $0xc4] sm:$0xf] }
  0x74   :  { %v534_v50 = vld [vmem:[%s10467_s2] sm:$0xff] }
  0x75   :  { %v6738_v53 = vld [vmem:[%s10465_s1 + $0x85c] sm:$0xf0]  ;;  %538 = vperm.xlu0 %6983, %v534_v50   ;;  %3249 = vmatpush.bf16.msrb.mxu3 %v6257_v56  ;;  %v7573_v50 = vor.u32 %v6465_v33, %v4394_v34  ;;  %v6574_v56 = vld [vmem:[%s10465_s1 + $0x344] sm:$0xf] }
  0x76   :  { %v5712_v54 = vld [vmem:[%s10465_s1 + $0xa40] sm:$0xf]  ;;  %v5457_v2 = vor.u32 %v6738_v53, %v5456_v49  ;;  %v5362_v49 = vld [vmem:[%s10465_s1 + $0x7a0] sm:$0xf0]  ;;  %v5109_v53 = vor.u32 %v6646_v44, %v5106_v45 }
  0x77   :  { %v6802_v55 = vld [vmem:[%s10465_s1 + $0xa5c] sm:$0xf0]  ;;  %v4498_v19 = vld [vmem:[%s10465_s1 + $0xe0] sm:$0xf0] }
  0x78   :  { %v5968_v57 = vld [vmem:[%s10465_s1 + $0xc40] sm:$0xf]  ;;  %v5713_v7 = vor.u32 %v6802_v55, %v5712_v54  ;;  %3208 = vmatpush.bf16.msrb.mxu0 %v5457_v2  ;;  %v6510_v54 = vld [vmem:[%s10465_s1 + $0x144] sm:$0xf] }
  0x79   :  { %v6866_v59 = vld [vmem:[%s10465_s1 + $0xc5c] sm:$0xf0]  ;;  %v4562_v55 = vld [vmem:[%s10465_s1 + $0x160] sm:$0xf0] }
  0x7a   :  { %v6224_v60 = vld [vmem:[%s10465_s1 + $0xe40] sm:$0xf]  ;;  %v5969_v8 = vor.u32 %v6866_v59, %v5968_v57  ;;  %3222 = vmatpush.bf16.msrb.mxu1 %v5713_v7  ;;  %v5365_v57 = vor.u32 %v6710_v48, %v5362_v49  ;;  %v4818_v59 = vld [vmem:[%s10465_s1 + $0x360] sm:$0xf0] }
  0x7b   :  { %v6930_v62 = vld [vmem:[%s10465_s1 + $0xe5c] sm:$0xf0]  ;;  %v4821_v2 = vor.u32 %v6574_v56, %v4818_v59  ;;  %v6558_v20 = vld [vmem:[%s10465_s1 + $0x2c4] sm:$0xf] }
  0x7c   :  { %v5424_v63 = vld [vmem:[%s10465_s1 + $0x800] sm:$0xf]  ;;  %v6225_v14 = vor.u32 %v6930_v62, %v6224_v60  ;;  %3236 = vmatpush.bf16.msrb.mxu2 %v5969_v8  ;;  %v6638_v60 = vld [vmem:[%s10465_s1 + $0x544] sm:$0xf] }
  0x7d   :  { %v6730_v0 = vld [vmem:[%s10465_s1 + $0x81c] sm:$0xf0]  ;;  %543 = vperm.xlu0 %6983, %v535_v35   ;;  %v6702_v62 = vld [vmem:[%s10465_s1 + $0x744] sm:$0xf] }
  0x7e   :  { %v5680_v3 = vld [vmem:[%s10465_s1 + $0xa00] sm:$0xf]  ;;  %v5425_v22 = vor.u32 %v6730_v0, %v5424_v63  ;;  %3250 = vmatpush.bf16.msrb.mxu3 %v6225_v14  ;;  %v5330_v63 = vld [vmem:[%s10465_s1 + $0x760] sm:$0xf0]  ;;  %v4565_v0 = vor.u32 %v6510_v54, %v4562_v55 }
  0x7f   :  { %v6794_v4 = vld [vmem:[%s10465_s1 + $0xa1c] sm:$0xf0]  ;;  %v5333_v7 = vor.u32 %v6702_v62, %v5330_v63  ;;  %v4786_v8 = vld [vmem:[%s10465_s1 + $0x320] sm:$0xf0] }
  0x80   :  { %v5936_v5 = vld [vmem:[%s10465_s1 + $0xc00] sm:$0xf]  ;;  %v5681_v26 = vor.u32 %v6794_v4, %v5680_v3  ;;  %3209 = vmatpush.bf16.msrb.mxu0 %v5425_v22  ;;  %v5077_v3 = vor.u32 %v6638_v60, %v5074_v61  ;;  %v6502_v4 = vld [vmem:[%s10465_s1 + $0x104] sm:$0xf] }
  0x81   :  { %v6858_v6 = vld [vmem:[%s10465_s1 + $0xc1c] sm:$0xf0]  ;;  %v4754_v22 = vld [vmem:[%s10465_s1 + $0x2e0] sm:$0xf0] }
  0x82   :  { %v6192_v9 = vld [vmem:[%s10465_s1 + $0xe00] sm:$0xf]  ;;  %v5937_v27 = vor.u32 %v6858_v6, %v5936_v5  ;;  %3223 = vmatpush.bf16.msrb.mxu1 %v5681_v26  ;;  %v4530_v5 = vld [vmem:[%s10465_s1 + $0x120] sm:$0xf0]  ;;  %v4757_v28 = vor.u32 %v6558_v20, %v4754_v22 }
  0x83   :  { %v6922_v11 = vld [vmem:[%s10465_s1 + $0xe1c] sm:$0xf0]  ;;  %3210 = vmatmul.bf16.vlgmr.msrb.gmra.mxu0 %v7552_v42  ;;  %v6566_v6 = vld [vmem:[%s10465_s1 + $0x304] sm:$0xf]  ;;  %v4533_v14 = vor.u32 %v6502_v4, %v4530_v5 }
  0x84   :  { %v6193_v31 = vor.u32 %v6922_v11, %v6192_v9  ;;  %3237 = vmatpush.bf16.msrb.mxu2 %v5937_v27  ;;  %3258 = vmatpush.bf16.msra.mxu0 %v4629_v32  ;;  %v6630_v9 = vld [vmem:[%s10465_s1 + $0x504] sm:$0xf]  ;;  %v4789_v15 = vor.u32 %v6566_v6, %v4786_v8  ;;  %v4501_v27 = vor.u32 %v6494_v18, %v4498_v19 }
  0x85   :  { %3224 = vmatmul.bf16.vlgmr.msrb.gmra.mxu1 %v7565_v47  ;;  %v5042_v11 = vld [vmem:[%s10465_s1 + $0x520] sm:$0xf0] }
  0x86   :  { %3251 = vmatpush.bf16.msrb.mxu3 %v6193_v31  ;;  %3272 = vmatpush.bf16.msra.mxu1 %v4885_v36  ;;  %v5045_v16 = vor.u32 %v6630_v9, %v5042_v11  ;;  %v6622_v23 = vld [vmem:[%s10465_s1 + $0x4c4] sm:$0xf] }
  0x87   :  { %3238 = vmatmul.bf16.vlgmr.msrb.gmra.mxu2 %v7563_v46  ;;  %v5010_v24 = vld [vmem:[%s10465_s1 + $0x4e0] sm:$0xf0] }
  0x88   :  { %3286 = vmatpush.bf16.msra.mxu2 %v5141_v37  ;;  %3259 = vmatpush.bf16.msra.mxu0 %v4597_v51  ;;  %v6686_v25 = vld [vmem:[%s10465_s1 + $0x6c4] sm:$0xf]  ;;  %v5013_v29 = vor.u32 %v6622_v23, %v5010_v24 }
  0x89   :  { %3252 = vmatmul.bf16.vlgmr.msrb.gmra.mxu3 %v7573_v50  ;;  %v5266_v26 = vld [vmem:[%s10465_s1 + $0x6e0] sm:$0xf0] }
  0x8a   :  { %3300 = vmatpush.bf16.msra.mxu3 %v5397_v41  ;;  %3273 = vmatpush.bf16.msra.mxu1 %v4853_v52  ;;  %v6486_v30 = vld [vmem:[%s10465_s1 + $0x84] sm:$0xf]  ;;  %v5269_v33 = vor.u32 %v6686_v25, %v5266_v26 }
  0x8b   :  { %v4466_v31 = vld [vmem:[%s10465_s1 + $0xa0] sm:$0xf0] }
  0x8c   :  { %3287 = vmatpush.bf16.msra.mxu2 %v5109_v53  ;;  %3260 = vmatpush.bf16.msra.mxu0 %v4565_v0  ;;  %v6550_v32 = vld [vmem:[%s10465_s1 + $0x284] sm:$0xf]  ;;  %v4469_v39 = vor.u32 %v6486_v30, %v4466_v31 }
  0x8d   :  { %v4722_v34 = vld [vmem:[%s10465_s1 + $0x2a0] sm:$0xf0] }
  0x8e   :  { %3301 = vmatpush.bf16.msra.mxu3 %v5365_v57  ;;  %3274 = vmatpush.bf16.msra.mxu1 %v4821_v2  ;;  %v6614_v35 = vld [vmem:[%s10465_s1 + $0x484] sm:$0xf]  ;;  %v4725_v40 = vor.u32 %v6550_v32, %v4722_v34 }
  0x8f   :  { %v4978_v36 = vld [vmem:[%s10465_s1 + $0x4a0] sm:$0xf0] }
  0x90   :  { %3288 = vmatpush.bf16.msra.mxu2 %v5077_v3  ;;  %3261 = vmatpush.bf16.msra.mxu0 %v4533_v14  ;;  %v6678_v37 = vld [vmem:[%s10465_s1 + $0x684] sm:$0xf]  ;;  %v4981_v41 = vor.u32 %v6614_v35, %v4978_v36 }
  0x91   :  { %v5234_v38 = vld [vmem:[%s10465_s1 + $0x6a0] sm:$0xf0] }
  0x92   :  { %3302 = vmatpush.bf16.msra.mxu3 %v5333_v7  ;;  %3275 = vmatpush.bf16.msra.mxu1 %v4789_v15  ;;  %v6478_v43 = vld [vmem:[%s10465_s1 + $0x44] sm:$0xf]  ;;  %v5237_v48 = vor.u32 %v6678_v37, %v5234_v38 }
  0x93   :  { %v4434_v44 = vld [vmem:[%s10465_s1 + $0x60] sm:$0xf0] }
  0x94   :  { %3289 = vmatpush.bf16.msra.mxu2 %v5045_v16  ;;  %3262 = vmatpush.bf16.msra.mxu0 %v4501_v27  ;;  %v6542_v45 = vld [vmem:[%s10465_s1 + $0x244] sm:$0xf]  ;;  %v4437_v55 = vor.u32 %v6478_v43, %v4434_v44 }
  0x95   :  { %v4690_v49 = vld [vmem:[%s10465_s1 + $0x260] sm:$0xf0] }
  0x96   :  { %3303 = vmatpush.bf16.msra.mxu3 %v5301_v21  ;;  %3276 = vmatpush.bf16.msra.mxu1 %v4757_v28  ;;  %v6606_v51 = vld [vmem:[%s10465_s1 + $0x444] sm:$0xf]  ;;  %v4693_v59 = vor.u32 %v6542_v45, %v4690_v49 }
  0x97   :  { %v4946_v52 = vld [vmem:[%s10465_s1 + $0x460] sm:$0xf0] }
  0x98   :  { %3290 = vmatpush.bf16.msra.mxu2 %v5013_v29  ;;  %v6670_v53 = vld [vmem:[%s10465_s1 + $0x644] sm:$0xf]  ;;  %3263 = vmatpush.bf16.msra.mxu0 %v4469_v39  ;;  %v4949_v60 = vor.u32 %v6606_v51, %v4946_v52 }
  0x99   :  { %v5202_v54 = vld [vmem:[%s10465_s1 + $0x660] sm:$0xf0] }
  0x9a   :  { %3304 = vmatpush.bf16.msra.mxu3 %v5269_v33  ;;  %v6470_v56 = vld [vmem:[%s10465_s1 + $0x4] sm:$0xf]  ;;  %3277 = vmatpush.bf16.msra.mxu1 %v4725_v40  ;;  %v5205_v0 = vor.u32 %v6670_v53, %v5202_v54 }
  0x9b   :  { %v4402_v57 = vld [vmem:[%s10465_s1 + $0x20] sm:$0xf0] }
  0x9c   :  { %3291 = vmatpush.bf16.msra.mxu2 %v4981_v41  ;;  %v6534_v61 = vld [vmem:[%s10465_s1 + $0x204] sm:$0xf]  ;;  %3264 = vmatpush.bf16.msra.mxu0 %v4437_v55  ;;  %v4405_v8 = vor.u32 %v6470_v56, %v4402_v57 }
  0x9d   :  { %v4658_v62 = vld [vmem:[%s10465_s1 + $0x220] sm:$0xf0] }
  0x9e   :  { %v6598_v63 = vld [vmem:[%s10465_s1 + $0x404] sm:$0xf]  ;;  %3305 = vmatpush.bf16.msra.mxu3 %v5237_v48  ;;  %3278 = vmatpush.bf16.msra.mxu1 %v4693_v59  ;;  %v4661_v13 = vor.u32 %v6534_v61, %v4658_v62 }
  0x9f   :  { %v4914_v2 = vld [vmem:[%s10465_s1 + $0x420] sm:$0xf0] }
  0xa0   :  { %v6662_v3 = vld [vmem:[%s10465_s1 + $0x604] sm:$0xf]  ;;  %3292 = vmatpush.bf16.msra.mxu2 %v4949_v60  ;;  %v4917_v14 = vor.u32 %v6598_v63, %v4914_v2  ;;  %3265 = vmatpush.bf16.msra.mxu0 %v4405_v8 }
  0xa1   :  { %v5170_v4 = vld [vmem:[%s10465_s1 + $0x620] sm:$0xf0] }
  0xa2   :  { %v6782_v5 = vld [vmem:[%s10465_s1 + $0x9c4] sm:$0xf]  ;;  %3306 = vmatpush.bf16.msra.mxu3 %v5205_v0  ;;  %v5173_v18 = vor.u32 %v6662_v3, %v5170_v4  ;;  %3279 = vmatpush.bf16.msra.mxu1 %v4661_v13 }
  0xa3   :  { %v5650_v6 = vld [vmem:[%s10465_s1 + $0x9e0] sm:$0xf0]  ;;  %3266 = vmatmul.bf16.vlgmr.msra.gmra.mxu0 %v7324_v58 }
  0xa4   :  { %v6846_v7 = vld [vmem:[%s10465_s1 + $0xbc4] sm:$0xf]  ;;  %v5653_v19 = vor.u32 %v6782_v5, %v5650_v6  ;;  %3293 = vmatpush.bf16.msra.mxu2 %v4917_v14 }
  0xa5   :  { %v5906_v9 = vld [vmem:[%s10465_s1 + $0xbe0] sm:$0xf0]  ;;  %3280 = vmatmul.bf16.vlgmr.msra.gmra.mxu1 %v7360_v10 }
  0xa6   :  { %v6910_v11 = vld [vmem:[%s10465_s1 + $0xdc4] sm:$0xf]  ;;  %v5909_v20 = vor.u32 %v6846_v7, %v5906_v9  ;;  %3307 = vmatpush.bf16.msra.mxu3 %v5173_v18  ;;  %3314 = vmatpush.bf16.msrb.mxu0 %v5653_v19 }
  0xa7   :  { %v6162_v12 = vld [vmem:[%s10465_s1 + $0xde0] sm:$0xf0]  ;;  %3294 = vmatmul.bf16.vlgmr.msra.gmra.mxu2 %v7338_v1 }
  0xa8   :  { %v6974_v15 = vld [vmem:[%s10465_s1 + $0xfc4] sm:$0xf]  ;;  %v6165_v21 = vor.u32 %v6910_v11, %v6162_v12  ;;  %3328 = vmatpush.bf16.msrb.mxu1 %v5909_v20 }
  0xa9   :  { %v6418_v16 = vld [vmem:[%s10465_s1 + $0xfe0] sm:$0xf0]  ;;  %3308 = vmatmul.bf16.vlgmr.msra.gmra.mxu3 %v7374_v17 }
  0xaa   :  { %v6774_v22 = vld [vmem:[%s10465_s1 + $0x984] sm:$0xf]  ;;  %v6421_v25 = vor.u32 %v6974_v15, %v6418_v16  ;;  %3342 = vmatpush.bf16.msrb.mxu2 %v6165_v21 }
  0xab   :  { %v5618_v23 = vld [vmem:[%s10465_s1 + $0x9a0] sm:$0xf0] }
  0xac   :  { %v6838_v24 = vld [vmem:[%s10465_s1 + $0xb84] sm:$0xf]  ;;  %v5621_v31 = vor.u32 %v6774_v22, %v5618_v23  ;;  %3356 = vmatpush.bf16.msrb.mxu3 %v6421_v25 }
  0xad   :  { %v5874_v26 = vld [vmem:[%s10465_s1 + $0xba0] sm:$0xf0] }
  0xae   :  { %v6902_v27 = vld [vmem:[%s10465_s1 + $0xd84] sm:$0xf]  ;;  %v5877_v32 = vor.u32 %v6838_v24, %v5874_v26  ;;  %3315 = vmatpush.bf16.msrb.mxu0 %v5621_v31 }
  0xaf   :  { %v6130_v28 = vld [vmem:[%s10465_s1 + $0xda0] sm:$0xf0] }
  0xb0   :  { %v6966_v29 = vld [vmem:[%s10465_s1 + $0xf84] sm:$0xf]  ;;  %v6133_v33 = vor.u32 %v6902_v27, %v6130_v28  ;;  %3329 = vmatpush.bf16.msrb.mxu1 %v5877_v32 }
  0xb1   :  { %v6386_v30 = vld [vmem:[%s10465_s1 + $0xfa0] sm:$0xf0] }
  0xb2   :  { %v6766_v34 = vld [vmem:[%s10465_s1 + $0x944] sm:$0xf]  ;;  %v6389_v37 = vor.u32 %v6966_v29, %v6386_v30  ;;  %3343 = vmatpush.bf16.msrb.mxu2 %v6133_v33 }
  0xb3   :  { %v5586_v35 = vld [vmem:[%s10465_s1 + $0x960] sm:$0xf0] }
  0xb4   :  { %v6830_v36 = vld [vmem:[%s10465_s1 + $0xb44] sm:$0xf]  ;;  %v5589_v44 = vor.u32 %v6766_v34, %v5586_v35  ;;  %3357 = vmatpush.bf16.msrb.mxu3 %v6389_v37 }
  0xb5   :  { %v5842_v38 = vld [vmem:[%s10465_s1 + $0xb60] sm:$0xf0] }
  0xb6   :  { %v6894_v39 = vld [vmem:[%s10465_s1 + $0xd44] sm:$0xf]  ;;  %v5845_v45 = vor.u32 %v6830_v36, %v5842_v38  ;;  %3316 = vmatpush.bf16.msrb.mxu0 %v5589_v44 }
  0xb7   :  { %v6098_v40 = vld [vmem:[%s10465_s1 + $0xd60] sm:$0xf0] }
  0xb8   :  { %v6958_v41 = vld [vmem:[%s10465_s1 + $0xf44] sm:$0xf]  ;;  %v6101_v48 = vor.u32 %v6894_v39, %v6098_v40  ;;  %3330 = vmatpush.bf16.msrb.mxu1 %v5845_v45 }
  0xb9   :  { %v6354_v43 = vld [vmem:[%s10465_s1 + $0xf60] sm:$0xf0] }
  0xba   :  { %v6758_v49 = vld [vmem:[%s10465_s1 + $0x904] sm:$0xf]  ;;  %v6357_v53 = vor.u32 %v6958_v41, %v6354_v43  ;;  %3344 = vmatpush.bf16.msrb.mxu2 %v6101_v48 }
  0xbb   :  { %v5554_v51 = vld [vmem:[%s10465_s1 + $0x920] sm:$0xf0] }
  0xbc   :  { %v6822_v52 = vld [vmem:[%s10465_s1 + $0xb04] sm:$0xf]  ;;  %v5557_v60 = vor.u32 %v6758_v49, %v5554_v51  ;;  %3358 = vmatpush.bf16.msrb.mxu3 %v6357_v53  ;;  %v4632_v51 = vld [vmem:[%s10465_s1 + $0x1c8] sm:$0xf] }
  0xbd   :  { %v5810_v54 = vld [vmem:[%s10465_s1 + $0xb20] sm:$0xf0]  ;;  %v4888_v53 = vld [vmem:[%s10465_s1 + $0x3c8] sm:$0xf] }
  0xbe   :  { %v6886_v55 = vld [vmem:[%s10465_s1 + $0xd04] sm:$0xf]  ;;  %v5813_v61 = vor.u32 %v6822_v52, %v5810_v54  ;;  %3317 = vmatpush.bf16.msrb.mxu0 %v5557_v60  ;;  %v6531_v52 = vld [vmem:[%s10465_s1 + $0x1e4] sm:$0xf0] }
  0xbf   :  { %v6066_v56 = vld [vmem:[%s10465_s1 + $0xd20] sm:$0xf0] }
  0xc0   :  { %v6950_v57 = vld [vmem:[%s10465_s1 + $0xf04] sm:$0xf]  ;;  %v6069_v62 = vor.u32 %v6886_v55, %v6066_v56  ;;  %3331 = vmatpush.bf16.msrb.mxu1 %v5813_v61  ;;  %v6595_v55 = vld [vmem:[%s10465_s1 + $0x3e4] sm:$0xf0] }
  0xc1   :  { %v6322_v59 = vld [vmem:[%s10465_s1 + $0xf20] sm:$0xf0]  ;;  %v5144_v56 = vld [vmem:[%s10465_s1 + $0x5c8] sm:$0xf] }
  0xc2   :  { %v6750_v63 = vld [vmem:[%s10465_s1 + $0x8c4] sm:$0xf]  ;;  %v6325_v3 = vor.u32 %v6950_v57, %v6322_v59  ;;  %3345 = vmatpush.bf16.msrb.mxu2 %v6069_v62  ;;  %v6659_v57 = vld [vmem:[%s10465_s1 + $0x5e4] sm:$0xf0] }
  0xc3   :  { %v5522_v0 = vld [vmem:[%s10465_s1 + $0x8e0] sm:$0xf0]  ;;  %v5400_v61 = vld [vmem:[%s10465_s1 + $0x7c8] sm:$0xf] }
  0xc4   :  { %v6814_v2 = vld [vmem:[%s10465_s1 + $0xac4] sm:$0xf]  ;;  %v5525_v9 = vor.u32 %v6750_v63, %v5522_v0  ;;  %3359 = vmatpush.bf16.msrb.mxu3 %v6325_v3  ;;  %v6723_v62 = vld [vmem:[%s10465_s1 + $0x7e4] sm:$0xf0]  ;;  %v4633_v0 = vor.u32 %v6531_v52, %v4632_v51  ;;  %v5145_v3 = vor.u32 %v6659_v57, %v5144_v56 }
  0xc5   :  { %v5778_v4 = vld [vmem:[%s10465_s1 + $0xae0] sm:$0xf0]  ;;  %v5016_v51 = vld [vmem:[%s10465_s1 + $0x4c8] sm:$0xf] }
  0xc6   :  { %v6878_v5 = vld [vmem:[%s10465_s1 + $0xcc4] sm:$0xf]  ;;  %v5781_v11 = vor.u32 %v6814_v2, %v5778_v4  ;;  %3318 = vmatpush.bf16.msrb.mxu0 %v5525_v9  ;;  %v4889_v2 = vor.u32 %v6595_v55, %v4888_v53  ;;  %v4600_v4 = vld [vmem:[%s10465_s1 + $0x188] sm:$0xf] }
  0xc7   :  { %v6034_v6 = vld [vmem:[%s10465_s1 + $0xce0] sm:$0xf0]  ;;  %v5112_v9 = vld [vmem:[%s10465_s1 + $0x588] sm:$0xf] }
  0xc8   :  { %v6942_v7 = vld [vmem:[%s10465_s1 + $0xec4] sm:$0xf]  ;;  %v6037_v12 = vor.u32 %v6878_v5, %v6034_v6  ;;  %3332 = vmatpush.bf16.msrb.mxu1 %v5781_v11  ;;  %v6523_v5 = vld [vmem:[%s10465_s1 + $0x1a4] sm:$0xf0] }
  0xc9   :  { %v6290_v8 = vld [vmem:[%s10465_s1 + $0xee0] sm:$0xf0]  ;;  %v4856_v6 = vld [vmem:[%s10465_s1 + $0x388] sm:$0xf] }
  0xca   :  { %v6742_v13 = vld [vmem:[%s10465_s1 + $0x884] sm:$0xf]  ;;  %v6293_v16 = vor.u32 %v6942_v7, %v6290_v8  ;;  %3346 = vmatpush.bf16.msrb.mxu2 %v6037_v12  ;;  %v5401_v7 = vor.u32 %v6723_v62, %v5400_v61  ;;  %v6587_v8 = vld [vmem:[%s10465_s1 + $0x3a4] sm:$0xf0] }
  0xcb   :  { %v5490_v14 = vld [vmem:[%s10465_s1 + $0x8a0] sm:$0xf0]  ;;  %v6651_v11 = vld [vmem:[%s10465_s1 + $0x5a4] sm:$0xf0] }
  0xcc   :  { %v6806_v15 = vld [vmem:[%s10465_s1 + $0xa84] sm:$0xf]  ;;  %v5493_v23 = vor.u32 %v6742_v13, %v5490_v14  ;;  %3360 = vmatpush.bf16.msrb.mxu3 %v6293_v16  ;;  %v5368_v12 = vld [vmem:[%s10465_s1 + $0x788] sm:$0xf]  ;;  %v4601_v14 = vor.u32 %v6523_v5, %v4600_v4  ;;  %v5113_v16 = vor.u32 %v6651_v11, %v5112_v9 }
  0xcd   :  { %v5746_v18 = vld [vmem:[%s10465_s1 + $0xaa0] sm:$0xf0]  ;;  %v6715_v13 = vld [vmem:[%s10465_s1 + $0x7a4] sm:$0xf0] }
  0xce   :  { %v6870_v19 = vld [vmem:[%s10465_s1 + $0xc84] sm:$0xf]  ;;  %v5749_v24 = vor.u32 %v6806_v15, %v5746_v18  ;;  %3319 = vmatpush.bf16.msrb.mxu0 %v5493_v23  ;;  %v4857_v15 = vor.u32 %v6587_v8, %v4856_v6  ;;  %v4568_v18 = vld [vmem:[%s10465_s1 + $0x148] sm:$0xf] }
  0xcf   :  { %v6002_v20 = vld [vmem:[%s10465_s1 + $0xca0] sm:$0xf0]  ;;  %v5080_v23 = vld [vmem:[%s10465_s1 + $0x548] sm:$0xf] }
  0xd0   :  { %v6934_v21 = vld [vmem:[%s10465_s1 + $0xe84] sm:$0xf]  ;;  %v6005_v25 = vor.u32 %v6870_v19, %v6002_v20  ;;  %3333 = vmatpush.bf16.msrb.mxu1 %v5749_v24  ;;  %v6515_v19 = vld [vmem:[%s10465_s1 + $0x164] sm:$0xf0] }
  0xd1   :  { %v6258_v22 = vld [vmem:[%s10465_s1 + $0xea0] sm:$0xf0]  ;;  %v4824_v20 = vld [vmem:[%s10465_s1 + $0x348] sm:$0xf] }
  0xd2   :  { %v6734_v26 = vld [vmem:[%s10465_s1 + $0x844] sm:$0xf]  ;;  %v6261_v29 = vor.u32 %v6934_v21, %v6258_v22  ;;  %3347 = vmatpush.bf16.msrb.mxu2 %v6005_v25  ;;  %v5369_v21 = vor.u32 %v6715_v13, %v5368_v12  ;;  %v6579_v22 = vld [vmem:[%s10465_s1 + $0x364] sm:$0xf0] }
  0xd3   :  { %v5458_v27 = vld [vmem:[%s10465_s1 + $0x860] sm:$0xf0]  ;;  %v6643_v24 = vld [vmem:[%s10465_s1 + $0x564] sm:$0xf0] }
  0xd4   :  { %v6798_v28 = vld [vmem:[%s10465_s1 + $0xa44] sm:$0xf]  ;;  %v5461_v35 = vor.u32 %v6734_v26, %v5458_v27  ;;  %3361 = vmatpush.bf16.msrb.mxu3 %v6261_v29  ;;  %v5336_v25 = vld [vmem:[%s10465_s1 + $0x748] sm:$0xf]  ;;  %v4569_v27 = vor.u32 %v6515_v19, %v4568_v18  ;;  %v5081_v29 = vor.u32 %v6643_v24, %v5080_v23 }
  0xd5   :  { %v5714_v30 = vld [vmem:[%s10465_s1 + $0xa60] sm:$0xf0]  ;;  %v6707_v26 = vld [vmem:[%s10465_s1 + $0x764] sm:$0xf0] }
  0xd6   :  { %v6862_v31 = vld [vmem:[%s10465_s1 + $0xc44] sm:$0xf]  ;;  %v5717_v38 = vor.u32 %v6798_v28, %v5714_v30  ;;  %3320 = vmatpush.bf16.msrb.mxu0 %v5461_v35  ;;  %v4825_v28 = vor.u32 %v6579_v22, %v4824_v20  ;;  %v4536_v30 = vld [vmem:[%s10465_s1 + $0x108] sm:$0xf] }
  0xd7   :  { %v5970_v32 = vld [vmem:[%s10465_s1 + $0xc60] sm:$0xf0]  ;;  %v5048_v35 = vld [vmem:[%s10465_s1 + $0x508] sm:$0xf] }
  0xd8   :  { %v6926_v33 = vld [vmem:[%s10465_s1 + $0xe44] sm:$0xf]  ;;  %v5973_v39 = vor.u32 %v6862_v31, %v5970_v32  ;;  %3334 = vmatpush.bf16.msrb.mxu1 %v5717_v38  ;;  %v6507_v31 = vld [vmem:[%s10465_s1 + $0x124] sm:$0xf0] }
  0xd9   :  { %v6226_v34 = vld [vmem:[%s10465_s1 + $0xe60] sm:$0xf0]  ;;  %v4792_v32 = vld [vmem:[%s10465_s1 + $0x308] sm:$0xf] }
  0xda   :  { %v6726_v36 = vld [vmem:[%s10465_s1 + $0x804] sm:$0xf]  ;;  %v6229_v44 = vor.u32 %v6926_v33, %v6226_v34  ;;  %3348 = vmatpush.bf16.msrb.mxu2 %v5973_v39  ;;  %v5337_v33 = vor.u32 %v6707_v26, %v5336_v25  ;;  %v6571_v34 = vld [vmem:[%s10465_s1 + $0x324] sm:$0xf0]  ;;  %v4537_v39 = vor.u32 %v6507_v31, %v4536_v30 }
  0xdb   :  { %v5426_v37 = vld [vmem:[%s10465_s1 + $0x820] sm:$0xf0]  ;;  %v6699_v38 = vld [vmem:[%s10465_s1 + $0x724] sm:$0xf0] }
  0xdc   :  { %v6790_v40 = vld [vmem:[%s10465_s1 + $0xa04] sm:$0xf]  ;;  %v5429_v54 = vor.u32 %v6726_v36, %v5426_v37  ;;  %3362 = vmatpush.bf16.msrb.mxu3 %v6229_v44  ;;  %v6635_v36 = vld [vmem:[%s10465_s1 + $0x524] sm:$0xf0] }
  0xdd   :  { %v5682_v41 = vld [vmem:[%s10465_s1 + $0xa20] sm:$0xf0]  ;;  %v5304_v37 = vld [vmem:[%s10465_s1 + $0x708] sm:$0xf] }
  0xde   :  { %v6854_v43 = vld [vmem:[%s10465_s1 + $0xc04] sm:$0xf]  ;;  %v5685_v59 = vor.u32 %v6790_v40, %v5682_v41  ;;  %3321 = vmatpush.bf16.msrb.mxu0 %v5429_v54  ;;  %v4793_v40 = vor.u32 %v6571_v34, %v4792_v32  ;;  %v5049_v41 = vor.u32 %v6635_v36, %v5048_v35  ;;  %v6499_v44 = vld [vmem:[%s10465_s1 + $0xe4] sm:$0xf0] }
  0xdf   :  { %v5938_v45 = vld [vmem:[%s10465_s1 + $0xc20] sm:$0xf0]  ;;  %v6627_v52 = vld [vmem:[%s10465_s1 + $0x4e4] sm:$0xf0] }
  0xe0   :  { %v6918_v48 = vld [vmem:[%s10465_s1 + $0xe04] sm:$0xf]  ;;  %v5941_v60 = vor.u32 %v6854_v43, %v5938_v45  ;;  %3335 = vmatpush.bf16.msrb.mxu1 %v5685_v59  ;;  %v4504_v43 = vld [vmem:[%s10465_s1 + $0xc8] sm:$0xf]  ;;  %v5017_v57 = vor.u32 %v6627_v52, %v5016_v51 }
  0xe1   :  { %v6194_v49 = vld [vmem:[%s10465_s1 + $0xe20] sm:$0xf0]  ;;  %3322 = vmatmul.bf16.vlgmr.msrb.gmra.mxu0 %v7552_v42  ;;  %v4760_v45 = vld [vmem:[%s10465_s1 + $0x2c8] sm:$0xf]  ;;  %v4505_v55 = vor.u32 %v6499_v44, %v4504_v43 }
  0xe2   :  { %v6197_v63 = vor.u32 %v6918_v48, %v6194_v49  ;;  %3349 = vmatpush.bf16.msrb.mxu2 %v5941_v60  ;;  %3370 = vmatpush.bf16.msra.mxu0 %v4633_v0  ;;  %v5305_v48 = vor.u32 %v6699_v38, %v5304_v37  ;;  %v6563_v49 = vld [vmem:[%s10465_s1 + $0x2e4] sm:$0xf0] }
  0xe3   :  { %3336 = vmatmul.bf16.vlgmr.msrb.gmra.mxu1 %v7565_v47  ;;  %v5272_v53 = vld [vmem:[%s10465_s1 + $0x6c8] sm:$0xf]  ;;  %v4761_v56 = vor.u32 %v6563_v49, %v4760_v45 }
  0xe4   :  { %3363 = vmatpush.bf16.msrb.mxu3 %v6197_v63  ;;  %3384 = vmatpush.bf16.msra.mxu1 %v4889_v2  ;;  %v6691_v54 = vld [vmem:[%s10465_s1 + $0x6e4] sm:$0xf0] }
  0xe5   :  { %3350 = vmatmul.bf16.vlgmr.msrb.gmra.mxu2 %v7563_v46  ;;  %v4472_v59 = vld [vmem:[%s10465_s1 + $0x88] sm:$0xf]  ;;  %v5273_v62 = vor.u32 %v6691_v54, %v5272_v53 }
  0xe6   :  { %3398 = vmatpush.bf16.msra.mxu2 %v5145_v3  ;;  %3371 = vmatpush.bf16.msra.mxu0 %v4601_v14  ;;  %v6491_v60 = vld [vmem:[%s10465_s1 + $0xa4] sm:$0xf0] }
  0xe7   :  { %3364 = vmatmul.bf16.vlgmr.msrb.gmra.mxu3 %v7573_v50  ;;  %v4728_v61 = vld [vmem:[%s10465_s1 + $0x288] sm:$0xf]  ;;  %v4473_v5 = vor.u32 %v6491_v60, %v4472_v59 }
  0xe8   :  { %3412 = vmatpush.bf16.msra.mxu3 %v5401_v7  ;;  %3385 = vmatpush.bf16.msra.mxu1 %v4857_v15  ;;  %v6555_v63 = vld [vmem:[%s10465_s1 + $0x2a4] sm:$0xf0] }
  0xe9   :  { %v4984_v0 = vld [vmem:[%s10465_s1 + $0x488] sm:$0xf]  ;;  %v4729_v6 = vor.u32 %v6555_v63, %v4728_v61 }
  0xea   :  { %3399 = vmatpush.bf16.msra.mxu2 %v5113_v16  ;;  %3372 = vmatpush.bf16.msra.mxu0 %v4569_v27  ;;  %v6619_v2 = vld [vmem:[%s10465_s1 + $0x4a4] sm:$0xf0] }
  0xeb   :  { %v5240_v3 = vld [vmem:[%s10465_s1 + $0x688] sm:$0xf]  ;;  %v4985_v7 = vor.u32 %v6619_v2, %v4984_v0 }
  0xec   :  { %3413 = vmatpush.bf16.msra.mxu3 %v5369_v21  ;;  %3386 = vmatpush.bf16.msra.mxu1 %v4825_v28  ;;  %v6683_v4 = vld [vmem:[%s10465_s1 + $0x6a4] sm:$0xf0] }
  0xed   :  { %v4440_v8 = vld [vmem:[%s10465_s1 + $0x48] sm:$0xf]  ;;  %v5241_v12 = vor.u32 %v6683_v4, %v5240_v3 }
  0xee   :  { %3400 = vmatpush.bf16.msra.mxu2 %v5081_v29  ;;  %3373 = vmatpush.bf16.msra.mxu0 %v4537_v39  ;;  %v6483_v9 = vld [vmem:[%s10465_s1 + $0x64] sm:$0xf0] }
  0xef   :  { %v4696_v11 = vld [vmem:[%s10465_s1 + $0x248] sm:$0xf]  ;;  %v4441_v19 = vor.u32 %v6483_v9, %v4440_v8 }
  0xf0   :  { %3414 = vmatpush.bf16.msra.mxu3 %v5337_v33  ;;  %3387 = vmatpush.bf16.msra.mxu1 %v4793_v40  ;;  %v6547_v13 = vld [vmem:[%s10465_s1 + $0x264] sm:$0xf0] }
  0xf1   :  { %v4952_v14 = vld [vmem:[%s10465_s1 + $0x448] sm:$0xf]  ;;  %v4697_v22 = vor.u32 %v6547_v13, %v4696_v11 }
  0xf2   :  { %3401 = vmatpush.bf16.msra.mxu2 %v5049_v41  ;;  %3374 = vmatpush.bf16.msra.mxu0 %v4505_v55  ;;  %v6611_v15 = vld [vmem:[%s10465_s1 + $0x464] sm:$0xf0] }
  0xf3   :  { %v5208_v16 = vld [vmem:[%s10465_s1 + $0x648] sm:$0xf]  ;;  %v4953_v23 = vor.u32 %v6611_v15, %v4952_v14 }
  0xf4   :  { %3415 = vmatpush.bf16.msra.mxu3 %v5305_v48  ;;  %3388 = vmatpush.bf16.msra.mxu1 %v4761_v56  ;;  %v6675_v18 = vld [vmem:[%s10465_s1 + $0x664] sm:$0xf0] }
  0xf5   :  { %v4408_v20 = vld [vmem:[%s10465_s1 + $0x8] sm:$0xf]  ;;  %v5209_v27 = vor.u32 %v6675_v18, %v5208_v16 }
  0xf6   :  { %3402 = vmatpush.bf16.msra.mxu2 %v5017_v57  ;;  %3375 = vmatpush.bf16.msra.mxu0 %v4473_v5  ;;  %v6475_v21 = vld [vmem:[%s10465_s1 + $0x24] sm:$0xf0] }
  0xf7   :  { %v4664_v24 = vld [vmem:[%s10465_s1 + $0x208] sm:$0xf]  ;;  %v4409_v34 = vor.u32 %v6475_v21, %v4408_v20 }
  0xf8   :  { %3416 = vmatpush.bf16.msra.mxu3 %v5273_v62  ;;  %3389 = vmatpush.bf16.msra.mxu1 %v4729_v6  ;;  %v6539_v25 = vld [vmem:[%s10465_s1 + $0x224] sm:$0xf0] }
  0xf9   :  { %v4920_v26 = vld [vmem:[%s10465_s1 + $0x408] sm:$0xf]  ;;  %v4665_v38 = vor.u32 %v6539_v25, %v4664_v24 }
  0xfa   :  { %3403 = vmatpush.bf16.msra.mxu2 %v4985_v7  ;;  %v6603_v28 = vld [vmem:[%s10465_s1 + $0x424] sm:$0xf0]  ;;  %3376 = vmatpush.bf16.msra.mxu0 %v4441_v19 }
  0xfb   :  { %v5176_v29 = vld [vmem:[%s10465_s1 + $0x608] sm:$0xf]  ;;  %v4921_v39 = vor.u32 %v6603_v28, %v4920_v26 }
  0xfc   :  { %3417 = vmatpush.bf16.msra.mxu3 %v5241_v12  ;;  %v6667_v30 = vld [vmem:[%s10465_s1 + $0x624] sm:$0xf0]  ;;  %3390 = vmatpush.bf16.msra.mxu1 %v4697_v22 }
  0xfd   :  { %v5656_v31 = vld [vmem:[%s10465_s1 + $0x9c8] sm:$0xf]  ;;  %v5177_v43 = vor.u32 %v6667_v30, %v5176_v29 }
  0xfe   :  { %v6787_v32 = vld [vmem:[%s10465_s1 + $0x9e4] sm:$0xf0]  ;;  %3404 = vmatpush.bf16.msra.mxu2 %v4953_v23  ;;  %3377 = vmatpush.bf16.msra.mxu0 %v4409_v34 }
  0xff   :  { %v5912_v33 = vld [vmem:[%s10465_s1 + $0xbc8] sm:$0xf]  ;;  %v5657_v44 = vor.u32 %v6787_v32, %v5656_v31 }
 0x100   :  { %v6851_v35 = vld [vmem:[%s10465_s1 + $0xbe4] sm:$0xf0]  ;;  %3418 = vmatpush.bf16.msra.mxu3 %v5209_v27  ;;  %3391 = vmatpush.bf16.msra.mxu1 %v4665_v38 }
 0x101   :  { %v6168_v36 = vld [vmem:[%s10465_s1 + $0xdc8] sm:$0xf]  ;;  %v5913_v45 = vor.u32 %v6851_v35, %v5912_v33  ;;  %3378 = vmatmul.bf16.vlgmr.msra.gmra.mxu0 %v7324_v58 }
 0x102   :  { %v6915_v37 = vld [vmem:[%s10465_s1 + $0xde4] sm:$0xf0]  ;;  %3405 = vmatpush.bf16.msra.mxu2 %v4921_v39  ;;  %3426 = vmatpush.bf16.msrb.mxu0 %v5657_v44 }
 0x103   :  { %v6424_v40 = vld [vmem:[%s10465_s1 + $0xfc8] sm:$0xf]  ;;  %v6169_v48 = vor.u32 %v6915_v37, %v6168_v36  ;;  %3392 = vmatmul.bf16.vlgmr.msra.gmra.mxu1 %v7360_v10 }
 0x104   :  { %v6979_v41 = vld [vmem:[%s10465_s1 + $0xfe4] sm:$0xf0]  ;;  %3419 = vmatpush.bf16.msra.mxu3 %v5177_v43  ;;  %3440 = vmatpush.bf16.msrb.mxu1 %v5913_v45 }
 0x105   :  { %v5624_v49 = vld [vmem:[%s10465_s1 + $0x988] sm:$0xf]  ;;  %v6425_v53 = vor.u32 %v6979_v41, %v6424_v40  ;;  %3406 = vmatmul.bf16.vlgmr.msra.gmra.mxu2 %v7338_v1 }
 0x106   :  { %v6779_v51 = vld [vmem:[%s10465_s1 + $0x9a4] sm:$0xf0]  ;;  %3454 = vmatpush.bf16.msrb.mxu2 %v6169_v48 }
 0x107   :  { %v5880_v52 = vld [vmem:[%s10465_s1 + $0xb88] sm:$0xf]  ;;  %v5625_v60 = vor.u32 %v6779_v51, %v5624_v49  ;;  %3420 = vmatmul.bf16.vlgmr.msra.gmra.mxu3 %v7374_v17 }
 0x108   :  { %v6843_v54 = vld [vmem:[%s10465_s1 + $0xba4] sm:$0xf0]  ;;  %3468 = vmatpush.bf16.msrb.mxu3 %v6425_v53 }
 0x109   :  { %v6136_v55 = vld [vmem:[%s10465_s1 + $0xd88] sm:$0xf]  ;;  %v5881_v61 = vor.u32 %v6843_v54, %v5880_v52  ;;  %3427 = vmatpush.bf16.msrb.mxu0 %v5625_v60  ;;  %v3155_v54 = vpop.f32.mrf.mxu0 }
 0x10a   :  { %v6907_v56 = vld [vmem:[%s10465_s1 + $0xda4] sm:$0xf0] }
 0x10b   :  { %v6392_v57 = vld [vmem:[%s10465_s1 + $0xf88] sm:$0xf]  ;;  %v6137_v62 = vor.u32 %v6907_v56, %v6136_v55  ;;  %3441 = vmatpush.bf16.msrb.mxu1 %v5881_v61 }
 0x10c   :  { %v6971_v59 = vld [vmem:[%s10465_s1 + $0xfa4] sm:$0xf0] }
 0x10d   :  { %v5592_v63 = vld [vmem:[%s10465_s1 + $0x948] sm:$0xf]  ;;  %v6393_v3 = vor.u32 %v6971_v59, %v6392_v57  ;;  %3455 = vmatpush.bf16.msrb.mxu2 %v6137_v62 }
 0x10e   :  { %v6771_v0 = vld [vmem:[%s10465_s1 + $0x964] sm:$0xf0] }
 0x10f   :  { %v5848_v2 = vld [vmem:[%s10465_s1 + $0xb48] sm:$0xf]  ;;  %v5593_v9 = vor.u32 %v6771_v0, %v5592_v63  ;;  %3469 = vmatpush.bf16.msrb.mxu3 %v6393_v3  ;;  %v3169_v63 = vpop.f32.mrf.mxu1  ;;  %v8281_v0 = vpop.permute.xlu0 %538 }
 0x110   :  { %v6835_v4 = vld [vmem:[%s10465_s1 + $0xb64] sm:$0xf0] }
 0x111   :  { %v6104_v5 = vld [vmem:[%s10465_s1 + $0xd48] sm:$0xf]  ;;  %v5849_v11 = vor.u32 %v6835_v4, %v5848_v2  ;;  %3428 = vmatpush.bf16.msrb.mxu0 %v5593_v9 }
 0x112   :  { %v6899_v6 = vld [vmem:[%s10465_s1 + $0xd64] sm:$0xf0] }
 0x113   :  { %v6360_v7 = vld [vmem:[%s10465_s1 + $0xf48] sm:$0xf]  ;;  %v6105_v12 = vor.u32 %v6899_v6, %v6104_v5  ;;  %3442 = vmatpush.bf16.msrb.mxu1 %v5849_v11 }
 0x114   :  { %v6963_v8 = vld [vmem:[%s10465_s1 + $0xf64] sm:$0xf0] }
 0x115   :  { %v5560_v13 = vld [vmem:[%s10465_s1 + $0x908] sm:$0xf]  ;;  %v6361_v16 = vor.u32 %v6963_v8, %v6360_v7  ;;  %3456 = vmatpush.bf16.msrb.mxu2 %v6105_v12 }
 0x116   :  { %v6763_v14 = vld [vmem:[%s10465_s1 + $0x924] sm:$0xf0] }
 0x117   :  { %v5816_v15 = vld [vmem:[%s10465_s1 + $0xb08] sm:$0xf]  ;;  %v5561_v23 = vor.u32 %v6763_v14, %v5560_v13  ;;  %3470 = vmatpush.bf16.msrb.mxu3 %v6361_v16 }
 0x118   :  { %v6827_v18 = vld [vmem:[%s10465_s1 + $0xb24] sm:$0xf0] }
 0x119   :  { %v6072_v19 = vld [vmem:[%s10465_s1 + $0xd08] sm:$0xf]  ;;  %v5817_v24 = vor.u32 %v6827_v18, %v5816_v15  ;;  %3429 = vmatpush.bf16.msrb.mxu0 %v5561_v23  ;;  %v3156_v18 = vadd.f32 %v3155_v54, %v8281_v0  ;;  %v4890_v23 = vld [vmem:[%s10465_s1 + $0x3e8] sm:$0xf0] }
 0x11a   :  { %v6891_v20 = vld [vmem:[%s10465_s1 + $0xd24] sm:$0xf0] }
 0x11b   :  { %v6328_v21 = vld [vmem:[%s10465_s1 + $0xf08] sm:$0xf]  ;;  %v6073_v25 = vor.u32 %v6891_v20, %v6072_v19  ;;  %3443 = vmatpush.bf16.msrb.mxu1 %v5817_v24  ;;  %v6527_v19 = vld [vmem:[%s10465_s1 + $0x1cc] sm:$0xf] }
 0x11c   :  { %v6955_v22 = vld [vmem:[%s10465_s1 + $0xf24] sm:$0xf0]  ;;  %v4634_v20 = vld [vmem:[%s10465_s1 + $0x1e8] sm:$0xf0] }
 0x11d   :  { %v5528_v26 = vld [vmem:[%s10465_s1 + $0x8c8] sm:$0xf]  ;;  %v6329_v29 = vor.u32 %v6955_v22, %v6328_v21  ;;  %3457 = vmatpush.bf16.msrb.mxu2 %v6073_v25  ;;  %v6591_v21 = vld [vmem:[%s10465_s1 + $0x3cc] sm:$0xf] }
 0x11e   :  { %v6755_v27 = vld [vmem:[%s10465_s1 + $0x8e4] sm:$0xf0]  ;;  %v6655_v24 = vld [vmem:[%s10465_s1 + $0x5cc] sm:$0xf] }
 0x11f   :  { %v5784_v28 = vld [vmem:[%s10465_s1 + $0xac8] sm:$0xf]  ;;  %v5529_v35 = vor.u32 %v6755_v27, %v5528_v26  ;;  %3471 = vmatpush.bf16.msrb.mxu3 %v6329_v29  ;;  %v5146_v25 = vld [vmem:[%s10465_s1 + $0x5e8] sm:$0xf0]  ;;  %v3183_v26 = vpop.f32.mrf.mxu2 }
 0x120   :  { %v6819_v30 = vld [vmem:[%s10465_s1 + $0xae4] sm:$0xf0]  ;;  %v6719_v29 = vld [vmem:[%s10465_s1 + $0x7cc] sm:$0xf] }
 0x121   :  { %v6040_v31 = vld [vmem:[%s10465_s1 + $0xcc8] sm:$0xf]  ;;  %v5785_v36 = vor.u32 %v6819_v30, %v5784_v28  ;;  %3430 = vmatpush.bf16.msrb.mxu0 %v5529_v35  ;;  %v5402_v30 = vld [vmem:[%s10465_s1 + $0x7e8] sm:$0xf0]  ;;  %v4893_v35 = vor.u32 %v6591_v21, %v4890_v23 }
 0x122   :  { %v6883_v32 = vld [vmem:[%s10465_s1 + $0xce4] sm:$0xf0]  ;;  %v5050_v21 = vld [vmem:[%s10465_s1 + $0x528] sm:$0xf0] }
 0x123   :  { %v6296_v33 = vld [vmem:[%s10465_s1 + $0xec8] sm:$0xf]  ;;  %v6041_v37 = vor.u32 %v6883_v32, %v6040_v31  ;;  %3444 = vmatpush.bf16.msrb.mxu1 %v5785_v36  ;;  %v3197_v31 = vpop.f32.mrf.mxu3  ;;  %v5149_v36 = vor.u32 %v6655_v24, %v5146_v25  ;;  %v6695_v23 = vld [vmem:[%s10465_s1 + $0x70c] sm:$0xf] }
 0x124   :  { %v6947_v34 = vld [vmem:[%s10465_s1 + $0xee4] sm:$0xf0]  ;;  %v5306_v24 = vld [vmem:[%s10465_s1 + $0x728] sm:$0xf0] }
 0x125   :  { %v5496_v38 = vld [vmem:[%s10465_s1 + $0x888] sm:$0xf]  ;;  %v6297_v41 = vor.u32 %v6947_v34, %v6296_v33  ;;  %3458 = vmatpush.bf16.msrb.mxu2 %v6041_v37  ;;  %v4637_v33 = vor.u32 %v6527_v19, %v4634_v20  ;;  %v3170_v34 = vadd.f32 %v3169_v63, %v3156_v18  ;;  %v3157_v37 = vpop.f32.mrf.mxu0  ;;  %v4826_v63 = vld [vmem:[%s10465_s1 + $0x368] sm:$0xf0] }
 0x126   :  { %v6747_v39 = vld [vmem:[%s10465_s1 + $0x8a4] sm:$0xf0]  ;;  %v4794_v19 = vld [vmem:[%s10465_s1 + $0x328] sm:$0xf0] }
 0x127   :  { %v5752_v40 = vld [vmem:[%s10465_s1 + $0xa88] sm:$0xf]  ;;  %v5497_v51 = vor.u32 %v6747_v39, %v5496_v38  ;;  %3472 = vmatpush.bf16.msrb.mxu3 %v6297_v41  ;;  %v6519_v38 = vld [vmem:[%s10465_s1 + $0x18c] sm:$0xf]  ;;  %v5405_v41 = vor.u32 %v6719_v29, %v5402_v30 }
 0x128   :  { %v6811_v43 = vld [vmem:[%s10465_s1 + $0xaa4] sm:$0xf0]  ;;  %v4602_v39 = vld [vmem:[%s10465_s1 + $0x1a8] sm:$0xf0] }
 0x129   :  { %v6008_v44 = vld [vmem:[%s10465_s1 + $0xc88] sm:$0xf]  ;;  %v5753_v52 = vor.u32 %v6811_v43, %v5752_v40  ;;  %3431 = vmatpush.bf16.msrb.mxu0 %v5497_v51  ;;  %v6583_v40 = vld [vmem:[%s10465_s1 + $0x38c] sm:$0xf]  ;;  %v4605_v54 = vor.u32 %v6519_v38, %v4602_v39 }
 0x12a   :  { %v6875_v45 = vld [vmem:[%s10465_s1 + $0xca4] sm:$0xf0]  ;;  %v4858_v43 = vld [vmem:[%s10465_s1 + $0x3a8] sm:$0xf0] }
 0x12b   :  { %v6264_v48 = vld [vmem:[%s10465_s1 + $0xe88] sm:$0xf]  ;;  %v6009_v53 = vor.u32 %v6875_v45, %v6008_v44  ;;  %3445 = vmatpush.bf16.msrb.mxu1 %v5753_v52  ;;  %v6647_v44 = vld [vmem:[%s10465_s1 + $0x58c] sm:$0xf] }
 0x12c   :  { %v6939_v49 = vld [vmem:[%s10465_s1 + $0xea4] sm:$0xf0]  ;;  %v5114_v45 = vld [vmem:[%s10465_s1 + $0x5a8] sm:$0xf0] }
 0x12d   :  { %v5464_v55 = vld [vmem:[%s10465_s1 + $0x848] sm:$0xf]  ;;  %v6265_v59 = vor.u32 %v6939_v49, %v6264_v48  ;;  %3459 = vmatpush.bf16.msrb.mxu2 %v6009_v53  ;;  %v3171_v48 = vpop.f32.mrf.mxu1  ;;  %v8356_v49 = vpop.permute.xlu0 %543  ;;  %v6711_v51 = vld [vmem:[%s10465_s1 + $0x78c] sm:$0xf]  ;;  %v3184_v53 = vadd.f32 %v3183_v26, %v3170_v34  ;;  %v5309_v34 = vor.u32 %v6695_v23, %v5306_v24 }
 0x12e   :  { %v6739_v56 = vld [vmem:[%s10465_s1 + $0x864] sm:$0xf0]  ;;  %v5370_v52 = vld [vmem:[%s10465_s1 + $0x7a8] sm:$0xf0] }
 0x12f   :  { %v5720_v57 = vld [vmem:[%s10465_s1 + $0xa48] sm:$0xf]  ;;  %v5465_v4 = vor.u32 %v6739_v56, %v5464_v55  ;;  %3473 = vmatpush.bf16.msrb.mxu3 %v6265_v59  ;;  %v4861_v55 = vor.u32 %v6583_v40, %v4858_v43  ;;  %v5117_v56 = vor.u32 %v6647_v44, %v5114_v45  ;;  %v4570_v59 = vld [vmem:[%s10465_s1 + $0x168] sm:$0xf0] }
 0x130   :  { %v6803_v60 = vld [vmem:[%s10465_s1 + $0xa64] sm:$0xf0]  ;;  %v6631_v20 = vld [vmem:[%s10465_s1 + $0x50c] sm:$0xf] }
 0x131   :  { %v5976_v61 = vld [vmem:[%s10465_s1 + $0xc48] sm:$0xf]  ;;  %v5721_v7 = vor.u32 %v6803_v60, %v5720_v57  ;;  %3432 = vmatpush.bf16.msrb.mxu0 %v5465_v4  ;;  %v6511_v57 = vld [vmem:[%s10465_s1 + $0x14c] sm:$0xf]  ;;  %v5053_v30 = vor.u32 %v6631_v20, %v5050_v21 }
 0x132   :  { %v6867_v62 = vld [vmem:[%s10465_s1 + $0xc64] sm:$0xf0]  ;;  %v6575_v60 = vld [vmem:[%s10465_s1 + $0x34c] sm:$0xf] }
 0x133   :  { %v6232_v2 = vld [vmem:[%s10465_s1 + $0xe48] sm:$0xf]  ;;  %v5977_v8 = vor.u32 %v6867_v62, %v5976_v61  ;;  %3446 = vmatpush.bf16.msrb.mxu1 %v5721_v7  ;;  %v3158_v61 = vadd.f32 %v3157_v37, %v8356_v49  ;;  %v5373_v62 = vor.u32 %v6711_v51, %v5370_v52  ;;  %v6703_v4 = vld [vmem:[%s10465_s1 + $0x74c] sm:$0xf]  ;;  %v4573_v7 = vor.u32 %v6511_v57, %v4570_v59 }
 0x134   :  { %v6931_v3 = vld [vmem:[%s10465_s1 + $0xe64] sm:$0xf0]  ;;  %v5018_v37 = vld [vmem:[%s10465_s1 + $0x4e8] sm:$0xf0] }
 0x135   :  { %v5432_v5 = vld [vmem:[%s10465_s1 + $0x808] sm:$0xf]  ;;  %v6233_v13 = vor.u32 %v6931_v3, %v6232_v2  ;;  %3460 = vmatpush.bf16.msrb.mxu2 %v5977_v8  ;;  %v6639_v2 = vld [vmem:[%s10465_s1 + $0x54c] sm:$0xf]  ;;  %v3185_v8 = vpop.f32.mrf.mxu2 }
 0x136   :  { %v6731_v6 = vld [vmem:[%s10465_s1 + $0x824] sm:$0xf0]  ;;  %v5082_v3 = vld [vmem:[%s10465_s1 + $0x568] sm:$0xf0] }
 0x137   :  { %v5688_v9 = vld [vmem:[%s10465_s1 + $0xa08] sm:$0xf]  ;;  %v5433_v22 = vor.u32 %v6731_v6, %v5432_v5  ;;  %3474 = vmatpush.bf16.msrb.mxu3 %v6233_v13  ;;  %v5338_v5 = vld [vmem:[%s10465_s1 + $0x768] sm:$0xf0]  ;;  %v3198_v6 = vadd.f32 %v3197_v31, %v3184_v53  ;;  %v3199_v13 = vpop.f32.mrf.mxu3 }
 0x138   :  { %v6795_v11 = vld [vmem:[%s10465_s1 + $0xa24] sm:$0xf0]  ;;  %v5341_v18 = vor.u32 %v6703_v4, %v5338_v5  ;;  %v6495_v31 = vld [vmem:[%s10465_s1 + $0xcc] sm:$0xf] }
 0x139   :  { %v5944_v12 = vld [vmem:[%s10465_s1 + $0xc08] sm:$0xf]  ;;  %v5689_v27 = vor.u32 %v6795_v11, %v5688_v9  ;;  %3433 = vmatpush.bf16.msrb.mxu0 %v5433_v22  ;;  %v4829_v9 = vor.u32 %v6575_v60, %v4826_v63  ;;  %v5085_v11 = vor.u32 %v6639_v2, %v5082_v3  ;;  %v3211_v22 = vpop.f32.mrf.mxu0  ;;  %v6687_v39 = vld [vmem:[%s10465_s1 + $0x6cc] sm:$0xf] }
 0x13a   :  { %v6859_v14 = vld [vmem:[%s10465_s1 + $0xc24] sm:$0xf0]  ;;  %v3212_v25 = vadd.f32 %v3211_v22, %v3198_v6  ;;  %v5274_v40 = vld [vmem:[%s10465_s1 + $0x6e8] sm:$0xf0] }
 0x13b   :  { %v6200_v15 = vld [vmem:[%s10465_s1 + $0xe08] sm:$0xf]  ;;  %v5945_v28 = vor.u32 %v6859_v14, %v5944_v12  ;;  %3447 = vmatpush.bf16.msrb.mxu1 %v5689_v27  ;;  %v3172_v12 = vadd.f32 %v3171_v48, %v3158_v61  ;;  %v6503_v14 = vld [vmem:[%s10465_s1 + $0x10c] sm:$0xf]  ;;  %v3225_v27 = vpop.f32.mrf.mxu1 }
 0x13c   :  { %v6923_v16 = vld [vmem:[%s10465_s1 + $0xe24] sm:$0xf0]  ;;  %3434 = vmatmul.bf16.vlgmr.msrb.gmra.mxu0 %v7552_v42  ;;  %v3226_v38 = vadd.f32 %v3225_v27, %v3212_v25  ;;  %v6487_v43 = vld [vmem:[%s10465_s1 + $0x8c] sm:$0xf] }
 0x13d   :  { %v6201_v32 = vor.u32 %v6923_v16, %v6200_v15  ;;  %3461 = vmatpush.bf16.msrb.mxu2 %v5945_v28  ;;  %3482 = vmatpush.bf16.msra.mxu0 %v4637_v33  ;;  %v4538_v15 = vld [vmem:[%s10465_s1 + $0x128] sm:$0xf0]  ;;  %v3186_v28 = vadd.f32 %v3185_v8, %v3172_v12 }
 0x13e   :  { %3448 = vmatmul.bf16.vlgmr.msrb.gmra.mxu1 %v7565_v47  ;;  %v6567_v16 = vld [vmem:[%s10465_s1 + $0x30c] sm:$0xf]  ;;  %v4541_v26 = vor.u32 %v6503_v14, %v4538_v15 }
 0x13f   :  { %3475 = vmatpush.bf16.msrb.mxu3 %v6201_v32  ;;  %3496 = vmatpush.bf16.msra.mxu1 %v4893_v35  ;;  %v4797_v29 = vor.u32 %v6567_v16, %v4794_v19  ;;  %v4506_v32 = vld [vmem:[%s10465_s1 + $0xe8] sm:$0xf0]  ;;  %v3200_v44 = vadd.f32 %v3199_v13, %v3186_v28  ;;  %v3253_v61 = vpop.f32.mrf.mxu3 }
 0x140   :  { %3462 = vmatmul.bf16.vlgmr.msrb.gmra.mxu2 %v7563_v46  ;;  %v6559_v33 = vld [vmem:[%s10465_s1 + $0x2cc] sm:$0xf] }
 0x141   :  { %3510 = vmatpush.bf16.msra.mxu2 %v5149_v36  ;;  %3483 = vmatpush.bf16.msra.mxu0 %v4605_v54  ;;  %v4762_v35 = vld [vmem:[%s10465_s1 + $0x2e8] sm:$0xf0]  ;;  %v5277_v54 = vor.u32 %v6687_v39, %v5274_v40  ;;  %v3213_v60 = vpop.f32.mrf.mxu0 }
 0x142   :  { %3476 = vmatmul.bf16.vlgmr.msrb.gmra.mxu3 %v7573_v50  ;;  %v6623_v36 = vld [vmem:[%s10465_s1 + $0x4cc] sm:$0xf]  ;;  %v4765_v45 = vor.u32 %v6559_v33, %v4762_v35  ;;  %v3214_v4 = vadd.f32 %v3213_v60, %v3200_v44 }
 0x143   :  { %3524 = vmatpush.bf16.msra.mxu3 %v5405_v41  ;;  %3497 = vmatpush.bf16.msra.mxu1 %v4861_v55  ;;  %v4509_v41 = vor.u32 %v6495_v31, %v4506_v32  ;;  %v5021_v48 = vor.u32 %v6623_v36, %v5018_v37  ;;  %v4474_v51 = vld [vmem:[%s10465_s1 + $0xa8] sm:$0xf0]  ;;  %v3239_v55 = vpop.f32.mrf.mxu2  ;;  %v3227_v12 = vpop.f32.mrf.mxu1 }
 0x144   :  { %v6551_v52 = vld [vmem:[%s10465_s1 + $0x28c] sm:$0xf]  ;;  %v3240_v59 = vadd.f32 %v3239_v55, %v3226_v38  ;;  %v4477_v2 = vor.u32 %v6487_v43, %v4474_v51  ;;  %v3228_v23 = vadd.f32 %v3227_v12, %v3214_v4 }
 0x145   :  { %3511 = vmatpush.bf16.msra.mxu2 %v5117_v56  ;;  %3484 = vmatpush.bf16.msra.mxu0 %v4573_v7  ;;  %v4730_v53 = vld [vmem:[%s10465_s1 + $0x2a8] sm:$0xf0] }
 0x146   :  { %v6615_v56 = vld [vmem:[%s10465_s1 + $0x48c] sm:$0xf]  ;;  %v4733_v3 = vor.u32 %v6551_v52, %v4730_v53  ;;  %v3254_v5 = vadd.f32 %v3253_v61, %v3240_v59 }
 0x147   :  { %3525 = vmatpush.bf16.msra.mxu3 %v5373_v62  ;;  %3498 = vmatpush.bf16.msra.mxu1 %v4829_v9  ;;  %v4986_v57 = vld [vmem:[%s10465_s1 + $0x4a8] sm:$0xf0]  ;;  %v3255_v35 = vpop.f32.mrf.mxu3 }
 0x148   :  { %v6679_v62 = vld [vmem:[%s10465_s1 + $0x68c] sm:$0xf]  ;;  %v4989_v6 = vor.u32 %v6615_v56, %v4986_v57  ;;  %v6446_v16 = vmul.f32 -1.442695, %v3254_v5 }
 0x149   :  { %3512 = vmatpush.bf16.msra.mxu2 %v5085_v11  ;;  %3485 = vmatpush.bf16.msra.mxu0 %v4541_v26  ;;  %v5242_v63 = vld [vmem:[%s10465_s1 + $0x6a8] sm:$0xf0] }
 0x14a   :  { %v6479_v7 = vld [vmem:[%s10465_s1 + $0x4c] sm:$0xf]  ;;  %v5245_v11 = vor.u32 %v6679_v62, %v5242_v63  ;;  %6984 = vpow2.f32 %v6446_v16 }
 0x14b   :  { %3526 = vmatpush.bf16.msra.mxu3 %v5341_v18  ;;  %3499 = vmatpush.bf16.msra.mxu1 %v4797_v29  ;;  %v4442_v8 = vld [vmem:[%s10465_s1 + $0x68] sm:$0xf0] }
 0x14c   :  { %v6543_v9 = vld [vmem:[%s10465_s1 + $0x24c] sm:$0xf]  ;;  %v4445_v20 = vor.u32 %v6479_v7, %v4442_v8 }
 0x14d   :  { %3513 = vmatpush.bf16.msra.mxu2 %v5053_v30  ;;  %3486 = vmatpush.bf16.msra.mxu0 %v4509_v41  ;;  %v4698_v13 = vld [vmem:[%s10465_s1 + $0x268] sm:$0xf0]  ;;  %v3241_v30 = vpop.f32.mrf.mxu2 }
 0x14e   :  { %v6607_v14 = vld [vmem:[%s10465_s1 + $0x44c] sm:$0xf]  ;;  %v4701_v24 = vor.u32 %v6543_v9, %v4698_v13 }
 0x14f   :  { %3527 = vmatpush.bf16.msra.mxu3 %v5309_v34  ;;  %3500 = vmatpush.bf16.msra.mxu1 %v4765_v45  ;;  %v4954_v15 = vld [vmem:[%s10465_s1 + $0x468] sm:$0xf0]  ;;  %v3242_v34 = vadd.f32 %v3241_v30, %v3228_v23 }
 0x150   :  { %v6671_v18 = vld [vmem:[%s10465_s1 + $0x64c] sm:$0xf]  ;;  %v4957_v25 = vor.u32 %v6607_v14, %v4954_v15  ;;  %v6985_v57 = vpop.eup %6984 }
 0x151   :  { %3514 = vmatpush.bf16.msra.mxu2 %v5021_v48  ;;  %v5210_v19 = vld [vmem:[%s10465_s1 + $0x668] sm:$0xf0]  ;;  %3487 = vmatpush.bf16.msra.mxu0 %v4477_v2  ;;  %v3256_v44 = vadd.f32 %v3255_v35, %v3242_v34  ;;  %v8549_v2 = vadd.f32 1.0, %v6985_v57 }
 0x152   :  { %v6471_v21 = vld [vmem:[%s10465_s1 + $0xc] sm:$0xf]  ;;  %v5213_v29 = vor.u32 %v6671_v18, %v5210_v19 }
 0x153   :  { %3528 = vmatpush.bf16.msra.mxu3 %v5277_v54  ;;  %v4410_v22 = vld [vmem:[%s10465_s1 + $0x28] sm:$0xf0]  ;;  %3501 = vmatpush.bf16.msra.mxu1 %v4733_v3  ;;  %v6454_v59 = vmul.f32 -1.442695, %v3256_v44  ;;  %vm4111_vm0 = vweird.f32 %v8549_v2 }
 0x154   :  { %v6535_v26 = vld [vmem:[%s10465_s1 + $0x20c] sm:$0xf]  ;;  %v4413_v39 = vor.u32 %v6471_v21, %v4410_v22 }
 0x155   :  { %3515 = vmatpush.bf16.msra.mxu2 %v4989_v6  ;;  %v4666_v27 = vld [vmem:[%s10465_s1 + $0x228] sm:$0xf0]  ;;  %3488 = vmatpush.bf16.msra.mxu0 %v4445_v20  ;;  %6986 = vpow2.f32 %v6454_v59 }
 0x156   :  { %v6599_v28 = vld [vmem:[%s10465_s1 + $0x40c] sm:$0xf]  ;;  %v4669_v45 = vor.u32 %v6535_v26, %v4666_v27  ;;  %6988 = vrcp.f32 %v8549_v2 }
 0x157   :  { %3529 = vmatpush.bf16.msra.mxu3 %v5245_v11  ;;  %v4922_v31 = vld [vmem:[%s10465_s1 + $0x428] sm:$0xf0]  ;;  %3502 = vmatpush.bf16.msra.mxu1 %v4701_v24 }
 0x158   :  { %v6663_v32 = vld [vmem:[%s10465_s1 + $0x60c] sm:$0xf]  ;;  %v4925_v48 = vor.u32 %v6599_v28, %v4922_v31 }
 0x159   :  { %v5178_v33 = vld [vmem:[%s10465_s1 + $0x628] sm:$0xf0]  ;;  %3516 = vmatpush.bf16.msra.mxu2 %v4957_v25  ;;  %3489 = vmatpush.bf16.msra.mxu0 %v4413_v39 }
 0x15a   :  { %v6783_v36 = vld [vmem:[%s10465_s1 + $0x9cc] sm:$0xf]  ;;  %v5181_v53 = vor.u32 %v6663_v32, %v5178_v33 }
 0x15b   :  { %v5658_v37 = vld [vmem:[%s10465_s1 + $0x9e8] sm:$0xf0]  ;;  %3530 = vmatpush.bf16.msra.mxu3 %v5213_v29  ;;  %3503 = vmatpush.bf16.msra.mxu1 %v4669_v45  ;;  %v6987_v24 = vpop.eup %6986 }
 0x15c   :  { %v6847_v38 = vld [vmem:[%s10465_s1 + $0xbcc] sm:$0xf]  ;;  %v5661_v54 = vor.u32 %v6783_v36, %v5658_v37  ;;  %3490 = vmatmul.bf16.vlgmr.msra.gmra.mxu0 %v7324_v58  ;;  %v6989_v30 = vpop.eup %6988  ;;  %v8604_v31 = vadd.f32 1.0, %v6987_v24 }
 0x15d   :  { %v5914_v40 = vld [vmem:[%s10465_s1 + $0xbe8] sm:$0xf0]  ;;  %3517 = vmatpush.bf16.msra.mxu2 %v4925_v48  ;;  %v4107_v35 = vmul.f32 %v6989_v30, %v8549_v2  ;;  %vm4112_vm1 = vweird.f32 %v6989_v30 }
 0x15e   :  { %v6911_v41 = vld [vmem:[%s10465_s1 + $0xdcc] sm:$0xf]  ;;  %v5917_v60 = vor.u32 %v6847_v38, %v5914_v40  ;;  %3538 = vmatpush.bf16.msrb.mxu0 %v5661_v54  ;;  %3504 = vmatmul.bf16.vlgmr.msra.gmra.mxu1 %v7360_v10  ;;  %6990 = vrcp.f32 %v8604_v31  ;;  %vm4113_vm2 = vmor %vm4111_vm0, %vm4112_vm1  ;;  %vm4231_vm5 = vweird.f32 %v8604_v31 }
 0x15f   :  { %v6170_v43 = vld [vmem:[%s10465_s1 + $0xde8] sm:$0xf0]  ;;  %3531 = vmatpush.bf16.msra.mxu3 %v5181_v53 }
 0x160   :  { %v6975_v51 = vld [vmem:[%s10465_s1 + $0xfcc] sm:$0xf]  ;;  %v6173_v61 = vor.u32 %v6911_v41, %v6170_v43  ;;  %3552 = vmatpush.bf16.msrb.mxu1 %v5917_v60  ;;  %3518 = vmatmul.bf16.vlgmr.msra.gmra.mxu2 %v7338_v1  ;;  %v4108_v41 = vsub.f32 1.0, %v4107_v35  ;;  %v4235_v35 = vand.u32 2147483647, %v8604_v31 }
 0x161   :  { %v6426_v52 = vld [vmem:[%s10465_s1 + $0xfe8] sm:$0xf0] }
 0x162   :  { %v6775_v55 = vld [vmem:[%s10465_s1 + $0x98c] sm:$0xf]  ;;  %v6429_v3 = vor.u32 %v6975_v51, %v6426_v52  ;;  %3566 = vmatpush.bf16.msrb.mxu2 %v6173_v61  ;;  %3532 = vmatmul.bf16.vlgmr.msra.gmra.mxu3 %v7374_v17  ;;  %v4117_v51 = vand.u32 2147483648, %v8549_v2  ;;  %vm4236_vm7 = vcmp.eq.f32.partialorder %v4235_v35, 8.507059e+37  ;;  %v6516_v35 = vld [vmem:[%s10465_s1 + $0x16c] sm:$0xf0] }
 0x163   :  { %v5626_v56 = vld [vmem:[%s10465_s1 + $0x9a8] sm:$0xf0] }
 0x164   :  { %v6839_v62 = vld [vmem:[%s10465_s1 + $0xb8c] sm:$0xf]  ;;  %v5629_v8 = vor.u32 %v6775_v55, %v5626_v56  ;;  %3580 = vmatpush.bf16.msrb.mxu3 %v6429_v3  ;;  %v4109_v55 = vmul.f32 %v6989_v30, %v4108_v41  ;;  %v4115_v56 = vand.u32 2147483647, %v8549_v2 }
 0x165   :  { %v5882_v63 = vld [vmem:[%s10465_s1 + $0xba8] sm:$0xf0] }
 0x166   :  { %v6903_v4 = vld [vmem:[%s10465_s1 + $0xd8c] sm:$0xf]  ;;  %v5885_v9 = vor.u32 %v6839_v62, %v5882_v63  ;;  %3539 = vmatpush.bf16.msrb.mxu0 %v5629_v8  ;;  %v4110_v62 = vadd.f32 %v6989_v30, %v4109_v55  ;;  %v4118_v8 = vor.u32 1.1754944e-38, %v4117_v51  ;;  %vm4116_vm3 = vcmp.eq.f32.partialorder %v4115_v56, 8.507059e+37  ;;  %v4640_v56 = vld [vmem:[%s10465_s1 + $0x1d0] sm:$0xf] }
 0x167   :  { %v6138_v5 = vld [vmem:[%s10465_s1 + $0xda8] sm:$0xf0] }
 0x168   :  { %v6967_v6 = vld [vmem:[%s10465_s1 + $0xf8c] sm:$0xf]  ;;  %v6141_v11 = vor.u32 %v6903_v4, %v6138_v5  ;;  %3553 = vmatpush.bf16.msrb.mxu1 %v5885_v9 }
 0x169   :  { %v6394_v7 = vld [vmem:[%s10465_s1 + $0xfa8] sm:$0xf0] }
 0x16a   :  { %v6767_v12 = vld [vmem:[%s10465_s1 + $0x94c] sm:$0xf]  ;;  %v6397_v15 = vor.u32 %v6967_v6, %v6394_v7  ;;  %3567 = vmatpush.bf16.msrb.mxu2 %v6141_v11  ;;  %v8659_v7 = vpop.eup %6990 }
 0x16b   :  { %v5594_v13 = vld [vmem:[%s10465_s1 + $0x968] sm:$0xf0]  ;;  %vm4232_vm4 = vweird.f32 %v8659_v7 }
 0x16c   :  { %v6831_v14 = vld [vmem:[%s10465_s1 + $0xb4c] sm:$0xf]  ;;  %v5597_v22 = vor.u32 %v6767_v12, %v5594_v13  ;;  %3581 = vmatpush.bf16.msrb.mxu3 %v6397_v15  ;;  %v4114_v13 = vsel %vm4113_vm2, %v6989_v30, %v4110_v62  ;;  %vm4233_vm6 = vmor %vm4231_vm5, %vm4232_vm4 }
 0x16d   :  { %v5850_v16 = vld [vmem:[%s10465_s1 + $0xb68] sm:$0xf0] }
 0x16e   :  { %v6895_v18 = vld [vmem:[%s10465_s1 + $0xd4c] sm:$0xf]  ;;  %v5853_v25 = vor.u32 %v6831_v14, %v5850_v16  ;;  %3540 = vmatpush.bf16.msrb.mxu0 %v5597_v22  ;;  %v4227_v14 = vmul.f32 %v8659_v7, %v8604_v31  ;;  %v4119_v16 = vsel %vm4116_vm3, %v4118_v8, %v4114_v13  ;;  %v5408_v8 = vld [vmem:[%s10465_s1 + $0x7d0] sm:$0xf] }
 0x16f   :  { %v6106_v19 = vld [vmem:[%s10465_s1 + $0xd68] sm:$0xf0]  ;;  %4346 = vst [vmem:[%s10468_s3] sm:$0xff] %v4119_v16 }
 0x170   :  { %v6959_v20 = vld [vmem:[%s10465_s1 + $0xf4c] sm:$0xf]  ;;  %v6109_v26 = vor.u32 %v6895_v18, %v6106_v19  ;;  %3554 = vmatpush.bf16.msrb.mxu1 %v5853_v25  ;;  %v4228_v22 = vsub.f32 1.0, %v4227_v14  ;;  %v3267_v25 = vpop.f32.mrf.mxu0 }
 0x171   :  { %v6362_v21 = vld [vmem:[%s10465_s1 + $0xf68] sm:$0xf0] }
 0x172   :  { %v6759_v23 = vld [vmem:[%s10465_s1 + $0x90c] sm:$0xf]  ;;  %v6365_v32 = vor.u32 %v6959_v20, %v6362_v21  ;;  %3568 = vmatpush.bf16.msrb.mxu2 %v6109_v26 }
 0x173   :  { %v5562_v27 = vld [vmem:[%s10465_s1 + $0x928] sm:$0xf0] }
 0x174   :  { %v6823_v28 = vld [vmem:[%s10465_s1 + $0xb0c] sm:$0xf]  ;;  %v5565_v38 = vor.u32 %v6759_v23, %v5562_v27  ;;  %3582 = vmatpush.bf16.msrb.mxu3 %v6365_v32 }
 0x175   :  { %v5818_v29 = vld [vmem:[%s10465_s1 + $0xb28] sm:$0xf0] }
 0x176   :  { %v6887_v33 = vld [vmem:[%s10465_s1 + $0xd0c] sm:$0xf]  ;;  %v5821_v43 = vor.u32 %v6823_v28, %v5818_v29  ;;  %3541 = vmatpush.bf16.msrb.mxu0 %v5565_v38  ;;  %v4237_v28 = vand.u32 2147483648, %v8604_v31 }
 0x177   :  { %v6074_v34 = vld [vmem:[%s10465_s1 + $0xd28] sm:$0xf0] }
 0x178   :  { %v6951_v36 = vld [vmem:[%s10465_s1 + $0xf0c] sm:$0xf]  ;;  %v6077_v44 = vor.u32 %v6887_v33, %v6074_v34  ;;  %3555 = vmatpush.bf16.msrb.mxu1 %v5821_v43  ;;  %v3281_v33 = vpop.f32.mrf.mxu1  ;;  %v4229_v34 = vmul.f32 %v8659_v7, %v4228_v22  ;;  %v4238_v31 = vor.u32 1.1754944e-38, %v4237_v28  ;;  %v3269_v16 = vpop.f32.mrf.mxu0  ;;  %v6588_v22 = vld [vmem:[%s10465_s1 + $0x3ac] sm:$0xf0] }
 0x179   :  { %v6330_v37 = vld [vmem:[%s10465_s1 + $0xf28] sm:$0xf0] }
 0x17a   :  { %v6751_v39 = vld [vmem:[%s10465_s1 + $0x8cc] sm:$0xf]  ;;  %v6333_v52 = vor.u32 %v6951_v36, %v6330_v37  ;;  %3569 = vmatpush.bf16.msrb.mxu2 %v6077_v44  ;;  %v4230_v43 = vadd.f32 %v8659_v7, %v4229_v34  ;;  %v4576_v34 = vld [vmem:[%s10465_s1 + $0x150] sm:$0xf] }
 0x17b   :  { %v5530_v40 = vld [vmem:[%s10465_s1 + $0x8e8] sm:$0xf0] }
 0x17c   :  { %v6815_v45 = vld [vmem:[%s10465_s1 + $0xacc] sm:$0xf]  ;;  %v5533_v60 = vor.u32 %v6751_v39, %v5530_v40  ;;  %3583 = vmatpush.bf16.msrb.mxu3 %v6333_v52 }
 0x17d   :  { %v5786_v48 = vld [vmem:[%s10465_s1 + $0xae8] sm:$0xf0] }
 0x17e   :  { %v6879_v53 = vld [vmem:[%s10465_s1 + $0xccc] sm:$0xf]  ;;  %v5789_v63 = vor.u32 %v6815_v45, %v5786_v48  ;;  %3542 = vmatpush.bf16.msrb.mxu0 %v5533_v60  ;;  %v4896_v60 = vld [vmem:[%s10465_s1 + $0x3d0] sm:$0xf] }
 0x17f   :  { %v6042_v54 = vld [vmem:[%s10465_s1 + $0xce8] sm:$0xf0] }
 0x180   :  { %v6943_v57 = vld [vmem:[%s10465_s1 + $0xecc] sm:$0xf]  ;;  %v6045_v3 = vor.u32 %v6879_v53, %v6042_v54  ;;  %3556 = vmatpush.bf16.msrb.mxu1 %v5789_v63  ;;  %v3268_v53 = vadd.f32 %v3267_v25, %v8281_v0  ;;  %v6596_v63 = vld [vmem:[%s10465_s1 + $0x3ec] sm:$0xf0]  ;;  %v3283_v25 = vpop.f32.mrf.mxu1 }
 0x181   :  { %v6298_v59 = vld [vmem:[%s10465_s1 + $0xee8] sm:$0xf0] }
 0x182   :  { %v6743_v61 = vld [vmem:[%s10465_s1 + $0x88c] sm:$0xf]  ;;  %v6301_v9 = vor.u32 %v6943_v57, %v6298_v59  ;;  %3570 = vmatpush.bf16.msrb.mxu2 %v6045_v3  ;;  %v4234_v57 = vsel %vm4233_vm6, %v8659_v7, %v4230_v43  ;;  %v6532_v59 = vld [vmem:[%s10465_s1 + $0x1ec] sm:$0xf0] }
 0x183   :  { %v5498_v4 = vld [vmem:[%s10465_s1 + $0x8a8] sm:$0xf0]  ;;  %v5152_v3 = vld [vmem:[%s10465_s1 + $0x5d0] sm:$0xf]  ;;  %v4641_v14 = vor.u32 %v6532_v59, %v4640_v56 }
 0x184   :  { %v6807_v5 = vld [vmem:[%s10465_s1 + $0xa8c] sm:$0xf]  ;;  %v5501_v18 = vor.u32 %v6743_v61, %v5498_v4  ;;  %3584 = vmatpush.bf16.msrb.mxu3 %v6301_v9  ;;  %v4239_v61 = vsel %vm4236_vm7, %v4238_v31, %v4234_v57  ;;  %v6660_v4 = vld [vmem:[%s10465_s1 + $0x5ec] sm:$0xf0] }
 0x185   :  { %v5754_v6 = vld [vmem:[%s10465_s1 + $0xaa8] sm:$0xf0]  ;;  %4354 = vst [vmem:[%s10468_s3 + $0x40] sm:$0xff] %v4239_v61  ;;  %v6724_v9 = vld [vmem:[%s10465_s1 + $0x7ec] sm:$0xf0] }
 0x186   :  { %v6871_v11 = vld [vmem:[%s10465_s1 + $0xc8c] sm:$0xf]  ;;  %v5757_v23 = vor.u32 %v6807_v5, %v5754_v6  ;;  %3543 = vmatpush.bf16.msrb.mxu0 %v5501_v18  ;;  %v3295_v5 = vpop.f32.mrf.mxu2  ;;  %v4608_v18 = vld [vmem:[%s10465_s1 + $0x190] sm:$0xf] }
 0x187   :  { %v6010_v12 = vld [vmem:[%s10465_s1 + $0xca8] sm:$0xf0]  ;;  %v6708_v43 = vld [vmem:[%s10465_s1 + $0x76c] sm:$0xf0] }
 0x188   :  { %v6935_v2 = vld [vmem:[%s10465_s1 + $0xe8c] sm:$0xf]  ;;  %v6013_v24 = vor.u32 %v6871_v11, %v6010_v12  ;;  %3557 = vmatpush.bf16.msrb.mxu1 %v5757_v23  ;;  %v3309_v11 = vpop.f32.mrf.mxu3  ;;  %v3282_v12 = vadd.f32 %v3281_v33, %v3268_v53  ;;  %v5120_v23 = vld [vmem:[%s10465_s1 + $0x590] sm:$0xf] }
 0x189   :  { %v6266_v15 = vld [vmem:[%s10465_s1 + $0xea8] sm:$0xf0]  ;;  %v4800_v56 = vld [vmem:[%s10465_s1 + $0x310] sm:$0xf] }
 0x18a   :  { %v6735_v19 = vld [vmem:[%s10465_s1 + $0x84c] sm:$0xf]  ;;  %v6269_v29 = vor.u32 %v6935_v2, %v6266_v15  ;;  %3571 = vmatpush.bf16.msrb.mxu2 %v6013_v24  ;;  %v4897_v2 = vor.u32 %v6596_v63, %v4896_v60  ;;  %v5153_v15 = vor.u32 %v6660_v4, %v5152_v3  ;;  %v6652_v24 = vld [vmem:[%s10465_s1 + $0x5ac] sm:$0xf0]  ;;  %v3296_v28 = vadd.f32 %v3295_v5, %v3282_v12 }
 0x18b   :  { %v5466_v20 = vld [vmem:[%s10465_s1 + $0x868] sm:$0xf0]  ;;  %v5121_v33 = vor.u32 %v6652_v24, %v5120_v23  ;;  %v6572_v59 = vld [vmem:[%s10465_s1 + $0x32c] sm:$0xf0] }
 0x18c   :  { %v6799_v21 = vld [vmem:[%s10465_s1 + $0xa4c] sm:$0xf]  ;;  %v5469_v38 = vor.u32 %v6735_v19, %v5466_v20  ;;  %3585 = vmatpush.bf16.msrb.mxu3 %v6269_v29  ;;  %v6524_v19 = vld [vmem:[%s10465_s1 + $0x1ac] sm:$0xf0] }
 0x18d   :  { %v5722_v26 = vld [vmem:[%s10465_s1 + $0xa68] sm:$0xf0]  ;;  %v4864_v20 = vld [vmem:[%s10465_s1 + $0x390] sm:$0xf]  ;;  %v4609_v29 = vor.u32 %v6524_v19, %v4608_v18 }
 0x18e   :  { %v6863_v27 = vld [vmem:[%s10465_s1 + $0xc4c] sm:$0xf]  ;;  %v5725_v44 = vor.u32 %v6799_v21, %v5722_v26  ;;  %3544 = vmatpush.bf16.msrb.mxu0 %v5469_v38  ;;  %v5409_v21 = vor.u32 %v6724_v9, %v5408_v8  ;;  %v5376_v26 = vld [vmem:[%s10465_s1 + $0x790] sm:$0xf]  ;;  %v4801_v8 = vor.u32 %v6572_v59, %v4800_v56 }
 0x18f   :  { %v5978_v30 = vld [vmem:[%s10465_s1 + $0xc68] sm:$0xf0]  ;;  %v6580_v38 = vld [vmem:[%s10465_s1 + $0x36c] sm:$0xf0] }
 0x190   :  { %v6927_v32 = vld [vmem:[%s10465_s1 + $0xe4c] sm:$0xf]  ;;  %v5981_v45 = vor.u32 %v6863_v27, %v5978_v30  ;;  %3558 = vmatpush.bf16.msrb.mxu1 %v5725_v44  ;;  %v6716_v27 = vld [vmem:[%s10465_s1 + $0x7ac] sm:$0xf0]  ;;  %v3270_v30 = vadd.f32 %v3269_v16, %v8356_v49  ;;  %v3310_v44 = vadd.f32 %v3309_v11, %v3296_v28  ;;  %v3311_v53 = vpop.f32.mrf.mxu3 }
 0x191   :  { %v6234_v36 = vld [vmem:[%s10465_s1 + $0xe68] sm:$0xf0]  ;;  %v5056_v60 = vld [vmem:[%s10465_s1 + $0x510] sm:$0xf] }
 0x192   :  { %v6727_v37 = vld [vmem:[%s10465_s1 + $0x80c] sm:$0xf]  ;;  %v6237_v54 = vor.u32 %v6927_v32, %v6234_v36  ;;  %3572 = vmatpush.bf16.msrb.mxu2 %v5981_v45  ;;  %v4865_v32 = vor.u32 %v6588_v22, %v4864_v20  ;;  %v4832_v36 = vld [vmem:[%s10465_s1 + $0x350] sm:$0xf]  ;;  %v4577_v45 = vor.u32 %v6516_v35, %v4576_v34 }
 0x193   :  { %v5434_v39 = vld [vmem:[%s10465_s1 + $0x828] sm:$0xf0]  ;;  %v6636_v61 = vld [vmem:[%s10465_s1 + $0x52c] sm:$0xf0] }
 0x194   :  { %v6791_v40 = vld [vmem:[%s10465_s1 + $0xa0c] sm:$0xf]  ;;  %v5437_v62 = vor.u32 %v6727_v37, %v5434_v39  ;;  %3586 = vmatpush.bf16.msrb.mxu3 %v6237_v54  ;;  %v5377_v37 = vor.u32 %v6716_v27, %v5376_v26  ;;  %v5088_v39 = vld [vmem:[%s10465_s1 + $0x550] sm:$0xf]  ;;  %v5057_v9 = vor.u32 %v6636_v61, %v5056_v60 }
 0x195   :  { %v5690_v41 = vld [vmem:[%s10465_s1 + $0xa28] sm:$0xf0]  ;;  %v4544_v54 = vld [vmem:[%s10465_s1 + $0x110] sm:$0xf] }
 0x196   :  { %v6855_v48 = vld [vmem:[%s10465_s1 + $0xc0c] sm:$0xf]  ;;  %v5693_v6 = vor.u32 %v6791_v40, %v5690_v41  ;;  %3545 = vmatpush.bf16.msrb.mxu0 %v5437_v62  ;;  %v6644_v40 = vld [vmem:[%s10465_s1 + $0x56c] sm:$0xf0]  ;;  %v3323_v62 = vpop.f32.mrf.mxu0 }
 0x197   :  { %v5946_v51 = vld [vmem:[%s10465_s1 + $0xc28] sm:$0xf0]  ;;  %v5344_v41 = vld [vmem:[%s10465_s1 + $0x750] sm:$0xf]  ;;  %v5089_v31 = vor.u32 %v6644_v40, %v5088_v39  ;;  %v3324_v4 = vadd.f32 %v3323_v62, %v3310_v44 }
 0x198   :  { %v6919_v52 = vld [vmem:[%s10465_s1 + $0xe0c] sm:$0xf]  ;;  %v5949_v7 = vor.u32 %v6855_v48, %v5946_v51  ;;  %3559 = vmatpush.bf16.msrb.mxu1 %v5693_v6  ;;  %v3297_v48 = vpop.f32.mrf.mxu2  ;;  %v3284_v51 = vadd.f32 %v3283_v25, %v3270_v30  ;;  %v5345_v57 = vor.u32 %v6708_v43, %v5344_v41  ;;  %v5312_v63 = vld [vmem:[%s10465_s1 + $0x710] sm:$0xf]  ;;  %v3337_v6 = vpop.f32.mrf.mxu1 }
 0x199   :  { %v6202_v55 = vld [vmem:[%s10465_s1 + $0xe28] sm:$0xf0]  ;;  %3546 = vmatmul.bf16.vlgmr.msrb.gmra.mxu0 %v7552_v42  ;;  %v6700_v3 = vld [vmem:[%s10465_s1 + $0x72c] sm:$0xf0]  ;;  %v3338_v18 = vadd.f32 %v3337_v6, %v3324_v4 }
 0x19a   :  { %v6205_v13 = vor.u32 %v6919_v52, %v6202_v55  ;;  %3573 = vmatpush.bf16.msrb.mxu2 %v5949_v7  ;;  %3594 = vmatpush.bf16.msra.mxu0 %v4641_v14  ;;  %v4833_v52 = vor.u32 %v6580_v38, %v4832_v36  ;;  %v6508_v55 = vld [vmem:[%s10465_s1 + $0x12c] sm:$0xf0]  ;;  %v3298_v7 = vadd.f32 %v3297_v48, %v3284_v51  ;;  %v3365_v36 = vpop.f32.mrf.mxu3 }
 0x19b   :  { %3560 = vmatmul.bf16.vlgmr.msrb.gmra.mxu1 %v7565_v47  ;;  %v4545_v5 = vor.u32 %v6508_v55, %v4544_v54  ;;  %v4512_v11 = vld [vmem:[%s10465_s1 + $0xd0] sm:$0xf]  ;;  %v5313_v14 = vor.u32 %v6700_v3, %v5312_v63 }
 0x19c   :  { %3587 = vmatpush.bf16.msrb.mxu3 %v6205_v13  ;;  %3608 = vmatpush.bf16.msra.mxu1 %v4897_v2  ;;  %v6500_v12 = vld [vmem:[%s10465_s1 + $0xec] sm:$0xf0]  ;;  %v3312_v23 = vadd.f32 %v3311_v53, %v3298_v7 }
 0x19d   :  { %3574 = vmatmul.bf16.vlgmr.msrb.gmra.mxu2 %v7563_v46  ;;  %v4768_v13 = vld [vmem:[%s10465_s1 + $0x2d0] sm:$0xf] }
 0x19e   :  { %3622 = vmatpush.bf16.msra.mxu2 %v5153_v15  ;;  %3595 = vmatpush.bf16.msra.mxu0 %v4609_v29  ;;  %v6564_v2 = vld [vmem:[%s10465_s1 + $0x2ec] sm:$0xf0]  ;;  %v3325_v35 = vpop.f32.mrf.mxu0 }
 0x19f   :  { %3588 = vmatmul.bf16.vlgmr.msrb.gmra.mxu3 %v7573_v50  ;;  %v5024_v15 = vld [vmem:[%s10465_s1 + $0x4d0] sm:$0xf]  ;;  %v4769_v24 = vor.u32 %v6564_v2, %v4768_v13  ;;  %v3326_v41 = vadd.f32 %v3325_v35, %v3312_v23 }
 0x1a0   :  { %3636 = vmatpush.bf16.msra.mxu3 %v5409_v21  ;;  %3609 = vmatpush.bf16.msra.mxu1 %v4865_v32  ;;  %v6628_v16 = vld [vmem:[%s10465_s1 + $0x4ec] sm:$0xf0]  ;;  %v4513_v21 = vor.u32 %v6500_v12, %v4512_v11  ;;  %v3351_v30 = vpop.f32.mrf.mxu2 }
 0x1a1   :  { %v5280_v19 = vld [vmem:[%s10465_s1 + $0x6d0] sm:$0xf]  ;;  %v5025_v25 = vor.u32 %v6628_v16, %v5024_v15  ;;  %v3352_v34 = vadd.f32 %v3351_v30, %v3338_v18 }
 0x1a2   :  { %3623 = vmatpush.bf16.msra.mxu2 %v5121_v33  ;;  %3596 = vmatpush.bf16.msra.mxu0 %v4577_v45  ;;  %v6692_v20 = vld [vmem:[%s10465_s1 + $0x6ec] sm:$0xf0]  ;;  %v3367_v2 = vpop.f32.mrf.mxu3 }
 0x1a3   :  { %v4480_v22 = vld [vmem:[%s10465_s1 + $0x90] sm:$0xf]  ;;  %v5281_v29 = vor.u32 %v6692_v20, %v5280_v19  ;;  %v3366_v43 = vadd.f32 %v3365_v36, %v3352_v34 }
 0x1a4   :  { %3637 = vmatpush.bf16.msra.mxu3 %v5377_v37  ;;  %3610 = vmatpush.bf16.msra.mxu1 %v4833_v52  ;;  %v6492_v26 = vld [vmem:[%s10465_s1 + $0xac] sm:$0xf0] }
 0x1a5   :  { %v4736_v27 = vld [vmem:[%s10465_s1 + $0x290] sm:$0xf]  ;;  %v4481_v39 = vor.u32 %v6492_v26, %v4480_v22  ;;  %v6447_v56 = vmul.f32 -1.442695, %v3366_v43 }
 0x1a6   :  { %3624 = vmatpush.bf16.msra.mxu2 %v5089_v31  ;;  %3597 = vmatpush.bf16.msra.mxu0 %v4545_v5  ;;  %v6556_v28 = vld [vmem:[%s10465_s1 + $0x2ac] sm:$0xf0]  ;;  %v3339_v31 = vpop.f32.mrf.mxu1 }
 0x1a7   :  { %v4992_v32 = vld [vmem:[%s10465_s1 + $0x490] sm:$0xf]  ;;  %v4737_v40 = vor.u32 %v6556_v28, %v4736_v27  ;;  %6992 = vpow2.f32 %v6447_v56  ;;  %v3340_v63 = vadd.f32 %v3339_v31, %v3326_v41 }
 0x1a8   :  { %3638 = vmatpush.bf16.msra.mxu3 %v5345_v57  ;;  %3611 = vmatpush.bf16.msra.mxu1 %v4801_v8  ;;  %v6620_v33 = vld [vmem:[%s10465_s1 + $0x4ac] sm:$0xf0] }
 0x1a9   :  { %v5248_v37 = vld [vmem:[%s10465_s1 + $0x690] sm:$0xf]  ;;  %v4993_v44 = vor.u32 %v6620_v33, %v4992_v32 }
 0x1aa   :  { %3625 = vmatpush.bf16.msra.mxu2 %v5057_v9  ;;  %v6684_v38 = vld [vmem:[%s10465_s1 + $0x6ac] sm:$0xf0]  ;;  %3598 = vmatpush.bf16.msra.mxu0 %v4513_v21  ;;  %v3353_v9 = vpop.f32.mrf.mxu2 }
 0x1ab   :  { %v4448_v45 = vld [vmem:[%s10465_s1 + $0x50] sm:$0xf]  ;;  %v5249_v52 = vor.u32 %v6684_v38, %v5248_v37 }
 0x1ac   :  { %3639 = vmatpush.bf16.msra.mxu3 %v5313_v14  ;;  %3612 = vmatpush.bf16.msra.mxu1 %v4769_v24  ;;  %v6484_v48 = vld [vmem:[%s10465_s1 + $0x6c] sm:$0xf0]  ;;  %v3354_v14 = vadd.f32 %v3353_v9, %v3340_v63 }
 0x1ad   :  { %v4704_v51 = vld [vmem:[%s10465_s1 + $0x250] sm:$0xf]  ;;  %v4449_v60 = vor.u32 %v6484_v48, %v4448_v45  ;;  %v6993_v33 = vpop.eup %6992 }
 0x1ae   :  { %3626 = vmatpush.bf16.msra.mxu2 %v5025_v25  ;;  %v6548_v53 = vld [vmem:[%s10465_s1 + $0x26c] sm:$0xf0]  ;;  %3599 = vmatpush.bf16.msra.mxu0 %v4481_v39  ;;  %v3368_v23 = vadd.f32 %v3367_v2, %v3354_v14  ;;  %v8975_v39 = vadd.f32 1.0, %v6993_v33 }
 0x1af   :  { %v4960_v54 = vld [vmem:[%s10465_s1 + $0x450] sm:$0xf]  ;;  %v4705_v3 = vor.u32 %v6548_v53, %v4704_v51 }
 0x1b0   :  { %3640 = vmatpush.bf16.msra.mxu3 %v5281_v29  ;;  %v6612_v55 = vld [vmem:[%s10465_s1 + $0x46c] sm:$0xf0]  ;;  %3613 = vmatpush.bf16.msra.mxu1 %v4737_v40  ;;  %v6455_v34 = vmul.f32 -1.442695, %v3368_v23  ;;  %vm4126_vm8 = vweird.f32 %v8975_v39 }
 0x1b1   :  { %v5216_v57 = vld [vmem:[%s10465_s1 + $0x650] sm:$0xf]  ;;  %v4961_v4 = vor.u32 %v6612_v55, %v4960_v54 }
 0x1b2   :  { %v6676_v59 = vld [vmem:[%s10465_s1 + $0x66c] sm:$0xf0]  ;;  %3627 = vmatpush.bf16.msra.mxu2 %v4993_v44  ;;  %3600 = vmatpush.bf16.msra.mxu0 %v4449_v60  ;;  %6994 = vpow2.f32 %v6455_v34 }
 0x1b3   :  { %v4416_v61 = vld [vmem:[%s10465_s1 + $0x10] sm:$0xf]  ;;  %v5217_v8 = vor.u32 %v6676_v59, %v5216_v57  ;;  %6996 = vrcp.f32 %v8975_v39 }
 0x1b4   :  { %v6476_v62 = vld [vmem:[%s10465_s1 + $0x2c] sm:$0xf0]  ;;  %3641 = vmatpush.bf16.msra.mxu3 %v5249_v52  ;;  %3614 = vmatpush.bf16.msra.mxu1 %v4705_v3 }
 0x1b5   :  { %v4672_v5 = vld [vmem:[%s10465_s1 + $0x210] sm:$0xf]  ;;  %v4417_v19 = vor.u32 %v6476_v62, %v4416_v61 }
 0x1b6   :  { %v6540_v6 = vld [vmem:[%s10465_s1 + $0x22c] sm:$0xf0]  ;;  %3628 = vmatpush.bf16.msra.mxu2 %v4961_v4 }
 0x1b7   :  { %v4928_v7 = vld [vmem:[%s10465_s1 + $0x410] sm:$0xf]  ;;  %v4673_v24 = vor.u32 %v6540_v6, %v4672_v5  ;;  %3601 = vmatpush.bf16.msra.mxu0 %v4417_v19 }
 0x1b8   :  { %v6604_v11 = vld [vmem:[%s10465_s1 + $0x42c] sm:$0xf0]  ;;  %3642 = vmatpush.bf16.msra.mxu3 %v5217_v8  ;;  %v6995_v3 = vpop.eup %6994 }
 0x1b9   :  { %v5184_v12 = vld [vmem:[%s10465_s1 + $0x610] sm:$0xf]  ;;  %v4929_v25 = vor.u32 %v6604_v11, %v4928_v7  ;;  %3615 = vmatpush.bf16.msra.mxu1 %v4673_v24  ;;  %v6997_v9 = vpop.eup %6996  ;;  %v9030_v11 = vadd.f32 1.0, %v6995_v3 }
 0x1ba   :  { %v6668_v13 = vld [vmem:[%s10465_s1 + $0x62c] sm:$0xf0]  ;;  %3602 = vmatmul.bf16.vlgmr.msra.gmra.mxu0 %v7324_v58  ;;  %v4122_v2 = vmul.f32 %v6997_v9, %v8975_v39  ;;  %vm4127_vm9 = vweird.f32 %v6997_v9 }
 0x1bb   :  { %v5664_v15 = vld [vmem:[%s10465_s1 + $0x9d0] sm:$0xf]  ;;  %v5185_v28 = vor.u32 %v6668_v13, %v5184_v12  ;;  %3629 = vmatpush.bf16.msra.mxu2 %v4929_v25  ;;  %6998 = vrcp.f32 %v9030_v11  ;;  %vm4128_vm10 = vmor %vm4126_vm8, %vm4127_vm9  ;;  %vm4246_vm13 = vweird.f32 %v9030_v11 }
 0x1bc   :  { %v6788_v16 = vld [vmem:[%s10465_s1 + $0x9ec] sm:$0xf0]  ;;  %3616 = vmatmul.bf16.vlgmr.msra.gmra.mxu1 %v7360_v10 }
 0x1bd   :  { %v5920_v18 = vld [vmem:[%s10465_s1 + $0xbd0] sm:$0xf]  ;;  %v5665_v29 = vor.u32 %v6788_v16, %v5664_v15  ;;  %3643 = vmatpush.bf16.msra.mxu3 %v5185_v28 }
 0x1be   :  { %v6852_v20 = vld [vmem:[%s10465_s1 + $0xbec] sm:$0xf0]  ;;  %3630 = vmatmul.bf16.vlgmr.msra.gmra.mxu2 %v7338_v1 }
 0x1bf   :  { %v6176_v21 = vld [vmem:[%s10465_s1 + $0xdd0] sm:$0xf]  ;;  %v5921_v35 = vor.u32 %v6852_v20, %v5920_v18  ;;  %3650 = vmatpush.bf16.msrb.mxu0 %v5665_v29 }
 0x1c0   :  { %v6916_v22 = vld [vmem:[%s10465_s1 + $0xdec] sm:$0xf0]  ;;  %3644 = vmatmul.bf16.vlgmr.msra.gmra.mxu3 %v7374_v17 }
 0x1c1   :  { %v6432_v26 = vld [vmem:[%s10465_s1 + $0xfd0] sm:$0xf]  ;;  %v6177_v36 = vor.u32 %v6916_v22, %v6176_v21  ;;  %3664 = vmatpush.bf16.msrb.mxu1 %v5921_v35  ;;  %v4123_v21 = vsub.f32 1.0, %v4122_v2  ;;  %v4250_v2 = vand.u32 2147483647, %v9030_v11 }
 0x1c2   :  { %v6980_v27 = vld [vmem:[%s10465_s1 + $0xfec] sm:$0xf0] }
 0x1c3   :  { %v5632_v30 = vld [vmem:[%s10465_s1 + $0x990] sm:$0xf]  ;;  %v6433_v40 = vor.u32 %v6980_v27, %v6432_v26  ;;  %3678 = vmatpush.bf16.msrb.mxu2 %v6177_v36  ;;  %v4132_v26 = vand.u32 2147483648, %v8975_v39  ;;  %vm4251_vm15 = vcmp.eq.f32.partialorder %v4250_v2, 8.507059e+37  ;;  %v4578_v2 = vld [vmem:[%s10465_s1 + $0x170] sm:$0xf0] }
 0x1c4   :  { %v6780_v32 = vld [vmem:[%s10465_s1 + $0x9ac] sm:$0xf0] }
 0x1c5   :  { %v5888_v37 = vld [vmem:[%s10465_s1 + $0xb90] sm:$0xf]  ;;  %v5633_v48 = vor.u32 %v6780_v32, %v5632_v30  ;;  %3692 = vmatpush.bf16.msrb.mxu3 %v6433_v40  ;;  %v4124_v30 = vmul.f32 %v6997_v9, %v4123_v21  ;;  %v4130_v32 = vand.u32 2147483647, %v8975_v39 }
 0x1c6   :  { %v6844_v38 = vld [vmem:[%s10465_s1 + $0xbac] sm:$0xf0] }
 0x1c7   :  { %v6144_v41 = vld [vmem:[%s10465_s1 + $0xd90] sm:$0xf]  ;;  %v5889_v51 = vor.u32 %v6844_v38, %v5888_v37  ;;  %3651 = vmatpush.bf16.msrb.mxu0 %v5633_v48  ;;  %v4125_v37 = vadd.f32 %v6997_v9, %v4124_v30  ;;  %v4133_v48 = vor.u32 1.1754944e-38, %v4132_v26  ;;  %vm4131_vm11 = vcmp.eq.f32.partialorder %v4130_v32, 8.507059e+37  ;;  %v6528_v32 = vld [vmem:[%s10465_s1 + $0x1d4] sm:$0xf] }
 0x1c8   :  { %v6908_v43 = vld [vmem:[%s10465_s1 + $0xdac] sm:$0xf0] }
 0x1c9   :  { %v6400_v44 = vld [vmem:[%s10465_s1 + $0xf90] sm:$0xf]  ;;  %v6145_v52 = vor.u32 %v6908_v43, %v6144_v41  ;;  %3665 = vmatpush.bf16.msrb.mxu1 %v5889_v51 }
 0x1ca   :  { %v6972_v45 = vld [vmem:[%s10465_s1 + $0xfac] sm:$0xf0] }
 0x1cb   :  { %v5600_v31 = vld [vmem:[%s10465_s1 + $0x950] sm:$0xf]  ;;  %v6401_v55 = vor.u32 %v6972_v45, %v6400_v44  ;;  %3679 = vmatpush.bf16.msrb.mxu2 %v6145_v52  ;;  %v9085_v45 = vpop.eup %6998 }
 0x1cc   :  { %v6772_v53 = vld [vmem:[%s10465_s1 + $0x96c] sm:$0xf0]  ;;  %vm4247_vm12 = vweird.f32 %v9085_v45 }
 0x1cd   :  { %v5856_v54 = vld [vmem:[%s10465_s1 + $0xb50] sm:$0xf]  ;;  %v5601_v62 = vor.u32 %v6772_v53, %v5600_v31  ;;  %3693 = vmatpush.bf16.msrb.mxu3 %v6401_v55  ;;  %v4129_v53 = vsel %vm4128_vm10, %v6997_v9, %v4125_v37  ;;  %vm4248_vm14 = vmor %vm4246_vm13, %vm4247_vm12 }
 0x1ce   :  { %v6836_v56 = vld [vmem:[%s10465_s1 + $0xb6c] sm:$0xf0] }
 0x1cf   :  { %v6112_v57 = vld [vmem:[%s10465_s1 + $0xd50] sm:$0xf]  ;;  %v5857_v4 = vor.u32 %v6836_v56, %v5856_v54  ;;  %3652 = vmatpush.bf16.msrb.mxu0 %v5601_v62  ;;  %v4242_v54 = vmul.f32 %v9085_v45, %v9030_v11  ;;  %v4134_v56 = vsel %vm4131_vm11, %v4133_v48, %v4129_v53  ;;  %v6720_v48 = vld [vmem:[%s10465_s1 + $0x7d4] sm:$0xf] }
 0x1d0   :  { %v6900_v59 = vld [vmem:[%s10465_s1 + $0xd6c] sm:$0xf0]  ;;  %4347 = vst [vmem:[%s10468_s3 + $0x8] sm:$0xff] %v4134_v56 }
 0x1d1   :  { %v6368_v60 = vld [vmem:[%s10465_s1 + $0xf50] sm:$0xf]  ;;  %v6113_v5 = vor.u32 %v6900_v59, %v6112_v57  ;;  %3666 = vmatpush.bf16.msrb.mxu1 %v5857_v4  ;;  %v4243_v62 = vsub.f32 1.0, %v4242_v54  ;;  %v3379_v4 = vpop.f32.mrf.mxu0 }
 0x1d2   :  { %v6964_v61 = vld [vmem:[%s10465_s1 + $0xf6c] sm:$0xf0] }
 0x1d3   :  { %v5568_v63 = vld [vmem:[%s10465_s1 + $0x910] sm:$0xf]  ;;  %v6369_v12 = vor.u32 %v6964_v61, %v6368_v60  ;;  %3680 = vmatpush.bf16.msrb.mxu2 %v6113_v5 }
 0x1d4   :  { %v6764_v6 = vld [vmem:[%s10465_s1 + $0x92c] sm:$0xf0] }
 0x1d5   :  { %v5824_v7 = vld [vmem:[%s10465_s1 + $0xb10] sm:$0xf]  ;;  %v5569_v18 = vor.u32 %v6764_v6, %v5568_v63  ;;  %3694 = vmatpush.bf16.msrb.mxu3 %v6369_v12 }
 0x1d6   :  { %v6828_v8 = vld [vmem:[%s10465_s1 + $0xb2c] sm:$0xf0] }
 0x1d7   :  { %v6080_v13 = vld [vmem:[%s10465_s1 + $0xd10] sm:$0xf]  ;;  %v5825_v22 = vor.u32 %v6828_v8, %v5824_v7  ;;  %3653 = vmatpush.bf16.msrb.mxu0 %v5569_v18  ;;  %v4252_v7 = vand.u32 2147483648, %v9030_v11 }
 0x1d8   :  { %v6892_v14 = vld [vmem:[%s10465_s1 + $0xd2c] sm:$0xf0] }
 0x1d9   :  { %v6336_v15 = vld [vmem:[%s10465_s1 + $0xf10] sm:$0xf]  ;;  %v6081_v23 = vor.u32 %v6892_v14, %v6080_v13  ;;  %3667 = vmatpush.bf16.msrb.mxu1 %v5825_v22  ;;  %v3393_v13 = vpop.f32.mrf.mxu1  ;;  %v4244_v14 = vmul.f32 %v9085_v45, %v4243_v62  ;;  %v4253_v11 = vor.u32 1.1754944e-38, %v4252_v7  ;;  %v3381_v56 = vpop.f32.mrf.mxu0  ;;  %v4866_v62 = vld [vmem:[%s10465_s1 + $0x3b0] sm:$0xf0] }
 0x1da   :  { %v6956_v16 = vld [vmem:[%s10465_s1 + $0xf2c] sm:$0xf0] }
 0x1db   :  { %v5536_v19 = vld [vmem:[%s10465_s1 + $0x8d0] sm:$0xf]  ;;  %v6337_v27 = vor.u32 %v6956_v16, %v6336_v15  ;;  %3681 = vmatpush.bf16.msrb.mxu2 %v6081_v23  ;;  %v4245_v22 = vadd.f32 %v9085_v45, %v4244_v14  ;;  %v6512_v14 = vld [vmem:[%s10465_s1 + $0x154] sm:$0xf] }
 0x1dc   :  { %v6756_v20 = vld [vmem:[%s10465_s1 + $0x8ec] sm:$0xf0] }
 0x1dd   :  { %v5792_v24 = vld [vmem:[%s10465_s1 + $0xad0] sm:$0xf]  ;;  %v5537_v35 = vor.u32 %v6756_v20, %v5536_v19  ;;  %3695 = vmatpush.bf16.msrb.mxu3 %v6337_v27 }
 0x1de   :  { %v6820_v25 = vld [vmem:[%s10465_s1 + $0xaec] sm:$0xf0] }
 0x1df   :  { %v6048_v28 = vld [vmem:[%s10465_s1 + $0xcd0] sm:$0xf]  ;;  %v5793_v38 = vor.u32 %v6820_v25, %v5792_v24  ;;  %3654 = vmatpush.bf16.msrb.mxu0 %v5537_v35  ;;  %v6592_v35 = vld [vmem:[%s10465_s1 + $0x3d4] sm:$0xf] }
 0x1e0   :  { %v6884_v29 = vld [vmem:[%s10465_s1 + $0xcec] sm:$0xf0] }
 0x1e1   :  { %v6304_v33 = vld [vmem:[%s10465_s1 + $0xed0] sm:$0xf]  ;;  %v6049_v40 = vor.u32 %v6884_v29, %v6048_v28  ;;  %3668 = vmatpush.bf16.msrb.mxu1 %v5793_v38  ;;  %v3380_v28 = vadd.f32 %v3379_v4, %v8281_v0  ;;  %v4898_v38 = vld [vmem:[%s10465_s1 + $0x3f0] sm:$0xf0]  ;;  %v3395_v4 = vpop.f32.mrf.mxu1 }
 0x1e2   :  { %v6948_v34 = vld [vmem:[%s10465_s1 + $0xeec] sm:$0xf0] }
 0x1e3   :  { %v5504_v36 = vld [vmem:[%s10465_s1 + $0x890] sm:$0xf]  ;;  %v6305_v51 = vor.u32 %v6948_v34, %v6304_v33  ;;  %3682 = vmatpush.bf16.msrb.mxu2 %v6049_v40  ;;  %v4249_v33 = vsel %vm4248_vm14, %v9085_v45, %v4245_v22  ;;  %v4642_v34 = vld [vmem:[%s10465_s1 + $0x1f0] sm:$0xf0] }
 0x1e4   :  { %v6748_v41 = vld [vmem:[%s10465_s1 + $0x8ac] sm:$0xf0]  ;;  %v6656_v40 = vld [vmem:[%s10465_s1 + $0x5d4] sm:$0xf]  ;;  %v4645_v54 = vor.u32 %v6528_v32, %v4642_v34 }
 0x1e5   :  { %v5760_v43 = vld [vmem:[%s10465_s1 + $0xa90] sm:$0xf]  ;;  %v5505_v57 = vor.u32 %v6748_v41, %v5504_v36  ;;  %3696 = vmatpush.bf16.msrb.mxu3 %v6305_v51  ;;  %v4254_v36 = vsel %vm4251_vm15, %v4253_v11, %v4249_v33  ;;  %v5154_v41 = vld [vmem:[%s10465_s1 + $0x5f0] sm:$0xf0] }
 0x1e6   :  { %v6812_v44 = vld [vmem:[%s10465_s1 + $0xaac] sm:$0xf0]  ;;  %4355 = vst [vmem:[%s10468_s3 + $0x48] sm:$0xff] %v4254_v36  ;;  %v5410_v51 = vld [vmem:[%s10465_s1 + $0x7f0] sm:$0xf0] }
 0x1e7   :  { %v6016_v52 = vld [vmem:[%s10465_s1 + $0xc90] sm:$0xf]  ;;  %v5761_v63 = vor.u32 %v6812_v44, %v5760_v43  ;;  %3655 = vmatpush.bf16.msrb.mxu0 %v5505_v57  ;;  %v3407_v43 = vpop.f32.mrf.mxu2  ;;  %v6520_v57 = vld [vmem:[%s10465_s1 + $0x194] sm:$0xf] }
 0x1e8   :  { %v6876_v31 = vld [vmem:[%s10465_s1 + $0xcac] sm:$0xf0]  ;;  %v5346_v22 = vld [vmem:[%s10465_s1 + $0x770] sm:$0xf0] }
 0x1e9   :  { %v6272_v39 = vld [vmem:[%s10465_s1 + $0xe90] sm:$0xf]  ;;  %v6017_v3 = vor.u32 %v6876_v31, %v6016_v52  ;;  %3669 = vmatpush.bf16.msrb.mxu1 %v5761_v63  ;;  %v3421_v52 = vpop.f32.mrf.mxu3  ;;  %v3394_v31 = vadd.f32 %v3393_v13, %v3380_v28  ;;  %v6648_v63 = vld [vmem:[%s10465_s1 + $0x594] sm:$0xf] }
 0x1ea   :  { %v6940_v55 = vld [vmem:[%s10465_s1 + $0xeac] sm:$0xf0]  ;;  %v6568_v32 = vld [vmem:[%s10465_s1 + $0x314] sm:$0xf] }
 0x1eb   :  { %v5472_v59 = vld [vmem:[%s10465_s1 + $0x850] sm:$0xf]  ;;  %v6273_v8 = vor.u32 %v6940_v55, %v6272_v39  ;;  %3683 = vmatpush.bf16.msrb.mxu2 %v6017_v3  ;;  %v4901_v39 = vor.u32 %v6592_v35, %v4898_v38  ;;  %v5157_v55 = vor.u32 %v6656_v40, %v5154_v41  ;;  %v5122_v3 = vld [vmem:[%s10465_s1 + $0x5b0] sm:$0xf0]  ;;  %v3408_v7 = vadd.f32 %v3407_v43, %v3394_v31 }
 0x1ec   :  { %v6740_v60 = vld [vmem:[%s10465_s1 + $0x86c] sm:$0xf0]  ;;  %v5125_v13 = vor.u32 %v6648_v63, %v5122_v3  ;;  %v4802_v34 = vld [vmem:[%s10465_s1 + $0x330] sm:$0xf0] }
 0x1ed   :  { %v5728_v61 = vld [vmem:[%s10465_s1 + $0xa50] sm:$0xf]  ;;  %v5473_v18 = vor.u32 %v6740_v60, %v5472_v59  ;;  %3697 = vmatpush.bf16.msrb.mxu3 %v6273_v8  ;;  %v4610_v59 = vld [vmem:[%s10465_s1 + $0x1b0] sm:$0xf0] }
 0x1ee   :  { %v6804_v5 = vld [vmem:[%s10465_s1 + $0xa6c] sm:$0xf0]  ;;  %v6584_v60 = vld [vmem:[%s10465_s1 + $0x394] sm:$0xf]  ;;  %v4613_v8 = vor.u32 %v6520_v57, %v4610_v59 }
 0x1ef   :  { %v5984_v6 = vld [vmem:[%s10465_s1 + $0xc50] sm:$0xf]  ;;  %v5729_v23 = vor.u32 %v6804_v5, %v5728_v61  ;;  %3656 = vmatpush.bf16.msrb.mxu0 %v5473_v18  ;;  %v5413_v61 = vor.u32 %v6720_v48, %v5410_v51  ;;  %v6712_v5 = vld [vmem:[%s10465_s1 + $0x794] sm:$0xf]  ;;  %v4805_v48 = vor.u32 %v6568_v32, %v4802_v34 }
 0x1f0   :  { %v6868_v9 = vld [vmem:[%s10465_s1 + $0xc6c] sm:$0xf0]  ;;  %v4834_v18 = vld [vmem:[%s10465_s1 + $0x370] sm:$0xf0] }
 0x1f1   :  { %v6240_v12 = vld [vmem:[%s10465_s1 + $0xe50] sm:$0xf]  ;;  %v5985_v24 = vor.u32 %v6868_v9, %v5984_v6  ;;  %3670 = vmatpush.bf16.msrb.mxu1 %v5729_v23  ;;  %v5378_v6 = vld [vmem:[%s10465_s1 + $0x7b0] sm:$0xf0]  ;;  %v3382_v9 = vadd.f32 %v3381_v56, %v8356_v49  ;;  %v3422_v23 = vadd.f32 %v3421_v52, %v3408_v7  ;;  %v3423_v28 = vpop.f32.mrf.mxu3 }
 0x1f2   :  { %v6932_v15 = vld [vmem:[%s10465_s1 + $0xe6c] sm:$0xf0]  ;;  %v6632_v35 = vld [vmem:[%s10465_s1 + $0x514] sm:$0xf] }
 0x1f3   :  { %v5440_v16 = vld [vmem:[%s10465_s1 + $0x810] sm:$0xf]  ;;  %v6241_v29 = vor.u32 %v6932_v15, %v6240_v12  ;;  %3684 = vmatpush.bf16.msrb.mxu2 %v5985_v24  ;;  %v4869_v12 = vor.u32 %v6584_v60, %v4866_v62  ;;  %v6576_v15 = vld [vmem:[%s10465_s1 + $0x354] sm:$0xf]  ;;  %v4581_v24 = vor.u32 %v6512_v14, %v4578_v2 }
 0x1f4   :  { %v6732_v19 = vld [vmem:[%s10465_s1 + $0x82c] sm:$0xf0]  ;;  %v5058_v36 = vld [vmem:[%s10465_s1 + $0x530] sm:$0xf0] }
 0x1f5   :  { %v5696_v20 = vld [vmem:[%s10465_s1 + $0xa10] sm:$0xf]  ;;  %v5441_v37 = vor.u32 %v6732_v19, %v5440_v16  ;;  %3698 = vmatpush.bf16.msrb.mxu3 %v6241_v29  ;;  %v5381_v16 = vor.u32 %v6712_v5, %v5378_v6  ;;  %v6640_v19 = vld [vmem:[%s10465_s1 + $0x554] sm:$0xf]  ;;  %v5061_v51 = vor.u32 %v6632_v35, %v5058_v36 }
 0x1f6   :  { %v6796_v21 = vld [vmem:[%s10465_s1 + $0xa2c] sm:$0xf0]  ;;  %v6504_v29 = vld [vmem:[%s10465_s1 + $0x114] sm:$0xf] }
 0x1f7   :  { %v5952_v25 = vld [vmem:[%s10465_s1 + $0xc10] sm:$0xf]  ;;  %v5697_v44 = vor.u32 %v6796_v21, %v5696_v20  ;;  %3657 = vmatpush.bf16.msrb.mxu0 %v5441_v37  ;;  %v5090_v20 = vld [vmem:[%s10465_s1 + $0x570] sm:$0xf0]  ;;  %v3435_v37 = vpop.f32.mrf.mxu0 }
 0x1f8   :  { %v6860_v26 = vld [vmem:[%s10465_s1 + $0xc2c] sm:$0xf0]  ;;  %v6704_v21 = vld [vmem:[%s10465_s1 + $0x754] sm:$0xf]  ;;  %v5093_v11 = vor.u32 %v6640_v19, %v5090_v20  ;;  %v3436_v41 = vadd.f32 %v3435_v37, %v3422_v23 }
 0x1f9   :  { %v6208_v27 = vld [vmem:[%s10465_s1 + $0xe10] sm:$0xf]  ;;  %v5953_v45 = vor.u32 %v6860_v26, %v5952_v25  ;;  %3671 = vmatpush.bf16.msrb.mxu1 %v5697_v44  ;;  %v3409_v25 = vpop.f32.mrf.mxu2  ;;  %v3396_v26 = vadd.f32 %v3395_v4, %v3382_v9  ;;  %v5349_v33 = vor.u32 %v6704_v21, %v5346_v22  ;;  %v6696_v38 = vld [vmem:[%s10465_s1 + $0x714] sm:$0xf]  ;;  %v3449_v44 = vpop.f32.mrf.mxu1 }
 0x1fa   :  { %v6924_v30 = vld [vmem:[%s10465_s1 + $0xe2c] sm:$0xf0]  ;;  %3658 = vmatmul.bf16.vlgmr.msrb.gmra.mxu0 %v7552_v42  ;;  %v5314_v40 = vld [vmem:[%s10465_s1 + $0x730] sm:$0xf0]  ;;  %v3450_v57 = vadd.f32 %v3449_v44, %v3436_v41 }
 0x1fb   :  { %v6209_v53 = vor.u32 %v6924_v30, %v6208_v27  ;;  %3685 = vmatpush.bf16.msrb.mxu2 %v5953_v45  ;;  %3706 = vmatpush.bf16.msra.mxu0 %v4645_v54  ;;  %v4837_v27 = vor.u32 %v6576_v15, %v4834_v18  ;;  %v4546_v30 = vld [vmem:[%s10465_s1 + $0x130] sm:$0xf0]  ;;  %v3410_v45 = vadd.f32 %v3409_v25, %v3396_v26  ;;  %v3477_v15 = vpop.f32.mrf.mxu3 }
 0x1fc   :  { %3672 = vmatmul.bf16.vlgmr.msrb.gmra.mxu1 %v7565_v47  ;;  %v4549_v43 = vor.u32 %v6504_v29, %v4546_v30  ;;  %v6496_v52 = vld [vmem:[%s10465_s1 + $0xd4] sm:$0xf]  ;;  %v5317_v54 = vor.u32 %v6696_v38, %v5314_v40 }
 0x1fd   :  { %3699 = vmatpush.bf16.msrb.mxu3 %v6209_v53  ;;  %3720 = vmatpush.bf16.msra.mxu1 %v4901_v39  ;;  %v4514_v31 = vld [vmem:[%s10465_s1 + $0xf0] sm:$0xf0]  ;;  %v3424_v63 = vadd.f32 %v3423_v28, %v3410_v45 }
 0x1fe   :  { %3686 = vmatmul.bf16.vlgmr.msrb.gmra.mxu2 %v7563_v46  ;;  %v6560_v53 = vld [vmem:[%s10465_s1 + $0x2d4] sm:$0xf] }
 0x1ff   :  { %3734 = vmatpush.bf16.msra.mxu2 %v5157_v55  ;;  %3707 = vmatpush.bf16.msra.mxu0 %v4613_v8  ;;  %v4770_v39 = vld [vmem:[%s10465_s1 + $0x2f0] sm:$0xf0]  ;;  %v3437_v2 = vpop.f32.mrf.mxu0 }
 0x200   :  { %3700 = vmatmul.bf16.vlgmr.msrb.gmra.mxu3 %v7573_v50  ;;  %v6624_v55 = vld [vmem:[%s10465_s1 + $0x4d4] sm:$0xf]  ;;  %v4773_v3 = vor.u32 %v6560_v53, %v4770_v39  ;;  %v3438_v21 = vadd.f32 %v3437_v2, %v3424_v63 }
 0x201   :  { %3748 = vmatpush.bf16.msra.mxu3 %v5413_v61  ;;  %3721 = vmatpush.bf16.msra.mxu1 %v4869_v12  ;;  %v5026_v56 = vld [vmem:[%s10465_s1 + $0x4f0] sm:$0xf0]  ;;  %v4517_v61 = vor.u32 %v6496_v52, %v4514_v31  ;;  %v3463_v9 = vpop.f32.mrf.mxu2 }
 0x202   :  { %v6688_v59 = vld [vmem:[%s10465_s1 + $0x6d4] sm:$0xf]  ;;  %v5029_v4 = vor.u32 %v6624_v55, %v5026_v56  ;;  %v3464_v14 = vadd.f32 %v3463_v9, %v3450_v57 }
 0x203   :  { %3735 = vmatpush.bf16.msra.mxu2 %v5125_v13  ;;  %3708 = vmatpush.bf16.msra.mxu0 %v4581_v24  ;;  %v5282_v60 = vld [vmem:[%s10465_s1 + $0x6f0] sm:$0xf0]  ;;  %v3479_v39 = vpop.f32.mrf.mxu3 }
 0x204   :  { %v6488_v62 = vld [vmem:[%s10465_s1 + $0x94] sm:$0xf]  ;;  %v5285_v8 = vor.u32 %v6688_v59, %v5282_v60  ;;  %v3478_v22 = vadd.f32 %v3477_v15, %v3464_v14 }
 0x205   :  { %3749 = vmatpush.bf16.msra.mxu3 %v5381_v16  ;;  %3722 = vmatpush.bf16.msra.mxu1 %v4837_v27  ;;  %v4482_v5 = vld [vmem:[%s10465_s1 + $0xb0] sm:$0xf0] }
 0x206   :  { %v6552_v6 = vld [vmem:[%s10465_s1 + $0x294] sm:$0xf]  ;;  %v4485_v19 = vor.u32 %v6488_v62, %v4482_v5  ;;  %v6448_v32 = vmul.f32 -1.442695, %v3478_v22 }
 0x207   :  { %3736 = vmatpush.bf16.msra.mxu2 %v5093_v11  ;;  %3709 = vmatpush.bf16.msra.mxu0 %v4549_v43  ;;  %v4738_v7 = vld [vmem:[%s10465_s1 + $0x2b0] sm:$0xf0]  ;;  %v3451_v11 = vpop.f32.mrf.mxu1 }
 0x208   :  { %v6616_v12 = vld [vmem:[%s10465_s1 + $0x494] sm:$0xf]  ;;  %v4741_v20 = vor.u32 %v6552_v6, %v4738_v7  ;;  %7000 = vpow2.f32 %v6448_v32  ;;  %v3452_v38 = vadd.f32 %v3451_v11, %v3438_v21 }
 0x209   :  { %3750 = vmatpush.bf16.msra.mxu3 %v5349_v33  ;;  %3723 = vmatpush.bf16.msra.mxu1 %v4805_v48  ;;  %v4994_v13 = vld [vmem:[%s10465_s1 + $0x4b0] sm:$0xf0] }
 0x20a   :  { %v6680_v16 = vld [vmem:[%s10465_s1 + $0x694] sm:$0xf]  ;;  %v4997_v23 = vor.u32 %v6616_v12, %v4994_v13 }
 0x20b   :  { %3737 = vmatpush.bf16.msra.mxu2 %v5061_v51  ;;  %v5250_v18 = vld [vmem:[%s10465_s1 + $0x6b0] sm:$0xf0]  ;;  %3710 = vmatpush.bf16.msra.mxu0 %v4517_v61  ;;  %v3465_v51 = vpop.f32.mrf.mxu2 }
 0x20c   :  { %v6480_v24 = vld [vmem:[%s10465_s1 + $0x54] sm:$0xf]  ;;  %v5253_v27 = vor.u32 %v6680_v16, %v5250_v18 }
 0x20d   :  { %3751 = vmatpush.bf16.msra.mxu3 %v5317_v54  ;;  %3724 = vmatpush.bf16.msra.mxu1 %v4773_v3  ;;  %v4450_v25 = vld [vmem:[%s10465_s1 + $0x70] sm:$0xf0]  ;;  %v3466_v54 = vadd.f32 %v3465_v51, %v3452_v38 }
 0x20e   :  { %v6544_v26 = vld [vmem:[%s10465_s1 + $0x254] sm:$0xf]  ;;  %v4453_v35 = vor.u32 %v6480_v24, %v4450_v25  ;;  %v7001_v13 = vpop.eup %7000 }
 0x20f   :  { %3738 = vmatpush.bf16.msra.mxu2 %v5029_v4  ;;  %v4706_v28 = vld [vmem:[%s10465_s1 + $0x270] sm:$0xf0]  ;;  %3711 = vmatpush.bf16.msra.mxu0 %v4485_v19  ;;  %v3480_v63 = vadd.f32 %v3479_v39, %v3466_v54  ;;  %v9401_v19 = vadd.f32 1.0, %v7001_v13 }
 0x210   :  { %v6608_v29 = vld [vmem:[%s10465_s1 + $0x454] sm:$0xf]  ;;  %v4709_v40 = vor.u32 %v6544_v26, %v4706_v28 }
 0x211   :  { %3752 = vmatpush.bf16.msra.mxu3 %v5285_v8  ;;  %v4962_v30 = vld [vmem:[%s10465_s1 + $0x470] sm:$0xf0]  ;;  %3725 = vmatpush.bf16.msra.mxu1 %v4741_v20  ;;  %v6456_v14 = vmul.f32 -1.442695, %v3480_v63  ;;  %vm4141_vm0 = vweird.f32 %v9401_v19 }
 0x212   :  { %v6672_v33 = vld [vmem:[%s10465_s1 + $0x654] sm:$0xf]  ;;  %v4965_v41 = vor.u32 %v6608_v29, %v4962_v30 }
 0x213   :  { %v5218_v34 = vld [vmem:[%s10465_s1 + $0x670] sm:$0xf0]  ;;  %3739 = vmatpush.bf16.msra.mxu2 %v4997_v23  ;;  %3712 = vmatpush.bf16.msra.mxu0 %v4453_v35  ;;  %7002 = vpow2.f32 %v6456_v14 }
 0x214   :  { %v6472_v36 = vld [vmem:[%s10465_s1 + $0x14] sm:$0xf]  ;;  %v5221_v48 = vor.u32 %v6672_v33, %v5218_v34  ;;  %7004 = vrcp.f32 %v9401_v19 }
 0x215   :  { %v4418_v37 = vld [vmem:[%s10465_s1 + $0x30] sm:$0xf0]  ;;  %3753 = vmatpush.bf16.msra.mxu3 %v5253_v27  ;;  %3726 = vmatpush.bf16.msra.mxu1 %v4709_v40 }
 0x216   :  { %v6536_v43 = vld [vmem:[%s10465_s1 + $0x214] sm:$0xf]  ;;  %v4421_v59 = vor.u32 %v6472_v36, %v4418_v37 }
 0x217   :  { %v4674_v44 = vld [vmem:[%s10465_s1 + $0x230] sm:$0xf0]  ;;  %3740 = vmatpush.bf16.msra.mxu2 %v4965_v41 }
 0x218   :  { %v6600_v45 = vld [vmem:[%s10465_s1 + $0x414] sm:$0xf]  ;;  %v4677_v3 = vor.u32 %v6536_v43, %v4674_v44  ;;  %3713 = vmatpush.bf16.msra.mxu0 %v4421_v59 }
 0x219   :  { %v4930_v52 = vld [vmem:[%s10465_s1 + $0x430] sm:$0xf0]  ;;  %3754 = vmatpush.bf16.msra.mxu3 %v5221_v48  ;;  %v7003_v40 = vpop.eup %7002 }
 0x21a   :  { %v6664_v31 = vld [vmem:[%s10465_s1 + $0x614] sm:$0xf]  ;;  %v4933_v4 = vor.u32 %v6600_v45, %v4930_v52  ;;  %3727 = vmatpush.bf16.msra.mxu1 %v4677_v3  ;;  %v7005_v51 = vpop.eup %7004  ;;  %v9456_v52 = vadd.f32 1.0, %v7003_v40 }
 0x21b   :  { %v5186_v53 = vld [vmem:[%s10465_s1 + $0x630] sm:$0xf0]  ;;  %3714 = vmatmul.bf16.vlgmr.msra.gmra.mxu0 %v7324_v58  ;;  %v4137_v39 = vmul.f32 %v7005_v51, %v9401_v19  ;;  %vm4142_vm1 = vweird.f32 %v7005_v51 }
 0x21c   :  { %v6784_v55 = vld [vmem:[%s10465_s1 + $0x9d4] sm:$0xf]  ;;  %v5189_v7 = vor.u32 %v6664_v31, %v5186_v53  ;;  %3741 = vmatpush.bf16.msra.mxu2 %v4933_v4  ;;  %7006 = vrcp.f32 %v9456_v52  ;;  %vm4143_vm2 = vmor %vm4141_vm0, %vm4142_vm1  ;;  %vm4261_vm5 = vweird.f32 %v9456_v52 }
 0x21d   :  { %v5666_v56 = vld [vmem:[%s10465_s1 + $0x9f0] sm:$0xf0]  ;;  %3728 = vmatmul.bf16.vlgmr.msra.gmra.mxu1 %v7360_v10 }
 0x21e   :  { %v6848_v57 = vld [vmem:[%s10465_s1 + $0xbd4] sm:$0xf]  ;;  %v5669_v8 = vor.u32 %v6784_v55, %v5666_v56  ;;  %3755 = vmatpush.bf16.msra.mxu3 %v5189_v7 }
 0x21f   :  { %v5922_v60 = vld [vmem:[%s10465_s1 + $0xbf0] sm:$0xf0]  ;;  %3742 = vmatmul.bf16.vlgmr.msra.gmra.mxu2 %v7338_v1 }
 0x220   :  { %v6912_v61 = vld [vmem:[%s10465_s1 + $0xdd4] sm:$0xf]  ;;  %v5925_v2 = vor.u32 %v6848_v57, %v5922_v60  ;;  %3762 = vmatpush.bf16.msrb.mxu0 %v5669_v8 }
 0x221   :  { %v6178_v62 = vld [vmem:[%s10465_s1 + $0xdf0] sm:$0xf0]  ;;  %3756 = vmatmul.bf16.vlgmr.msra.gmra.mxu3 %v7374_v17 }
 0x222   :  { %v6976_v5 = vld [vmem:[%s10465_s1 + $0xfd4] sm:$0xf]  ;;  %v6181_v15 = vor.u32 %v6912_v61, %v6178_v62  ;;  %3776 = vmatpush.bf16.msrb.mxu1 %v5925_v2  ;;  %v4138_v61 = vsub.f32 1.0, %v4137_v39  ;;  %v4265_v39 = vand.u32 2147483647, %v9456_v52 }
 0x223   :  { %v6434_v6 = vld [vmem:[%s10465_s1 + $0xff0] sm:$0xf0] }
 0x224   :  { %v6776_v9 = vld [vmem:[%s10465_s1 + $0x994] sm:$0xf]  ;;  %v6437_v20 = vor.u32 %v6976_v5, %v6434_v6  ;;  %3790 = vmatpush.bf16.msrb.mxu2 %v6181_v15  ;;  %v4147_v5 = vand.u32 2147483648, %v9401_v19  ;;  %vm4266_vm7 = vcmp.eq.f32.partialorder %v4265_v39, 8.507059e+37  ;;  %v6517_v39 = vld [vmem:[%s10465_s1 + $0x174] sm:$0xf0] }
 0x225   :  { %v5634_v12 = vld [vmem:[%s10465_s1 + $0x9b0] sm:$0xf0] }
 0x226   :  { %v6840_v16 = vld [vmem:[%s10465_s1 + $0xb94] sm:$0xf]  ;;  %v5637_v25 = vor.u32 %v6776_v9, %v5634_v12  ;;  %3804 = vmatpush.bf16.msrb.mxu3 %v6437_v20  ;;  %v4139_v9 = vmul.f32 %v7005_v51, %v4138_v61  ;;  %v4145_v12 = vand.u32 2147483647, %v9401_v19 }
 0x227   :  { %v5890_v18 = vld [vmem:[%s10465_s1 + $0xbb0] sm:$0xf0] }
 0x228   :  { %v6904_v21 = vld [vmem:[%s10465_s1 + $0xd94] sm:$0xf]  ;;  %v5893_v26 = vor.u32 %v6840_v16, %v5890_v18  ;;  %3763 = vmatpush.bf16.msrb.mxu0 %v5637_v25  ;;  %v4140_v16 = vadd.f32 %v7005_v51, %v4139_v9  ;;  %v4148_v25 = vor.u32 1.1754944e-38, %v4147_v5  ;;  %vm4146_vm3 = vcmp.eq.f32.partialorder %v4145_v12, 8.507059e+37  ;;  %v4648_v12 = vld [vmem:[%s10465_s1 + $0x1d8] sm:$0xf] }
 0x229   :  { %v6146_v22 = vld [vmem:[%s10465_s1 + $0xdb0] sm:$0xf0] }
 0x22a   :  { %v6968_v23 = vld [vmem:[%s10465_s1 + $0xf94] sm:$0xf]  ;;  %v6149_v27 = vor.u32 %v6904_v21, %v6146_v22  ;;  %3777 = vmatpush.bf16.msrb.mxu1 %v5893_v26 }
 0x22b   :  { %v6402_v24 = vld [vmem:[%s10465_s1 + $0xfb0] sm:$0xf0] }
 0x22c   :  { %v6768_v11 = vld [vmem:[%s10465_s1 + $0x954] sm:$0xf]  ;;  %v6405_v30 = vor.u32 %v6968_v23, %v6402_v24  ;;  %3791 = vmatpush.bf16.msrb.mxu2 %v6149_v27  ;;  %v9511_v24 = vpop.eup %7006 }
 0x22d   :  { %v5602_v28 = vld [vmem:[%s10465_s1 + $0x970] sm:$0xf0]  ;;  %vm4262_vm4 = vweird.f32 %v9511_v24 }
 0x22e   :  { %v6832_v29 = vld [vmem:[%s10465_s1 + $0xb54] sm:$0xf]  ;;  %v5605_v37 = vor.u32 %v6768_v11, %v5602_v28  ;;  %3805 = vmatpush.bf16.msrb.mxu3 %v6405_v30  ;;  %v4144_v28 = vsel %vm4143_vm2, %v7005_v51, %v4140_v16  ;;  %vm4263_vm6 = vmor %vm4261_vm5, %vm4262_vm4 }
 0x22f   :  { %v5858_v32 = vld [vmem:[%s10465_s1 + $0xb70] sm:$0xf0] }
 0x230   :  { %v6896_v33 = vld [vmem:[%s10465_s1 + $0xd54] sm:$0xf]  ;;  %v5861_v41 = vor.u32 %v6832_v29, %v5858_v32  ;;  %3764 = vmatpush.bf16.msrb.mxu0 %v5605_v37  ;;  %v4257_v29 = vmul.f32 %v9511_v24, %v9456_v52  ;;  %v4149_v32 = vsel %vm4146_vm3, %v4148_v25, %v4144_v28  ;;  %v5416_v25 = vld [vmem:[%s10465_s1 + $0x7d8] sm:$0xf] }
 0x231   :  { %v6114_v34 = vld [vmem:[%s10465_s1 + $0xd70] sm:$0xf0]  ;;  %4348 = vst [vmem:[%s10468_s3 + $0x10] sm:$0xff] %v4149_v32 }
 0x232   :  { %v6960_v35 = vld [vmem:[%s10465_s1 + $0xf54] sm:$0xf]  ;;  %v6117_v43 = vor.u32 %v6896_v33, %v6114_v34  ;;  %3778 = vmatpush.bf16.msrb.mxu1 %v5861_v41  ;;  %v4258_v37 = vsub.f32 1.0, %v4257_v29  ;;  %v3491_v41 = vpop.f32.mrf.mxu0 }
 0x233   :  { %v6370_v36 = vld [vmem:[%s10465_s1 + $0xf70] sm:$0xf0] }
 0x234   :  { %v6760_v38 = vld [vmem:[%s10465_s1 + $0x914] sm:$0xf]  ;;  %v6373_v31 = vor.u32 %v6960_v35, %v6370_v36  ;;  %3792 = vmatpush.bf16.msrb.mxu2 %v6117_v43 }
 0x235   :  { %v5570_v44 = vld [vmem:[%s10465_s1 + $0x930] sm:$0xf0] }
 0x236   :  { %v6824_v45 = vld [vmem:[%s10465_s1 + $0xb14] sm:$0xf]  ;;  %v5573_v57 = vor.u32 %v6760_v38, %v5570_v44  ;;  %3806 = vmatpush.bf16.msrb.mxu3 %v6373_v31 }
 0x237   :  { %v5826_v48 = vld [vmem:[%s10465_s1 + $0xb30] sm:$0xf0] }
 0x238   :  { %v6888_v53 = vld [vmem:[%s10465_s1 + $0xd14] sm:$0xf]  ;;  %v5829_v62 = vor.u32 %v6824_v45, %v5826_v48  ;;  %3765 = vmatpush.bf16.msrb.mxu0 %v5573_v57  ;;  %v4267_v45 = vand.u32 2147483648, %v9456_v52 }
 0x239   :  { %v6082_v54 = vld [vmem:[%s10465_s1 + $0xd30] sm:$0xf0] }
 0x23a   :  { %v6952_v55 = vld [vmem:[%s10465_s1 + $0xf14] sm:$0xf]  ;;  %v6085_v63 = vor.u32 %v6888_v53, %v6082_v54  ;;  %3779 = vmatpush.bf16.msrb.mxu1 %v5829_v62  ;;  %v3505_v53 = vpop.f32.mrf.mxu1  ;;  %v4259_v54 = vmul.f32 %v9511_v24, %v4258_v37  ;;  %v4268_v52 = vor.u32 1.1754944e-38, %v4267_v45  ;;  %v3493_v32 = vpop.f32.mrf.mxu0  ;;  %v6589_v37 = vld [vmem:[%s10465_s1 + $0x3b4] sm:$0xf0] }
 0x23b   :  { %v6338_v56 = vld [vmem:[%s10465_s1 + $0xf30] sm:$0xf0] }
 0x23c   :  { %v6752_v59 = vld [vmem:[%s10465_s1 + $0x8d4] sm:$0xf]  ;;  %v6341_v6 = vor.u32 %v6952_v55, %v6338_v56  ;;  %3793 = vmatpush.bf16.msrb.mxu2 %v6085_v63  ;;  %v4260_v62 = vadd.f32 %v9511_v24, %v4259_v54  ;;  %v4584_v54 = vld [vmem:[%s10465_s1 + $0x158] sm:$0xf] }
 0x23d   :  { %v5538_v60 = vld [vmem:[%s10465_s1 + $0x8f0] sm:$0xf0] }
 0x23e   :  { %v6816_v3 = vld [vmem:[%s10465_s1 + $0xad4] sm:$0xf]  ;;  %v5541_v2 = vor.u32 %v6752_v59, %v5538_v60  ;;  %3807 = vmatpush.bf16.msrb.mxu3 %v6341_v6 }
 0x23f   :  { %v5794_v4 = vld [vmem:[%s10465_s1 + $0xaf0] sm:$0xf0] }
 0x240   :  { %v6880_v7 = vld [vmem:[%s10465_s1 + $0xcd4] sm:$0xf]  ;;  %v5797_v18 = vor.u32 %v6816_v3, %v5794_v4  ;;  %3766 = vmatpush.bf16.msrb.mxu0 %v5541_v2  ;;  %v4904_v2 = vld [vmem:[%s10465_s1 + $0x3d8] sm:$0xf] }
 0x241   :  { %v6050_v8 = vld [vmem:[%s10465_s1 + $0xcf0] sm:$0xf0] }
 0x242   :  { %v6944_v13 = vld [vmem:[%s10465_s1 + $0xed4] sm:$0xf]  ;;  %v6053_v20 = vor.u32 %v6880_v7, %v6050_v8  ;;  %3780 = vmatpush.bf16.msrb.mxu1 %v5797_v18  ;;  %v3492_v7 = vadd.f32 %v3491_v41, %v8281_v0  ;;  %v6597_v18 = vld [vmem:[%s10465_s1 + $0x3f4] sm:$0xf0]  ;;  %v3507_v41 = vpop.f32.mrf.mxu1 }
 0x243   :  { %v6306_v14 = vld [vmem:[%s10465_s1 + $0xef0] sm:$0xf0] }
 0x244   :  { %v6744_v15 = vld [vmem:[%s10465_s1 + $0x894] sm:$0xf]  ;;  %v6309_v26 = vor.u32 %v6944_v13, %v6306_v14  ;;  %3794 = vmatpush.bf16.msrb.mxu2 %v6053_v20  ;;  %v4264_v13 = vsel %vm4263_vm6, %v9511_v24, %v4260_v62  ;;  %v6533_v14 = vld [vmem:[%s10465_s1 + $0x1f4] sm:$0xf0] }
 0x245   :  { %v5506_v21 = vld [vmem:[%s10465_s1 + $0x8b0] sm:$0xf0]  ;;  %v5160_v20 = vld [vmem:[%s10465_s1 + $0x5d8] sm:$0xf]  ;;  %v4649_v29 = vor.u32 %v6533_v14, %v4648_v12 }
 0x246   :  { %v6808_v22 = vld [vmem:[%s10465_s1 + $0xa94] sm:$0xf]  ;;  %v5509_v33 = vor.u32 %v6744_v15, %v5506_v21  ;;  %3808 = vmatpush.bf16.msrb.mxu3 %v6309_v26  ;;  %v4269_v15 = vsel %vm4266_vm7, %v4268_v52, %v4264_v13  ;;  %v6661_v21 = vld [vmem:[%s10465_s1 + $0x5f4] sm:$0xf0] }
 0x247   :  { %v5762_v23 = vld [vmem:[%s10465_s1 + $0xab0] sm:$0xf0]  ;;  %4356 = vst [vmem:[%s10468_s3 + $0x50] sm:$0xff] %v4269_v15  ;;  %v6725_v26 = vld [vmem:[%s10465_s1 + $0x7f4] sm:$0xf0] }
 0x248   :  { %v6872_v27 = vld [vmem:[%s10465_s1 + $0xc94] sm:$0xf]  ;;  %v5765_v38 = vor.u32 %v6808_v22, %v5762_v23  ;;  %3767 = vmatpush.bf16.msrb.mxu0 %v5509_v33  ;;  %v3519_v22 = vpop.f32.mrf.mxu2  ;;  %v4616_v33 = vld [vmem:[%s10465_s1 + $0x198] sm:$0xf] }
 0x249   :  { %v6018_v11 = vld [vmem:[%s10465_s1 + $0xcb0] sm:$0xf0]  ;;  %v6709_v62 = vld [vmem:[%s10465_s1 + $0x774] sm:$0xf0] }
 0x24a   :  { %v6936_v19 = vld [vmem:[%s10465_s1 + $0xe94] sm:$0xf]  ;;  %v6021_v40 = vor.u32 %v6872_v27, %v6018_v11  ;;  %3781 = vmatpush.bf16.msrb.mxu1 %v5765_v38  ;;  %v3533_v27 = vpop.f32.mrf.mxu3  ;;  %v3506_v11 = vadd.f32 %v3505_v53, %v3492_v7  ;;  %v5128_v38 = vld [vmem:[%s10465_s1 + $0x598] sm:$0xf] }
 0x24b   :  { %v6274_v30 = vld [vmem:[%s10465_s1 + $0xeb0] sm:$0xf0]  ;;  %v4808_v12 = vld [vmem:[%s10465_s1 + $0x318] sm:$0xf] }
 0x24c   :  { %v6736_v34 = vld [vmem:[%s10465_s1 + $0x854] sm:$0xf]  ;;  %v6277_v48 = vor.u32 %v6936_v19, %v6274_v30  ;;  %3795 = vmatpush.bf16.msrb.mxu2 %v6021_v40  ;;  %v4905_v19 = vor.u32 %v6597_v18, %v4904_v2  ;;  %v5161_v30 = vor.u32 %v6661_v21, %v5160_v20  ;;  %v6653_v40 = vld [vmem:[%s10465_s1 + $0x5b4] sm:$0xf0]  ;;  %v3520_v45 = vadd.f32 %v3519_v22, %v3506_v11 }
 0x24d   :  { %v5474_v35 = vld [vmem:[%s10465_s1 + $0x870] sm:$0xf0]  ;;  %v5129_v53 = vor.u32 %v6653_v40, %v5128_v38  ;;  %v6573_v14 = vld [vmem:[%s10465_s1 + $0x334] sm:$0xf0] }
 0x24e   :  { %v6800_v36 = vld [vmem:[%s10465_s1 + $0xa54] sm:$0xf]  ;;  %v5477_v57 = vor.u32 %v6736_v34, %v5474_v35  ;;  %3809 = vmatpush.bf16.msrb.mxu3 %v6277_v48  ;;  %v6525_v34 = vld [vmem:[%s10465_s1 + $0x1b4] sm:$0xf0] }
 0x24f   :  { %v5730_v43 = vld [vmem:[%s10465_s1 + $0xa70] sm:$0xf0]  ;;  %v4872_v35 = vld [vmem:[%s10465_s1 + $0x398] sm:$0xf]  ;;  %v4617_v48 = vor.u32 %v6525_v34, %v4616_v33 }
 0x250   :  { %v6864_v44 = vld [vmem:[%s10465_s1 + $0xc54] sm:$0xf]  ;;  %v5733_v63 = vor.u32 %v6800_v36, %v5730_v43  ;;  %3768 = vmatpush.bf16.msrb.mxu0 %v5477_v57  ;;  %v5417_v36 = vor.u32 %v6725_v26, %v5416_v25  ;;  %v5384_v43 = vld [vmem:[%s10465_s1 + $0x798] sm:$0xf]  ;;  %v4809_v25 = vor.u32 %v6573_v14, %v4808_v12 }
 0x251   :  { %v5986_v51 = vld [vmem:[%s10465_s1 + $0xc70] sm:$0xf0]  ;;  %v6581_v57 = vld [vmem:[%s10465_s1 + $0x374] sm:$0xf0] }
 0x252   :  { %v6928_v31 = vld [vmem:[%s10465_s1 + $0xe54] sm:$0xf]  ;;  %v5989_v3 = vor.u32 %v6864_v44, %v5986_v51  ;;  %3782 = vmatpush.bf16.msrb.mxu1 %v5733_v63  ;;  %v6717_v44 = vld [vmem:[%s10465_s1 + $0x7b4] sm:$0xf0]  ;;  %v3494_v51 = vadd.f32 %v3493_v32, %v8356_v49  ;;  %v3534_v63 = vadd.f32 %v3533_v27, %v3520_v45  ;;  %v3535_v7 = vpop.f32.mrf.mxu3 }
 0x253   :  { %v6242_v55 = vld [vmem:[%s10465_s1 + $0xe70] sm:$0xf0]  ;;  %v5064_v2 = vld [vmem:[%s10465_s1 + $0x518] sm:$0xf] }
 0x254   :  { %v6728_v56 = vld [vmem:[%s10465_s1 + $0x814] sm:$0xf]  ;;  %v6245_v8 = vor.u32 %v6928_v31, %v6242_v55  ;;  %3796 = vmatpush.bf16.msrb.mxu2 %v5989_v3  ;;  %v4873_v31 = vor.u32 %v6589_v37, %v4872_v35  ;;  %v4840_v55 = vld [vmem:[%s10465_s1 + $0x358] sm:$0xf]  ;;  %v4585_v3 = vor.u32 %v6517_v39, %v4584_v54 }
 0x255   :  { %v5442_v59 = vld [vmem:[%s10465_s1 + $0x830] sm:$0xf0]  ;;  %v6637_v15 = vld [vmem:[%s10465_s1 + $0x534] sm:$0xf0] }
 0x256   :  { %v6792_v60 = vld [vmem:[%s10465_s1 + $0xa14] sm:$0xf]  ;;  %v5445_v16 = vor.u32 %v6728_v56, %v5442_v59  ;;  %3810 = vmatpush.bf16.msrb.mxu3 %v6245_v8  ;;  %v5385_v56 = vor.u32 %v6717_v44, %v5384_v43  ;;  %v5096_v59 = vld [vmem:[%s10465_s1 + $0x558] sm:$0xf]  ;;  %v5065_v26 = vor.u32 %v6637_v15, %v5064_v2 }
 0x257   :  { %v5698_v61 = vld [vmem:[%s10465_s1 + $0xa30] sm:$0xf0]  ;;  %v4552_v8 = vld [vmem:[%s10465_s1 + $0x118] sm:$0xf] }
 0x258   :  { %v6856_v4 = vld [vmem:[%s10465_s1 + $0xc14] sm:$0xf]  ;;  %v5701_v23 = vor.u32 %v6792_v60, %v5698_v61  ;;  %3769 = vmatpush.bf16.msrb.mxu0 %v5445_v16  ;;  %v6645_v60 = vld [vmem:[%s10465_s1 + $0x574] sm:$0xf0]  ;;  %v3547_v16 = vpop.f32.mrf.mxu0 }
 0x259   :  { %v5954_v5 = vld [vmem:[%s10465_s1 + $0xc30] sm:$0xf0]  ;;  %v5352_v61 = vld [vmem:[%s10465_s1 + $0x758] sm:$0xf]  ;;  %v5097_v52 = vor.u32 %v6645_v60, %v5096_v59  ;;  %v3548_v21 = vadd.f32 %v3547_v16, %v3534_v63 }
 0x25a   :  { %v6920_v6 = vld [vmem:[%s10465_s1 + $0xe14] sm:$0xf]  ;;  %v5957_v24 = vor.u32 %v6856_v4, %v5954_v5  ;;  %3783 = vmatpush.bf16.msrb.mxu1 %v5701_v23  ;;  %v3521_v4 = vpop.f32.mrf.mxu2  ;;  %v3508_v5 = vadd.f32 %v3507_v41, %v3494_v51  ;;  %v5353_v13 = vor.u32 %v6709_v62, %v5352_v61  ;;  %v5320_v18 = vld [vmem:[%s10465_s1 + $0x718] sm:$0xf]  ;;  %v3561_v23 = vpop.f32.mrf.mxu1 }
 0x25b   :  { %v6210_v9 = vld [vmem:[%s10465_s1 + $0xe30] sm:$0xf0]  ;;  %3770 = vmatmul.bf16.vlgmr.msrb.gmra.mxu0 %v7552_v42  ;;  %v6701_v20 = vld [vmem:[%s10465_s1 + $0x734] sm:$0xf0]  ;;  %v3562_v33 = vadd.f32 %v3561_v23, %v3548_v21 }
 0x25c   :  { %v6213_v28 = vor.u32 %v6920_v6, %v6210_v9  ;;  %3797 = vmatpush.bf16.msrb.mxu2 %v5957_v24  ;;  %3818 = vmatpush.bf16.msra.mxu0 %v4649_v29  ;;  %v4841_v6 = vor.u32 %v6581_v57, %v4840_v55  ;;  %v6509_v9 = vld [vmem:[%s10465_s1 + $0x134] sm:$0xf0]  ;;  %v3522_v24 = vadd.f32 %v3521_v4, %v3508_v5  ;;  %v3589_v55 = vpop.f32.mrf.mxu3 }
 0x25d   :  { %3784 = vmatmul.bf16.vlgmr.msrb.gmra.mxu1 %v7565_v47  ;;  %v4553_v22 = vor.u32 %v6509_v9, %v4552_v8  ;;  %v4520_v27 = vld [vmem:[%s10465_s1 + $0xd8] sm:$0xf]  ;;  %v5321_v29 = vor.u32 %v6701_v20, %v5320_v18 }
 0x25e   :  { %3811 = vmatpush.bf16.msrb.mxu3 %v6213_v28  ;;  %3832 = vmatpush.bf16.msra.mxu1 %v4905_v19  ;;  %v6501_v11 = vld [vmem:[%s10465_s1 + $0xf4] sm:$0xf0]  ;;  %v3536_v38 = vadd.f32 %v3535_v7, %v3522_v24 }
 0x25f   :  { %3798 = vmatmul.bf16.vlgmr.msrb.gmra.mxu2 %v7563_v46  ;;  %v4776_v28 = vld [vmem:[%s10465_s1 + $0x2d8] sm:$0xf] }
 0x260   :  { %3846 = vmatpush.bf16.msra.mxu2 %v5161_v30  ;;  %3819 = vmatpush.bf16.msra.mxu0 %v4617_v48  ;;  %v6565_v19 = vld [vmem:[%s10465_s1 + $0x2f4] sm:$0xf0]  ;;  %v3549_v39 = vpop.f32.mrf.mxu0 }
 0x261   :  { %3812 = vmatmul.bf16.vlgmr.msrb.gmra.mxu3 %v7573_v50  ;;  %v5032_v30 = vld [vmem:[%s10465_s1 + $0x4d8] sm:$0xf]  ;;  %v4777_v40 = vor.u32 %v6565_v19, %v4776_v28  ;;  %v3550_v61 = vadd.f32 %v3549_v39, %v3536_v38 }
 0x262   :  { %3860 = vmatpush.bf16.msra.mxu3 %v5417_v36  ;;  %3833 = vmatpush.bf16.msra.mxu1 %v4873_v31  ;;  %v6629_v32 = vld [vmem:[%s10465_s1 + $0x4f4] sm:$0xf0]  ;;  %v4521_v36 = vor.u32 %v6501_v11, %v4520_v27  ;;  %v3575_v51 = vpop.f32.mrf.mxu2 }
 0x263   :  { %v5288_v34 = vld [vmem:[%s10465_s1 + $0x6d8] sm:$0xf]  ;;  %v5033_v41 = vor.u32 %v6629_v32, %v5032_v30  ;;  %v3576_v54 = vadd.f32 %v3575_v51, %v3562_v33 }
 0x264   :  { %3847 = vmatpush.bf16.msra.mxu2 %v5129_v53  ;;  %3820 = vmatpush.bf16.msra.mxu0 %v4585_v3  ;;  %v6693_v35 = vld [vmem:[%s10465_s1 + $0x6f4] sm:$0xf0]  ;;  %v3591_v19 = vpop.f32.mrf.mxu3 }
 0x265   :  { %v4488_v37 = vld [vmem:[%s10465_s1 + $0x98] sm:$0xf]  ;;  %v5289_v48 = vor.u32 %v6693_v35, %v5288_v34  ;;  %v3590_v62 = vadd.f32 %v3589_v55, %v3576_v54 }
 0x266   :  { %3861 = vmatpush.bf16.msra.mxu3 %v5385_v56  ;;  %3834 = vmatpush.bf16.msra.mxu1 %v4841_v6  ;;  %v6493_v43 = vld [vmem:[%s10465_s1 + $0xb4] sm:$0xf0] }
 0x267   :  { %v4744_v44 = vld [vmem:[%s10465_s1 + $0x298] sm:$0xf]  ;;  %v4489_v59 = vor.u32 %v6493_v43, %v4488_v37  ;;  %v6449_v12 = vmul.f32 -1.442695, %v3590_v62 }
 0x268   :  { %3848 = vmatpush.bf16.msra.mxu2 %v5097_v52  ;;  %3821 = vmatpush.bf16.msra.mxu0 %v4553_v22  ;;  %v6557_v45 = vld [vmem:[%s10465_s1 + $0x2b4] sm:$0xf0]  ;;  %v3563_v52 = vpop.f32.mrf.mxu1 }
 0x269   :  { %v5000_v31 = vld [vmem:[%s10465_s1 + $0x498] sm:$0xf]  ;;  %v4745_v60 = vor.u32 %v6557_v45, %v4744_v44  ;;  %7008 = vpow2.f32 %v6449_v12  ;;  %v3564_v18 = vadd.f32 %v3563_v52, %v3550_v61 }
 0x26a   :  { %3862 = vmatpush.bf16.msra.mxu3 %v5353_v13  ;;  %3835 = vmatpush.bf16.msra.mxu1 %v4809_v25  ;;  %v6621_v53 = vld [vmem:[%s10465_s1 + $0x4b4] sm:$0xf0] }
 0x26b   :  { %v5256_v56 = vld [vmem:[%s10465_s1 + $0x698] sm:$0xf]  ;;  %v5001_v63 = vor.u32 %v6621_v53, %v5000_v31 }
 0x26c   :  { %3849 = vmatpush.bf16.msra.mxu2 %v5065_v26  ;;  %v6685_v57 = vld [vmem:[%s10465_s1 + $0x6b4] sm:$0xf0]  ;;  %3822 = vmatpush.bf16.msra.mxu0 %v4521_v36  ;;  %v3577_v26 = vpop.f32.mrf.mxu2 }
 0x26d   :  { %v4456_v3 = vld [vmem:[%s10465_s1 + $0x58] sm:$0xf]  ;;  %v5257_v6 = vor.u32 %v6685_v57, %v5256_v56 }
 0x26e   :  { %3863 = vmatpush.bf16.msra.mxu3 %v5321_v29  ;;  %3836 = vmatpush.bf16.msra.mxu1 %v4777_v40  ;;  %v6485_v4 = vld [vmem:[%s10465_s1 + $0x74] sm:$0xf0]  ;;  %v3578_v29 = vadd.f32 %v3577_v26, %v3564_v18 }
 0x26f   :  { %v4712_v5 = vld [vmem:[%s10465_s1 + $0x258] sm:$0xf]  ;;  %v4457_v2 = vor.u32 %v6485_v4, %v4456_v3  ;;  %v7009_v53 = vpop.eup %7008 }
 0x270   :  { %3850 = vmatpush.bf16.msra.mxu2 %v5033_v41  ;;  %v6549_v7 = vld [vmem:[%s10465_s1 + $0x274] sm:$0xf0]  ;;  %3823 = vmatpush.bf16.msra.mxu0 %v4489_v59  ;;  %v3592_v38 = vadd.f32 %v3591_v19, %v3578_v29  ;;  %v9827_v59 = vadd.f32 1.0, %v7009_v53 }
 0x271   :  { %v4968_v8 = vld [vmem:[%s10465_s1 + $0x458] sm:$0xf]  ;;  %v4713_v20 = vor.u32 %v6549_v7, %v4712_v5 }
 0x272   :  { %3864 = vmatpush.bf16.msra.mxu3 %v5289_v48  ;;  %v6613_v9 = vld [vmem:[%s10465_s1 + $0x474] sm:$0xf0]  ;;  %3837 = vmatpush.bf16.msra.mxu1 %v4745_v60  ;;  %v6457_v54 = vmul.f32 -1.442695, %v3592_v38  ;;  %vm4156_vm8 = vweird.f32 %v9827_v59 }
 0x273   :  { %v5224_v13 = vld [vmem:[%s10465_s1 + $0x658] sm:$0xf]  ;;  %v4969_v21 = vor.u32 %v6613_v9, %v4968_v8 }
 0x274   :  { %v6677_v14 = vld [vmem:[%s10465_s1 + $0x674] sm:$0xf0]  ;;  %3851 = vmatpush.bf16.msra.mxu2 %v5001_v63  ;;  %3824 = vmatpush.bf16.msra.mxu0 %v4457_v2  ;;  %7010 = vpow2.f32 %v6457_v54 }
 0x275   :  { %v4424_v15 = vld [vmem:[%s10465_s1 + $0x18] sm:$0xf]  ;;  %v5225_v25 = vor.u32 %v6677_v14, %v5224_v13  ;;  %7012 = vrcp.f32 %v9827_v59 }
 0x276   :  { %v6477_v16 = vld [vmem:[%s10465_s1 + $0x34] sm:$0xf0]  ;;  %3865 = vmatpush.bf16.msra.mxu3 %v5257_v6  ;;  %3838 = vmatpush.bf16.msra.mxu1 %v4713_v20 }
 0x277   :  { %v4680_v22 = vld [vmem:[%s10465_s1 + $0x218] sm:$0xf]  ;;  %v4425_v34 = vor.u32 %v6477_v16, %v4424_v15 }
 0x278   :  { %v6541_v23 = vld [vmem:[%s10465_s1 + $0x234] sm:$0xf0]  ;;  %3852 = vmatpush.bf16.msra.mxu2 %v4969_v21 }
 0x279   :  { %v4936_v24 = vld [vmem:[%s10465_s1 + $0x418] sm:$0xf]  ;;  %v4681_v40 = vor.u32 %v6541_v23, %v4680_v22  ;;  %3825 = vmatpush.bf16.msra.mxu0 %v4425_v34 }
 0x27a   :  { %v6605_v27 = vld [vmem:[%s10465_s1 + $0x434] sm:$0xf0]  ;;  %3866 = vmatpush.bf16.msra.mxu3 %v5225_v25  ;;  %v7011_v20 = vpop.eup %7010 }
 0x27b   :  { %v5192_v11 = vld [vmem:[%s10465_s1 + $0x618] sm:$0xf]  ;;  %v4937_v41 = vor.u32 %v6605_v27, %v4936_v24  ;;  %3839 = vmatpush.bf16.msra.mxu1 %v4681_v40  ;;  %v7013_v26 = vpop.eup %7012  ;;  %v9882_v27 = vadd.f32 1.0, %v7011_v20 }
 0x27c   :  { %v6669_v28 = vld [vmem:[%s10465_s1 + $0x634] sm:$0xf0]  ;;  %3826 = vmatmul.bf16.vlgmr.msra.gmra.mxu0 %v7324_v58  ;;  %v4152_v19 = vmul.f32 %v7013_v26, %v9827_v59  ;;  %vm4157_vm9 = vweird.f32 %v7013_v26 }
 0x27d   :  { %v5672_v30 = vld [vmem:[%s10465_s1 + $0x9d8] sm:$0xf]  ;;  %v5193_v45 = vor.u32 %v6669_v28, %v5192_v11  ;;  %3853 = vmatpush.bf16.msra.mxu2 %v4937_v41  ;;  %7014 = vrcp.f32 %v9882_v27  ;;  %vm4158_vm10 = vmor %vm4156_vm8, %vm4157_vm9  ;;  %vm4276_vm13 = vweird.f32 %v9882_v27 }
 0x27e   :  { %v6789_v32 = vld [vmem:[%s10465_s1 + $0x9f4] sm:$0xf0]  ;;  %3840 = vmatmul.bf16.vlgmr.msra.gmra.mxu1 %v7360_v10 }
 0x27f   :  { %v5928_v33 = vld [vmem:[%s10465_s1 + $0xbd8] sm:$0xf]  ;;  %v5673_v48 = vor.u32 %v6789_v32, %v5672_v30  ;;  %3867 = vmatpush.bf16.msra.mxu3 %v5193_v45 }
 0x280   :  { %v6853_v35 = vld [vmem:[%s10465_s1 + $0xbf4] sm:$0xf0]  ;;  %3854 = vmatmul.bf16.vlgmr.msra.gmra.mxu2 %v7338_v1 }
 0x281   :  { %v6184_v36 = vld [vmem:[%s10465_s1 + $0xdd8] sm:$0xf]  ;;  %v5929_v39 = vor.u32 %v6853_v35, %v5928_v33  ;;  %3874 = vmatpush.bf16.msrb.mxu0 %v5673_v48 }
 0x282   :  { %v6917_v37 = vld [vmem:[%s10465_s1 + $0xdf4] sm:$0xf0]  ;;  %3868 = vmatmul.bf16.vlgmr.msra.gmra.mxu3 %v7374_v17 }
 0x283   :  { %v6440_v43 = vld [vmem:[%s10465_s1 + $0xfd8] sm:$0xf]  ;;  %v6185_v55 = vor.u32 %v6917_v37, %v6184_v36  ;;  %3888 = vmatpush.bf16.msrb.mxu1 %v5929_v39  ;;  %v4153_v36 = vsub.f32 1.0, %v4152_v19  ;;  %v4280_v19 = vand.u32 2147483647, %v9882_v27 }
 0x284   :  { %v6981_v44 = vld [vmem:[%s10465_s1 + $0xff4] sm:$0xf0] }
 0x285   :  { %v5640_v51 = vld [vmem:[%s10465_s1 + $0x998] sm:$0xf]  ;;  %v6441_v60 = vor.u32 %v6981_v44, %v6440_v43  ;;  %3902 = vmatpush.bf16.msrb.mxu2 %v6185_v55  ;;  %v4162_v43 = vand.u32 2147483648, %v9827_v59  ;;  %vm4281_vm15 = vcmp.eq.f32.partialorder %v4280_v19, 8.507059e+37  ;;  %v4586_v19 = vld [vmem:[%s10465_s1 + $0x178] sm:$0xf0] }
 0x286   :  { %v6781_v31 = vld [vmem:[%s10465_s1 + $0x9b4] sm:$0xf0] }
 0x287   :  { %v5896_v56 = vld [vmem:[%s10465_s1 + $0xb98] sm:$0xf]  ;;  %v5641_v4 = vor.u32 %v6781_v31, %v5640_v51  ;;  %3916 = vmatpush.bf16.msrb.mxu3 %v6441_v60  ;;  %v4154_v51 = vmul.f32 %v7013_v26, %v4153_v36  ;;  %v4160_v31 = vand.u32 2147483647, %v9827_v59 }
 0x288   :  { %v6845_v57 = vld [vmem:[%s10465_s1 + $0xbb4] sm:$0xf0] }
 0x289   :  { %v6152_v61 = vld [vmem:[%s10465_s1 + $0xd98] sm:$0xf]  ;;  %v5897_v5 = vor.u32 %v6845_v57, %v5896_v56  ;;  %3875 = vmatpush.bf16.msrb.mxu0 %v5641_v4  ;;  %v4155_v56 = vadd.f32 %v7013_v26, %v4154_v51  ;;  %v4163_v4 = vor.u32 1.1754944e-38, %v4162_v43  ;;  %vm4161_vm11 = vcmp.eq.f32.partialorder %v4160_v31, 8.507059e+37  ;;  %v6529_v31 = vld [vmem:[%s10465_s1 + $0x1dc] sm:$0xf] }
 0x28a   :  { %v6909_v62 = vld [vmem:[%s10465_s1 + $0xdb4] sm:$0xf0] }
 0x28b   :  { %v6408_v63 = vld [vmem:[%s10465_s1 + $0xf98] sm:$0xf]  ;;  %v6153_v6 = vor.u32 %v6909_v62, %v6152_v61  ;;  %3889 = vmatpush.bf16.msrb.mxu1 %v5897_v5 }
 0x28c   :  { %v6973_v3 = vld [vmem:[%s10465_s1 + $0xfb4] sm:$0xf0] }
 0x28d   :  { %v5608_v52 = vld [vmem:[%s10465_s1 + $0x958] sm:$0xf]  ;;  %v6409_v9 = vor.u32 %v6973_v3, %v6408_v63  ;;  %3903 = vmatpush.bf16.msrb.mxu2 %v6153_v6  ;;  %v9937_v3 = vpop.eup %7014 }
 0x28e   :  { %v6773_v7 = vld [vmem:[%s10465_s1 + $0x974] sm:$0xf0]  ;;  %vm4277_vm12 = vweird.f32 %v9937_v3 }
 0x28f   :  { %v5864_v8 = vld [vmem:[%s10465_s1 + $0xb58] sm:$0xf]  ;;  %v5609_v16 = vor.u32 %v6773_v7, %v5608_v52  ;;  %3917 = vmatpush.bf16.msrb.mxu3 %v6409_v9  ;;  %v4159_v7 = vsel %vm4158_vm10, %v7013_v26, %v4155_v56  ;;  %vm4278_vm14 = vmor %vm4276_vm13, %vm4277_vm12 }
 0x290   :  { %v6837_v12 = vld [vmem:[%s10465_s1 + $0xb74] sm:$0xf0] }
 0x291   :  { %v6120_v13 = vld [vmem:[%s10465_s1 + $0xd58] sm:$0xf]  ;;  %v5865_v21 = vor.u32 %v6837_v12, %v5864_v8  ;;  %3876 = vmatpush.bf16.msrb.mxu0 %v5609_v16  ;;  %v4272_v8 = vmul.f32 %v9937_v3, %v9882_v27  ;;  %v4164_v12 = vsel %vm4161_vm11, %v4163_v4, %v4159_v7  ;;  %v6721_v4 = vld [vmem:[%s10465_s1 + $0x7dc] sm:$0xf] }
 0x292   :  { %v6901_v14 = vld [vmem:[%s10465_s1 + $0xd74] sm:$0xf0]  ;;  %4349 = vst [vmem:[%s10468_s3 + $0x18] sm:$0xff] %v4164_v12 }
 0x293   :  { %v6376_v2 = vld [vmem:[%s10465_s1 + $0xf58] sm:$0xf]  ;;  %v6121_v22 = vor.u32 %v6901_v14, %v6120_v13  ;;  %3890 = vmatpush.bf16.msrb.mxu1 %v5865_v21  ;;  %v4273_v16 = vsub.f32 1.0, %v4272_v8  ;;  %v3603_v21 = vpop.f32.mrf.mxu0 }
 0x294   :  { %v6965_v15 = vld [vmem:[%s10465_s1 + $0xf74] sm:$0xf0] }
 0x295   :  { %v5576_v18 = vld [vmem:[%s10465_s1 + $0x918] sm:$0xf]  ;;  %v6377_v11 = vor.u32 %v6965_v15, %v6376_v2  ;;  %3904 = vmatpush.bf16.msrb.mxu2 %v6121_v22 }
 0x296   :  { %v6765_v23 = vld [vmem:[%s10465_s1 + $0x934] sm:$0xf0] }
 0x297   :  { %v5832_v24 = vld [vmem:[%s10465_s1 + $0xb18] sm:$0xf]  ;;  %v5577_v33 = vor.u32 %v6765_v23, %v5576_v18  ;;  %3918 = vmatpush.bf16.msrb.mxu3 %v6377_v11 }
 0x298   :  { %v6829_v25 = vld [vmem:[%s10465_s1 + $0xb34] sm:$0xf0] }
 0x299   :  { %v6088_v28 = vld [vmem:[%s10465_s1 + $0xd18] sm:$0xf]  ;;  %v5833_v37 = vor.u32 %v6829_v25, %v5832_v24  ;;  %3877 = vmatpush.bf16.msrb.mxu0 %v5577_v33  ;;  %v4282_v24 = vand.u32 2147483648, %v9882_v27 }
 0x29a   :  { %v6893_v29 = vld [vmem:[%s10465_s1 + $0xd34] sm:$0xf0] }
 0x29b   :  { %v6344_v30 = vld [vmem:[%s10465_s1 + $0xf18] sm:$0xf]  ;;  %v6089_v38 = vor.u32 %v6893_v29, %v6088_v28  ;;  %3891 = vmatpush.bf16.msrb.mxu1 %v5833_v37  ;;  %v3617_v28 = vpop.f32.mrf.mxu1  ;;  %v4274_v29 = vmul.f32 %v9937_v3, %v4273_v16  ;;  %v4283_v27 = vor.u32 1.1754944e-38, %v4282_v24  ;;  %v3605_v12 = vpop.f32.mrf.mxu0  ;;  %v4874_v16 = vld [vmem:[%s10465_s1 + $0x3b8] sm:$0xf0] }
 0x29c   :  { %v6957_v32 = vld [vmem:[%s10465_s1 + $0xf34] sm:$0xf0] }
 0x29d   :  { %v5544_v34 = vld [vmem:[%s10465_s1 + $0x8d8] sm:$0xf]  ;;  %v6345_v44 = vor.u32 %v6957_v32, %v6344_v30  ;;  %3905 = vmatpush.bf16.msrb.mxu2 %v6089_v38  ;;  %v4275_v37 = vadd.f32 %v9937_v3, %v4274_v29  ;;  %v6513_v29 = vld [vmem:[%s10465_s1 + $0x15c] sm:$0xf] }
 0x29e   :  { %v6757_v35 = vld [vmem:[%s10465_s1 + $0x8f4] sm:$0xf0] }
 0x29f   :  { %v5800_v40 = vld [vmem:[%s10465_s1 + $0xad8] sm:$0xf]  ;;  %v5545_v39 = vor.u32 %v6757_v35, %v5544_v34  ;;  %3919 = vmatpush.bf16.msrb.mxu3 %v6345_v44 }
 0x2a0   :  { %v6821_v41 = vld [vmem:[%s10465_s1 + $0xaf4] sm:$0xf0] }
 0x2a1   :  { %v6056_v45 = vld [vmem:[%s10465_s1 + $0xcd8] sm:$0xf]  ;;  %v5801_v57 = vor.u32 %v6821_v41, %v5800_v40  ;;  %3878 = vmatpush.bf16.msrb.mxu0 %v5545_v39  ;;  %v6593_v39 = vld [vmem:[%s10465_s1 + $0x3dc] sm:$0xf] }
 0x2a2   :  { %v6885_v48 = vld [vmem:[%s10465_s1 + $0xcf4] sm:$0xf0] }
 0x2a3   :  { %v6312_v53 = vld [vmem:[%s10465_s1 + $0xed8] sm:$0xf]  ;;  %v6057_v60 = vor.u32 %v6885_v48, %v6056_v45  ;;  %3892 = vmatpush.bf16.msrb.mxu1 %v5801_v57  ;;  %v3604_v45 = vadd.f32 %v3603_v21, %v8281_v0  ;;  %v4906_v57 = vld [vmem:[%s10465_s1 + $0x3f8] sm:$0xf0]  ;;  %v3619_v21 = vpop.f32.mrf.mxu1 }
 0x2a4   :  { %v6949_v54 = vld [vmem:[%s10465_s1 + $0xef4] sm:$0xf0] }
 0x2a5   :  { %v5512_v55 = vld [vmem:[%s10465_s1 + $0x898] sm:$0xf]  ;;  %v6313_v5 = vor.u32 %v6949_v54, %v6312_v53  ;;  %3906 = vmatpush.bf16.msrb.mxu2 %v6057_v60  ;;  %v4279_v53 = vsel %vm4278_vm14, %v9937_v3, %v4275_v37  ;;  %v4650_v54 = vld [vmem:[%s10465_s1 + $0x1f8] sm:$0xf0] }
 0x2a6   :  { %v6749_v61 = vld [vmem:[%s10465_s1 + $0x8b4] sm:$0xf0]  ;;  %v6657_v60 = vld [vmem:[%s10465_s1 + $0x5dc] sm:$0xf]  ;;  %v4653_v8 = vor.u32 %v6529_v31, %v4650_v54 }
 0x2a7   :  { %v5768_v62 = vld [vmem:[%s10465_s1 + $0xa98] sm:$0xf]  ;;  %v5513_v13 = vor.u32 %v6749_v61, %v5512_v55  ;;  %3920 = vmatpush.bf16.msrb.mxu3 %v6313_v5  ;;  %v4284_v55 = vsel %vm4281_vm15, %v4283_v27, %v4279_v53  ;;  %v5162_v61 = vld [vmem:[%s10465_s1 + $0x5f8] sm:$0xf0] }
 0x2a8   :  { %v6813_v63 = vld [vmem:[%s10465_s1 + $0xab4] sm:$0xf0]  ;;  %4357 = vst [vmem:[%s10468_s3 + $0x58] sm:$0xff] %v4284_v55  ;;  %v5418_v5 = vld [vmem:[%s10465_s1 + $0x7f8] sm:$0xf0] }
 0x2a9   :  { %v6024_v6 = vld [vmem:[%s10465_s1 + $0xc98] sm:$0xf]  ;;  %v5769_v18 = vor.u32 %v6813_v63, %v5768_v62  ;;  %3879 = vmatpush.bf16.msrb.mxu0 %v5513_v13  ;;  %v3631_v62 = vpop.f32.mrf.mxu2  ;;  %v6521_v13 = vld [vmem:[%s10465_s1 + $0x19c] sm:$0xf] }
 0x2aa   :  { %v6877_v52 = vld [vmem:[%s10465_s1 + $0xcb4] sm:$0xf0]  ;;  %v5354_v37 = vld [vmem:[%s10465_s1 + $0x778] sm:$0xf0] }
 0x2ab   :  { %v6280_v59 = vld [vmem:[%s10465_s1 + $0xe98] sm:$0xf]  ;;  %v6025_v20 = vor.u32 %v6877_v52, %v6024_v6  ;;  %3893 = vmatpush.bf16.msrb.mxu1 %v5769_v18  ;;  %v3645_v6 = vpop.f32.mrf.mxu3  ;;  %v3618_v52 = vadd.f32 %v3617_v28, %v3604_v45  ;;  %v6649_v18 = vld [vmem:[%s10465_s1 + $0x59c] sm:$0xf] }
 0x2ac   :  { %v6941_v9 = vld [vmem:[%s10465_s1 + $0xeb4] sm:$0xf0]  ;;  %v6569_v31 = vld [vmem:[%s10465_s1 + $0x31c] sm:$0xf] }
 0x2ad   :  { %v5480_v14 = vld [vmem:[%s10465_s1 + $0x858] sm:$0xf]  ;;  %v6281_v25 = vor.u32 %v6941_v9, %v6280_v59  ;;  %3907 = vmatpush.bf16.msrb.mxu2 %v6025_v20  ;;  %v4909_v59 = vor.u32 %v6593_v39, %v4906_v57  ;;  %v5165_v9 = vor.u32 %v6657_v60, %v5162_v61  ;;  %v5130_v20 = vld [vmem:[%s10465_s1 + $0x5b8] sm:$0xf0]  ;;  %v3632_v24 = vadd.f32 %v3631_v62, %v3618_v52 }
 0x2ae   :  { %v6741_v2 = vld [vmem:[%s10465_s1 + $0x874] sm:$0xf0]  ;;  %v5133_v28 = vor.u32 %v6649_v18, %v5130_v20  ;;  %v4810_v54 = vld [vmem:[%s10465_s1 + $0x338] sm:$0xf0] }
 0x2af   :  { %v5736_v15 = vld [vmem:[%s10465_s1 + $0xa58] sm:$0xf]  ;;  %v5481_v33 = vor.u32 %v6741_v2, %v5480_v14  ;;  %3921 = vmatpush.bf16.msrb.mxu3 %v6281_v25  ;;  %v4618_v14 = vld [vmem:[%s10465_s1 + $0x1b8] sm:$0xf0] }
 0x2b0   :  { %v6805_v22 = vld [vmem:[%s10465_s1 + $0xa74] sm:$0xf0]  ;;  %v6585_v2 = vld [vmem:[%s10465_s1 + $0x39c] sm:$0xf]  ;;  %v4621_v25 = vor.u32 %v6521_v13, %v4618_v14 }
 0x2b1   :  { %v5992_v23 = vld [vmem:[%s10465_s1 + $0xc58] sm:$0xf]  ;;  %v5737_v38 = vor.u32 %v6805_v22, %v5736_v15  ;;  %3880 = vmatpush.bf16.msrb.mxu0 %v5481_v33  ;;  %v5421_v15 = vor.u32 %v6721_v4, %v5418_v5  ;;  %v6713_v22 = vld [vmem:[%s10465_s1 + $0x79c] sm:$0xf]  ;;  %v4813_v4 = vor.u32 %v6569_v31, %v4810_v54 }
 0x2b2   :  { %v6869_v26 = vld [vmem:[%s10465_s1 + $0xc74] sm:$0xf0]  ;;  %v4842_v33 = vld [vmem:[%s10465_s1 + $0x378] sm:$0xf0] }
 0x2b3   :  { %v6248_v11 = vld [vmem:[%s10465_s1 + $0xe58] sm:$0xf]  ;;  %v5993_v40 = vor.u32 %v6869_v26, %v5992_v23  ;;  %3894 = vmatpush.bf16.msrb.mxu1 %v5737_v38  ;;  %v5386_v23 = vld [vmem:[%s10465_s1 + $0x7b8] sm:$0xf0]  ;;  %v3606_v26 = vadd.f32 %v3605_v12, %v8356_v49  ;;  %v3646_v38 = vadd.f32 %v3645_v6, %v3632_v24  ;;  %v3647_v45 = vpop.f32.mrf.mxu3 }
 0x2b4   :  { %v6933_v30 = vld [vmem:[%s10465_s1 + $0xe74] sm:$0xf0]  ;;  %v6633_v39 = vld [vmem:[%s10465_s1 + $0x51c] sm:$0xf] }
 0x2b5   :  { %v5448_v32 = vld [vmem:[%s10465_s1 + $0x818] sm:$0xf]  ;;  %v6249_v48 = vor.u32 %v6933_v30, %v6248_v11  ;;  %3908 = vmatpush.bf16.msrb.mxu2 %v5993_v40  ;;  %v4877_v11 = vor.u32 %v6585_v2, %v4874_v16  ;;  %v6577_v30 = vld [vmem:[%s10465_s1 + $0x35c] sm:$0xf]  ;;  %v4589_v40 = vor.u32 %v6513_v29, %v4586_v19 }
 0x2b6   :  { %v6733_v34 = vld [vmem:[%s10465_s1 + $0x834] sm:$0xf0]  ;;  %v5066_v55 = vld [vmem:[%s10465_s1 + $0x538] sm:$0xf0] }
 0x2b7   :  { %v5704_v35 = vld [vmem:[%s10465_s1 + $0xa18] sm:$0xf]  ;;  %v5449_v56 = vor.u32 %v6733_v34, %v5448_v32  ;;  %3922 = vmatpush.bf16.msrb.mxu3 %v6249_v48  ;;  %v5389_v32 = vor.u32 %v6713_v22, %v5386_v23  ;;  %v6641_v34 = vld [vmem:[%s10465_s1 + $0x55c] sm:$0xf]  ;;  %v5069_v5 = vor.u32 %v6633_v39, %v5066_v55 }
 0x2b8   :  { %v6797_v36 = vld [vmem:[%s10465_s1 + $0xa34] sm:$0xf0]  ;;  %v6505_v48 = vld [vmem:[%s10465_s1 + $0x11c] sm:$0xf] }
 0x2b9   :  { %v5960_v41 = vld [vmem:[%s10465_s1 + $0xc18] sm:$0xf]  ;;  %v5705_v63 = vor.u32 %v6797_v36, %v5704_v35  ;;  %3881 = vmatpush.bf16.msrb.mxu0 %v5449_v56  ;;  %v5098_v35 = vld [vmem:[%s10465_s1 + $0x578] sm:$0xf0]  ;;  %v3659_v56 = vpop.f32.mrf.mxu0 }
 0x2ba   :  { %v6861_v43 = vld [vmem:[%s10465_s1 + $0xc34] sm:$0xf0]  ;;  %v6705_v36 = vld [vmem:[%s10465_s1 + $0x75c] sm:$0xf]  ;;  %v5101_v27 = vor.u32 %v6641_v34, %v5098_v35  ;;  %v3660_v61 = vadd.f32 %v3659_v56, %v3646_v38 }
 0x2bb   :  { %v6216_v44 = vld [vmem:[%s10465_s1 + $0xe18] sm:$0xf]  ;;  %v5961_v3 = vor.u32 %v6861_v43, %v5960_v41  ;;  %3895 = vmatpush.bf16.msrb.mxu1 %v5705_v63  ;;  %v3633_v41 = vpop.f32.mrf.mxu2  ;;  %v3620_v43 = vadd.f32 %v3619_v21, %v3606_v26  ;;  %v5357_v53 = vor.u32 %v6705_v36, %v5354_v37  ;;  %v6697_v57 = vld [vmem:[%s10465_s1 + $0x71c] sm:$0xf]  ;;  %v3673_v63 = vpop.f32.mrf.mxu1 }
 0x2bc   :  { %v6925_v51 = vld [vmem:[%s10465_s1 + $0xe34] sm:$0xf0]  ;;  %3882 = vmatmul.bf16.vlgmr.msrb.gmra.mxu0 %v7552_v42  ;;  %v5322_v60 = vld [vmem:[%s10465_s1 + $0x738] sm:$0xf0]  ;;  %v3674_v13 = vadd.f32 %v3673_v63, %v3660_v61 }
 0x2bd   :  { %v6217_v7 = vor.u32 %v6925_v51, %v6216_v44  ;;  %3909 = vmatpush.bf16.msrb.mxu2 %v5961_v3  ;;  %3930 = vmatpush.bf16.msra.mxu0 %v4653_v8  ;;  %v4845_v44 = vor.u32 %v6577_v30, %v4842_v33  ;;  %v4554_v51 = vld [vmem:[%s10465_s1 + $0x138] sm:$0xf0]  ;;  %v3634_v3 = vadd.f32 %v3633_v41, %v3620_v43  ;;  %v3701_v30 = vpop.f32.mrf.mxu3 }
 0x2be   :  { %3896 = vmatmul.bf16.vlgmr.msrb.gmra.mxu1 %v7565_v47  ;;  %v4557_v62 = vor.u32 %v6505_v48, %v4554_v51  ;;  %v6497_v6 = vld [vmem:[%s10465_s1 + $0xdc] sm:$0xf]  ;;  %v5325_v8 = vor.u32 %v6697_v57, %v5322_v60 }
 0x2bf   :  { %3923 = vmatpush.bf16.msrb.mxu3 %v6217_v7  ;;  %3944 = vmatpush.bf16.msra.mxu1 %v4909_v59  ;;  %v4522_v52 = vld [vmem:[%s10465_s1 + $0xf8] sm:$0xf0]  ;;  %v3648_v18 = vadd.f32 %v3647_v45, %v3634_v3 }
 0x2c0   :  { %3910 = vmatmul.bf16.vlgmr.msrb.gmra.mxu2 %v7563_v46  ;;  %v6561_v7 = vld [vmem:[%s10465_s1 + $0x2dc] sm:$0xf] }
 0x2c1   :  { %3958 = vmatpush.bf16.msra.mxu2 %v5165_v9  ;;  %3931 = vmatpush.bf16.msra.mxu0 %v4621_v25  ;;  %v4778_v59 = vld [vmem:[%s10465_s1 + $0x2f8] sm:$0xf0]  ;;  %v3661_v19 = vpop.f32.mrf.mxu0 }
 0x2c2   :  { %3924 = vmatmul.bf16.vlgmr.msrb.gmra.mxu3 %v7573_v50  ;;  %v6625_v9 = vld [vmem:[%s10465_s1 + $0x4dc] sm:$0xf]  ;;  %v4781_v20 = vor.u32 %v6561_v7, %v4778_v59  ;;  %v3662_v36 = vadd.f32 %v3661_v19, %v3648_v18 }
 0x2c3   :  { %3972 = vmatpush.bf16.msra.mxu3 %v5421_v15  ;;  %3945 = vmatpush.bf16.msra.mxu1 %v4877_v11  ;;  %v5034_v12 = vld [vmem:[%s10465_s1 + $0x4f8] sm:$0xf0]  ;;  %v4525_v15 = vor.u32 %v6497_v6, %v4522_v52  ;;  %v3687_v26 = vpop.f32.mrf.mxu2 }
 0x2c4   :  { %v6689_v14 = vld [vmem:[%s10465_s1 + $0x6dc] sm:$0xf]  ;;  %v5037_v21 = vor.u32 %v6625_v9, %v5034_v12  ;;  %v3688_v29 = vadd.f32 %v3687_v26, %v3674_v13 }
 0x2c5   :  { %3959 = vmatpush.bf16.msra.mxu2 %v5133_v28  ;;  %3932 = vmatpush.bf16.msra.mxu0 %v4589_v40  ;;  %v5290_v2 = vld [vmem:[%s10465_s1 + $0x6f8] sm:$0xf0]  ;;  %v3703_v59 = vpop.f32.mrf.mxu3 }
 0x2c6   :  { %v6489_v16 = vld [vmem:[%s10465_s1 + $0x9c] sm:$0xf]  ;;  %v5293_v25 = vor.u32 %v6689_v14, %v5290_v2  ;;  %v3702_v37 = vadd.f32 %v3701_v30, %v3688_v29 }
 0x2c7   :  { %3973 = vmatpush.bf16.msra.mxu3 %v5389_v32  ;;  %3946 = vmatpush.bf16.msra.mxu1 %v4845_v44  ;;  %v4490_v22 = vld [vmem:[%s10465_s1 + $0xb8] sm:$0xf0] }
 0x2c8   :  { %v6553_v23 = vld [vmem:[%s10465_s1 + $0x29c] sm:$0xf]  ;;  %v4493_v34 = vor.u32 %v6489_v16, %v4490_v22  ;;  %v6450_v31 = vmul.f32 -1.442695, %v3702_v37 }
 0x2c9   :  { %3960 = vmatpush.bf16.msra.mxu2 %v5101_v27  ;;  %3933 = vmatpush.bf16.msra.mxu0 %v4557_v62  ;;  %v4746_v24 = vld [vmem:[%s10465_s1 + $0x2b8] sm:$0xf0]  ;;  %v3675_v27 = vpop.f32.mrf.mxu1 }
 0x2ca   :  { %v6617_v11 = vld [vmem:[%s10465_s1 + $0x49c] sm:$0xf]  ;;  %v4749_v35 = vor.u32 %v6553_v23, %v4746_v24  ;;  %7016 = vpow2.f32 %v6450_v31  ;;  %v3676_v57 = vadd.f32 %v3675_v27, %v3662_v36 }
 0x2cb   :  { %3974 = vmatpush.bf16.msra.mxu3 %v5357_v53  ;;  %3947 = vmatpush.bf16.msra.mxu1 %v4813_v4  ;;  %v5002_v28 = vld [vmem:[%s10465_s1 + $0x4b8] sm:$0xf0] }
 0x2cc   :  { %v6681_v32 = vld [vmem:[%s10465_s1 + $0x69c] sm:$0xf]  ;;  %v5005_v38 = vor.u32 %v6617_v11, %v5002_v28 }
 0x2cd   :  { %3961 = vmatpush.bf16.msra.mxu2 %v5069_v5  ;;  %v5258_v33 = vld [vmem:[%s10465_s1 + $0x6b8] sm:$0xf0]  ;;  %3934 = vmatpush.bf16.msra.mxu0 %v4525_v15  ;;  %v3689_v5 = vpop.f32.mrf.mxu2 }
 0x2ce   :  { %v6481_v40 = vld [vmem:[%s10465_s1 + $0x5c] sm:$0xf]  ;;  %v5261_v44 = vor.u32 %v6681_v32, %v5258_v33 }
 0x2cf   :  { %3975 = vmatpush.bf16.msra.mxu3 %v5325_v8  ;;  %3948 = vmatpush.bf16.msra.mxu1 %v4781_v20  ;;  %v4458_v41 = vld [vmem:[%s10465_s1 + $0x78] sm:$0xf0]  ;;  %v3690_v8 = vadd.f32 %v3689_v5, %v3676_v57 }
 0x2d0   :  { %v6545_v43 = vld [vmem:[%s10465_s1 + $0x25c] sm:$0xf]  ;;  %v4461_v39 = vor.u32 %v6481_v40, %v4458_v41  ;;  %v7017_v28 = vpop.eup %7016 }
 0x2d1   :  { %3962 = vmatpush.bf16.msra.mxu2 %v5037_v21  ;;  %v4714_v45 = vld [vmem:[%s10465_s1 + $0x278] sm:$0xf0]  ;;  %3935 = vmatpush.bf16.msra.mxu0 %v4493_v34  ;;  %v3704_v18 = vadd.f32 %v3703_v59, %v3690_v8  ;;  %v10253_v34 = vadd.f32 1.0, %v7017_v28 }
 0x2d2   :  { %v6609_v48 = vld [vmem:[%s10465_s1 + $0x45c] sm:$0xf]  ;;  %v4717_v60 = vor.u32 %v6545_v43, %v4714_v45 }
 0x2d3   :  { %3976 = vmatpush.bf16.msra.mxu3 %v5293_v25  ;;  %v4970_v51 = vld [vmem:[%s10465_s1 + $0x478] sm:$0xf0]  ;;  %3949 = vmatpush.bf16.msra.mxu1 %v4749_v35  ;;  %v6458_v29 = vmul.f32 -1.442695, %v3704_v18  ;;  %vm4171_vm0 = vweird.f32 %v10253_v34 }
 0x2d4   :  { %v6673_v53 = vld [vmem:[%s10465_s1 + $0x65c] sm:$0xf]  ;;  %v4973_v61 = vor.u32 %v6609_v48, %v4970_v51 }
 0x2d5   :  { %v5226_v54 = vld [vmem:[%s10465_s1 + $0x678] sm:$0xf0]  ;;  %3963 = vmatpush.bf16.msra.mxu2 %v5005_v38  ;;  %3936 = vmatpush.bf16.msra.mxu0 %v4461_v39  ;;  %7018 = vpow2.f32 %v6458_v29 }
 0x2d6   :  { %v6473_v55 = vld [vmem:[%s10465_s1 + $0x1c] sm:$0xf]  ;;  %v5229_v4 = vor.u32 %v6673_v53, %v5226_v54  ;;  %7020 = vrcp.f32 %v10253_v34 }
 0x2d7   :  { %v4426_v56 = vld [vmem:[%s10465_s1 + $0x38] sm:$0xf0]  ;;  %3977 = vmatpush.bf16.msra.mxu3 %v5261_v44  ;;  %3950 = vmatpush.bf16.msra.mxu1 %v4717_v60 }
 0x2d8   :  { %v6537_v62 = vld [vmem:[%s10465_s1 + $0x21c] sm:$0xf]  ;;  %v4429_v14 = vor.u32 %v6473_v55, %v4426_v56 }
 0x2d9   :  { %v4682_v63 = vld [vmem:[%s10465_s1 + $0x238] sm:$0xf0]  ;;  %3964 = vmatpush.bf16.msra.mxu2 %v4973_v61 }
 0x2da   :  { %v6601_v3 = vld [vmem:[%s10465_s1 + $0x41c] sm:$0xf]  ;;  %v4685_v20 = vor.u32 %v6537_v62, %v4682_v63  ;;  %3937 = vmatpush.bf16.msra.mxu0 %v4429_v14 }
 0x2db   :  { %v4938_v6 = vld [vmem:[%s10465_s1 + $0x438] sm:$0xf0]  ;;  %3978 = vmatpush.bf16.msra.mxu3 %v5229_v4  ;;  %v7019_v57 = vpop.eup %7018 }
 0x2dc   :  { %v6665_v52 = vld [vmem:[%s10465_s1 + $0x61c] sm:$0xf]  ;;  %v4941_v21 = vor.u32 %v6601_v3, %v4938_v6  ;;  %3951 = vmatpush.bf16.msra.mxu1 %v4685_v20  ;;  %v10308_v63 = vadd.f32 1.0, %v7019_v57 }
 0x2dd   :  { %v5194_v7 = vld [vmem:[%s10465_s1 + $0x638] sm:$0xf0]  ;;  %3938 = vmatmul.bf16.vlgmr.msra.gmra.mxu0 %v7324_v58 }
 0x2de   :  { %v6785_v9 = vld [vmem:[%s10465_s1 + $0x9dc] sm:$0xf]  ;;  %v5197_v24 = vor.u32 %v6665_v52, %v5194_v7  ;;  %3965 = vmatpush.bf16.msra.mxu2 %v4941_v21  ;;  %7022 = vrcp.f32 %v10308_v63  ;;  %vm4291_vm5 = vweird.f32 %v10308_v63 }
 0x2df   :  { %v5674_v12 = vld [vmem:[%s10465_s1 + $0x9f8] sm:$0xf0]  ;;  %3952 = vmatmul.bf16.vlgmr.msra.gmra.mxu1 %v7360_v10 }
 0x2e0   :  { %v6849_v13 = vld [vmem:[%s10465_s1 + $0xbdc] sm:$0xf]  ;;  %v5677_v25 = vor.u32 %v6785_v9, %v5674_v12  ;;  %3979 = vmatpush.bf16.msra.mxu3 %v5197_v24 }
 0x2e1   :  { %v5930_v2 = vld [vmem:[%s10465_s1 + $0xbf8] sm:$0xf0]  ;;  %3966 = vmatmul.bf16.vlgmr.msra.gmra.mxu2 %v7338_v1 }
 0x2e2   :  { %v6913_v15 = vld [vmem:[%s10465_s1 + $0xddc] sm:$0xf]  ;;  %v5933_v19 = vor.u32 %v6849_v13, %v5930_v2  ;;  %3986 = vmatpush.bf16.msrb.mxu0 %v5677_v25 }
 0x2e3   :  { %v6186_v16 = vld [vmem:[%s10465_s1 + $0xdf8] sm:$0xf0]  ;;  %3980 = vmatmul.bf16.vlgmr.msra.gmra.mxu3 %v7374_v17  ;;  %v7021_v17 = vpop.eup %7020 }
 0x2e4   :  { %v6977_v22 = vld [vmem:[%s10465_s1 + $0xfdc] sm:$0xf]  ;;  %v6189_v30 = vor.u32 %v6913_v15, %v6186_v16  ;;  %4000 = vmatpush.bf16.msrb.mxu1 %v5933_v19  ;;  %v4167_v6 = vmul.f32 %v7021_v17, %v10253_v34  ;;  %v4177_v16 = vand.u32 2147483648, %v10253_v34  ;;  %vm4172_vm1 = vweird.f32 %v7021_v17 }
 0x2e5   :  { %v6442_v23 = vld [vmem:[%s10465_s1 + $0xff8] sm:$0xf0]  ;;  %vm4173_vm2 = vmor %vm4171_vm0, %vm4172_vm1 }
 0x2e6   :  { %v6777_v26 = vld [vmem:[%s10465_s1 + $0x99c] sm:$0xf]  ;;  %v6445_v35 = vor.u32 %v6977_v22, %v6442_v23  ;;  %4014 = vmatpush.bf16.msrb.mxu2 %v6189_v30  ;;  %v4168_v12 = vsub.f32 1.0, %v4167_v6  ;;  %v4175_v23 = vand.u32 2147483647, %v10253_v34 }
 0x2e7   :  { %v5642_v11 = vld [vmem:[%s10465_s1 + $0x9b8] sm:$0xf0] }
 0x2e8   :  { %v6841_v32 = vld [vmem:[%s10465_s1 + $0xb9c] sm:$0xf]  ;;  %v5645_v41 = vor.u32 %v6777_v26, %v5642_v11  ;;  %4028 = vmatpush.bf16.msrb.mxu3 %v6445_v35  ;;  %v4169_v22 = vmul.f32 %v7021_v17, %v4168_v12  ;;  %v7023_v35 = vpop.eup %7022  ;;  %vm4176_vm3 = vcmp.eq.f32.partialorder %v4175_v23, 8.507059e+37 }
 0x2e9   :  { %v5898_v33 = vld [vmem:[%s10465_s1 + $0xbb8] sm:$0xf0]  ;;  %vm4292_vm4 = vweird.f32 %v7023_v35 }
 0x2ea   :  { %v6905_v36 = vld [vmem:[%s10465_s1 + $0xd9c] sm:$0xf]  ;;  %v5901_v43 = vor.u32 %v6841_v32, %v5898_v33  ;;  %3987 = vmatpush.bf16.msrb.mxu0 %v5645_v41  ;;  %v4170_v28 = vadd.f32 %v7021_v17, %v4169_v22  ;;  %vm4293_vm6 = vmor %vm4291_vm5, %vm4292_vm4  ;;  %v3743_v22 = vpop.f32.mrf.mxu2 }
 0x2eb   :  { %v6154_v37 = vld [vmem:[%s10465_s1 + $0xdb8] sm:$0xf0] }
 0x2ec   :  { %v6969_v38 = vld [vmem:[%s10465_s1 + $0xf9c] sm:$0xf]  ;;  %v6157_v44 = vor.u32 %v6905_v36, %v6154_v37  ;;  %4001 = vmatpush.bf16.msrb.mxu1 %v5901_v43  ;;  %v4178_v36 = vor.u32 1.1754944e-38, %v4177_v16  ;;  %v4174_v41 = vsel %vm4173_vm2, %v7021_v17, %v4170_v28  ;;  %v4287_v43 = vmul.f32 %v7023_v35, %v10308_v63 }
 0x2ed   :  { %v6410_v40 = vld [vmem:[%s10465_s1 + $0xfb8] sm:$0xf0] }
 0x2ee   :  { %v6769_v27 = vld [vmem:[%s10465_s1 + $0x95c] sm:$0xf]  ;;  %v6413_v51 = vor.u32 %v6969_v38, %v6410_v40  ;;  %4015 = vmatpush.bf16.msrb.mxu2 %v6157_v44 }
 0x2ef   :  { %v5610_v45 = vld [vmem:[%s10465_s1 + $0x978] sm:$0xf0] }
 0x2f0   :  { %v6833_v48 = vld [vmem:[%s10465_s1 + $0xb5c] sm:$0xf]  ;;  %v5613_v55 = vor.u32 %v6769_v27, %v5610_v45  ;;  %4029 = vmatpush.bf16.msrb.mxu3 %v6413_v51  ;;  %v4179_v27 = vsel %vm4176_vm3, %v4178_v36, %v4174_v41 }
 0x2f1   :  { %v5866_v31 = vld [vmem:[%s10465_s1 + $0xb78] sm:$0xf0]  ;;  %4350 = vst [vmem:[%s10468_s3 + $0x20] sm:$0xff] %v4179_v27 }
 0x2f2   :  { %v6897_v53 = vld [vmem:[%s10465_s1 + $0xd5c] sm:$0xf]  ;;  %v5869_v60 = vor.u32 %v6833_v48, %v5866_v31  ;;  %3988 = vmatpush.bf16.msrb.mxu0 %v5613_v55  ;;  %v4288_v31 = vsub.f32 1.0, %v4287_v43 }
 0x2f3   :  { %v6122_v54 = vld [vmem:[%s10465_s1 + $0xd78] sm:$0xf0] }
 0x2f4   :  { %v6961_v39 = vld [vmem:[%s10465_s1 + $0xf5c] sm:$0xf]  ;;  %v6125_v61 = vor.u32 %v6897_v53, %v6122_v54  ;;  %4002 = vmatpush.bf16.msrb.mxu1 %v5869_v60 }
 0x2f5   :  { %v6378_v1 = vld [vmem:[%s10465_s1 + $0xf78] sm:$0xf0] }
 0x2f6   :  { %v6761_v56 = vld [vmem:[%s10465_s1 + $0x91c] sm:$0xf]  ;;  %v6381_v3 = vor.u32 %v6961_v39, %v6378_v1  ;;  %4016 = vmatpush.bf16.msrb.mxu2 %v6125_v61  ;;  %v3715_v39 = vpop.f32.mrf.mxu0 }
 0x2f7   :  { %v5578_v62 = vld [vmem:[%s10465_s1 + $0x938] sm:$0xf0] }
 0x2f8   :  { %v6825_v58 = vld [vmem:[%s10465_s1 + $0xb1c] sm:$0xf]  ;;  %v5581_v8 = vor.u32 %v6761_v56, %v5578_v62  ;;  %4030 = vmatpush.bf16.msrb.mxu3 %v6381_v3  ;;  %v4297_v56 = vand.u32 2147483648, %v10308_v63  ;;  %v3729_v62 = vpop.f32.mrf.mxu1 }
 0x2f9   :  { %v5834_v10 = vld [vmem:[%s10465_s1 + $0xb38] sm:$0xf0] }
 0x2fa   :  { %v6889_v4 = vld [vmem:[%s10465_s1 + $0xd1c] sm:$0xf]  ;;  %v5837_v13 = vor.u32 %v6825_v58, %v5834_v10  ;;  %3989 = vmatpush.bf16.msrb.mxu0 %v5581_v8  ;;  %v4289_v58 = vmul.f32 %v7023_v35, %v4288_v31  ;;  %v4295_v10 = vand.u32 2147483647, %v10308_v63  ;;  %v4298_v12 = vor.u32 1.1754944e-38, %v4297_v56 }
 0x2fb   :  { %v6090_v5 = vld [vmem:[%s10465_s1 + $0xd38] sm:$0xf0]  ;;  %v3716_v63 = vadd.f32 %v3715_v39, %v8281_v0 }
 0x2fc   :  { %v6953_v52 = vld [vmem:[%s10465_s1 + $0xf1c] sm:$0xf]  ;;  %v6093_v14 = vor.u32 %v6889_v4, %v6090_v5  ;;  %4003 = vmatpush.bf16.msrb.mxu1 %v5837_v13  ;;  %v4290_v6 = vadd.f32 %v7023_v35, %v4289_v58  ;;  %vm4296_vm7 = vcmp.eq.f32.partialorder %v4295_v10, 8.507059e+37 }
 0x2fd   :  { %v6346_v7 = vld [vmem:[%s10465_s1 + $0xf38] sm:$0xf0] }
 0x2fe   :  { %v6753_v59 = vld [vmem:[%s10465_s1 + $0x8dc] sm:$0xf]  ;;  %v6349_v18 = vor.u32 %v6953_v52, %v6346_v7  ;;  %4017 = vmatpush.bf16.msrb.mxu2 %v6093_v14  ;;  %v3717_v28 = vpop.f32.mrf.mxu0 }
 0x2ff   :  { %v5546_v9 = vld [vmem:[%s10465_s1 + $0x8f8] sm:$0xf0] }
 0x300   :  { %v6817_v2 = vld [vmem:[%s10465_s1 + $0xadc] sm:$0xf]  ;;  %v5549_v26 = vor.u32 %v6753_v59, %v5546_v9  ;;  %4031 = vmatpush.bf16.msrb.mxu3 %v6349_v18 }
 0x301   :  { %v5802_v15 = vld [vmem:[%s10465_s1 + $0xaf8] sm:$0xf0] }
 0x302   :  { %v6881_v20 = vld [vmem:[%s10465_s1 + $0xcdc] sm:$0xf]  ;;  %v5805_v29 = vor.u32 %v6817_v2, %v5802_v15  ;;  %3990 = vmatpush.bf16.msrb.mxu0 %v5549_v26  ;;  %v4294_v15 = vsel %vm4293_vm6, %v7023_v35, %v4290_v6  ;;  %v3730_v26 = vadd.f32 %v3729_v62, %v3716_v63 }
 0x303   :  { %v6058_v21 = vld [vmem:[%s10465_s1 + $0xcf8] sm:$0xf0] }
 0x304   :  { %v6945_v24 = vld [vmem:[%s10465_s1 + $0xedc] sm:$0xf]  ;;  %v6061_v19 = vor.u32 %v6881_v20, %v6058_v21  ;;  %4004 = vmatpush.bf16.msrb.mxu1 %v5805_v29  ;;  %v4299_v20 = vsel %vm4296_vm7, %v4298_v12, %v4294_v15  ;;  %v3731_v29 = vpop.f32.mrf.mxu1 }
 0x305   :  { %v6314_v25 = vld [vmem:[%s10465_s1 + $0xef8] sm:$0xf0]  ;;  %4358 = vst [vmem:[%s10468_s3 + $0x60] sm:$0xff] %v4299_v20 }
 0x306   :  { %v6745_v11 = vld [vmem:[%s10465_s1 + $0x89c] sm:$0xf]  ;;  %v6317_v37 = vor.u32 %v6945_v24, %v6314_v25  ;;  %4018 = vmatpush.bf16.msrb.mxu2 %v6061_v19  ;;  %v3757_v25 = vpop.f32.mrf.mxu3  ;;  %v3744_v19 = vadd.f32 %v3743_v22, %v3730_v26 }
 0x307   :  { %v5514_v30 = vld [vmem:[%s10465_s1 + $0x8b8] sm:$0xf0] }
 0x308   :  { %v6809_v32 = vld [vmem:[%s10465_s1 + $0xa9c] sm:$0xf]  ;;  %v5517_v45 = vor.u32 %v6745_v11, %v5514_v30  ;;  %4032 = vmatpush.bf16.msrb.mxu3 %v6317_v37  ;;  %v3718_v30 = vadd.f32 %v3717_v28, %v8356_v49  ;;  %v3771_v37 = vpop.f32.mrf.mxu0 }
 0x309   :  { %v5770_v33 = vld [vmem:[%s10465_s1 + $0xab8] sm:$0xf0] }
 0x30a   :  { %v6873_v38 = vld [vmem:[%s10465_s1 + $0xc9c] sm:$0xf]  ;;  %v5773_v53 = vor.u32 %v6809_v32, %v5770_v33  ;;  %3991 = vmatpush.bf16.msrb.mxu0 %v5517_v45  ;;  %v3758_v32 = vadd.f32 %v3757_v25, %v3744_v19  ;;  %v3745_v33 = vpop.f32.mrf.mxu2  ;;  %v3732_v35 = vadd.f32 %v3731_v29, %v3718_v30 }
 0x30b   :  { %v6026_v40 = vld [vmem:[%s10465_s1 + $0xcb8] sm:$0xf0] }
 0x30c   :  { %v6937_v34 = vld [vmem:[%s10465_s1 + $0xe9c] sm:$0xf]  ;;  %v6029_v54 = vor.u32 %v6873_v38, %v6026_v40  ;;  %4005 = vmatpush.bf16.msrb.mxu1 %v5773_v53  ;;  %v3772_v38 = vadd.f32 %v3771_v37, %v3758_v32  ;;  %v3785_v40 = vpop.f32.mrf.mxu1  ;;  %v3746_v41 = vadd.f32 %v3745_v33, %v3732_v35 }
 0x30d   :  { %v6282_v44 = vld [vmem:[%s10465_s1 + $0xeb8] sm:$0xf0] }
 0x30e   :  { %v6737_v48 = vld [vmem:[%s10465_s1 + $0x85c] sm:$0xf]  ;;  %v6285_v57 = vor.u32 %v6937_v34, %v6282_v44  ;;  %4019 = vmatpush.bf16.msrb.mxu2 %v6029_v54  ;;  %v3759_v36 = vpop.f32.mrf.mxu3  ;;  %v3786_v43 = vadd.f32 %v3785_v40, %v3772_v38 }
 0x30f   :  { %v5482_v51 = vld [vmem:[%s10465_s1 + $0x878] sm:$0xf0]  ;;  %v3760_v34 = vadd.f32 %v3759_v36, %v3746_v41 }
 0x310   :  { %v6801_v1 = vld [vmem:[%s10465_s1 + $0xa5c] sm:$0xf]  ;;  %v5485_v4 = vor.u32 %v6737_v48, %v5482_v51  ;;  %4033 = vmatpush.bf16.msrb.mxu3 %v6285_v57  ;;  %v3773_v27 = vpop.f32.mrf.mxu0 }
 0x311   :  { %v5738_v55 = vld [vmem:[%s10465_s1 + $0xa78] sm:$0xf0]  ;;  %v3774_v48 = vadd.f32 %v3773_v27, %v3760_v34 }
 0x312   :  { %v6865_v60 = vld [vmem:[%s10465_s1 + $0xc5c] sm:$0xf]  ;;  %v5741_v52 = vor.u32 %v6801_v1, %v5738_v55  ;;  %3992 = vmatpush.bf16.msrb.mxu0 %v5485_v4  ;;  %v3799_v44 = vpop.f32.mrf.mxu2 }
 0x313   :  { %v5994_v61 = vld [vmem:[%s10465_s1 + $0xc78] sm:$0xf0] }
 0x314   :  { %v6929_v17 = vld [vmem:[%s10465_s1 + $0xe5c] sm:$0xf]  ;;  %v5997_v7 = vor.u32 %v6865_v60, %v5994_v61  ;;  %4006 = vmatpush.bf16.msrb.mxu1 %v5741_v52  ;;  %v3787_v51 = vpop.f32.mrf.mxu1 }
 0x315   :  { %v6250_v3 = vld [vmem:[%s10465_s1 + $0xe78] sm:$0xf0] }
 0x316   :  { %v6729_v5 = vld [vmem:[%s10465_s1 + $0x81c] sm:$0xf]  ;;  %v6253_v13 = vor.u32 %v6929_v17, %v6250_v3  ;;  %4020 = vmatpush.bf16.msrb.mxu2 %v5997_v7  ;;  %v3813_v45 = vpop.f32.mrf.mxu3 }
 0x317   :  { %v5450_v8 = vld [vmem:[%s10465_s1 + $0x838] sm:$0xf0] }
 0x318   :  { %v6793_v59 = vld [vmem:[%s10465_s1 + $0xa1c] sm:$0xf]  ;;  %v5453_v21 = vor.u32 %v6729_v5, %v5450_v8  ;;  %4034 = vmatpush.bf16.msrb.mxu3 %v6253_v13 }
 0x319   :  { %v5706_v9 = vld [vmem:[%s10465_s1 + $0xa38] sm:$0xf0] }
 0x31a   :  { %v6857_v14 = vld [vmem:[%s10465_s1 + $0xc1c] sm:$0xf]  ;;  %v5709_v23 = vor.u32 %v6793_v59, %v5706_v9  ;;  %3993 = vmatpush.bf16.msrb.mxu0 %v5453_v21  ;;  %v3801_v31 = vpop.f32.mrf.mxu2  ;;  %v3827_v9 = vpop.f32.mrf.mxu0 }
 0x31b   :  { %v5962_v2 = vld [vmem:[%s10465_s1 + $0xc38] sm:$0xf0] }
 0x31c   :  { %v6921_v16 = vld [vmem:[%s10465_s1 + $0xe1c] sm:$0xf]  ;;  %v5965_v24 = vor.u32 %v6857_v14, %v5962_v2  ;;  %4007 = vmatpush.bf16.msrb.mxu1 %v5709_v23  ;;  %v3841_v63 = vpop.f32.mrf.mxu1 }
 0x31d   :  { %v6218_v18 = vld [vmem:[%s10465_s1 + $0xe38] sm:$0xf0]  ;;  %3994 = vmatmul.bf16.vlgmr.msrb.gmra.mxu0 %v7552_v42  ;;  %v3800_v42 = vadd.f32 %v3799_v44, %v3786_v43 }
 0x31e   :  { %v6221_v11 = vor.u32 %v6921_v16, %v6218_v18  ;;  %4021 = vmatpush.bf16.msrb.mxu2 %v5965_v24  ;;  %v3815_v54 = vpop.f32.mrf.mxu3  ;;  %v3828_v16 = vadd.f32 %v3827_v9, %v8281_v0 }
 0x31f   :  { %4008 = vmatmul.bf16.vlgmr.msrb.gmra.mxu1 %v7565_v47  ;;  %v3814_v47 = vadd.f32 %v3813_v45, %v3800_v42 }
 0x320   :  { %4035 = vmatpush.bf16.msrb.mxu3 %v6221_v11  ;;  %v3842_v23 = vadd.f32 %v3841_v63, %v3828_v16 }
 0x321   :  { %4022 = vmatmul.bf16.vlgmr.msrb.gmra.mxu2 %v7563_v46  ;;  %v6451_v46 = vmul.f32 -1.442695, %v3814_v47 }
 0x322   :  { %v3855_v21 = vpop.f32.mrf.mxu2  ;;  %v3829_v24 = vpop.f32.mrf.mxu0 }
 0x323   :  { %4036 = vmatmul.bf16.vlgmr.msrb.gmra.mxu3 %v7573_v50  ;;  %7024 = vpow2.f32 %v6451_v46  ;;  %v3788_v50 = vadd.f32 %v3787_v51, %v3774_v48  ;;  %v3856_v26 = vadd.f32 %v3855_v21, %v3842_v23  ;;  %v3830_v11 = vadd.f32 %v3829_v24, %v8356_v49 }
 0x324   :  { %v3843_v25 = vpop.f32.mrf.mxu1 }
 0x325   :  { %v3802_v53 = vadd.f32 %v3801_v31, %v3788_v50  ;;  %v3844_v19 = vadd.f32 %v3843_v25, %v3830_v11 }
 0x326   :  { %v3869_v22 = vpop.f32.mrf.mxu3 }
 0x327   :  { %v3816_v39 = vadd.f32 %v3815_v54, %v3802_v53  ;;  %v3870_v28 = vadd.f32 %v3869_v22, %v3856_v26 }
 0x329   :  { %v7025_v1 = vpop.eup %7024  ;;  %v6459_v55 = vmul.f32 -1.442695, %v3816_v39 }
 0x32a   :  { %v4095_v56 = vadd.f32 1.0, %v7025_v1  ;;  %v3857_v29 = vpop.f32.mrf.mxu2 }
 0x32b   :  { %7026 = vpow2.f32 %v6459_v55  ;;  %v3858_v36 = vadd.f32 %v3857_v29, %v3844_v19 }
 0x32c   :  { %7028 = vrcp.f32 %v4095_v56  ;;  %v4192_v10 = vand.u32 2147483648, %v4095_v56  ;;  %vm4186_vm8 = vweird.f32 %v4095_v56  ;;  %v4190_v3 = vand.u32 2147483647, %v4095_v56 }
 0x32e   :  { %v4193_v6 = vor.u32 1.1754944e-38, %v4192_v10  ;;  %vm4191_vm11 = vcmp.eq.f32.partialorder %v4190_v3, 8.507059e+37  ;;  %v3871_v30 = vpop.f32.mrf.mxu3 }
 0x32f   :  { %v3872_v38 = vadd.f32 %v3871_v30, %v3858_v36 }
 0x331   :  { %v7027_v57 = vpop.eup %7026 }
 0x332   :  { %v7029_v60 = vpop.eup %7028  ;;  %v4103_v61 = vadd.f32 1.0, %v7027_v57 }
 0x333   :  { %v4182_v62 = vmul.f32 %v7029_v60, %v4095_v56  ;;  %vm4187_vm9 = vweird.f32 %v7029_v60 }
 0x334   :  { %7030 = vrcp.f32 %v4103_v61  ;;  %vm4188_vm10 = vmor %vm4186_vm8, %vm4187_vm9  ;;  %v4312_v12 = vand.u32 2147483648, %v4103_v61  ;;  %v4310_v14 = vand.u32 2147483647, %v4103_v61  ;;  %vm4306_vm13 = vweird.f32 %v4103_v61 }
 0x335   :  { %v4183_v58 = vsub.f32 1.0, %v4182_v62 }
 0x336   :  { %v4313_v15 = vor.u32 1.1754944e-38, %v4312_v12  ;;  %vm4311_vm15 = vcmp.eq.f32.partialorder %v4310_v14, 8.507059e+37 }
 0x337   :  { %v4184_v17 = vmul.f32 %v7029_v60, %v4183_v58 }
 0x339   :  { %v4185_v4 = vadd.f32 %v7029_v60, %v4184_v17  ;;  %v3883_v32 = vpop.f32.mrf.mxu0 }
 0x33a   :  { %v7031_v5 = vpop.eup %7030  ;;  %v3884_v33 = vadd.f32 %v3883_v32, %v3870_v28 }
 0x33b   :  { %v4189_v52 = vsel %vm4188_vm10, %v7029_v60, %v4185_v4  ;;  %v4302_v7 = vmul.f32 %v7031_v5, %v4103_v61  ;;  %vm4307_vm12 = vweird.f32 %v7031_v5  ;;  %v3897_v35 = vpop.f32.mrf.mxu1 }
 0x33c   :  { %v4194_v8 = vsel %vm4191_vm11, %v4193_v6, %v4189_v52  ;;  %vm4308_vm14 = vmor %vm4306_vm13, %vm4307_vm12  ;;  %v3898_v37 = vadd.f32 %v3897_v35, %v3884_v33 }
 0x33d   :  { %4351 = vst [vmem:[%s10468_s3 + $0x28] sm:$0xff] %v4194_v8  ;;  %v4303_v59 = vsub.f32 1.0, %v4302_v7 }
 0x33f   :  { %v4304_v13 = vmul.f32 %v7031_v5, %v4303_v59 }
 0x341   :  { %v4305_v2 = vadd.f32 %v7031_v5, %v4304_v13  ;;  %v3885_v43 = vpop.f32.mrf.mxu0 }
 0x342   :  { %v3886_v44 = vadd.f32 %v3885_v43, %v3872_v38 }
 0x343   :  { %v4309_v18 = vsel %vm4308_vm14, %v7031_v5, %v4305_v2  ;;  %v3911_v40 = vpop.f32.mrf.mxu2  ;;  %v3899_v27 = vpop.f32.mrf.mxu1 }
 0x344   :  { %v4314_v20 = vsel %vm4311_vm15, %v4313_v15, %v4309_v18  ;;  %v3912_v41 = vadd.f32 %v3911_v40, %v3898_v37  ;;  %v3900_v48 = vadd.f32 %v3899_v27, %v3886_v44 }
 0x345   :  { %4359 = vst [vmem:[%s10468_s3 + $0x68] sm:$0xff] %v4314_v20  ;;  %v3925_v34 = vpop.f32.mrf.mxu3 }
 0x346   :  { %v3926_v42 = vadd.f32 %v3925_v34, %v3912_v41 }
 0x348   :  { %v6452_v45 = vmul.f32 -1.442695, %v3926_v42 }
 0x34a   :  { %7032 = vpow2.f32 %v6452_v45 }
 0x34b   :  { %v3913_v47 = vpop.f32.mrf.mxu2 }
 0x34c   :  { %v3914_v51 = vadd.f32 %v3913_v47, %v3900_v48 }
 0x34d   :  { %v3927_v46 = vpop.f32.mrf.mxu3 }
 0x34e   :  { %v3928_v50 = vadd.f32 %v3927_v46, %v3914_v51 }
 0x350   :  { %v7033_v31 = vpop.eup %7032  ;;  %v6460_v53 = vmul.f32 -1.442695, %v3928_v50 }
 0x351   :  { %v4096_v54 = vadd.f32 1.0, %v7033_v31 }
 0x352   :  { %7034 = vpow2.f32 %v6460_v53 }
 0x353   :  { %7036 = vrcp.f32 %v4096_v54  ;;  %v4207_v60 = vand.u32 2147483648, %v4096_v54  ;;  %vm4201_vm0 = vweird.f32 %v4096_v54  ;;  %v4205_v62 = vand.u32 2147483647, %v4096_v54 }
 0x355   :  { %v4208_v17 = vor.u32 1.1754944e-38, %v4207_v60  ;;  %vm4206_vm3 = vcmp.eq.f32.partialorder %v4205_v62, 8.507059e+37 }
 0x358   :  { %v7035_v39 = vpop.eup %7034 }
 0x359   :  { %v7037_v1 = vpop.eup %7036  ;;  %v4104_v55 = vadd.f32 1.0, %v7035_v39 }
 0x35a   :  { %v4197_v56 = vmul.f32 %v7037_v1, %v4096_v54  ;;  %vm4202_vm1 = vweird.f32 %v7037_v1  ;;  %v3939_v7 = vpop.f32.mrf.mxu0 }
 0x35b   :  { %7038 = vrcp.f32 %v4104_v55  ;;  %vm4203_vm2 = vmor %vm4201_vm0, %vm4202_vm1  ;;  %v4327_v52 = vand.u32 2147483648, %v4104_v55  ;;  %v4325_v59 = vand.u32 2147483647, %v4104_v55  ;;  %vm4321_vm5 = vweird.f32 %v4104_v55 }
 0x35c   :  { %v4198_v57 = vsub.f32 1.0, %v4197_v56  ;;  %v3953_v12 = vpop.f32.mrf.mxu1  ;;  %v3940_v2 = vadd.f32 %v3939_v7, %v8281_v0 }
 0x35d   :  { %v4328_v63 = vor.u32 1.1754944e-38, %v4327_v52  ;;  %vm4326_vm7 = vcmp.eq.f32.partialorder %v4325_v59, 8.507059e+37 }
 0x35e   :  { %v4199_v61 = vmul.f32 %v7037_v1, %v4198_v57  ;;  %v3954_v18 = vadd.f32 %v3953_v12, %v3940_v2 }
 0x360   :  { %v4200_v58 = vadd.f32 %v7037_v1, %v4199_v61 }
 0x361   :  { %v7039_v10 = vpop.eup %7038 }
 0x362   :  { %v4204_v3 = vsel %vm4203_vm2, %v7037_v1, %v4200_v58  ;;  %v4317_v4 = vmul.f32 %v7039_v10, %v4104_v55  ;;  %vm4322_vm4 = vweird.f32 %v7039_v10  ;;  %v3941_v20 = vpop.f32.mrf.mxu0 }
 0x363   :  { %v4209_v5 = vsel %vm4206_vm3, %v4208_v17, %v4204_v3  ;;  %vm4323_vm6 = vmor %vm4321_vm5, %vm4322_vm4  ;;  %v3942_v23 = vadd.f32 %v3941_v20, %v8356_v49 }
 0x364   :  { %4352 = vst [vmem:[%s10468_s3 + $0x30] sm:$0xff] %v4209_v5  ;;  %v4318_v6 = vsub.f32 1.0, %v4317_v4  ;;  %v3967_v15 = vpop.f32.mrf.mxu2  ;;  %v3955_v21 = vpop.f32.mrf.mxu1 }
 0x365   :  { %v3968_v22 = vadd.f32 %v3967_v15, %v3954_v18  ;;  %v3956_v26 = vadd.f32 %v3955_v21, %v3942_v23 }
 0x366   :  { %v4319_v8 = vmul.f32 %v7039_v10, %v4318_v6  ;;  %v3981_v16 = vpop.f32.mrf.mxu3 }
 0x367   :  { %v3982_v25 = vadd.f32 %v3981_v16, %v3968_v22 }
 0x368   :  { %v4320_v9 = vadd.f32 %v7039_v10, %v4319_v8 }
 0x36a   :  { %v4324_v13 = vsel %vm4323_vm6, %v7039_v10, %v4320_v9 }
 0x36b   :  { %v4329_v14 = vsel %vm4326_vm7, %v4328_v63, %v4324_v13 }
 0x36c   :  { %4360 = vst [vmem:[%s10468_s3 + $0x70] sm:$0xff] %v4329_v14  ;;  %v3969_v24 = vpop.f32.mrf.mxu2 }
 0x36d   :  { %v3970_v0 = vadd.f32 %v3969_v24, %v3956_v26 }
 0x36e   :  { %v3983_v11 = vpop.f32.mrf.mxu3 }
 0x36f   :  { %v3984_v33 = vadd.f32 %v3983_v11, %v3970_v0 }
 0x39a   :  { %v3995_v28 = vpop.f32.mrf.mxu0 }
 0x39b   :  { %v3996_v29 = vadd.f32 %v3995_v28, %v3982_v25 }
 0x39c   :  { %v4009_v19 = vpop.f32.mrf.mxu1 }
 0x39d   :  { %v4010_v30 = vadd.f32 %v4009_v19, %v3996_v29 }
 0x3a2   :  { %v3997_v37 = vpop.f32.mrf.mxu0 }
 0x3a3   :  { %v3998_v40 = vadd.f32 %v3997_v37, %v3984_v33 }
 0x3a4   :  { %v4023_v32 = vpop.f32.mrf.mxu2  ;;  %v4011_v43 = vpop.f32.mrf.mxu1 }
 0x3a5   :  { %v4024_v35 = vadd.f32 %v4023_v32, %v4010_v30  ;;  %v4012_v49 = vadd.f32 %v4011_v43, %v3998_v40 }
 0x3a6   :  { %v4037_v36 = vpop.f32.mrf.mxu3 }
 0x3a7   :  { %v4038_v38 = vadd.f32 %v4037_v36, %v4024_v35 }
 0x3a9   :  { %v6453_v41 = vmul.f32 -1.442695, %v4038_v38 }
 0x3ab   :  { %7040 = vpow2.f32 %v6453_v41 }
 0x3ac   :  { %v4025_v34 = vpop.f32.mrf.mxu2 }
 0x3ad   :  { %v4026_v44 = vadd.f32 %v4025_v34, %v4012_v49 }
 0x3ae   :  { %v4039_v42 = vpop.f32.mrf.mxu3 }
 0x3af   :  { %v4040_v27 = vadd.f32 %v4039_v42, %v4026_v44 }
 0x3b1   :  { %v7041_v45 = vpop.eup %7040  ;;  %v6461_v48 = vmul.f32 -1.442695, %v4040_v27 }
 0x3b2   :  { %v4097_v47 = vadd.f32 1.0, %v7041_v45 }
 0x3b3   :  { %7042 = vpow2.f32 %v6461_v48 }
 0x3b4   :  { %7044 = vrcp.f32 %v4097_v47  ;;  %v4222_v54 = vand.u32 2147483648, %v4097_v47  ;;  %v4220_v1 = vand.u32 2147483647, %v4097_v47  ;;  %vm4216_vm9 = vweird.f32 %v4097_v47 }
 0x3b6   :  { %v4223_v57 = vor.u32 1.1754944e-38, %v4222_v54  ;;  %vm4221_vm11 = vcmp.eq.f32.partialorder %v4220_v1, 8.507059e+37 }
 0x3b9   :  { %v7043_v51 = vpop.eup %7042 }
 0x3ba   :  { %v7045_v46 = vpop.eup %7044  ;;  %v4105_v50 = vadd.f32 1.0, %v7043_v51 }
 0x3bb   :  { %v4212_v31 = vmul.f32 %v7045_v46, %v4097_v47  ;;  %vm4217_vm8 = vweird.f32 %v7045_v46 }
 0x3bc   :  { %7046 = vrcp.f32 %v4105_v50  ;;  %vm4218_vm10 = vmor %vm4216_vm9, %vm4217_vm8  ;;  %v4342_v10 = vand.u32 2147483648, %v4105_v50  ;;  %v4340_v3 = vand.u32 2147483647, %v4105_v50  ;;  %vm4336_vm13 = vweird.f32 %v4105_v50 }
 0x3bd   :  { %v4213_v53 = vsub.f32 1.0, %v4212_v31 }
 0x3be   :  { %v4343_v5 = vor.u32 1.1754944e-38, %v4342_v10  ;;  %vm4341_vm15 = vcmp.eq.f32.partialorder %v4340_v3, 8.507059e+37 }
 0x3bf   :  { %v4214_v39 = vmul.f32 %v7045_v46, %v4213_v53 }
 0x3c1   :  { %v4215_v55 = vadd.f32 %v7045_v46, %v4214_v39 }
 0x3c2   :  { %v7047_v56 = vpop.eup %7046 }
 0x3c3   :  { %v4219_v60 = vsel %vm4218_vm10, %v7045_v46, %v4215_v55  ;;  %v4332_v61 = vmul.f32 %v7047_v56, %v4105_v50  ;;  %vm4337_vm12 = vweird.f32 %v7047_v56 }
 0x3c4   :  { %v4224_v62 = vsel %vm4221_vm11, %v4223_v57, %v4219_v60  ;;  %vm4338_vm14 = vmor %vm4336_vm13, %vm4337_vm12 }
 0x3c5   :  { %4353 = vst [vmem:[%s10468_s3 + $0x38] sm:$0xff] %v4224_v62  ;;  %v4333_v58 = vsub.f32 1.0, %v4332_v61 }
 0x3c7   :  { %v4334_v17 = vmul.f32 %v7047_v56, %v4333_v58 }
 0x3c9   :  { %v4335_v4 = vadd.f32 %v7047_v56, %v4334_v17 }
 0x3cb   :  { %v4339_v6 = vsel %vm4338_vm14, %v7047_v56, %v4335_v4 }
 0x3cc   :  { %v4344_v52 = vsel %vm4341_vm15, %v4343_v5, %v4339_v6 }
 0x3cd   :  { %4361 = vst [vmem:[%s10468_s3 + $0x78] sm:$0xff] %v4344_v52 }

</bundles_post_ra>
